<compile_context>
chip_gen: v6e
topology: v6e:2x2x1
jax: 0.10.0
libtpu: 0.0.40
codegen_flags: <defaults>
</compile_context>

<pallas_src>
import functools
import math

import jax
import jax.numpy as jnp
from jax.experimental import pallas as pl
from jax.experimental.pallas import tpu as pltpu


_VMEM_LIMIT = 32 * 1024 * 1024  # conservative scoped-VMEM cap (fits v5e/v6e/v7x)


def _cparams(n_axes=1):
    return pltpu.CompilerParams(
        dimension_semantics=("parallel",) * n_axes,
        vmem_limit_bytes=_VMEM_LIMIT)


def _row_tile(m, target=1024):
    # block (tm, C): tm must be a multiple of 8 or equal to M; 1024 % 8 == 0.
    return m if m <= target else target


def _i_tile(i, target=64):
    return i if i <= target else target


def _sigmoid(x):
    # explicit form (exp -> EUP slot); f32 math.
    return 1.0 / (1.0 + jnp.exp(-x))


def _layernorm(x, g, b, eps=1e-5):
    mu = jnp.mean(x, axis=-1, keepdims=True)
    var = jnp.mean(jnp.square(x - mu), axis=-1, keepdims=True)
    return (x - mu) * jax.lax.rsqrt(var + eps) * g + b


# ------------------------------ Kernels --------------------------------------


def _tri_gate_kernel(p_ref, mask_ref, lng_ref, lnb_ref, w_ref, b_ref,
                     a_ref, b_out_ref, g_ref, *, c_hidden):
    """LN + fused [a_g|a_p|b_g|b_p|g] matmul + sigmoid + mask.  Outputs a,b (bf16), g (f32)."""
    x = p_ref[...]
    z = _layernorm(x, lng_ref[...], lnb_ref[...])
    proj = jnp.dot(z.astype(jnp.bfloat16), w_ref[...],
                   preferred_element_type=jnp.float32) + b_ref[...]
    m = mask_ref[...]                                    # [TM, 1]
    ch = c_hidden
    ag = proj[:, 0 * ch:1 * ch]
    ap = proj[:, 1 * ch:2 * ch]
    bg = proj[:, 2 * ch:3 * ch]
    bp = proj[:, 3 * ch:4 * ch]
    gg = proj[:, 4 * ch:]
    a_ref[...] = (m * _sigmoid(ag) * ap).astype(jnp.bfloat16)
    b_out_ref[...] = (m * _sigmoid(bg) * bp).astype(jnp.bfloat16)
    g_ref[...] = _sigmoid(gg)


def _tri_matmul_kernel(a_ref, b_ref, o_ref):
    """Batched per-channel matmul: o[c] = a[c] @ b[c]  (bf16 in, f32 out)."""
    o_ref[...] = jnp.einsum("cik,ckj->cij", a_ref[...], b_ref[...],
                            preferred_element_type=jnp.float32)


def _tri_tail_kernel(x_ref, g_ref, p_ref, lng_ref, lnb_ref, wz_ref, bz_ref, o_ref):
    """out = p + (LN(x) @ W_z + b_z) * g   (residual + gating fused)."""
    xn = _layernorm(x_ref[...], lng_ref[...], lnb_ref[...])
    proj = jnp.dot(xn.astype(jnp.bfloat16), wz_ref[...],
                   preferred_element_type=jnp.float32) + bz_ref[...]
    o_ref[...] = p_ref[...] + proj * g_ref[...]


def _att_proj_kernel(p_ref, lng_ref, lnb_ref, w_ref, bg_ref,
                     q_ref, k_ref, v_ref, g_ref, t_ref, *, hc):
    """LN + fused [q|k|v|g|tri] matmul.  q/k/v bf16, g sigmoid'd f32, tri f32."""
    z = _layernorm(p_ref[...], lng_ref[...], lnb_ref[...])
    proj = jnp.dot(z.astype(jnp.bfloat16), w_ref[...],
                   preferred_element_type=jnp.float32)
    q_ref[...] = proj[:, 0 * hc:1 * hc].astype(jnp.bfloat16)
    k_ref[...] = proj[:, 1 * hc:2 * hc].astype(jnp.bfloat16)
    v_ref[...] = proj[:, 2 * hc:3 * hc].astype(jnp.bfloat16)
    g_ref[...] = _sigmoid(proj[:, 3 * hc:4 * hc] + bg_ref[...])
    t_ref[...] = proj[:, 4 * hc:]


def _att_kernel(q_ref, k_ref, v_ref, g_ref, mask_ref, tri_ref, wo_ref, bo_ref,
                p_ref, o_ref, *, n_head, c_hidden, scale, inf):
    """Multi-head attention for a block of TI rows; all heads per step.

    Bias = inf*(mask-1) + triangle_bias[h] is built in-kernel (never materialized in HBM).
    Gating, output projection and the residual add are fused into the epilogue.
    """
    ti, jj, _ = q_ref.shape
    c_p = o_ref.shape[-1]
    q = q_ref[...]                                   # bf16 [ti, J, H*ch]
    k = k_ref[...]
    v = v_ref[...]
    g = g_ref[...]                                   # f32
    wo = wo_ref[...]                                 # bf16 [H*ch, c_p]
    mask_bias = inf * (mask_ref[...] - 1.0)          # f32 [ti, J]

    acc = jnp.zeros((ti * jj, c_p), jnp.float32)
    for h in range(n_head):
        lo = h * c_hidden
        hi = lo + c_hidden
        qh = q[:, :, lo:hi]
        kh = k[:, :, lo:hi]
        vh = v[:, :, lo:hi]
        logits = jnp.einsum("tqc,tkc->tqk", qh, kh,
                            preferred_element_type=jnp.float32) * scale
        logits = logits + mask_bias[:, None, :] + tri_ref[h][None, :, :]
        mmax = jnp.max(logits, axis=-1, keepdims=True)
        pexp = jnp.exp(logits - mmax)
        denom = jnp.sum(pexp, axis=-1, keepdims=True)
        probs = pexp * pl.reciprocal(denom, approx=True)
        oh = jnp.einsum("tqk,tkc->tqc", probs.astype(jnp.bfloat16), vh,
                        preferred_element_type=jnp.float32)
        oh = oh * g[:, :, lo:hi]                     # per-head gate
        acc = acc + jnp.dot(oh.reshape(ti * jj, c_hidden).astype(jnp.bfloat16),
                            wo[lo:hi, :], preferred_element_type=jnp.float32)
    out = acc + bo_ref[...]
    o_ref[...] = p_ref[...] + out.reshape(ti, jj, c_p)


def _transition_kernel(p_ref, mask_ref, lng_ref, lnb_ref, w1_ref, b1_ref,
                       w2_ref, b2_ref, o_ref):
    """out = (p + (relu(LN(p)@W1+b1)@W2+b2)*mask) * mask  (residual + final mask fused)."""
    x = p_ref[...]
    z = _layernorm(x, lng_ref[...], lnb_ref[...])
    h = jnp.dot(z.astype(jnp.bfloat16), w1_ref[...],
                preferred_element_type=jnp.float32) + b1_ref[...]
    h = jnp.maximum(h, 0.0)
    t = jnp.dot(h.astype(jnp.bfloat16), w2_ref[...],
                preferred_element_type=jnp.float32) + b2_ref[...]
    m = mask_ref[...]
    o_ref[...] = (x + t * m) * m


# --------------------------- pallas_call wrappers -----------------------------


def _tri_gates(p2, mask2, lng, lnb, w_cat, b_cat, c_hidden, c_p):
    m_rows = p2.shape[0]
    tm = _row_tile(m_rows)
    wdim = w_cat.shape[1]
    kernel = functools.partial(_tri_gate_kernel, c_hidden=c_hidden)
    return pl.pallas_call(
        kernel,
        out_shape=(jax.ShapeDtypeStruct((m_rows, c_hidden), jnp.bfloat16),
                   jax.ShapeDtypeStruct((m_rows, c_hidden), jnp.bfloat16),
                   jax.ShapeDtypeStruct((m_rows, c_p), jnp.float32)),
        grid=(pl.cdiv(m_rows, tm),),
        in_specs=[pl.BlockSpec((tm, c_p), lambda i: (i, 0)),
                  pl.BlockSpec((tm, 1), lambda i: (i, 0)),
                  pl.BlockSpec((1, c_p), lambda i: (0, 0)),
                  pl.BlockSpec((1, c_p), lambda i: (0, 0)),
                  pl.BlockSpec((c_p, wdim), lambda i: (0, 0)),
                  pl.BlockSpec((1, wdim), lambda i: (0, 0))],
        out_specs=(pl.BlockSpec((tm, c_hidden), lambda i: (i, 0)),
                   pl.BlockSpec((tm, c_hidden), lambda i: (i, 0)),
                   pl.BlockSpec((tm, c_p), lambda i: (i, 0))),
        compiler_params=_cparams(),
    )(p2, mask2, lng, lnb, w_cat, b_cat)


def _tri_matmul(a_t, b_t):
    c, ii, kk = a_t.shape
    jj = b_t.shape[2]
    ti = _i_tile(ii)
    return pl.pallas_call(
        _tri_matmul_kernel,
        out_shape=jax.ShapeDtypeStruct((c, ii, jj), jnp.float32),
        grid=(pl.cdiv(ii, ti),),
        in_specs=[pl.BlockSpec((c, ti, kk), lambda i: (0, i, 0)),
                  pl.BlockSpec((c, kk, jj), lambda i: (0, 0, 0))],
        out_specs=pl.BlockSpec((c, ti, jj), lambda i: (0, i, 0)),
        compiler_params=_cparams(),
    )(a_t, b_t)


def _tri_tail(x2, g2, p2, lng, lnb, wz, bz, c_hidden, c_p):
    m_rows = x2.shape[0]
    tm = _row_tile(m_rows)
    return pl.pallas_call(
        _tri_tail_kernel,
        out_shape=jax.ShapeDtypeStruct((m_rows, c_p), jnp.float32),
        grid=(pl.cdiv(m_rows, tm),),
        in_specs=[pl.BlockSpec((tm, c_hidden), lambda i: (i, 0)),
                  pl.BlockSpec((tm, c_p), lambda i: (i, 0)),
                  pl.BlockSpec((tm, c_p), lambda i: (i, 0)),
                  pl.BlockSpec((1, c_hidden), lambda i: (0, 0)),
                  pl.BlockSpec((1, c_hidden), lambda i: (0, 0)),
                  pl.BlockSpec((c_hidden, c_p), lambda i: (0, 0)),
                  pl.BlockSpec((1, c_p), lambda i: (0, 0))],
        out_specs=pl.BlockSpec((tm, c_p), lambda i: (i, 0)),
        compiler_params=_cparams(),
    )(x2, g2, p2, lng, lnb, wz, bz)


def _att_proj(p2, lng, lnb, w_cat, bg, hc, n_head, c_p):
    m_rows = p2.shape[0]
    tm = _row_tile(m_rows)
    wdim = w_cat.shape[1]
    kernel = functools.partial(_att_proj_kernel, hc=hc)
    return pl.pallas_call(
        kernel,
        out_shape=(jax.ShapeDtypeStruct((m_rows, hc), jnp.bfloat16),
                   jax.ShapeDtypeStruct((m_rows, hc), jnp.bfloat16),
                   jax.ShapeDtypeStruct((m_rows, hc), jnp.bfloat16),
                   jax.ShapeDtypeStruct((m_rows, hc), jnp.float32),
                   jax.ShapeDtypeStruct((m_rows, n_head), jnp.float32)),
        grid=(pl.cdiv(m_rows, tm),),
        in_specs=[pl.BlockSpec((tm, c_p), lambda i: (i, 0)),
                  pl.BlockSpec((1, c_p), lambda i: (0, 0)),
                  pl.BlockSpec((1, c_p), lambda i: (0, 0)),
                  pl.BlockSpec((c_p, wdim), lambda i: (0, 0)),
                  pl.BlockSpec((1, hc), lambda i: (0, 0))],
        out_specs=(pl.BlockSpec((tm, hc), lambda i: (i, 0)),
                   pl.BlockSpec((tm, hc), lambda i: (i, 0)),
                   pl.BlockSpec((tm, hc), lambda i: (i, 0)),
                   pl.BlockSpec((tm, hc), lambda i: (i, 0)),
                   pl.BlockSpec((tm, n_head), lambda i: (i, 0))),
        compiler_params=_cparams(),
    )(p2, lng, lnb, w_cat, bg)


def _attention(q3, k3, v3, g3, mask, tri_b, wo, bo, p3, *, n_head, c_hidden, inf):
    ii, jj, hc = q3.shape
    c_p = p3.shape[-1]
    ti = _i_tile(ii)
    kernel = functools.partial(_att_kernel, n_head=n_head, c_hidden=c_hidden,
                               scale=1.0 / math.sqrt(c_hidden), inf=inf)
    return pl.pallas_call(
        kernel,
        out_shape=jax.ShapeDtypeStruct((ii, jj, c_p), jnp.float32),
        grid=(pl.cdiv(ii, ti),),
        in_specs=[pl.BlockSpec((ti, jj, hc), lambda i: (i, 0, 0)),     # q
                  pl.BlockSpec((ti, jj, hc), lambda i: (i, 0, 0)),     # k
                  pl.BlockSpec((ti, jj, hc), lambda i: (i, 0, 0)),     # v
                  pl.BlockSpec((ti, jj, hc), lambda i: (i, 0, 0)),     # g
                  pl.BlockSpec((ti, jj), lambda i: (i, 0)),            # mask
                  pl.BlockSpec((n_head, jj, jj), lambda i: (0, 0, 0)), # tri bias (pinned)
                  pl.BlockSpec((hc, c_p), lambda i: (0, 0)),           # W_o
                  pl.BlockSpec((1, c_p), lambda i: (0, 0)),            # b_o
                  pl.BlockSpec((ti, jj, c_p), lambda i: (i, 0, 0))],   # residual p
        out_specs=pl.BlockSpec((ti, jj, c_p), lambda i: (i, 0, 0)),
        compiler_params=_cparams(),
    )(q3, k3, v3, g3, mask, tri_b, wo, bo, p3)


def _pair_transition(p2, mask2, lng, lnb, w1, b1, w2, b2, c_p):
    m_rows = p2.shape[0]
    hdim = w1.shape[1]
    tm = _row_tile(m_rows)
    return pl.pallas_call(
        _transition_kernel,
        out_shape=jax.ShapeDtypeStruct((m_rows, c_p), jnp.float32),
        grid=(pl.cdiv(m_rows, tm),),
        in_specs=[pl.BlockSpec((tm, c_p), lambda i: (i, 0)),
                  pl.BlockSpec((tm, 1), lambda i: (i, 0)),
                  pl.BlockSpec((1, c_p), lambda i: (0, 0)),
                  pl.BlockSpec((1, c_p), lambda i: (0, 0)),
                  pl.BlockSpec((c_p, hdim), lambda i: (0, 0)),
                  pl.BlockSpec((1, hdim), lambda i: (0, 0)),
                  pl.BlockSpec((hdim, c_p), lambda i: (0, 0)),
                  pl.BlockSpec((1, c_p), lambda i: (0, 0))],
        out_specs=pl.BlockSpec((tm, c_p), lambda i: (i, 0)),
        compiler_params=_cparams(),
    )(p2, mask2, lng, lnb, w1, b1, w2, b2)


# ----------------------------- Module forward ---------------------------------


def triangle_multiplication(p, mask, params, *, outgoing):
    """TriangleMultiplicationOutgoing / Incoming, residual add fused into the tail kernel."""
    ii, jj, c_p = p.shape
    ch = params["a_p"]["w"].shape[1]
    p2 = p.reshape(ii * jj, c_p)
    mask2 = mask.reshape(ii * jj, 1)

    w_cat = jnp.concatenate(
        [params["a_g"]["w"], params["a_p"]["w"],
         params["b_g"]["w"], params["b_p"]["w"], params["g"]["w"]],
        axis=1).astype(jnp.bfloat16)
    b_cat = jnp.concatenate(
        [params["a_g"]["b"], params["a_p"]["b"],
         params["b_g"]["b"], params["b_p"]["b"], params["g"]["b"]],
        axis=0).reshape(1, -1)

    a2, b2, g2 = _tri_gates(p2, mask2,
                            params["ln_in"]["g"].reshape(1, c_p),
                            params["ln_in"]["b"].reshape(1, c_p),
                            w_cat, b_cat, ch, c_p)
    a3 = a2.reshape(ii, jj, ch)
    b3 = b2.reshape(ii, jj, ch)
    # Channel-first layouts for the batched triangle matmul (kept in XLA for robustness).
    if outgoing:   # x[i,j,c] = sum_k a[i,k,c] * b[j,k,c]
        a_t = jnp.transpose(a3, (2, 0, 1))   # [C, I, K]
        b_t = jnp.transpose(b3, (2, 1, 0))   # [C, K, J]
    else:          # x[i,j,c] = sum_k a[k,i,c] * b[k,j,c]
        a_t = jnp.transpose(a3, (2, 1, 0))
        b_t = jnp.transpose(b3, (2, 0, 1))
    x_c = _tri_matmul(a_t, b_t)              # [C, I, J] f32
    x2 = jnp.transpose(x_c, (1, 2, 0)).reshape(ii * jj, ch)

    out2 = _tri_tail(x2, g2, p2,
                     params["ln_out"]["g"].reshape(1, ch),
                     params["ln_out"]["b"].reshape(1, ch),
                     params["z"]["w"].astype(jnp.bfloat16),
                     params["z"]["b"].reshape(1, c_p),
                     ch, c_p)
    return out2.reshape(ii, jj, c_p)


def triangle_attention(p, mask, params, *, starting, n_head, c_hidden, inf=1e9):
    """TriangleAttentionStartingNode / EndingNode, residual add fused into the attention kernel."""
    if not starting:
        p = jnp.swapaxes(p, 0, 1)
        mask = jnp.swapaxes(mask, 0, 1)
    ii, jj, c_p = p.shape
    hc = n_head * c_hidden
    p2 = p.reshape(ii * jj, c_p)

    w_cat = jnp.concatenate(
        [params["q"]["w"], params["k"]["w"], params["v"]["w"],
         params["g"]["w"], params["tri"]["w"]], axis=1).astype(jnp.bfloat16)
    bg = params["g"]["b"].reshape(1, hc)

    q2, k2, v2, g2, tri2 = _att_proj(p2,
                                     params["ln"]["g"].reshape(1, c_p),
                                     params["ln"]["b"].reshape(1, c_p),
                                     w_cat, bg, hc, n_head, c_p)
    q3 = q2.reshape(ii, jj, hc)
    k3 = k2.reshape(ii, jj, hc)
    v3 = v2.reshape(ii, jj, hc)
    g3 = g2.reshape(ii, jj, hc)
    tri_b = jnp.transpose(tri2.reshape(ii, jj, n_head), (2, 0, 1))   # [H, Jq, Jk] (small)

    out = _attention(q3, k3, v3, g3, mask, tri_b,
                     params["o"]["w"].astype(jnp.bfloat16),
                     params["o"]["b"].reshape(1, c_p),
                     p, n_head=n_head, c_hidden=c_hidden, inf=inf)
    if not starting:
        out = jnp.swapaxes(out, 0, 1)
    return out


def pair_transition_block(p, mask, params):
    """PairTransition + residual + final mask multiply, all in one kernel."""
    ii, jj, c_p = p.shape
    out2 = _pair_transition(p.reshape(ii * jj, c_p),
                            mask.reshape(ii * jj, 1),
                            params["ln"]["g"].reshape(1, c_p),
                            params["ln"]["b"].reshape(1, c_p),
                            params["l1"]["w"].astype(jnp.bfloat16),
                            params["l1"]["b"].reshape(1, -1),
                            params["l2"]["w"].astype(jnp.bfloat16),
                            params["l2"]["b"].reshape(1, -1),
                            c_p)
    return out2.reshape(ii, jj, c_p)


def pair_transform_layer(p, p_mask, params, config):
    # TODO(synk): DropoutRowwise / DropoutColumnwise treated as identity (eval mode).
    if config["include_mul_update"]:
        p = triangle_multiplication(p, p_mask, params["tri_mul_out"], outgoing=True)
        p = triangle_multiplication(p, p_mask, params["tri_mul_in"], outgoing=False)
    if config["include_tri_att"]:
        p = triangle_attention(p, p_mask, params["tri_att_start"], starting=True,
                               n_head=config["n_head_tri"],
                               c_hidden=config["c_hidden_tri_att"])
        p = triangle_attention(p, p_mask, params["tri_att_end"], starting=False,
                               n_head=config["n_head_tri"],
                               c_hidden=config["c_hidden_tri_att"])
    p = pair_transition_block(p, p_mask, params["pair_transition"])
    return p, p_mask


# ----------------------------- Parameter init ---------------------------------


def init_params(key, c_p, c_hidden_mul, c_hidden_att, n_head, transition_n):
    keys = iter(jax.random.split(key, 128))

    def lin(cin, cout, bias=True):
        w = jax.random.normal(next(keys), (cin, cout), jnp.float32) / math.sqrt(cin)
        b = (0.02 * jax.random.normal(next(keys), (cout,), jnp.float32)) if bias else None
        return {"w": w, "b": b}

    def ln(c):
        return {"g": jnp.ones((c,), jnp.float32), "b": jnp.zeros((c,), jnp.float32)}

    def tri_mul_params():
        return {"ln_in": ln(c_p), "ln_out": ln(c_hidden_mul),
                "a_p": lin(c_p, c_hidden_mul), "a_g": lin(c_p, c_hidden_mul),
                "b_p": lin(c_p, c_hidden_mul), "b_g": lin(c_p, c_hidden_mul),
                "g": lin(c_p, c_p), "z": lin(c_hidden_mul, c_p)}

    def tri_att_params():
        hc = n_head * c_hidden_att
        return {"ln": ln(c_p), "tri": lin(c_p, n_head, bias=False),
                "q": lin(c_p, hc, bias=False), "k": lin(c_p, hc, bias=False),
                "v": lin(c_p, hc, bias=False), "g": lin(c_p, hc), "o": lin(hc, c_p)}

    return {"tri_mul_out": tri_mul_params(),
            "tri_mul_in": tri_mul_params(),
            "tri_att_start": tri_att_params(),
            "tri_att_end": tri_att_params(),
            "pair_transition": {"ln": ln(c_p),
                                "l1": lin(c_p, transition_n * c_p),
                                "l2": lin(transition_n * c_p, c_p)}}


# ---------------------------------- Main ---------------------------------------


if __name__ == "__main__":
    c_p = 16
    c_hidden_mul = 16
    c_hidden_tri_att = 8
    n_head_tri = 2
    pair_transition_n = 2
    N = 16

    key = jax.random.PRNGKey(0)
    k_p, k_m, k_par = jax.random.split(key, 3)
    p = jax.random.normal(k_p, (N, N, c_p), jnp.float32)
    p_mask = (jax.random.uniform(k_m, (N, N)) > 0.1).astype(jnp.float32)

    params = init_params(k_par, c_p, c_hidden_mul, c_hidden_tri_att,
                         n_head_tri, pair_transition_n)
    config = {"include_mul_update": True, "include_tri_att": True,
              "n_head_tri": n_head_tri, "c_hidden_tri_att": c_hidden_tri_att}

    fwd = jax.jit(functools.partial(pair_transform_layer, config=config))
    out_p, out_mask = fwd(p, p_mask, params)
    jax.block_until_ready(out_p)
    jax.block_until_ready(out_mask)
    assert out_p.shape == (N, N, c_p) and out_mask.shape == (N, N)
    assert bool(jnp.isfinite(out_p).all())
    print("KERNEL_OK")
</pallas_src>

<mosaic_0001>
module attributes {stable_mosaic.version = 11 : i64} {
  func.func @_tri_gate_kernel(%arg0: i32, %arg1: memref<256x16xf32, #tpu.memory_space<vmem>>, %arg2: memref<256x1xf32, #tpu.memory_space<vmem>>, %arg3: memref<1x16xf32, #tpu.memory_space<vmem>>, %arg4: memref<1x16xf32, #tpu.memory_space<vmem>>, %arg5: memref<16x80xbf16, #tpu.memory_space<vmem>>, %arg6: memref<1x80xf32, #tpu.memory_space<vmem>>, %arg7: memref<256x16xbf16, #tpu.memory_space<vmem>>, %arg8: memref<256x16xbf16, #tpu.memory_space<vmem>>, %arg9: memref<256x16xf32, #tpu.memory_space<vmem>>) attributes {dimension_semantics = [#tpu.dimension_semantics<parallel>], iteration_bounds = array<i64: 1>, scalar_prefetch = 0 : i64, scratch_operands = 0 : i64, tpu.core_type = #tpu.core_type<tc>, window_params = [{transform_indices = @transform_0, window_bounds = array<i64: 256, 16>}, {transform_indices = @transform_1, window_bounds = array<i64: 256, 1>}, {pipeline_mode = #tpu.pipeline_mode<synchronous>, transform_indices = @transform_2, window_bounds = array<i64: 1, 16>}, {pipeline_mode = #tpu.pipeline_mode<synchronous>, transform_indices = @transform_3, window_bounds = array<i64: 1, 16>}, {pipeline_mode = #tpu.pipeline_mode<synchronous>, transform_indices = @transform_4, window_bounds = array<i64: 16, 80>}, {pipeline_mode = #tpu.pipeline_mode<synchronous>, transform_indices = @transform_5, window_bounds = array<i64: 1, 80>}, {transform_indices = @transform_6, window_bounds = array<i64: 256, 16>}, {transform_indices = @transform_7, window_bounds = array<i64: 256, 16>}, {transform_indices = @transform_8, window_bounds = array<i64: 256, 16>}]} {
    %c0 = arith.constant 0 : index
    %c0_0 = arith.constant 0 : index
    %0 = vector.load %arg1[%c0, %c0_0] : memref<256x16xf32, #tpu.memory_space<vmem>>, vector<256x16xf32>
    %c0_1 = arith.constant 0 : index
    %c0_2 = arith.constant 0 : index
    %1 = vector.load %arg3[%c0_1, %c0_2] : memref<1x16xf32, #tpu.memory_space<vmem>>, vector<1x16xf32>
    %c0_3 = arith.constant 0 : index
    %c0_4 = arith.constant 0 : index
    %2 = vector.load %arg4[%c0_3, %c0_4] : memref<1x16xf32, #tpu.memory_space<vmem>>, vector<1x16xf32>
    %cst = arith.constant dense<0.000000e+00> : vector<256xf32>
    %3 = vector.multi_reduction <add>, %0, %cst [1] : vector<256x16xf32> to vector<256xf32>
    %4 = vector.shape_cast %3 : vector<256xf32> to vector<256x1xf32>
    %cst_5 = arith.constant 1.600000e+01 : f32
    %5 = vector.broadcast %cst_5 : f32 to vector<256x1xf32>
    %6 = arith.divf %4, %5 : vector<256x1xf32>
    %7 = vector.broadcast %6 : vector<256x1xf32> to vector<256x16xf32>
    %8 = arith.subf %0, %7 : vector<256x16xf32>
    %9 = arith.mulf %8, %8 : vector<256x16xf32>
    %cst_6 = arith.constant dense<0.000000e+00> : vector<256xf32>
    %10 = vector.multi_reduction <add>, %9, %cst_6 [1] : vector<256x16xf32> to vector<256xf32>
    %11 = vector.shape_cast %10 : vector<256xf32> to vector<256x1xf32>
    %cst_7 = arith.constant 1.600000e+01 : f32
    %12 = vector.broadcast %cst_7 : f32 to vector<256x1xf32>
    %13 = arith.divf %11, %12 : vector<256x1xf32>
    %14 = vector.broadcast %6 : vector<256x1xf32> to vector<256x16xf32>
    %15 = arith.subf %0, %14 : vector<256x16xf32>
    %cst_8 = arith.constant 9.99999974E-6 : f32
    %16 = vector.broadcast %cst_8 : f32 to vector<256x1xf32>
    %17 = arith.addf %13, %16 : vector<256x1xf32>
    %18 = math.rsqrt %17 : vector<256x1xf32>
    %19 = vector.broadcast %18 : vector<256x1xf32> to vector<256x16xf32>
    %20 = arith.mulf %15, %19 : vector<256x16xf32>
    %21 = vector.broadcast %1 : vector<1x16xf32> to vector<256x16xf32>
    %22 = arith.mulf %20, %21 : vector<256x16xf32>
    %23 = vector.broadcast %2 : vector<1x16xf32> to vector<256x16xf32>
    %24 = arith.addf %22, %23 : vector<256x16xf32>
    %25 = arith.truncf %24 : vector<256x16xf32> to vector<256x16xbf16>
    %c0_9 = arith.constant 0 : index
    %c0_10 = arith.constant 0 : index
    %26 = vector.load %arg5[%c0_9, %c0_10] : memref<16x80xbf16, #tpu.memory_space<vmem>>, vector<16x80xbf16>
    %cst_11 = arith.constant dense<0.000000e+00> : vector<256x80xf32>
    %27 = tpu.matmul %25, %26, %cst_11 {dimension_numbers = #tpu.dot_dimension_numbers<[1], [0], [0], [1], [0, 0, 1, 1], [], []>} : vector<256x16xbf16>, vector<16x80xbf16>, vector<256x80xf32> -> vector<256x80xf32>
    %c0_12 = arith.constant 0 : index
    %c0_13 = arith.constant 0 : index
    %28 = vector.load %arg6[%c0_12, %c0_13] : memref<1x80xf32, #tpu.memory_space<vmem>>, vector<1x80xf32>
    %29 = vector.broadcast %28 : vector<1x80xf32> to vector<256x80xf32>
    %30 = arith.addf %27, %29 : vector<256x80xf32>
    %c0_14 = arith.constant 0 : index
    %c0_15 = arith.constant 0 : index
    %31 = vector.load %arg2[%c0_14, %c0_15] : memref<256x1xf32, #tpu.memory_space<vmem>>, vector<256x1xf32>
    %32 = vector.extract_strided_slice %30 {offsets = [0, 0], sizes = [256, 16], strides = [1, 1]} : vector<256x80xf32> to vector<256x16xf32>
    %33 = vector.extract_strided_slice %30 {offsets = [0, 16], sizes = [256, 16], strides = [1, 1]} : vector<256x80xf32> to vector<256x16xf32>
    %34 = vector.extract_strided_slice %30 {offsets = [0, 32], sizes = [256, 16], strides = [1, 1]} : vector<256x80xf32> to vector<256x16xf32>
    %35 = vector.extract_strided_slice %30 {offsets = [0, 48], sizes = [256, 16], strides = [1, 1]} : vector<256x80xf32> to vector<256x16xf32>
    %36 = vector.extract_strided_slice %30 {offsets = [0, 64], sizes = [256, 16], strides = [1, 1]} : vector<256x80xf32> to vector<256x16xf32>
    %cst_16 = arith.constant 0.000000e+00 : f32
    %37 = vector.broadcast %cst_16 : f32 to vector<256x16xf32>
    %38 = arith.subf %37, %32 : vector<256x16xf32>
    %39 = math.exp %38 : vector<256x16xf32>
    %cst_17 = arith.constant 1.000000e+00 : f32
    %40 = vector.broadcast %cst_17 : f32 to vector<256x16xf32>
    %41 = arith.addf %40, %39 : vector<256x16xf32>
    %cst_18 = arith.constant 1.000000e+00 : f32
    %42 = vector.broadcast %cst_18 : f32 to vector<256x16xf32>
    %43 = arith.divf %42, %41 : vector<256x16xf32>
    %44 = vector.broadcast %31 : vector<256x1xf32> to vector<256x16xf32>
    %45 = arith.mulf %44, %43 : vector<256x16xf32>
    %46 = arith.mulf %45, %33 : vector<256x16xf32>
    %47 = arith.truncf %46 : vector<256x16xf32> to vector<256x16xbf16>
    %c0_19 = arith.constant 0 : index
    %c0_20 = arith.constant 0 : index
    %48 = vector.load %arg7[%c0_19, %c0_20] : memref<256x16xbf16, #tpu.memory_space<vmem>>, vector<256x16xbf16>
    tpu.vector_store %arg7[%c0_19, %c0_20], %47 {strides = array<i32>} : memref<256x16xbf16, #tpu.memory_space<vmem>>, vector<256x16xbf16>,
    %cst_21 = arith.constant 0.000000e+00 : f32
    %49 = vector.broadcast %cst_21 : f32 to vector<256x16xf32>
    %50 = arith.subf %49, %34 : vector<256x16xf32>
    %51 = math.exp %50 : vector<256x16xf32>
    %cst_22 = arith.constant 1.000000e+00 : f32
    %52 = vector.broadcast %cst_22 : f32 to vector<256x16xf32>
    %53 = arith.addf %52, %51 : vector<256x16xf32>
    %cst_23 = arith.constant 1.000000e+00 : f32
    %54 = vector.broadcast %cst_23 : f32 to vector<256x16xf32>
    %55 = arith.divf %54, %53 : vector<256x16xf32>
    %56 = vector.broadcast %31 : vector<256x1xf32> to vector<256x16xf32>
    %57 = arith.mulf %56, %55 : vector<256x16xf32>
    %58 = arith.mulf %57, %35 : vector<256x16xf32>
    %59 = arith.truncf %58 : vector<256x16xf32> to vector<256x16xbf16>
    %c0_24 = arith.constant 0 : index
    %c0_25 = arith.constant 0 : index
    %60 = vector.load %arg8[%c0_24, %c0_25] : memref<256x16xbf16, #tpu.memory_space<vmem>>, vector<256x16xbf16>
    tpu.vector_store %arg8[%c0_24, %c0_25], %59 {strides = array<i32>} : memref<256x16xbf16, #tpu.memory_space<vmem>>, vector<256x16xbf16>,
    %cst_26 = arith.constant 0.000000e+00 : f32
    %61 = vector.broadcast %cst_26 : f32 to vector<256x16xf32>
    %62 = arith.subf %61, %36 : vector<256x16xf32>
    %63 = math.exp %62 : vector<256x16xf32>
    %cst_27 = arith.constant 1.000000e+00 : f32
    %64 = vector.broadcast %cst_27 : f32 to vector<256x16xf32>
    %65 = arith.addf %64, %63 : vector<256x16xf32>
    %cst_28 = arith.constant 1.000000e+00 : f32
    %66 = vector.broadcast %cst_28 : f32 to vector<256x16xf32>
    %67 = arith.divf %66, %65 : vector<256x16xf32>
    %c0_29 = arith.constant 0 : index
    %c0_30 = arith.constant 0 : index
    %68 = vector.load %arg9[%c0_29, %c0_30] : memref<256x16xf32, #tpu.memory_space<vmem>>, vector<256x16xf32>
    tpu.vector_store %arg9[%c0_29, %c0_30], %67 {strides = array<i32>} : memref<256x16xf32, #tpu.memory_space<vmem>>, vector<256x16xf32>,
    return
  }
  func.func @transform_0(%arg0: i32) -> (i32, i32) {
    %c0_i32 = arith.constant 0 : i32
    %c0_i32_0 = arith.constant 0 : i32
    return %arg0, %c0_i32 : i32, i32
  }
  func.func @transform_1(%arg0: i32) -> (i32, i32) {
    %c0_i32 = arith.constant 0 : i32
    %c0_i32_0 = arith.constant 0 : i32
    return %arg0, %c0_i32 : i32, i32
  }
  func.func @transform_2(%arg0: i32) -> (i32, i32) {
    %c0_i32 = arith.constant 0 : i32
    %c0_i32_0 = arith.constant 0 : i32
    %c0_i32_1 = arith.constant 0 : i32
    return %c0_i32, %c0_i32_0 : i32, i32
  }
  func.func @transform_3(%arg0: i32) -> (i32, i32) {
    %c0_i32 = arith.constant 0 : i32
    %c0_i32_0 = arith.constant 0 : i32
    %c0_i32_1 = arith.constant 0 : i32
    return %c0_i32, %c0_i32_0 : i32, i32
  }
  func.func @transform_4(%arg0: i32) -> (i32, i32) {
    %c0_i32 = arith.constant 0 : i32
    %c0_i32_0 = arith.constant 0 : i32
    %c0_i32_1 = arith.constant 0 : i32
    return %c0_i32, %c0_i32_0 : i32, i32
  }
  func.func @transform_5(%arg0: i32) -> (i32, i32) {
    %c0_i32 = arith.constant 0 : i32
    %c0_i32_0 = arith.constant 0 : i32
    %c0_i32_1 = arith.constant 0 : i32
    return %c0_i32, %c0_i32_0 : i32, i32
  }
  func.func @transform_6(%arg0: i32) -> (i32, i32) {
    %c0_i32 = arith.constant 0 : i32
    %c0_i32_0 = arith.constant 0 : i32
    return %arg0, %c0_i32 : i32, i32
  }
  func.func @transform_7(%arg0: i32) -> (i32, i32) {
    %c0_i32 = arith.constant 0 : i32
    %c0_i32_0 = arith.constant 0 : i32
    return %arg0, %c0_i32 : i32, i32
  }
  func.func @transform_8(%arg0: i32) -> (i32, i32) {
    %c0_i32 = arith.constant 0 : i32
    %c0_i32_0 = arith.constant 0 : i32
    return %arg0, %c0_i32 : i32, i32
  }
}

module attributes {stable_mosaic.version = 11 : i64} {
  func.func @_tri_matmul_kernel(%arg0: i32, %arg1: memref<16x16x16xbf16, #tpu.memory_space<vmem>>, %arg2: memref<16x16x16xbf16, #tpu.memory_space<vmem>>, %arg3: memref<16x16x16xf32, #tpu.memory_space<vmem>>) attributes {dimension_semantics = [#tpu.dimension_semantics<parallel>], iteration_bounds = array<i64: 1>, scalar_prefetch = 0 : i64, scratch_operands = 0 : i64, tpu.core_type = #tpu.core_type<tc>, window_params = [{transform_indices = @transform_0, window_bounds = array<i64: 16, 16, 16>}, {pipeline_mode = #tpu.pipeline_mode<synchronous>, transform_indices = @transform_1, window_bounds = array<i64: 16, 16, 16>}, {transform_indices = @transform_2, window_bounds = array<i64: 16, 16, 16>}]} {
    %c0 = arith.constant 0 : index
    %c0_0 = arith.constant 0 : index
    %c0_1 = arith.constant 0 : index
    %0 = vector.load %arg1[%c0, %c0_0, %c0_1] : memref<16x16x16xbf16, #tpu.memory_space<vmem>>, vector<16x16x16xbf16>
    %c0_2 = arith.constant 0 : index
    %c0_3 = arith.constant 0 : index
    %c0_4 = arith.constant 0 : index
    %1 = vector.load %arg2[%c0_2, %c0_3, %c0_4] : memref<16x16x16xbf16, #tpu.memory_space<vmem>>, vector<16x16x16xbf16>
    "tpu.trace_start"() <{level = 10 : i32, message = "cik,ckj->cij"}> : () -> ()
    %cst = arith.constant dense<0.000000e+00> : vector<16x16x16xf32>
    %2 = tpu.matmul %0, %1, %cst {dimension_numbers = #tpu.dot_dimension_numbers<[2], [1], [1], [2], [0, 0, 0, 1, 1, 2], [0], [0]>} : vector<16x16x16xbf16>, vector<16x16x16xbf16>, vector<16x16x16xf32> -> vector<16x16x16xf32>
    "tpu.trace_stop"() : () -> ()
    %c0_5 = arith.constant 0 : index
    %c0_6 = arith.constant 0 : index
    %c0_7 = arith.constant 0 : index
    %3 = vector.load %arg3[%c0_5, %c0_6, %c0_7] : memref<16x16x16xf32, #tpu.memory_space<vmem>>, vector<16x16x16xf32>
    tpu.vector_store %arg3[%c0_5, %c0_6, %c0_7], %2 {strides = array<i32>} : memref<16x16x16xf32, #tpu.memory_space<vmem>>, vector<16x16x16xf32>,
    return
  }
  func.func @transform_0(%arg0: i32) -> (i32, i32, i32) {
    %c0_i32 = arith.constant 0 : i32
    %c0_i32_0 = arith.constant 0 : i32
    %c0_i32_1 = arith.constant 0 : i32
    return %c0_i32, %arg0, %c0_i32_0 : i32, i32, i32
  }
  func.func @transform_1(%arg0: i32) -> (i32, i32, i32) {
    %c0_i32 = arith.constant 0 : i32
    %c0_i32_0 = arith.constant 0 : i32
    %c0_i32_1 = arith.constant 0 : i32
    %c0_i32_2 = arith.constant 0 : i32
    return %c0_i32, %c0_i32_0, %c0_i32_1 : i32, i32, i32
  }
  func.func @transform_2(%arg0: i32) -> (i32, i32, i32) {
    %c0_i32 = arith.constant 0 : i32
    %c0_i32_0 = arith.constant 0 : i32
    %c0_i32_1 = arith.constant 0 : i32
    return %c0_i32, %arg0, %c0_i32_0 : i32, i32, i32
  }
}

module attributes {stable_mosaic.version = 11 : i64} {
  func.func @_tri_tail_kernel(%arg0: i32, %arg1: memref<256x16xf32, #tpu.memory_space<vmem>>, %arg2: memref<256x16xf32, #tpu.memory_space<vmem>>, %arg3: memref<256x16xf32, #tpu.memory_space<vmem>>, %arg4: memref<1x16xf32, #tpu.memory_space<vmem>>, %arg5: memref<1x16xf32, #tpu.memory_space<vmem>>, %arg6: memref<16x16xbf16, #tpu.memory_space<vmem>>, %arg7: memref<1x16xf32, #tpu.memory_space<vmem>>, %arg8: memref<256x16xf32, #tpu.memory_space<vmem>>) attributes {dimension_semantics = [#tpu.dimension_semantics<parallel>], iteration_bounds = array<i64: 1>, scalar_prefetch = 0 : i64, scratch_operands = 0 : i64, tpu.core_type = #tpu.core_type<tc>, window_params = [{transform_indices = @transform_0, window_bounds = array<i64: 256, 16>}, {transform_indices = @transform_1, window_bounds = array<i64: 256, 16>}, {transform_indices = @transform_2, window_bounds = array<i64: 256, 16>}, {pipeline_mode = #tpu.pipeline_mode<synchronous>, transform_indices = @transform_3, window_bounds = array<i64: 1, 16>}, {pipeline_mode = #tpu.pipeline_mode<synchronous>, transform_indices = @transform_4, window_bounds = array<i64: 1, 16>}, {pipeline_mode = #tpu.pipeline_mode<synchronous>, transform_indices = @transform_5, window_bounds = array<i64: 16, 16>}, {pipeline_mode = #tpu.pipeline_mode<synchronous>, transform_indices = @transform_6, window_bounds = array<i64: 1, 16>}, {transform_indices = @transform_7, window_bounds = array<i64: 256, 16>}]} {
    %c0 = arith.constant 0 : index
    %c0_0 = arith.constant 0 : index
    %0 = vector.load %arg1[%c0, %c0_0] : memref<256x16xf32, #tpu.memory_space<vmem>>, vector<256x16xf32>
    %c0_1 = arith.constant 0 : index
    %c0_2 = arith.constant 0 : index
    %1 = vector.load %arg4[%c0_1, %c0_2] : memref<1x16xf32, #tpu.memory_space<vmem>>, vector<1x16xf32>
    %c0_3 = arith.constant 0 : index
    %c0_4 = arith.constant 0 : index
    %2 = vector.load %arg5[%c0_3, %c0_4] : memref<1x16xf32, #tpu.memory_space<vmem>>, vector<1x16xf32>
    %cst = arith.constant dense<0.000000e+00> : vector<256xf32>
    %3 = vector.multi_reduction <add>, %0, %cst [1] : vector<256x16xf32> to vector<256xf32>
    %4 = vector.shape_cast %3 : vector<256xf32> to vector<256x1xf32>
    %cst_5 = arith.constant 1.600000e+01 : f32
    %5 = vector.broadcast %cst_5 : f32 to vector<256x1xf32>
    %6 = arith.divf %4, %5 : vector<256x1xf32>
    %7 = vector.broadcast %6 : vector<256x1xf32> to vector<256x16xf32>
    %8 = arith.subf %0, %7 : vector<256x16xf32>
    %9 = arith.mulf %8, %8 : vector<256x16xf32>
    %cst_6 = arith.constant dense<0.000000e+00> : vector<256xf32>
    %10 = vector.multi_reduction <add>, %9, %cst_6 [1] : vector<256x16xf32> to vector<256xf32>
    %11 = vector.shape_cast %10 : vector<256xf32> to vector<256x1xf32>
    %cst_7 = arith.constant 1.600000e+01 : f32
    %12 = vector.broadcast %cst_7 : f32 to vector<256x1xf32>
    %13 = arith.divf %11, %12 : vector<256x1xf32>
    %14 = vector.broadcast %6 : vector<256x1xf32> to vector<256x16xf32>
    %15 = arith.subf %0, %14 : vector<256x16xf32>
    %cst_8 = arith.constant 9.99999974E-6 : f32
    %16 = vector.broadcast %cst_8 : f32 to vector<256x1xf32>
    %17 = arith.addf %13, %16 : vector<256x1xf32>
    %18 = math.rsqrt %17 : vector<256x1xf32>
    %19 = vector.broadcast %18 : vector<256x1xf32> to vector<256x16xf32>
    %20 = arith.mulf %15, %19 : vector<256x16xf32>
    %21 = vector.broadcast %1 : vector<1x16xf32> to vector<256x16xf32>
    %22 = arith.mulf %20, %21 : vector<256x16xf32>
    %23 = vector.broadcast %2 : vector<1x16xf32> to vector<256x16xf32>
    %24 = arith.addf %22, %23 : vector<256x16xf32>
    %25 = arith.truncf %24 : vector<256x16xf32> to vector<256x16xbf16>
    %c0_9 = arith.constant 0 : index
    %c0_10 = arith.constant 0 : index
    %26 = vector.load %arg6[%c0_9, %c0_10] : memref<16x16xbf16, #tpu.memory_space<vmem>>, vector<16x16xbf16>
    %cst_11 = arith.constant dense<0.000000e+00> : vector<256x16xf32>
    %27 = tpu.matmul %25, %26, %cst_11 {dimension_numbers = #tpu.dot_dimension_numbers<[1], [0], [0], [1], [0, 0, 1, 1], [], []>} : vector<256x16xbf16>, vector<16x16xbf16>, vector<256x16xf32> -> vector<256x16xf32>
    %c0_12 = arith.constant 0 : index
    %c0_13 = arith.constant 0 : index
    %28 = vector.load %arg7[%c0_12, %c0_13] : memref<1x16xf32, #tpu.memory_space<vmem>>, vector<1x16xf32>
    %29 = vector.broadcast %28 : vector<1x16xf32> to vector<256x16xf32>
    %30 = arith.addf %27, %29 : vector<256x16xf32>
    %c0_14 = arith.constant 0 : index
    %c0_15 = arith.constant 0 : index
    %31 = vector.load %arg3[%c0_14, %c0_15] : memref<256x16xf32, #tpu.memory_space<vmem>>, vector<256x16xf32>
    %c0_16 = arith.constant 0 : index
    %c0_17 = arith.constant 0 : index
    %32 = vector.load %arg2[%c0_16, %c0_17] : memref<256x16xf32, #tpu.memory_space<vmem>>, vector<256x16xf32>
    %33 = arith.mulf %30, %32 : vector<256x16xf32>
    %34 = arith.addf %31, %33 : vector<256x16xf32>
    %c0_18 = arith.constant 0 : index
    %c0_19 = arith.constant 0 : index
    %35 = vector.load %arg8[%c0_18, %c0_19] : memref<256x16xf32, #tpu.memory_space<vmem>>, vector<256x16xf32>
    tpu.vector_store %arg8[%c0_18, %c0_19], %34 {strides = array<i32>} : memref<256x16xf32, #tpu.memory_space<vmem>>, vector<256x16xf32>,
    return
  }
  func.func @transform_0(%arg0: i32) -> (i32, i32) {
    %c0_i32 = arith.constant 0 : i32
    %c0_i32_0 = arith.constant 0 : i32
    return %arg0, %c0_i32 : i32, i32
  }
  func.func @transform_1(%arg0: i32) -> (i32, i32) {
    %c0_i32 = arith.constant 0 : i32
    %c0_i32_0 = arith.constant 0 : i32
    return %arg0, %c0_i32 : i32, i32
  }
  func.func @transform_2(%arg0: i32) -> (i32, i32) {
    %c0_i32 = arith.constant 0 : i32
    %c0_i32_0 = arith.constant 0 : i32
    return %arg0, %c0_i32 : i32, i32
  }
  func.func @transform_3(%arg0: i32) -> (i32, i32) {
    %c0_i32 = arith.constant 0 : i32
    %c0_i32_0 = arith.constant 0 : i32
    %c0_i32_1 = arith.constant 0 : i32
    return %c0_i32, %c0_i32_0 : i32, i32
  }
  func.func @transform_4(%arg0: i32) -> (i32, i32) {
    %c0_i32 = arith.constant 0 : i32
    %c0_i32_0 = arith.constant 0 : i32
    %c0_i32_1 = arith.constant 0 : i32
    return %c0_i32, %c0_i32_0 : i32, i32
  }
  func.func @transform_5(%arg0: i32) -> (i32, i32) {
    %c0_i32 = arith.constant 0 : i32
    %c0_i32_0 = arith.constant 0 : i32
    %c0_i32_1 = arith.constant 0 : i32
    return %c0_i32, %c0_i32_0 : i32, i32
  }
  func.func @transform_6(%arg0: i32) -> (i32, i32) {
    %c0_i32 = arith.constant 0 : i32
    %c0_i32_0 = arith.constant 0 : i32
    %c0_i32_1 = arith.constant 0 : i32
    return %c0_i32, %c0_i32_0 : i32, i32
  }
  func.func @transform_7(%arg0: i32) -> (i32, i32) {
    %c0_i32 = arith.constant 0 : i32
    %c0_i32_0 = arith.constant 0 : i32
    return %arg0, %c0_i32 : i32, i32
  }
}

module attributes {stable_mosaic.version = 11 : i64} {
  func.func @_att_proj_kernel(%arg0: i32, %arg1: memref<256x16xf32, #tpu.memory_space<vmem>>, %arg2: memref<1x16xf32, #tpu.memory_space<vmem>>, %arg3: memref<1x16xf32, #tpu.memory_space<vmem>>, %arg4: memref<16x66xbf16, #tpu.memory_space<vmem>>, %arg5: memref<1x16xf32, #tpu.memory_space<vmem>>, %arg6: memref<256x16xbf16, #tpu.memory_space<vmem>>, %arg7: memref<256x16xbf16, #tpu.memory_space<vmem>>, %arg8: memref<256x16xbf16, #tpu.memory_space<vmem>>, %arg9: memref<256x16xf32, #tpu.memory_space<vmem>>, %arg10: memref<256x2xf32, #tpu.memory_space<vmem>>) attributes {dimension_semantics = [#tpu.dimension_semantics<parallel>], iteration_bounds = array<i64: 1>, scalar_prefetch = 0 : i64, scratch_operands = 0 : i64, tpu.core_type = #tpu.core_type<tc>, window_params = [{transform_indices = @transform_0, window_bounds = array<i64: 256, 16>}, {pipeline_mode = #tpu.pipeline_mode<synchronous>, transform_indices = @transform_1, window_bounds = array<i64: 1, 16>}, {pipeline_mode = #tpu.pipeline_mode<synchronous>, transform_indices = @transform_2, window_bounds = array<i64: 1, 16>}, {pipeline_mode = #tpu.pipeline_mode<synchronous>, transform_indices = @transform_3, window_bounds = array<i64: 16, 66>}, {pipeline_mode = #tpu.pipeline_mode<synchronous>, transform_indices = @transform_4, window_bounds = array<i64: 1, 16>}, {transform_indices = @transform_5, window_bounds = array<i64: 256, 16>}, {transform_indices = @transform_6, window_bounds = array<i64: 256, 16>}, {transform_indices = @transform_7, window_bounds = array<i64: 256, 16>}, {transform_indices = @transform_8, window_bounds = array<i64: 256, 16>}, {transform_indices = @transform_9, window_bounds = array<i64: 256, 2>}]} {
    %c0 = arith.constant 0 : index
    %c0_0 = arith.constant 0 : index
    %0 = vector.load %arg1[%c0, %c0_0] : memref<256x16xf32, #tpu.memory_space<vmem>>, vector<256x16xf32>
    %c0_1 = arith.constant 0 : index
    %c0_2 = arith.constant 0 : index
    %1 = vector.load %arg2[%c0_1, %c0_2] : memref<1x16xf32, #tpu.memory_space<vmem>>, vector<1x16xf32>
    %c0_3 = arith.constant 0 : index
    %c0_4 = arith.constant 0 : index
    %2 = vector.load %arg3[%c0_3, %c0_4] : memref<1x16xf32, #tpu.memory_space<vmem>>, vector<1x16xf32>
    %cst = arith.constant dense<0.000000e+00> : vector<256xf32>
    %3 = vector.multi_reduction <add>, %0, %cst [1] : vector<256x16xf32> to vector<256xf32>
    %4 = vector.shape_cast %3 : vector<256xf32> to vector<256x1xf32>
    %cst_5 = arith.constant 1.600000e+01 : f32
    %5 = vector.broadcast %cst_5 : f32 to vector<256x1xf32>
    %6 = arith.divf %4, %5 : vector<256x1xf32>
    %7 = vector.broadcast %6 : vector<256x1xf32> to vector<256x16xf32>
    %8 = arith.subf %0, %7 : vector<256x16xf32>
    %9 = arith.mulf %8, %8 : vector<256x16xf32>
    %cst_6 = arith.constant dense<0.000000e+00> : vector<256xf32>
    %10 = vector.multi_reduction <add>, %9, %cst_6 [1] : vector<256x16xf32> to vector<256xf32>
    %11 = vector.shape_cast %10 : vector<256xf32> to vector<256x1xf32>
    %cst_7 = arith.constant 1.600000e+01 : f32
    %12 = vector.broadcast %cst_7 : f32 to vector<256x1xf32>
    %13 = arith.divf %11, %12 : vector<256x1xf32>
    %14 = vector.broadcast %6 : vector<256x1xf32> to vector<256x16xf32>
    %15 = arith.subf %0, %14 : vector<256x16xf32>
    %cst_8 = arith.constant 9.99999974E-6 : f32
    %16 = vector.broadcast %cst_8 : f32 to vector<256x1xf32>
    %17 = arith.addf %13, %16 : vector<256x1xf32>
    %18 = math.rsqrt %17 : vector<256x1xf32>
    %19 = vector.broadcast %18 : vector<256x1xf32> to vector<256x16xf32>
    %20 = arith.mulf %15, %19 : vector<256x16xf32>
    %21 = vector.broadcast %1 : vector<1x16xf32> to vector<256x16xf32>
    %22 = arith.mulf %20, %21 : vector<256x16xf32>
    %23 = vector.broadcast %2 : vector<1x16xf32> to vector<256x16xf32>
    %24 = arith.addf %22, %23 : vector<256x16xf32>
    %25 = arith.truncf %24 : vector<256x16xf32> to vector<256x16xbf16>
    %c0_9 = arith.constant 0 : index
    %c0_10 = arith.constant 0 : index
    %26 = vector.load %arg4[%c0_9, %c0_10] : memref<16x66xbf16, #tpu.memory_space<vmem>>, vector<16x66xbf16>
    %cst_11 = arith.constant dense<0.000000e+00> : vector<256x66xf32>
    %27 = tpu.matmul %25, %26, %cst_11 {dimension_numbers = #tpu.dot_dimension_numbers<[1], [0], [0], [1], [0, 0, 1, 1], [], []>} : vector<256x16xbf16>, vector<16x66xbf16>, vector<256x66xf32> -> vector<256x66xf32>
    %28 = vector.extract_strided_slice %27 {offsets = [0, 0], sizes = [256, 16], strides = [1, 1]} : vector<256x66xf32> to vector<256x16xf32>
    %29 = arith.truncf %28 : vector<256x16xf32> to vector<256x16xbf16>
    %c0_12 = arith.constant 0 : index
    %c0_13 = arith.constant 0 : index
    %30 = vector.load %arg6[%c0_12, %c0_13] : memref<256x16xbf16, #tpu.memory_space<vmem>>, vector<256x16xbf16>
    tpu.vector_store %arg6[%c0_12, %c0_13], %29 {strides = array<i32>} : memref<256x16xbf16, #tpu.memory_space<vmem>>, vector<256x16xbf16>,
    %31 = vector.extract_strided_slice %27 {offsets = [0, 16], sizes = [256, 16], strides = [1, 1]} : vector<256x66xf32> to vector<256x16xf32>
    %32 = arith.truncf %31 : vector<256x16xf32> to vector<256x16xbf16>
    %c0_14 = arith.constant 0 : index
    %c0_15 = arith.constant 0 : index
    %33 = vector.load %arg7[%c0_14, %c0_15] : memref<256x16xbf16, #tpu.memory_space<vmem>>, vector<256x16xbf16>
    tpu.vector_store %arg7[%c0_14, %c0_15], %32 {strides = array<i32>} : memref<256x16xbf16, #tpu.memory_space<vmem>>, vector<256x16xbf16>,
    %34 = vector.extract_strided_slice %27 {offsets = [0, 32], sizes = [256, 16], strides = [1, 1]} : vector<256x66xf32> to vector<256x16xf32>
    %35 = arith.truncf %34 : vector<256x16xf32> to vector<256x16xbf16>
    %c0_16 = arith.constant 0 : index
    %c0_17 = arith.constant 0 : index
    %36 = vector.load %arg8[%c0_16, %c0_17] : memref<256x16xbf16, #tpu.memory_space<vmem>>, vector<256x16xbf16>
    tpu.vector_store %arg8[%c0_16, %c0_17], %35 {strides = array<i32>} : memref<256x16xbf16, #tpu.memory_space<vmem>>, vector<256x16xbf16>,
    %37 = vector.extract_strided_slice %27 {offsets = [0, 48], sizes = [256, 16], strides = [1, 1]} : vector<256x66xf32> to vector<256x16xf32>
    %c0_18 = arith.constant 0 : index
    %c0_19 = arith.constant 0 : index
    %38 = vector.load %arg5[%c0_18, %c0_19] : memref<1x16xf32, #tpu.memory_space<vmem>>, vector<1x16xf32>
    %39 = vector.broadcast %38 : vector<1x16xf32> to vector<256x16xf32>
    %40 = arith.addf %37, %39 : vector<256x16xf32>
    %cst_20 = arith.constant 0.000000e+00 : f32
    %41 = vector.broadcast %cst_20 : f32 to vector<256x16xf32>
    %42 = arith.subf %41, %40 : vector<256x16xf32>
    %43 = math.exp %42 : vector<256x16xf32>
    %cst_21 = arith.constant 1.000000e+00 : f32
    %44 = vector.broadcast %cst_21 : f32 to vector<256x16xf32>
    %45 = arith.addf %44, %43 : vector<256x16xf32>
    %cst_22 = arith.constant 1.000000e+00 : f32
    %46 = vector.broadcast %cst_22 : f32 to vector<256x16xf32>
    %47 = arith.divf %46, %45 : vector<256x16xf32>
    %c0_23 = arith.constant 0 : index
    %c0_24 = arith.constant 0 : index
    %48 = vector.load %arg9[%c0_23, %c0_24] : memref<256x16xf32, #tpu.memory_space<vmem>>, vector<256x16xf32>
    tpu.vector_store %arg9[%c0_23, %c0_24], %47 {strides = array<i32>} : memref<256x16xf32, #tpu.memory_space<vmem>>, vector<256x16xf32>,
    %49 = vector.extract_strided_slice %27 {offsets = [0, 64], sizes = [256, 2], strides = [1, 1]} : vector<256x66xf32> to vector<256x2xf32>
    %c0_25 = arith.constant 0 : index
    %c0_26 = arith.constant 0 : index
    %50 = vector.load %arg10[%c0_25, %c0_26] : memref<256x2xf32, #tpu.memory_space<vmem>>, vector<256x2xf32>
    tpu.vector_store %arg10[%c0_25, %c0_26], %49 {strides = array<i32>} : memref<256x2xf32, #tpu.memory_space<vmem>>, vector<256x2xf32>,
    return
  }
  func.func @transform_0(%arg0: i32) -> (i32, i32) {
    %c0_i32 = arith.constant 0 : i32
    %c0_i32_0 = arith.constant 0 : i32
    return %arg0, %c0_i32 : i32, i32
  }
  func.func @transform_1(%arg0: i32) -> (i32, i32) {
    %c0_i32 = arith.constant 0 : i32
    %c0_i32_0 = arith.constant 0 : i32
    %c0_i32_1 = arith.constant 0 : i32
    return %c0_i32, %c0_i32_0 : i32, i32
  }
  func.func @transform_2(%arg0: i32) -> (i32, i32) {
    %c0_i32 = arith.constant 0 : i32
    %c0_i32_0 = arith.constant 0 : i32
    %c0_i32_1 = arith.constant 0 : i32
    return %c0_i32, %c0_i32_0 : i32, i32
  }
  func.func @transform_3(%arg0: i32) -> (i32, i32) {
    %c0_i32 = arith.constant 0 : i32
    %c0_i32_0 = arith.constant 0 : i32
    %c0_i32_1 = arith.constant 0 : i32
    return %c0_i32, %c0_i32_0 : i32, i32
  }
  func.func @transform_4(%arg0: i32) -> (i32, i32) {
    %c0_i32 = arith.constant 0 : i32
    %c0_i32_0 = arith.constant 0 : i32
    %c0_i32_1 = arith.constant 0 : i32
    return %c0_i32, %c0_i32_0 : i32, i32
  }
  func.func @transform_5(%arg0: i32) -> (i32, i32) {
    %c0_i32 = arith.constant 0 : i32
    %c0_i32_0 = arith.constant 0 : i32
    return %arg0, %c0_i32 : i32, i32
  }
  func.func @transform_6(%arg0: i32) -> (i32, i32) {
    %c0_i32 = arith.constant 0 : i32
    %c0_i32_0 = arith.constant 0 : i32
    return %arg0, %c0_i32 : i32, i32
  }
  func.func @transform_7(%arg0: i32) -> (i32, i32) {
    %c0_i32 = arith.constant 0 : i32
    %c0_i32_0 = arith.constant 0 : i32
    return %arg0, %c0_i32 : i32, i32
  }
  func.func @transform_8(%arg0: i32) -> (i32, i32) {
    %c0_i32 = arith.constant 0 : i32
    %c0_i32_0 = arith.constant 0 : i32
    return %arg0, %c0_i32 : i32, i32
  }
  func.func @transform_9(%arg0: i32) -> (i32, i32) {
    %c0_i32 = arith.constant 0 : i32
    %c0_i32_0 = arith.constant 0 : i32
    return %arg0, %c0_i32 : i32, i32
  }
}

module attributes {stable_mosaic.version = 11 : i64} {
  func.func @_att_kernel(%arg0: i32, %arg1: memref<16x16x16xbf16, #tpu.memory_space<vmem>>, %arg2: memref<16x16x16xbf16, #tpu.memory_space<vmem>>, %arg3: memref<16x16x16xbf16, #tpu.memory_space<vmem>>, %arg4: memref<16x16x16xf32, #tpu.memory_space<vmem>>, %arg5: memref<16x16xf32, #tpu.memory_space<vmem>>, %arg6: memref<2x16x16xf32, #tpu.memory_space<vmem>>, %arg7: memref<16x16xbf16, #tpu.memory_space<vmem>>, %arg8: memref<1x16xf32, #tpu.memory_space<vmem>>, %arg9: memref<16x16x16xf32, #tpu.memory_space<vmem>>, %arg10: memref<16x16x16xf32, #tpu.memory_space<vmem>>) attributes {dimension_semantics = [#tpu.dimension_semantics<parallel>], iteration_bounds = array<i64: 1>, scalar_prefetch = 0 : i64, scratch_operands = 0 : i64, tpu.core_type = #tpu.core_type<tc>, window_params = [{transform_indices = @transform_0, window_bounds = array<i64: 16, 16, 16>}, {transform_indices = @transform_1, window_bounds = array<i64: 16, 16, 16>}, {transform_indices = @transform_2, window_bounds = array<i64: 16, 16, 16>}, {transform_indices = @transform_3, window_bounds = array<i64: 16, 16, 16>}, {transform_indices = @transform_4, window_bounds = array<i64: 16, 16>}, {pipeline_mode = #tpu.pipeline_mode<synchronous>, transform_indices = @transform_5, window_bounds = array<i64: 2, 16, 16>}, {pipeline_mode = #tpu.pipeline_mode<synchronous>, transform_indices = @transform_6, window_bounds = array<i64: 16, 16>}, {pipeline_mode = #tpu.pipeline_mode<synchronous>, transform_indices = @transform_7, window_bounds = array<i64: 1, 16>}, {transform_indices = @transform_8, window_bounds = array<i64: 16, 16, 16>}, {transform_indices = @transform_9, window_bounds = array<i64: 16, 16, 16>}]} {
    %c0 = arith.constant 0 : index
    %c0_0 = arith.constant 0 : index
    %c0_1 = arith.constant 0 : index
    %0 = vector.load %arg1[%c0, %c0_0, %c0_1] : memref<16x16x16xbf16, #tpu.memory_space<vmem>>, vector<16x16x16xbf16>
    %c0_2 = arith.constant 0 : index
    %c0_3 = arith.constant 0 : index
    %c0_4 = arith.constant 0 : index
    %1 = vector.load %arg2[%c0_2, %c0_3, %c0_4] : memref<16x16x16xbf16, #tpu.memory_space<vmem>>, vector<16x16x16xbf16>
    %c0_5 = arith.constant 0 : index
    %c0_6 = arith.constant 0 : index
    %c0_7 = arith.constant 0 : index
    %2 = vector.load %arg3[%c0_5, %c0_6, %c0_7] : memref<16x16x16xbf16, #tpu.memory_space<vmem>>, vector<16x16x16xbf16>
    %c0_8 = arith.constant 0 : index
    %c0_9 = arith.constant 0 : index
    %c0_10 = arith.constant 0 : index
    %3 = vector.load %arg4[%c0_8, %c0_9, %c0_10] : memref<16x16x16xf32, #tpu.memory_space<vmem>>, vector<16x16x16xf32>
    %c0_11 = arith.constant 0 : index
    %c0_12 = arith.constant 0 : index
    %4 = vector.load %arg7[%c0_11, %c0_12] : memref<16x16xbf16, #tpu.memory_space<vmem>>, vector<16x16xbf16>
    %c0_13 = arith.constant 0 : index
    %c0_14 = arith.constant 0 : index
    %5 = vector.load %arg5[%c0_13, %c0_14] : memref<16x16xf32, #tpu.memory_space<vmem>>, vector<16x16xf32>
    %cst = arith.constant 1.000000e+00 : f32
    %6 = vector.broadcast %cst : f32 to vector<16x16xf32>
    %7 = arith.subf %5, %6 : vector<16x16xf32>
    %cst_15 = arith.constant 1.000000e+09 : f32
    %8 = vector.broadcast %cst_15 : f32 to vector<16x16xf32>
    %9 = arith.mulf %8, %7 : vector<16x16xf32>
    %cst_16 = arith.constant 0.000000e+00 : f32
    %10 = vector.broadcast %cst_16 : f32 to vector<256x16xf32>
    %11 = vector.extract_strided_slice %0 {offsets = [0, 0, 0], sizes = [16, 16, 8], strides = [1, 1, 1]} : vector<16x16x16xbf16> to vector<16x16x8xbf16>
    %12 = vector.extract_strided_slice %1 {offsets = [0, 0, 0], sizes = [16, 16, 8], strides = [1, 1, 1]} : vector<16x16x16xbf16> to vector<16x16x8xbf16>
    %13 = vector.extract_strided_slice %2 {offsets = [0, 0, 0], sizes = [16, 16, 8], strides = [1, 1, 1]} : vector<16x16x16xbf16> to vector<16x16x8xbf16>
    "tpu.trace_start"() <{level = 10 : i32, message = "tqc,tkc->tqk"}> : () -> ()
    %cst_17 = arith.constant dense<0.000000e+00> : vector<16x16x16xf32>
    %14 = tpu.matmul %11, %12, %cst_17 {dimension_numbers = #tpu.dot_dimension_numbers<[2], [2], [1], [1], [0, 0, 0, 1, 1, 1], [0], [0]>} : vector<16x16x8xbf16>, vector<16x16x8xbf16>, vector<16x16x16xf32> -> vector<16x16x16xf32>
    "tpu.trace_stop"() : () -> ()
    %cst_18 = arith.constant 0.353553385 : f32
    %15 = vector.broadcast %cst_18 : f32 to vector<16x16x16xf32>
    %16 = arith.mulf %14, %15 : vector<16x16x16xf32>
    %17 = vector.shape_cast %9 : vector<16x16xf32> to vector<16x1x16xf32>
    %18 = vector.broadcast %17 : vector<16x1x16xf32> to vector<16x16x16xf32>
    %19 = arith.addf %16, %18 : vector<16x16x16xf32>
    %c0_19 = arith.constant 0 : index
    %c0_20 = arith.constant 0 : index
    %c0_21 = arith.constant 0 : index
    %20 = vector.load %arg6[%c0_19, %c0_20, %c0_21] : memref<2x16x16xf32, #tpu.memory_space<vmem>>, vector<1x16x16xf32>
    %21 = vector.shape_cast %20 : vector<1x16x16xf32> to vector<16x16xf32>
    %22 = vector.shape_cast %21 : vector<16x16xf32> to vector<1x16x16xf32>
    %23 = vector.broadcast %22 : vector<1x16x16xf32> to vector<16x16x16xf32>
    %24 = arith.addf %19, %23 : vector<16x16x16xf32>
    %cst_22 = arith.constant dense<0xFF800000> : vector<16x16xf32>
    %25 = vector.multi_reduction <maximumf>, %24, %cst_22 [2] : vector<16x16x16xf32> to vector<16x16xf32>
    %26 = vector.shape_cast %25 : vector<16x16xf32> to vector<16x16x1xf32>
    %27 = vector.broadcast %26 : vector<16x16x1xf32> to vector<16x16x16xf32>
    %28 = arith.subf %24, %27 : vector<16x16x16xf32>
    %29 = math.exp %28 : vector<16x16x16xf32>
    %cst_23 = arith.constant dense<0.000000e+00> : vector<16x16xf32>
    %30 = vector.multi_reduction <add>, %29, %cst_23 [2] : vector<16x16x16xf32> to vector<16x16xf32>
    %31 = vector.shape_cast %30 : vector<16x16xf32> to vector<16x16x1xf32>
    %32 = tpu.reciprocal %31 {approx = true} : vector<16x16x1xf32> -> vector<16x16x1xf32>
    %33 = vector.broadcast %32 : vector<16x16x1xf32> to vector<16x16x16xf32>
    %34 = arith.mulf %29, %33 : vector<16x16x16xf32>
    %35 = arith.truncf %34 : vector<16x16x16xf32> to vector<16x16x16xbf16>
    "tpu.trace_start"() <{level = 10 : i32, message = "tqk,tkc->tqc"}> : () -> ()
    %cst_24 = arith.constant dense<0.000000e+00> : vector<16x16x8xf32>
    %36 = tpu.matmul %35, %13, %cst_24 {dimension_numbers = #tpu.dot_dimension_numbers<[2], [1], [1], [2], [0, 0, 0, 1, 1, 2], [0], [0]>} : vector<16x16x16xbf16>, vector<16x16x8xbf16>, vector<16x16x8xf32> -> vector<16x16x8xf32>
    "tpu.trace_stop"() : () -> ()
    %37 = vector.extract_strided_slice %3 {offsets = [0, 0, 0], sizes = [16, 16, 8], strides = [1, 1, 1]} : vector<16x16x16xf32> to vector<16x16x8xf32>
    %38 = arith.mulf %36, %37 : vector<16x16x8xf32>
    %39 = vector.shape_cast %38 : vector<16x16x8xf32> to vector<256x8xf32>
    %40 = arith.truncf %39 : vector<256x8xf32> to vector<256x8xbf16>
    %41 = vector.extract_strided_slice %4 {offsets = [0, 0], sizes = [8, 16], strides = [1, 1]} : vector<16x16xbf16> to vector<8x16xbf16>
    %cst_25 = arith.constant dense<0.000000e+00> : vector<256x16xf32>
    %42 = tpu.matmul %40, %41, %cst_25 {dimension_numbers = #tpu.dot_dimension_numbers<[1], [0], [0], [1], [0, 0, 1, 1], [], []>} : vector<256x8xbf16>, vector<8x16xbf16>, vector<256x16xf32> -> vector<256x16xf32>
    %43 = arith.addf %10, %42 : vector<256x16xf32>
    %44 = vector.extract_strided_slice %0 {offsets = [0, 0, 8], sizes = [16, 16, 8], strides = [1, 1, 1]} : vector<16x16x16xbf16> to vector<16x16x8xbf16>
    %45 = vector.extract_strided_slice %1 {offsets = [0, 0, 8], sizes = [16, 16, 8], strides = [1, 1, 1]} : vector<16x16x16xbf16> to vector<16x16x8xbf16>
    %46 = vector.extract_strided_slice %2 {offsets = [0, 0, 8], sizes = [16, 16, 8], strides = [1, 1, 1]} : vector<16x16x16xbf16> to vector<16x16x8xbf16>
    "tpu.trace_start"() <{level = 10 : i32, message = "tqc,tkc->tqk"}> : () -> ()
    %cst_26 = arith.constant dense<0.000000e+00> : vector<16x16x16xf32>
    %47 = tpu.matmul %44, %45, %cst_26 {dimension_numbers = #tpu.dot_dimension_numbers<[2], [2], [1], [1], [0, 0, 0, 1, 1, 1], [0], [0]>} : vector<16x16x8xbf16>, vector<16x16x8xbf16>, vector<16x16x16xf32> -> vector<16x16x16xf32>
    "tpu.trace_stop"() : () -> ()
    %cst_27 = arith.constant 0.353553385 : f32
    %48 = vector.broadcast %cst_27 : f32 to vector<16x16x16xf32>
    %49 = arith.mulf %47, %48 : vector<16x16x16xf32>
    %50 = vector.shape_cast %9 : vector<16x16xf32> to vector<16x1x16xf32>
    %51 = vector.broadcast %50 : vector<16x1x16xf32> to vector<16x16x16xf32>
    %52 = arith.addf %49, %51 : vector<16x16x16xf32>
    %c1 = arith.constant 1 : index
    %c0_28 = arith.constant 0 : index
    %c0_29 = arith.constant 0 : index
    %53 = vector.load %arg6[%c1, %c0_28, %c0_29] : memref<2x16x16xf32, #tpu.memory_space<vmem>>, vector<1x16x16xf32>
    %54 = vector.shape_cast %53 : vector<1x16x16xf32> to vector<16x16xf32>
    %55 = vector.shape_cast %54 : vector<16x16xf32> to vector<1x16x16xf32>
    %56 = vector.broadcast %55 : vector<1x16x16xf32> to vector<16x16x16xf32>
    %57 = arith.addf %52, %56 : vector<16x16x16xf32>
    %cst_30 = arith.constant dense<0xFF800000> : vector<16x16xf32>
    %58 = vector.multi_reduction <maximumf>, %57, %cst_30 [2] : vector<16x16x16xf32> to vector<16x16xf32>
    %59 = vector.shape_cast %58 : vector<16x16xf32> to vector<16x16x1xf32>
    %60 = vector.broadcast %59 : vector<16x16x1xf32> to vector<16x16x16xf32>
    %61 = arith.subf %57, %60 : vector<16x16x16xf32>
    %62 = math.exp %61 : vector<16x16x16xf32>
    %cst_31 = arith.constant dense<0.000000e+00> : vector<16x16xf32>
    %63 = vector.multi_reduction <add>, %62, %cst_31 [2] : vector<16x16x16xf32> to vector<16x16xf32>
    %64 = vector.shape_cast %63 : vector<16x16xf32> to vector<16x16x1xf32>
    %65 = tpu.reciprocal %64 {approx = true} : vector<16x16x1xf32> -> vector<16x16x1xf32>
    %66 = vector.broadcast %65 : vector<16x16x1xf32> to vector<16x16x16xf32>
    %67 = arith.mulf %62, %66 : vector<16x16x16xf32>
    %68 = arith.truncf %67 : vector<16x16x16xf32> to vector<16x16x16xbf16>
    "tpu.trace_start"() <{level = 10 : i32, message = "tqk,tkc->tqc"}> : () -> ()
    %cst_32 = arith.constant dense<0.000000e+00> : vector<16x16x8xf32>
    %69 = tpu.matmul %68, %46, %cst_32 {dimension_numbers = #tpu.dot_dimension_numbers<[2], [1], [1], [2], [0, 0, 0, 1, 1, 2], [0], [0]>} : vector<16x16x16xbf16>, vector<16x16x8xbf16>, vector<16x16x8xf32> -> vector<16x16x8xf32>
    "tpu.trace_stop"() : () -> ()
    %70 = vector.extract_strided_slice %3 {offsets = [0, 0, 8], sizes = [16, 16, 8], strides = [1, 1, 1]} : vector<16x16x16xf32> to vector<16x16x8xf32>
    %71 = arith.mulf %69, %70 : vector<16x16x8xf32>
    %72 = vector.shape_cast %71 : vector<16x16x8xf32> to vector<256x8xf32>
    %73 = arith.truncf %72 : vector<256x8xf32> to vector<256x8xbf16>
    %74 = vector.extract_strided_slice %4 {offsets = [8, 0], sizes = [8, 16], strides = [1, 1]} : vector<16x16xbf16> to vector<8x16xbf16>
    %cst_33 = arith.constant dense<0.000000e+00> : vector<256x16xf32>
    %75 = tpu.matmul %73, %74, %cst_33 {dimension_numbers = #tpu.dot_dimension_numbers<[1], [0], [0], [1], [0, 0, 1, 1], [], []>} : vector<256x8xbf16>, vector<8x16xbf16>, vector<256x16xf32> -> vector<256x16xf32>
    %76 = arith.addf %43, %75 : vector<256x16xf32>
    %c0_34 = arith.constant 0 : index
    %c0_35 = arith.constant 0 : index
    %77 = vector.load %arg8[%c0_34, %c0_35] : memref<1x16xf32, #tpu.memory_space<vmem>>, vector<1x16xf32>
    %78 = vector.broadcast %77 : vector<1x16xf32> to vector<256x16xf32>
    %79 = arith.addf %76, %78 : vector<256x16xf32>
    %c0_36 = arith.constant 0 : index
    %c0_37 = arith.constant 0 : index
    %c0_38 = arith.constant 0 : index
    %80 = vector.load %arg9[%c0_36, %c0_37, %c0_38] : memref<16x16x16xf32, #tpu.memory_space<vmem>>, vector<16x16x16xf32>
    %81 = vector.shape_cast %79 : vector<256x16xf32> to vector<16x16x16xf32>
    %82 = arith.addf %80, %81 : vector<16x16x16xf32>
    %c0_39 = arith.constant 0 : index
    %c0_40 = arith.constant 0 : index
    %c0_41 = arith.constant 0 : index
    %83 = vector.load %arg10[%c0_39, %c0_40, %c0_41] : memref<16x16x16xf32, #tpu.memory_space<vmem>>, vector<16x16x16xf32>
    tpu.vector_store %arg10[%c0_39, %c0_40, %c0_41], %82 {strides = array<i32>} : memref<16x16x16xf32, #tpu.memory_space<vmem>>, vector<16x16x16xf32>,
    return
  }
  func.func @transform_0(%arg0: i32) -> (i32, i32, i32) {
    %c0_i32 = arith.constant 0 : i32
    %c0_i32_0 = arith.constant 0 : i32
    %c0_i32_1 = arith.constant 0 : i32
    return %arg0, %c0_i32, %c0_i32_0 : i32, i32, i32
  }
  func.func @transform_1(%arg0: i32) -> (i32, i32, i32) {
    %c0_i32 = arith.constant 0 : i32
    %c0_i32_0 = arith.constant 0 : i32
    %c0_i32_1 = arith.constant 0 : i32
    return %arg0, %c0_i32, %c0_i32_0 : i32, i32, i32
  }
  func.func @transform_2(%arg0: i32) -> (i32, i32, i32) {
    %c0_i32 = arith.constant 0 : i32
    %c0_i32_0 = arith.constant 0 : i32
    %c0_i32_1 = arith.constant 0 : i32
    return %arg0, %c0_i32, %c0_i32_0 : i32, i32, i32
  }
  func.func @transform_3(%arg0: i32) -> (i32, i32, i32) {
    %c0_i32 = arith.constant 0 : i32
    %c0_i32_0 = arith.constant 0 : i32
    %c0_i32_1 = arith.constant 0 : i32
    return %arg0, %c0_i32, %c0_i32_0 : i32, i32, i32
  }
  func.func @transform_4(%arg0: i32) -> (i32, i32) {
    %c0_i32 = arith.constant 0 : i32
    %c0_i32_0 = arith.constant 0 : i32
    return %arg0, %c0_i32 : i32, i32
  }
  func.func @transform_5(%arg0: i32) -> (i32, i32, i32) {
    %c0_i32 = arith.constant 0 : i32
    %c0_i32_0 = arith.constant 0 : i32
    %c0_i32_1 = arith.constant 0 : i32
    %c0_i32_2 = arith.constant 0 : i32
    return %c0_i32, %c0_i32_0, %c0_i32_1 : i32, i32, i32
  }
  func.func @transform_6(%arg0: i32) -> (i32, i32) {
    %c0_i32 = arith.constant 0 : i32
    %c0_i32_0 = arith.constant 0 : i32
    %c0_i32_1 = arith.constant 0 : i32
    return %c0_i32, %c0_i32_0 : i32, i32
  }
  func.func @transform_7(%arg0: i32) -> (i32, i32) {
    %c0_i32 = arith.constant 0 : i32
    %c0_i32_0 = arith.constant 0 : i32
    %c0_i32_1 = arith.constant 0 : i32
    return %c0_i32, %c0_i32_0 : i32, i32
  }
  func.func @transform_8(%arg0: i32) -> (i32, i32, i32) {
    %c0_i32 = arith.constant 0 : i32
    %c0_i32_0 = arith.constant 0 : i32
    %c0_i32_1 = arith.constant 0 : i32
    return %arg0, %c0_i32, %c0_i32_0 : i32, i32, i32
  }
  func.func @transform_9(%arg0: i32) -> (i32, i32, i32) {
    %c0_i32 = arith.constant 0 : i32
    %c0_i32_0 = arith.constant 0 : i32
    %c0_i32_1 = arith.constant 0 : i32
    return %arg0, %c0_i32, %c0_i32_0 : i32, i32, i32
  }
}

module attributes {stable_mosaic.version = 11 : i64} {
  func.func @_transition_kernel(%arg0: i32, %arg1: memref<256x16xf32, #tpu.memory_space<vmem>>, %arg2: memref<256x1xf32, #tpu.memory_space<vmem>>, %arg3: memref<1x16xf32, #tpu.memory_space<vmem>>, %arg4: memref<1x16xf32, #tpu.memory_space<vmem>>, %arg5: memref<16x32xbf16, #tpu.memory_space<vmem>>, %arg6: memref<1x32xf32, #tpu.memory_space<vmem>>, %arg7: memref<32x16xbf16, #tpu.memory_space<vmem>>, %arg8: memref<1x16xf32, #tpu.memory_space<vmem>>, %arg9: memref<256x16xf32, #tpu.memory_space<vmem>>) attributes {dimension_semantics = [#tpu.dimension_semantics<parallel>], iteration_bounds = array<i64: 1>, scalar_prefetch = 0 : i64, scratch_operands = 0 : i64, tpu.core_type = #tpu.core_type<tc>, window_params = [{transform_indices = @transform_0, window_bounds = array<i64: 256, 16>}, {transform_indices = @transform_1, window_bounds = array<i64: 256, 1>}, {pipeline_mode = #tpu.pipeline_mode<synchronous>, transform_indices = @transform_2, window_bounds = array<i64: 1, 16>}, {pipeline_mode = #tpu.pipeline_mode<synchronous>, transform_indices = @transform_3, window_bounds = array<i64: 1, 16>}, {pipeline_mode = #tpu.pipeline_mode<synchronous>, transform_indices = @transform_4, window_bounds = array<i64: 16, 32>}, {pipeline_mode = #tpu.pipeline_mode<synchronous>, transform_indices = @transform_5, window_bounds = array<i64: 1, 32>}, {pipeline_mode = #tpu.pipeline_mode<synchronous>, transform_indices = @transform_6, window_bounds = array<i64: 32, 16>}, {pipeline_mode = #tpu.pipeline_mode<synchronous>, transform_indices = @transform_7, window_bounds = array<i64: 1, 16>}, {transform_indices = @transform_8, window_bounds = array<i64: 256, 16>}]} {
    %c0 = arith.constant 0 : index
    %c0_0 = arith.constant 0 : index
    %0 = vector.load %arg1[%c0, %c0_0] : memref<256x16xf32, #tpu.memory_space<vmem>>, vector<256x16xf32>
    %c0_1 = arith.constant 0 : index
    %c0_2 = arith.constant 0 : index
    %1 = vector.load %arg3[%c0_1, %c0_2] : memref<1x16xf32, #tpu.memory_space<vmem>>, vector<1x16xf32>
    %c0_3 = arith.constant 0 : index
    %c0_4 = arith.constant 0 : index
    %2 = vector.load %arg4[%c0_3, %c0_4] : memref<1x16xf32, #tpu.memory_space<vmem>>, vector<1x16xf32>
    %cst = arith.constant dense<0.000000e+00> : vector<256xf32>
    %3 = vector.multi_reduction <add>, %0, %cst [1] : vector<256x16xf32> to vector<256xf32>
    %4 = vector.shape_cast %3 : vector<256xf32> to vector<256x1xf32>
    %cst_5 = arith.constant 1.600000e+01 : f32
    %5 = vector.broadcast %cst_5 : f32 to vector<256x1xf32>
    %6 = arith.divf %4, %5 : vector<256x1xf32>
    %7 = vector.broadcast %6 : vector<256x1xf32> to vector<256x16xf32>
    %8 = arith.subf %0, %7 : vector<256x16xf32>
    %9 = arith.mulf %8, %8 : vector<256x16xf32>
    %cst_6 = arith.constant dense<0.000000e+00> : vector<256xf32>
    %10 = vector.multi_reduction <add>, %9, %cst_6 [1] : vector<256x16xf32> to vector<256xf32>
    %11 = vector.shape_cast %10 : vector<256xf32> to vector<256x1xf32>
    %cst_7 = arith.constant 1.600000e+01 : f32
    %12 = vector.broadcast %cst_7 : f32 to vector<256x1xf32>
    %13 = arith.divf %11, %12 : vector<256x1xf32>
    %14 = vector.broadcast %6 : vector<256x1xf32> to vector<256x16xf32>
    %15 = arith.subf %0, %14 : vector<256x16xf32>
    %cst_8 = arith.constant 9.99999974E-6 : f32
    %16 = vector.broadcast %cst_8 : f32 to vector<256x1xf32>
    %17 = arith.addf %13, %16 : vector<256x1xf32>
    %18 = math.rsqrt %17 : vector<256x1xf32>
    %19 = vector.broadcast %18 : vector<256x1xf32> to vector<256x16xf32>
    %20 = arith.mulf %15, %19 : vector<256x16xf32>
    %21 = vector.broadcast %1 : vector<1x16xf32> to vector<256x16xf32>
    %22 = arith.mulf %20, %21 : vector<256x16xf32>
    %23 = vector.broadcast %2 : vector<1x16xf32> to vector<256x16xf32>
    %24 = arith.addf %22, %23 : vector<256x16xf32>
    %25 = arith.truncf %24 : vector<256x16xf32> to vector<256x16xbf16>
    %c0_9 = arith.constant 0 : index
    %c0_10 = arith.constant 0 : index
    %26 = vector.load %arg5[%c0_9, %c0_10] : memref<16x32xbf16, #tpu.memory_space<vmem>>, vector<16x32xbf16>
    %cst_11 = arith.constant dense<0.000000e+00> : vector<256x32xf32>
    %27 = tpu.matmul %25, %26, %cst_11 {dimension_numbers = #tpu.dot_dimension_numbers<[1], [0], [0], [1], [0, 0, 1, 1], [], []>} : vector<256x16xbf16>, vector<16x32xbf16>, vector<256x32xf32> -> vector<256x32xf32>
    %c0_12 = arith.constant 0 : index
    %c0_13 = arith.constant 0 : index
    %28 = vector.load %arg6[%c0_12, %c0_13] : memref<1x32xf32, #tpu.memory_space<vmem>>, vector<1x32xf32>
    %29 = vector.broadcast %28 : vector<1x32xf32> to vector<256x32xf32>
    %30 = arith.addf %27, %29 : vector<256x32xf32>
    %cst_14 = arith.constant 0.000000e+00 : f32
    %31 = vector.broadcast %cst_14 : f32 to vector<256x32xf32>
    %32 = arith.maximumf %30, %31 : vector<256x32xf32>
    %33 = arith.truncf %32 : vector<256x32xf32> to vector<256x32xbf16>
    %c0_15 = arith.constant 0 : index
    %c0_16 = arith.constant 0 : index
    %34 = vector.load %arg7[%c0_15, %c0_16] : memref<32x16xbf16, #tpu.memory_space<vmem>>, vector<32x16xbf16>
    %cst_17 = arith.constant dense<0.000000e+00> : vector<256x16xf32>
    %35 = tpu.matmul %33, %34, %cst_17 {dimension_numbers = #tpu.dot_dimension_numbers<[1], [0], [0], [1], [0, 0, 1, 1], [], []>} : vector<256x32xbf16>, vector<32x16xbf16>, vector<256x16xf32> -> vector<256x16xf32>
    %c0_18 = arith.constant 0 : index
    %c0_19 = arith.constant 0 : index
    %36 = vector.load %arg8[%c0_18, %c0_19] : memref<1x16xf32, #tpu.memory_space<vmem>>, vector<1x16xf32>
    %37 = vector.broadcast %36 : vector<1x16xf32> to vector<256x16xf32>
    %38 = arith.addf %35, %37 : vector<256x16xf32>
    %c0_20 = arith.constant 0 : index
    %c0_21 = arith.constant 0 : index
    %39 = vector.load %arg2[%c0_20, %c0_21] : memref<256x1xf32, #tpu.memory_space<vmem>>, vector<256x1xf32>
    %40 = vector.broadcast %39 : vector<256x1xf32> to vector<256x16xf32>
    %41 = arith.mulf %38, %40 : vector<256x16xf32>
    %42 = arith.addf %0, %41 : vector<256x16xf32>
    %43 = vector.broadcast %39 : vector<256x1xf32> to vector<256x16xf32>
    %44 = arith.mulf %42, %43 : vector<256x16xf32>
    %c0_22 = arith.constant 0 : index
    %c0_23 = arith.constant 0 : index
    %45 = vector.load %arg9[%c0_22, %c0_23] : memref<256x16xf32, #tpu.memory_space<vmem>>, vector<256x16xf32>
    tpu.vector_store %arg9[%c0_22, %c0_23], %44 {strides = array<i32>} : memref<256x16xf32, #tpu.memory_space<vmem>>, vector<256x16xf32>,
    return
  }
  func.func @transform_0(%arg0: i32) -> (i32, i32) {
    %c0_i32 = arith.constant 0 : i32
    %c0_i32_0 = arith.constant 0 : i32
    return %arg0, %c0_i32 : i32, i32
  }
  func.func @transform_1(%arg0: i32) -> (i32, i32) {
    %c0_i32 = arith.constant 0 : i32
    %c0_i32_0 = arith.constant 0 : i32
    return %arg0, %c0_i32 : i32, i32
  }
  func.func @transform_2(%arg0: i32) -> (i32, i32) {
    %c0_i32 = arith.constant 0 : i32
    %c0_i32_0 = arith.constant 0 : i32
    %c0_i32_1 = arith.constant 0 : i32
    return %c0_i32, %c0_i32_0 : i32, i32
  }
  func.func @transform_3(%arg0: i32) -> (i32, i32) {
    %c0_i32 = arith.constant 0 : i32
    %c0_i32_0 = arith.constant 0 : i32
    %c0_i32_1 = arith.constant 0 : i32
    return %c0_i32, %c0_i32_0 : i32, i32
  }
  func.func @transform_4(%arg0: i32) -> (i32, i32) {
    %c0_i32 = arith.constant 0 : i32
    %c0_i32_0 = arith.constant 0 : i32
    %c0_i32_1 = arith.constant 0 : i32
    return %c0_i32, %c0_i32_0 : i32, i32
  }
  func.func @transform_5(%arg0: i32) -> (i32, i32) {
    %c0_i32 = arith.constant 0 : i32
    %c0_i32_0 = arith.constant 0 : i32
    %c0_i32_1 = arith.constant 0 : i32
    return %c0_i32, %c0_i32_0 : i32, i32
  }
  func.func @transform_6(%arg0: i32) -> (i32, i32) {
    %c0_i32 = arith.constant 0 : i32
    %c0_i32_0 = arith.constant 0 : i32
    %c0_i32_1 = arith.constant 0 : i32
    return %c0_i32, %c0_i32_0 : i32, i32
  }
  func.func @transform_7(%arg0: i32) -> (i32, i32) {
    %c0_i32 = arith.constant 0 : i32
    %c0_i32_0 = arith.constant 0 : i32
    %c0_i32_1 = arith.constant 0 : i32
    return %c0_i32, %c0_i32_0 : i32, i32
  }
  func.func @transform_8(%arg0: i32) -> (i32, i32) {
    %c0_i32 = arith.constant 0 : i32
    %c0_i32_0 = arith.constant 0 : i32
    return %arg0, %c0_i32 : i32, i32
  }
}

</mosaic_0001>

<bundles_post_ra>
// kernel: pair_transform_layer.12
= control target key start
LH: loop header
LB: loop body
LE: loop exit
PB: predicated region body
PF: predicated region fallthrough
CT: control target
= control target key end

     0   :  { %v1203_v0 = vmov 0.0   ;;  %vm1204_vm0 = vmmov 0   ;;  %vm87_vm1 = vcmask 130048   ;;  %s1508_s1 = inlined_call_operand.vmem [shape: bf16[16,16,16], index: 1, kind: input, shape index: {}]   ;;  %s1509_s0 = inlined_call_operand.vmem [shape: bf16[16,16,16], index: 0, kind: input, shape index: {}]   ;;  %s1510_s2 = inlined_call_operand.vmem [shape: f32[16,16,16], index: 2, kind: output, shape index: {}]  }
   0x1   :  { %1073 = vmatprep.subr.bf16.mxu0 %v1203_v0  ;;  %1079 = vmatprep.subr.bf16.mxu1 %v1203_v0  ;;  %v1171_v1 = vld [vmem:[%s1508_s1] sm:$0xff]   ;;  %v1172_v2 = vld [vmem:[%s1508_s1 + $0x8] sm:$0xff]   ;;  %v1175_v5 = vld [vmem:[%s1508_s1 + $0x10] sm:$0xff]  }
   0x2   :  { %1075 = vmatprep.mubr.msk.bf16.mxu0 %vm1204_vm0, %v1203_v0  ;;  %1081 = vmatprep.mubr.msk.bf16.mxu1 %vm1204_vm0, %v1203_v0  ;;  %v1173_v3 = vld [vmem:[%s1509_s0] sm:$0xff]   ;;  %v1174_v4 = vld [vmem:[%s1509_s0 + $0x8] sm:$0xff]   ;;  %v1176_v6 = vld [vmem:[%s1508_s1 + $0x18] sm:$0xff]  }
   0x3   :  { %1074 = vmatpush3.bf16.msra.mxu0 %v1171_v1  ;;  %1080 = vmatpush3.bf16.msra.mxu1 %v1172_v2  ;;  %v1177_v7 = vld [vmem:[%s1509_s0 + $0x10] sm:$0xff]   ;;  %v1178_v8 = vld [vmem:[%s1509_s0 + $0x18] sm:$0xff]   ;;  %v1179_v9 = vld [vmem:[%s1508_s1 + $0x20] sm:$0xff]  }
   0x4   :  { %1085 = vmatprep.subr.bf16.mxu0 %v1203_v0  ;;  %1091 = vmatprep.subr.bf16.mxu1 %v1203_v0  ;;  %v1180_v10 = vld [vmem:[%s1508_s1 + $0x28] sm:$0xff]   ;;  %v1181_v11 = vld [vmem:[%s1509_s0 + $0x20] sm:$0xff]   ;;  %v1183_v13 = vld [vmem:[%s1508_s1 + $0x30] sm:$0xff]  }
   0x5   :  { %v1182_v12 = vld [vmem:[%s1509_s0 + $0x28] sm:$0xff]   ;;  %v1184_v14 = vld [vmem:[%s1508_s1 + $0x38] sm:$0xff]   ;;  %v1185_v15 = vld [vmem:[%s1509_s0 + $0x30] sm:$0xff]  }
   0x6   :  { %1076 = vmatmul.mubr.msk.bf16.vlgmr.msra.gmra.mxu0 %vm87_vm1, %v1173_v3  ;;  %1082 = vmatmul.mubr.msk.bf16.vlgmr.msra.gmra.mxu1 %vm87_vm1, %v1174_v4  ;;  %v1186_v16 = vld [vmem:[%s1509_s0 + $0x38] sm:$0xff]   ;;  %v1187_v17 = vld [vmem:[%s1508_s1 + $0x40] sm:$0xff]   ;;  %v1188_v18 = vld [vmem:[%s1508_s1 + $0x48] sm:$0xff]  }
   0x7   :  { %1086 = vmatpush3.bf16.msra.mxu0 %v1175_v5  ;;  %1092 = vmatpush3.bf16.msra.mxu1 %v1176_v6  ;;  %v1189_v19 = vld [vmem:[%s1509_s0 + $0x40] sm:$0xff]   ;;  %v1190_v20 = vld [vmem:[%s1509_s0 + $0x48] sm:$0xff]   ;;  %v1191_v21 = vld [vmem:[%s1508_s1 + $0x50] sm:$0xff]  }
   0x8   :  { %1087 = vmatprep.mubr.msk.bf16.mxu0 %vm1204_vm0, %v1203_v0  ;;  %1093 = vmatprep.mubr.msk.bf16.mxu1 %vm1204_vm0, %v1203_v0  ;;  %v1192_v22 = vld [vmem:[%s1508_s1 + $0x58] sm:$0xff]   ;;  %v1193_v23 = vld [vmem:[%s1509_s0 + $0x50] sm:$0xff]   ;;  %v1195_v25 = vld [vmem:[%s1508_s1 + $0x60] sm:$0xff]  }
   0x9   :  { %1097 = vmatprep.subr.bf16.mxu0 %v1203_v0  ;;  %1103 = vmatprep.subr.bf16.mxu1 %v1203_v0  ;;  %v1194_v24 = vld [vmem:[%s1509_s0 + $0x58] sm:$0xff]   ;;  %v1196_v26 = vld [vmem:[%s1508_s1 + $0x68] sm:$0xff]   ;;  %v1197_v27 = vld [vmem:[%s1509_s0 + $0x60] sm:$0xff]  }
   0xa   :  { %v1198_v28 = vld [vmem:[%s1509_s0 + $0x68] sm:$0xff]   ;;  %v1199_v29 = vld [vmem:[%s1508_s1 + $0x70] sm:$0xff]   ;;  %v1200_v30 = vld [vmem:[%s1508_s1 + $0x78] sm:$0xff]  }
   0xb   :  { %v1201_v31 = vld [vmem:[%s1509_s0 + $0x70] sm:$0xff]   ;;  %v1202_v32 = vld [vmem:[%s1509_s0 + $0x78] sm:$0xff]  }
   0xe   :  { %1088 = vmatmul.mubr.msk.bf16.vlgmr.msra.gmra.mxu0 %vm87_vm1, %v1177_v7  ;;  %1094 = vmatmul.mubr.msk.bf16.vlgmr.msra.gmra.mxu1 %vm87_vm1, %v1178_v8 }
   0xf   :  { %1098 = vmatpush3.bf16.msra.mxu0 %v1179_v9  ;;  %1104 = vmatpush3.bf16.msra.mxu1 %v1180_v10 }
  0x10   :  { %1099 = vmatprep.mubr.msk.bf16.mxu0 %vm1204_vm0, %v1203_v0  ;;  %1105 = vmatprep.mubr.msk.bf16.mxu1 %vm1204_vm0, %v1203_v0 }
  0x11   :  { %1109 = vmatprep.subr.bf16.mxu0 %v1203_v0  ;;  %1115 = vmatprep.subr.bf16.mxu1 %v1203_v0 }
  0x16   :  { %1100 = vmatmul.mubr.msk.bf16.vlgmr.msra.gmra.mxu0 %vm87_vm1, %v1181_v11  ;;  %1106 = vmatmul.mubr.msk.bf16.vlgmr.msra.gmra.mxu1 %vm87_vm1, %v1182_v12 }
  0x17   :  { %1110 = vmatpush3.bf16.msra.mxu0 %v1183_v13  ;;  %1116 = vmatpush3.bf16.msra.mxu1 %v1184_v14 }
  0x18   :  { %1111 = vmatprep.mubr.msk.bf16.mxu0 %vm1204_vm0, %v1203_v0  ;;  %1117 = vmatprep.mubr.msk.bf16.mxu1 %vm1204_vm0, %v1203_v0 }
  0x19   :  { %1121 = vmatprep.subr.bf16.mxu0 %v1203_v0  ;;  %1127 = vmatprep.subr.bf16.mxu1 %v1203_v0 }
  0x1e   :  { %1112 = vmatmul.mubr.msk.bf16.vlgmr.msra.gmra.mxu0 %vm87_vm1, %v1185_v15  ;;  %1118 = vmatmul.mubr.msk.bf16.vlgmr.msra.gmra.mxu1 %vm87_vm1, %v1186_v16 }
  0x1f   :  { %1122 = vmatpush3.bf16.msra.mxu0 %v1187_v17  ;;  %1128 = vmatpush3.bf16.msra.mxu1 %v1188_v18 }
  0x20   :  { %1123 = vmatprep.mubr.msk.bf16.mxu0 %vm1204_vm0, %v1203_v0  ;;  %1129 = vmatprep.mubr.msk.bf16.mxu1 %vm1204_vm0, %v1203_v0 }
  0x21   :  { %1133 = vmatprep.subr.bf16.mxu0 %v1203_v0  ;;  %1139 = vmatprep.subr.bf16.mxu1 %v1203_v0 }
  0x26   :  { %1124 = vmatmul.mubr.msk.bf16.vlgmr.msra.gmra.mxu0 %vm87_vm1, %v1189_v19  ;;  %1130 = vmatmul.mubr.msk.bf16.vlgmr.msra.gmra.mxu1 %vm87_vm1, %v1190_v20 }
  0x27   :  { %1134 = vmatpush3.bf16.msra.mxu0 %v1191_v21  ;;  %1140 = vmatpush3.bf16.msra.mxu1 %v1192_v22 }
  0x28   :  { %1135 = vmatprep.mubr.msk.bf16.mxu0 %vm1204_vm0, %v1203_v0  ;;  %1141 = vmatprep.mubr.msk.bf16.mxu1 %vm1204_vm0, %v1203_v0 }
  0x29   :  { %1145 = vmatprep.subr.bf16.mxu0 %v1203_v0  ;;  %1151 = vmatprep.subr.bf16.mxu1 %v1203_v0 }
  0x2e   :  { %1136 = vmatmul.mubr.msk.bf16.vlgmr.msra.gmra.mxu0 %vm87_vm1, %v1193_v23  ;;  %1142 = vmatmul.mubr.msk.bf16.vlgmr.msra.gmra.mxu1 %vm87_vm1, %v1194_v24 }
  0x2f   :  { %1146 = vmatpush3.bf16.msra.mxu0 %v1195_v25  ;;  %1152 = vmatpush3.bf16.msra.mxu1 %v1196_v26 }
  0x30   :  { %1147 = vmatprep.mubr.msk.bf16.mxu0 %vm1204_vm0, %v1203_v0  ;;  %1153 = vmatprep.mubr.msk.bf16.mxu1 %vm1204_vm0, %v1203_v0 }
  0x31   :  { %1157 = vmatprep.subr.bf16.mxu0 %v1203_v0  ;;  %1163 = vmatprep.subr.bf16.mxu1 %v1203_v0 }
  0x36   :  { %1148 = vmatmul.mubr.msk.bf16.vlgmr.msra.gmra.mxu0 %vm87_vm1, %v1197_v27  ;;  %1154 = vmatmul.mubr.msk.bf16.vlgmr.msra.gmra.mxu1 %vm87_vm1, %v1198_v28 }
  0x37   :  { %1158 = vmatpush3.bf16.msra.mxu0 %v1199_v29  ;;  %1164 = vmatpush3.bf16.msra.mxu1 %v1200_v30 }
  0x38   :  { %1159 = vmatprep.mubr.msk.bf16.mxu0 %vm1204_vm0, %v1203_v0  ;;  %1165 = vmatprep.mubr.msk.bf16.mxu1 %vm1204_vm0, %v1203_v0 }
  0x3e   :  { %1160 = vmatmul.mubr.msk.bf16.vlgmr.msra.gmra.mxu0 %vm87_vm1, %v1201_v31  ;;  %1166 = vmatmul.mubr.msk.bf16.vlgmr.msra.gmra.mxu1 %vm87_vm1, %v1202_v32 }
  0xc6   :  { %v125_v33 = vpop.f32.mrf.mxu0  ;;  %v180_v34 = vpop.f32.mrf.mxu1 }
  0xc7   :  { %957 = vst.msk [vmem:[%s1510_s2] sm:$0xff] %vm87_vm1, %v125_v33  ;;  %959 = vst.msk [vmem:[%s1510_s2 + $0x10] sm:$0xff] %vm87_vm1, %v180_v34 }
  0xc8   :  { %v1077_v35 = vpop.f32.mrf.mxu0  ;;  %v1083_v36 = vpop.f32.mrf.mxu1 }
  0xca   :  { %v128_v37 = vpop.f32.mrf.mxu0  ;;  %v183_v38 = vpop.f32.mrf.mxu1 }
  0xcb   :  { %958 = vst.msk [vmem:[%s1510_s2 + $0x8] sm:$0xff] %vm87_vm1, %v128_v37  ;;  %960 = vst.msk [vmem:[%s1510_s2 + $0x18] sm:$0xff] %vm87_vm1, %v183_v38 }
  0xcc   :  { %v1078_v39 = vpop.f32.mrf.mxu0  ;;  %v1084_v40 = vpop.f32.mrf.mxu1 }
  0xce   :  { %v235_v41 = vpop.f32.mrf.mxu0  ;;  %v290_v42 = vpop.f32.mrf.mxu1 }
  0xcf   :  { %961 = vst.msk [vmem:[%s1510_s2 + $0x20] sm:$0xff] %vm87_vm1, %v235_v41  ;;  %963 = vst.msk [vmem:[%s1510_s2 + $0x30] sm:$0xff] %vm87_vm1, %v290_v42 }
  0xd0   :  { %v1089_v43 = vpop.f32.mrf.mxu0  ;;  %v1095_v44 = vpop.f32.mrf.mxu1 }
  0xd2   :  { %v238_v45 = vpop.f32.mrf.mxu0  ;;  %v293_v46 = vpop.f32.mrf.mxu1 }
  0xd3   :  { %962 = vst.msk [vmem:[%s1510_s2 + $0x28] sm:$0xff] %vm87_vm1, %v238_v45  ;;  %964 = vst.msk [vmem:[%s1510_s2 + $0x38] sm:$0xff] %vm87_vm1, %v293_v46 }
  0xd4   :  { %v1090_v47 = vpop.f32.mrf.mxu0  ;;  %v1096_v48 = vpop.f32.mrf.mxu1 }
  0xd6   :  { %v345_v49 = vpop.f32.mrf.mxu0  ;;  %v400_v50 = vpop.f32.mrf.mxu1 }
  0xd7   :  { %965 = vst.msk [vmem:[%s1510_s2 + $0x40] sm:$0xff] %vm87_vm1, %v345_v49  ;;  %967 = vst.msk [vmem:[%s1510_s2 + $0x50] sm:$0xff] %vm87_vm1, %v400_v50 }
  0xd8   :  { %v1101_v51 = vpop.f32.mrf.mxu0  ;;  %v1107_v52 = vpop.f32.mrf.mxu1 }
  0xda   :  { %v348_v53 = vpop.f32.mrf.mxu0  ;;  %v403_v54 = vpop.f32.mrf.mxu1 }
  0xdb   :  { %966 = vst.msk [vmem:[%s1510_s2 + $0x48] sm:$0xff] %vm87_vm1, %v348_v53  ;;  %968 = vst.msk [vmem:[%s1510_s2 + $0x58] sm:$0xff] %vm87_vm1, %v403_v54 }
  0xdc   :  { %v1102_v55 = vpop.f32.mrf.mxu0  ;;  %v1108_v56 = vpop.f32.mrf.mxu1 }
  0xde   :  { %v455_v57 = vpop.f32.mrf.mxu0  ;;  %v510_v58 = vpop.f32.mrf.mxu1 }
  0xdf   :  { %969 = vst.msk [vmem:[%s1510_s2 + $0x60] sm:$0xff] %vm87_vm1, %v455_v57  ;;  %971 = vst.msk [vmem:[%s1510_s2 + $0x70] sm:$0xff] %vm87_vm1, %v510_v58 }
  0xe0   :  { %v1113_v59 = vpop.f32.mrf.mxu0  ;;  %v1119_v60 = vpop.f32.mrf.mxu1 }
  0xe2   :  { %v458_v61 = vpop.f32.mrf.mxu0  ;;  %v513_v62 = vpop.f32.mrf.mxu1 }
  0xe3   :  { %970 = vst.msk [vmem:[%s1510_s2 + $0x68] sm:$0xff] %vm87_vm1, %v458_v61  ;;  %972 = vst.msk [vmem:[%s1510_s2 + $0x78] sm:$0xff] %vm87_vm1, %v513_v62 }
  0xe4   :  { %v1114_v63 = vpop.f32.mrf.mxu0  ;;  %v1120_v0 = vpop.f32.mrf.mxu1 }
  0xe6   :  { %v565_v1 = vpop.f32.mrf.mxu0  ;;  %v620_v2 = vpop.f32.mrf.mxu1 }
  0xe7   :  { %973 = vst.msk [vmem:[%s1510_s2 + $0x80] sm:$0xff] %vm87_vm1, %v565_v1  ;;  %975 = vst.msk [vmem:[%s1510_s2 + $0x90] sm:$0xff] %vm87_vm1, %v620_v2 }
  0xe8   :  { %v1125_v3 = vpop.f32.mrf.mxu0  ;;  %v1131_v4 = vpop.f32.mrf.mxu1 }
  0xea   :  { %v568_v5 = vpop.f32.mrf.mxu0  ;;  %v623_v6 = vpop.f32.mrf.mxu1 }
  0xeb   :  { %974 = vst.msk [vmem:[%s1510_s2 + $0x88] sm:$0xff] %vm87_vm1, %v568_v5  ;;  %976 = vst.msk [vmem:[%s1510_s2 + $0x98] sm:$0xff] %vm87_vm1, %v623_v6 }
  0xec   :  { %v1126_v7 = vpop.f32.mrf.mxu0  ;;  %v1132_v8 = vpop.f32.mrf.mxu1 }
  0xee   :  { %v675_v9 = vpop.f32.mrf.mxu0  ;;  %v730_v10 = vpop.f32.mrf.mxu1 }
  0xef   :  { %977 = vst.msk [vmem:[%s1510_s2 + $0xa0] sm:$0xff] %vm87_vm1, %v675_v9  ;;  %979 = vst.msk [vmem:[%s1510_s2 + $0xb0] sm:$0xff] %vm87_vm1, %v730_v10 }
  0xf0   :  { %v1137_v11 = vpop.f32.mrf.mxu0  ;;  %v1143_v12 = vpop.f32.mrf.mxu1 }
  0xf2   :  { %v678_v13 = vpop.f32.mrf.mxu0  ;;  %v733_v14 = vpop.f32.mrf.mxu1 }
  0xf3   :  { %978 = vst.msk [vmem:[%s1510_s2 + $0xa8] sm:$0xff] %vm87_vm1, %v678_v13  ;;  %980 = vst.msk [vmem:[%s1510_s2 + $0xb8] sm:$0xff] %vm87_vm1, %v733_v14 }
  0xf4   :  { %v1138_v15 = vpop.f32.mrf.mxu0  ;;  %v1144_v16 = vpop.f32.mrf.mxu1 }
  0xf6   :  { %v785_v17 = vpop.f32.mrf.mxu0  ;;  %v840_v18 = vpop.f32.mrf.mxu1 }
  0xf7   :  { %981 = vst.msk [vmem:[%s1510_s2 + $0xc0] sm:$0xff] %vm87_vm1, %v785_v17  ;;  %983 = vst.msk [vmem:[%s1510_s2 + $0xd0] sm:$0xff] %vm87_vm1, %v840_v18 }
  0xf8   :  { %v1149_v19 = vpop.f32.mrf.mxu0  ;;  %v1155_v20 = vpop.f32.mrf.mxu1 }
  0xfa   :  { %v788_v21 = vpop.f32.mrf.mxu0  ;;  %v843_v22 = vpop.f32.mrf.mxu1 }
  0xfb   :  { %982 = vst.msk [vmem:[%s1510_s2 + $0xc8] sm:$0xff] %vm87_vm1, %v788_v21  ;;  %984 = vst.msk [vmem:[%s1510_s2 + $0xd8] sm:$0xff] %vm87_vm1, %v843_v22 }
  0xfc   :  { %v1150_v23 = vpop.f32.mrf.mxu0  ;;  %v1156_v24 = vpop.f32.mrf.mxu1 }
  0xfe   :  { %v895_v25 = vpop.f32.mrf.mxu0  ;;  %v950_v26 = vpop.f32.mrf.mxu1 }
  0xff   :  { %985 = vst.msk [vmem:[%s1510_s2 + $0xe0] sm:$0xff] %vm87_vm1, %v895_v25  ;;  %987 = vst.msk [vmem:[%s1510_s2 + $0xf0] sm:$0xff] %vm87_vm1, %v950_v26 }
 0x100   :  { %v1161_v27 = vpop.f32.mrf.mxu0  ;;  %v1167_v28 = vpop.f32.mrf.mxu1 }
 0x102   :  { %v898_v29 = vpop.f32.mrf.mxu0  ;;  %v953_v30 = vpop.f32.mrf.mxu1 }
 0x103   :  { %986 = vst.msk [vmem:[%s1510_s2 + $0xe8] sm:$0xff] %vm87_vm1, %v898_v29  ;;  %988 = vst.msk [vmem:[%s1510_s2 + $0xf8] sm:$0xff] %vm87_vm1, %v953_v30 }
 0x104   :  { %v1162_v31 = vpop.f32.mrf.mxu0  ;;  %v1168_v32 = vpop.f32.mrf.mxu1 }

// kernel: pair_transform_layer.11
= control target key start
LH: loop header
LB: loop body
LE: loop exit
PB: predicated region body
PF: predicated region fallthrough
CT: control target
= control target key end

     0   :  { %vm61_vm0 = vcmask 130048   ;;  %s2169_s22 = smov 112   ;;  %vm1499_vm1 = vcmask 125952   ;;  %s2171_s27 = smov 96   ;;  %s3703_s0 = inlined_call_operand.vmem [shape: f32[256,16], index: 0, kind: input, shape index: {}]   ;;  %s3704_s4 = inlined_call_operand.vmem [shape: bf16[16,80], index: 4, kind: input, shape index: {}]   ;;  %s3705_s1 = inlined_call_operand.vmem [shape: f32[256,1], index: 1, kind: input, shape index: {}]   ;;  %s3706_s2 = inlined_call_operand.vmem [shape: f32[1,16], index: 2, kind: input, shape index: {}]   ;;  %s3707_s3 = inlined_call_operand.vmem [shape: f32[1,16], index: 3, kind: input, shape index: {}]   ;;  %s3708_s5 = inlined_call_operand.vmem [shape: f32[1,80], index: 5, kind: input, shape index: {}]   ;;  %s3709_s6 = inlined_call_operand.vmem [shape: bf16[256,16], index: 6, kind: output, shape index: {0}]   ;;  %s3710_s8 = inlined_call_operand.vmem [shape: f32[256,16], index: 8, kind: output, shape index: {2}]   ;;  %s3711_s7 = inlined_call_operand.vmem [shape: bf16[256,16], index: 7, kind: output, shape index: {1}]  }
   0x1   :  { %v2220_v0 = vld [vmem:[%s3703_s0] sm:$0xff]  ;;  %v2230_v2 = vld [vmem:[%s3703_s0 + $0x8] sm:$0xff]  ;;  %v2248_v8 = vld [vmem:[%s3703_s0 + $0x10] sm:$0xff] }
   0x2   :  { %v2225_v1 = vld [vmem:[%s3703_s0 + $0x80] sm:$0xff]  ;;  %v62_v3 = vsel %vm61_vm0, %v2220_v0, 0.0  ;;  %v2239_v5 = vld [vmem:[%s3703_s0 + $0x88] sm:$0xff]  ;;  %v65_v6 = vsel %vm61_vm0, %v2230_v2, 0.0  ;;  %v2253_v9 = vld [vmem:[%s3703_s0 + $0x18] sm:$0xff]  ;;  %v68_v10 = vsel %vm61_vm0, %v2248_v8, 0.0 }
   0x3   :  { %v110_v4 = vsel %vm61_vm0, %v2225_v1, 0.0  ;;  %63 = vadd.xlane.f32.xlu0 %v62_v3  ;;  %v113_v7 = vsel %vm61_vm0, %v2239_v5, 0.0  ;;  %v71_v11 = vsel %vm61_vm0, %v2253_v9, 0.0  ;;  %v2262_v12 = vld [vmem:[%s3703_s0 + $0x90] sm:$0xff]  ;;  %v2267_v13 = vld [vmem:[%s3703_s0 + $0x98] sm:$0xff]  ;;  %v2276_v16 = vld [vmem:[%s3703_s0 + $0x20] sm:$0xff] }
   0x4   :  { %111 = vadd.xlane.f32.xlu1 %v110_v4  ;;  %v116_v14 = vsel %vm61_vm0, %v2262_v12, 0.0  ;;  %v119_v15 = vsel %vm61_vm0, %v2267_v13, 0.0  ;;  %v2281_v17 = vld [vmem:[%s3703_s0 + $0x28] sm:$0xff]  ;;  %v74_v18 = vsel %vm61_vm0, %v2276_v16, 0.0  ;;  %v2290_v20 = vld [vmem:[%s3703_s0 + $0xa0] sm:$0xff]  ;;  %v2304_v24 = vld [vmem:[%s3703_s0 + $0x30] sm:$0xff] }
   0x5   :  { %v77_v19 = vsel %vm61_vm0, %v2281_v17, 0.0  ;;  %v2295_v21 = vld [vmem:[%s3703_s0 + $0xa8] sm:$0xff]  ;;  %v122_v22 = vsel %vm61_vm0, %v2290_v20, 0.0  ;;  %v2309_v25 = vld [vmem:[%s3703_s0 + $0x38] sm:$0xff]  ;;  %v80_v26 = vsel %vm61_vm0, %v2304_v24, 0.0  ;;  %v2318_v28 = vld [vmem:[%s3703_s0 + $0xb0] sm:$0xff] }
   0x6   :  { %v125_v23 = vsel %vm61_vm0, %v2295_v21, 0.0  ;;  %v83_v27 = vsel %vm61_vm0, %v2309_v25, 0.0  ;;  %v2323_v29 = vld [vmem:[%s3703_s0 + $0xb8] sm:$0xff]  ;;  %v128_v30 = vsel %vm61_vm0, %v2318_v28, 0.0  ;;  %v2332_v32 = vld [vmem:[%s3703_s0 + $0x40] sm:$0xff]  ;;  %v2337_v33 = vld [vmem:[%s3703_s0 + $0x48] sm:$0xff] }
   0x7   :  { %66 = vadd.xlane.f32.xlu0 %v65_v6  ;;  %v131_v31 = vsel %vm61_vm0, %v2323_v29, 0.0  ;;  %v86_v34 = vsel %vm61_vm0, %v2332_v32, 0.0  ;;  %v89_v35 = vsel %vm61_vm0, %v2337_v33, 0.0  ;;  %v2346_v36 = vld [vmem:[%s3703_s0 + $0xc0] sm:$0xff]  ;;  %v2351_v37 = vld [vmem:[%s3703_s0 + $0xc8] sm:$0xff]  ;;  %v2360_v40 = vld [vmem:[%s3703_s0 + $0x50] sm:$0xff] }
   0x8   :  { %114 = vadd.xlane.f32.xlu1 %v113_v7  ;;  %v134_v38 = vsel %vm61_vm0, %v2346_v36, 0.0  ;;  %v137_v39 = vsel %vm61_vm0, %v2351_v37, 0.0  ;;  %v2365_v41 = vld [vmem:[%s3703_s0 + $0x58] sm:$0xff]  ;;  %v92_v42 = vsel %vm61_vm0, %v2360_v40, 0.0  ;;  %v2374_v44 = vld [vmem:[%s3703_s0 + $0xd0] sm:$0xff]  ;;  %v2388_v48 = vld [vmem:[%s3703_s0 + $0x60] sm:$0xff] }
   0x9   :  { %v95_v43 = vsel %vm61_vm0, %v2365_v41, 0.0  ;;  %v2379_v45 = vld [vmem:[%s3703_s0 + $0xd8] sm:$0xff]  ;;  %v140_v46 = vsel %vm61_vm0, %v2374_v44, 0.0  ;;  %v2393_v49 = vld [vmem:[%s3703_s0 + $0x68] sm:$0xff]  ;;  %v98_v50 = vsel %vm61_vm0, %v2388_v48, 0.0  ;;  %v2402_v52 = vld [vmem:[%s3703_s0 + $0xe0] sm:$0xff] }
   0xa   :  { %v143_v47 = vsel %vm61_vm0, %v2379_v45, 0.0  ;;  %v101_v51 = vsel %vm61_vm0, %v2393_v49, 0.0  ;;  %v2407_v53 = vld [vmem:[%s3703_s0 + $0xe8] sm:$0xff]  ;;  %v146_v54 = vsel %vm61_vm0, %v2402_v52, 0.0  ;;  %v2416_v56 = vld [vmem:[%s3703_s0 + $0x70] sm:$0xff]  ;;  %v2421_v57 = vld [vmem:[%s3703_s0 + $0x78] sm:$0xff] }
   0xb   :  { %69 = vadd.xlane.f32.xlu0 %v68_v10  ;;  %v149_v55 = vsel %vm61_vm0, %v2407_v53, 0.0  ;;  %v104_v58 = vsel %vm61_vm0, %v2416_v56, 0.0  ;;  %v107_v59 = vsel %vm61_vm0, %v2421_v57, 0.0  ;;  %v2430_v60 = vld [vmem:[%s3703_s0 + $0xf0] sm:$0xff]  ;;  %v2435_v61 = vld [vmem:[%s3703_s0 + $0xf8] sm:$0xff] }
   0xc   :  { %72 = vadd.xlane.f32.xlu1 %v71_v11  ;;  %v152_v62 = vsel %vm61_vm0, %v2430_v60, 0.0  ;;  %v155_v63 = vsel %vm61_vm0, %v2435_v61, 0.0 }
   0xf   :  { %117 = vadd.xlane.f32.xlu0 %v116_v14 }
  0x10   :  { %120 = vadd.xlane.f32.xlu1 %v119_v15 }
  0x13   :  { %75 = vadd.xlane.f32.xlu0 %v74_v18 }
  0x14   :  { %78 = vadd.xlane.f32.xlu1 %v77_v19 }
  0x17   :  { %123 = vadd.xlane.f32.xlu0 %v122_v22 }
  0x18   :  { %126 = vadd.xlane.f32.xlu1 %v125_v23 }
  0x1b   :  { %81 = vadd.xlane.f32.xlu0 %v80_v26 }
  0x1c   :  { %84 = vadd.xlane.f32.xlu1 %v83_v27 }
  0x1f   :  { %129 = vadd.xlane.f32.xlu0 %v128_v30 }
  0x20   :  { %132 = vadd.xlane.f32.xlu1 %v131_v31 }
  0x23   :  { %87 = vadd.xlane.f32.xlu0 %v86_v34 }
  0x24   :  { %90 = vadd.xlane.f32.xlu1 %v89_v35 }
  0x27   :  { %135 = vadd.xlane.f32.xlu0 %v134_v38 }
  0x28   :  { %138 = vadd.xlane.f32.xlu1 %v137_v39 }
  0x2b   :  { %93 = vadd.xlane.f32.xlu0 %v92_v42 }
  0x2c   :  { %96 = vadd.xlane.f32.xlu1 %v95_v43 }
  0x2f   :  { %141 = vadd.xlane.f32.xlu0 %v140_v46 }
  0x30   :  { %144 = vadd.xlane.f32.xlu1 %v143_v47 }
  0x33   :  { %99 = vadd.xlane.f32.xlu0 %v98_v50 }
  0x34   :  { %102 = vadd.xlane.f32.xlu1 %v101_v51 }
  0x37   :  { %147 = vadd.xlane.f32.xlu0 %v146_v54 }
  0x38   :  { %150 = vadd.xlane.f32.xlu1 %v149_v55 }
  0x3b   :  { %105 = vadd.xlane.f32.xlu0 %v104_v58 }
  0x3c   :  { %108 = vadd.xlane.f32.xlu1 %v107_v59 }
  0x3f   :  { %153 = vadd.xlane.f32.xlu0 %v152_v62 }
  0x40   :  { %156 = vadd.xlane.f32.xlu1 %v155_v63 }
  0x8c   :  { %v64_v3 = vpop.xlane.xlu0 %63 }
  0x8d   :  { %v112_v4 = vpop.xlane.xlu1 %111  ;;  %v159_v6 = vmul.f32 0.0625, %v64_v3 }
  0x8e   :  { %v175_v7 = vmul.f32 0.0625, %v112_v4 }
  0x8f   :  { %v2442_v10 = vsub.f32 %v2220_v0, %v159_v6 }
  0x90   :  { %v2445_v11 = vsub.f32 %v2225_v1, %v175_v7  ;;  %v67_v14 = vpop.xlane.xlu0 %66 }
  0x91   :  { %v115_v15 = vpop.xlane.xlu1 %114  ;;  %v160_v18 = vmul.f32 0.0625, %v67_v14  ;;  %v223_v22 = vmul.f32 %v2442_v10, %v2442_v10 }
  0x92   :  { %v176_v19 = vmul.f32 0.0625, %v115_v15  ;;  %v239_v23 = vmul.f32 %v2445_v11, %v2445_v11 }
  0x93   :  { %v2452_v26 = vsub.f32 %v2230_v2, %v160_v18  ;;  %v255_v0 = vsel %vm61_vm0, %v223_v22, 0.0 }
  0x94   :  { %v2455_v27 = vsub.f32 %v2239_v5, %v176_v19  ;;  %256 = vadd.xlane.f32.xlu0 %v255_v0  ;;  %v70_v1 = vpop.xlane.xlu0 %69  ;;  %v303_v31 = vsel %vm61_vm0, %v239_v23, 0.0 }
  0x95   :  { %v73_v30 = vpop.xlane.xlu1 %72  ;;  %v161_v34 = vmul.f32 0.0625, %v70_v1  ;;  %v224_v38 = vmul.f32 %v2452_v26, %v2452_v26 }
  0x96   :  { %v162_v35 = vmul.f32 0.0625, %v73_v30  ;;  %v240_v39 = vmul.f32 %v2455_v27, %v2455_v27 }
  0x97   :  { %v2464_v2 = vsub.f32 %v2248_v8, %v161_v34  ;;  %v258_v42 = vsel %vm61_vm0, %v224_v38, 0.0 }
  0x98   :  { %v2467_v5 = vsub.f32 %v2253_v9, %v162_v35  ;;  %304 = vadd.xlane.f32.xlu0 %v303_v31  ;;  %259 = vadd.xlane.f32.xlu1 %v258_v42  ;;  %v118_v43 = vpop.xlane.xlu0 %117  ;;  %v306_v47 = vsel %vm61_vm0, %v240_v39, 0.0 }
  0x99   :  { %v121_v46 = vpop.xlane.xlu1 %120  ;;  %v177_v50 = vmul.f32 0.0625, %v118_v43  ;;  %v225_v54 = vmul.f32 %v2464_v2, %v2464_v2 }
  0x9a   :  { %v178_v51 = vmul.f32 0.0625, %v121_v46  ;;  %v226_v8 = vmul.f32 %v2467_v5, %v2467_v5 }
  0x9b   :  { %v2476_v55 = vsub.f32 %v2262_v12, %v177_v50  ;;  %v261_v58 = vsel %vm61_vm0, %v225_v54, 0.0 }
  0x9c   :  { %v2479_v9 = vsub.f32 %v2267_v13, %v178_v51  ;;  %307 = vadd.xlane.f32.xlu1 %v306_v47  ;;  %262 = vadd.xlane.f32.xlu0 %v261_v58  ;;  %v76_v59 = vpop.xlane.xlu0 %75  ;;  %v264_v63 = vsel %vm61_vm0, %v226_v8, 0.0 }
  0x9d   :  { %v79_v62 = vpop.xlane.xlu1 %78  ;;  %v163_v3 = vmul.f32 0.0625, %v76_v59  ;;  %v241_v6 = vmul.f32 %v2476_v55, %v2476_v55 }
  0x9e   :  { %v164_v4 = vmul.f32 0.0625, %v79_v62  ;;  %v242_v12 = vmul.f32 %v2479_v9, %v2479_v9 }
  0x9f   :  { %v2488_v7 = vsub.f32 %v2276_v16, %v163_v3  ;;  %v309_v14 = vsel %vm61_vm0, %v241_v6, 0.0 }
  0xa0   :  { %v2491_v13 = vsub.f32 %v2281_v17, %v164_v4  ;;  %265 = vadd.xlane.f32.xlu1 %v264_v63  ;;  %310 = vadd.xlane.f32.xlu0 %v309_v14  ;;  %v124_v15 = vpop.xlane.xlu0 %123  ;;  %v312_v19 = vsel %vm61_vm0, %v242_v12, 0.0 }
  0xa1   :  { %v127_v18 = vpop.xlane.xlu1 %126  ;;  %v179_v22 = vmul.f32 0.0625, %v124_v15  ;;  %v227_v0 = vmul.f32 %v2488_v7, %v2488_v7 }
  0xa2   :  { %v180_v23 = vmul.f32 0.0625, %v127_v18  ;;  %v228_v16 = vmul.f32 %v2491_v13, %v2491_v13 }
  0xa3   :  { %v2500_v1 = vsub.f32 %v2290_v20, %v179_v22  ;;  %v267_v30 = vsel %vm61_vm0, %v227_v0, 0.0 }
  0xa4   :  { %v2503_v17 = vsub.f32 %v2295_v21, %v180_v23  ;;  %313 = vadd.xlane.f32.xlu1 %v312_v19  ;;  %268 = vadd.xlane.f32.xlu0 %v267_v30  ;;  %v82_v31 = vpop.xlane.xlu0 %81  ;;  %v270_v35 = vsel %vm61_vm0, %v228_v16, 0.0 }
  0xa5   :  { %v85_v34 = vpop.xlane.xlu1 %84  ;;  %v165_v38 = vmul.f32 0.0625, %v82_v31  ;;  %v243_v42 = vmul.f32 %v2500_v1, %v2500_v1 }
  0xa6   :  { %v166_v39 = vmul.f32 0.0625, %v85_v34  ;;  %v244_v20 = vmul.f32 %v2503_v17, %v2503_v17 }
  0xa7   :  { %v2512_v43 = vsub.f32 %v2304_v24, %v165_v38  ;;  %v315_v46 = vsel %vm61_vm0, %v243_v42, 0.0 }
  0xa8   :  { %v2515_v21 = vsub.f32 %v2309_v25, %v166_v39  ;;  %271 = vadd.xlane.f32.xlu1 %v270_v35  ;;  %316 = vadd.xlane.f32.xlu0 %v315_v46  ;;  %v130_v47 = vpop.xlane.xlu0 %129  ;;  %v318_v51 = vsel %vm61_vm0, %v244_v20, 0.0 }
  0xa9   :  { %v133_v50 = vpop.xlane.xlu1 %132  ;;  %v181_v54 = vmul.f32 0.0625, %v130_v47  ;;  %v229_v58 = vmul.f32 %v2512_v43, %v2512_v43 }
  0xaa   :  { %v182_v8 = vmul.f32 0.0625, %v133_v50  ;;  %v230_v24 = vmul.f32 %v2515_v21, %v2515_v21 }
  0xab   :  { %v2524_v59 = vsub.f32 %v2318_v28, %v181_v54  ;;  %v273_v62 = vsel %vm61_vm0, %v229_v58, 0.0 }
  0xac   :  { %v2527_v25 = vsub.f32 %v2323_v29, %v182_v8  ;;  %319 = vadd.xlane.f32.xlu1 %v318_v51  ;;  %274 = vadd.xlane.f32.xlu0 %v273_v62  ;;  %v88_v63 = vpop.xlane.xlu0 %87  ;;  %v276_v4 = vsel %vm61_vm0, %v230_v24, 0.0 }
  0xad   :  { %v91_v3 = vpop.xlane.xlu1 %90  ;;  %v167_v6 = vmul.f32 0.0625, %v88_v63  ;;  %v245_v14 = vmul.f32 %v2524_v59, %v2524_v59 }
  0xae   :  { %v168_v12 = vmul.f32 0.0625, %v91_v3  ;;  %v246_v28 = vmul.f32 %v2527_v25, %v2527_v25 }
  0xaf   :  { %v2536_v15 = vsub.f32 %v2332_v32, %v167_v6  ;;  %v321_v18 = vsel %vm61_vm0, %v245_v14, 0.0 }
  0xb0   :  { %v2539_v29 = vsub.f32 %v2337_v33, %v168_v12  ;;  %277 = vadd.xlane.f32.xlu1 %v276_v4  ;;  %322 = vadd.xlane.f32.xlu0 %v321_v18  ;;  %v136_v19 = vpop.xlane.xlu0 %135  ;;  %v324_v23 = vsel %vm61_vm0, %v246_v28, 0.0 }
  0xb1   :  { %v139_v22 = vpop.xlane.xlu1 %138  ;;  %v183_v0 = vmul.f32 0.0625, %v136_v19  ;;  %v231_v30 = vmul.f32 %v2536_v15, %v2536_v15 }
  0xb2   :  { %v184_v16 = vmul.f32 0.0625, %v139_v22  ;;  %v232_v32 = vmul.f32 %v2539_v29, %v2539_v29 }
  0xb3   :  { %v2548_v31 = vsub.f32 %v2346_v36, %v183_v0  ;;  %v279_v34 = vsel %vm61_vm0, %v231_v30, 0.0  ;;  %v1975_v30 = vld [vmem:[%s3704_s4] sm:$0xff]  }
  0xb4   :  { %v2551_v33 = vsub.f32 %v2351_v37, %v184_v16  ;;  %325 = vadd.xlane.f32.xlu1 %v324_v23  ;;  %280 = vadd.xlane.f32.xlu0 %v279_v34  ;;  %v94_v35 = vpop.xlane.xlu0 %93  ;;  %v282_v39 = vsel %vm61_vm0, %v232_v32, 0.0 }
  0xb5   :  { %v97_v38 = vpop.xlane.xlu1 %96  ;;  %v169_v42 = vmul.f32 0.0625, %v94_v35  ;;  %v247_v46 = vmul.f32 %v2548_v31, %v2548_v31  ;;  %1933 = vmatprep.subr.bf16.mxu0 %v1975_v30  ;;  %1967 = vmatprep.subr.bf16.mxu1 %v1975_v30 }
  0xb6   :  { %v170_v20 = vmul.f32 0.0625, %v97_v38  ;;  %v248_v36 = vmul.f32 %v2551_v33, %v2551_v33  ;;  %1934 = vmatpush3.bf16.msra.mxu0 %v1975_v30  ;;  %1968 = vmatpush3.bf16.msra.mxu1 %v1975_v30  ;;  %v800_v30 = vld [vmem:[%s3705_s1 + $0x28] sm:$0xff] }
  0xb7   :  { %v2560_v47 = vsub.f32 %v2360_v40, %v169_v42  ;;  %v327_v50 = vsel %vm61_vm0, %v247_v46, 0.0 }
  0xb8   :  { %v2563_v37 = vsub.f32 %v2365_v41, %v170_v20  ;;  %283 = vadd.xlane.f32.xlu1 %v282_v39  ;;  %328 = vadd.xlane.f32.xlu0 %v327_v50  ;;  %v142_v51 = vpop.xlane.xlu0 %141  ;;  %v330_v8 = vsel %vm61_vm0, %v248_v36, 0.0 }
  0xb9   :  { %v145_v54 = vpop.xlane.xlu1 %144  ;;  %v185_v58 = vmul.f32 0.0625, %v142_v51  ;;  %v233_v62 = vmul.f32 %v2560_v47, %v2560_v47 }
  0xba   :  { %v186_v24 = vmul.f32 0.0625, %v145_v54  ;;  %v234_v40 = vmul.f32 %v2563_v37, %v2563_v37 }
  0xbb   :  { %v2572_v63 = vsub.f32 %v2374_v44, %v185_v58  ;;  %v285_v3 = vsel %vm61_vm0, %v233_v62, 0.0 }
  0xbc   :  { %v2575_v41 = vsub.f32 %v2379_v45, %v186_v24  ;;  %331 = vadd.xlane.f32.xlu1 %v330_v8  ;;  %286 = vadd.xlane.f32.xlu0 %v285_v3  ;;  %v100_v4 = vpop.xlane.xlu0 %99  ;;  %v288_v12 = vsel %vm61_vm0, %v234_v40, 0.0 }
  0xbd   :  { %v103_v6 = vpop.xlane.xlu1 %102  ;;  %v171_v14 = vmul.f32 0.0625, %v100_v4  ;;  %v249_v18 = vmul.f32 %v2572_v63, %v2572_v63 }
  0xbe   :  { %v172_v28 = vmul.f32 0.0625, %v103_v6  ;;  %v250_v44 = vmul.f32 %v2575_v41, %v2575_v41 }
  0xbf   :  { %v2584_v19 = vsub.f32 %v2388_v48, %v171_v14  ;;  %v333_v22 = vsel %vm61_vm0, %v249_v18, 0.0 }
  0xc0   :  { %v2587_v45 = vsub.f32 %v2393_v49, %v172_v28  ;;  %289 = vadd.xlane.f32.xlu1 %v288_v12  ;;  %334 = vadd.xlane.f32.xlu0 %v333_v22  ;;  %v148_v23 = vpop.xlane.xlu0 %147  ;;  %v336_v16 = vsel %vm61_vm0, %v250_v44, 0.0  ;;  %v796_v22 = vld [vmem:[%s3705_s1 + $0x8] sm:$0xff] }
  0xc1   :  { %v151_v0 = vpop.xlane.xlu1 %150  ;;  %v187_v32 = vmul.f32 0.0625, %v148_v23  ;;  %v235_v48 = vmul.f32 %v2584_v19, %v2584_v19  ;;  %v797_v23 = vld [vmem:[%s3705_s1 + $0x10] sm:$0xff] }
  0xc2   :  { %v188_v34 = vmul.f32 0.0625, %v151_v0  ;;  %v236_v49 = vmul.f32 %v2587_v45, %v2587_v45  ;;  %v798_v0 = vld [vmem:[%s3705_s1 + $0x18] sm:$0xff] }
  0xc3   :  { %v2599_v35 = vsub.f32 %v2402_v52, %v187_v32  ;;  %v291_v39 = vsel %vm61_vm0, %v235_v48, 0.0  ;;  %v795_v32 = vld [vmem:[%s3705_s1] sm:$0xff]  ;;  %v801_v48 = vld [vmem:[%s3705_s1 + $0x30] sm:$0xff] }
  0xc4   :  { %v2602_v38 = vsub.f32 %v2407_v53, %v188_v34  ;;  %337 = vadd.xlane.f32.xlu1 %v336_v16  ;;  %292 = vadd.xlane.f32.xlu0 %v291_v39  ;;  %v106_v42 = vpop.xlane.xlu0 %105  ;;  %v294_v46 = vsel %vm61_vm0, %v236_v49, 0.0  ;;  %v799_v16 = vld [vmem:[%s3705_s1 + $0x20] sm:$0xff]  ;;  %v804_v34 = vld [vmem:[%s3705_s1 + $0x48] sm:$0xff]  ;;  %v806_v49 = vld [vmem:[%s3705_s1 + $0x58] sm:$0xff] }
  0xc5   :  { %v109_v20 = vpop.xlane.xlu1 %108  ;;  %v173_v36 = vmul.f32 0.0625, %v106_v42  ;;  %v251_v51 = vmul.f32 %v2599_v35, %v2599_v35  ;;  %v802_v39 = vld [vmem:[%s3705_s1 + $0x38] sm:$0xff]  ;;  %v808_v42 = vld [vmem:[%s3705_s1 + $0x68] sm:$0xff] }
  0xc6   :  { %v174_v50 = vmul.f32 0.0625, %v109_v20  ;;  %v252_v52 = vmul.f32 %v2602_v38, %v2602_v38  ;;  %v803_v20 = vld [vmem:[%s3705_s1 + $0x40] sm:$0xff] }
  0xc7   :  { %v2611_v53 = vsub.f32 %v2416_v56, %v173_v36  ;;  %v339_v8 = vsel %vm61_vm0, %v251_v51, 0.0  ;;  %v805_v36 = vld [vmem:[%s3705_s1 + $0x50] sm:$0xff]  ;;  %v807_v51 = vld [vmem:[%s3705_s1 + $0x60] sm:$0xff] }
  0xc8   :  { %v2614_v54 = vsub.f32 %v2421_v57, %v174_v50  ;;  %295 = vadd.xlane.f32.xlu1 %v294_v46  ;;  %340 = vadd.xlane.f32.xlu0 %v339_v8  ;;  %v154_v58 = vpop.xlane.xlu0 %153  ;;  %v342_v62 = vsel %vm61_vm0, %v252_v52, 0.0  ;;  %v810_v46 = vld [vmem:[%s3705_s1 + $0x78] sm:$0xff]  ;;  %v812_v50 = vld [vmem:[%s3705_s1 + $0x88] sm:$0xff]  ;;  %v809_v8 = vld [vmem:[%s3705_s1 + $0x70] sm:$0xff] }
  0xc9   :  { %v157_v24 = vpop.xlane.xlu1 %156  ;;  %v189_v40 = vmul.f32 0.0625, %v154_v58  ;;  %v237_v4 = vmul.f32 %v2611_v53, %v2611_v53  ;;  %v814_v52 = vld [vmem:[%s3705_s1 + $0x98] sm:$0xff]  ;;  %v816_v58 = vld [vmem:[%s3705_s1 + $0xa8] sm:$0xff] }
  0xca   :  { %v190_v3 = vmul.f32 0.0625, %v157_v24  ;;  %v238_v56 = vmul.f32 %v2614_v54, %v2614_v54  ;;  %v811_v24 = vld [vmem:[%s3705_s1 + $0x80] sm:$0xff] }
  0xcb   :  { %v2623_v6 = vsub.f32 %v2430_v60, %v189_v40  ;;  %v297_v12 = vsel %vm61_vm0, %v237_v4, 0.0  ;;  %v813_v40 = vld [vmem:[%s3705_s1 + $0x90] sm:$0xff]  ;;  %v820_v4 = vld [vmem:[%s3705_s1 + $0xc8] sm:$0xff] }
  0xcc   :  { %v2626_v57 = vsub.f32 %v2435_v61, %v190_v3  ;;  %343 = vadd.xlane.f32.xlu1 %v342_v62  ;;  %298 = vadd.xlane.f32.xlu0 %v297_v12  ;;  %v300_v14 = vsel %vm61_vm0, %v238_v56, 0.0  ;;  %v2168_v61 = vmov 0   ;;  %v818_v62 = vld [vmem:[%s3705_s1 + $0xb8] sm:$0xff]  ;;  %v815_v12 = vld [vmem:[%s3705_s1 + $0xa0] sm:$0xff] }
  0xcd   :  { %v253_v28 = vmul.f32 %v2623_v6, %v2623_v6  ;;  %1974 = vset.pattern.permute.xlu1 %v2168_v61  ;;  %1973 = vset.pattern.permute.xlu0 %v2168_v61 }
  0xce   :  { %v254_v18 = vmul.f32 %v2626_v57, %v2626_v57 }
  0xcf   :  { %v345_v44 = vsel %vm61_vm0, %v253_v28, 0.0 }
  0xd0   :  { %301 = vadd.xlane.f32.xlu1 %v300_v14  ;;  %346 = vadd.xlane.f32.xlu0 %v345_v44  ;;  %v348_v60 = vsel %vm61_vm0, %v254_v18, 0.0  ;;  %v822_v44 = vld [vmem:[%s3705_s1 + $0xd8] sm:$0xff] }
  0xd4   :  { %349 = vadd.xlane.f32.xlu1 %v348_v60 }
  0xe5   :  { %1026 = vperm.xlu1 %1974, %v796_v22   ;;  %v817_v22 = vld [vmem:[%s3705_s1 + $0xb0] sm:$0xff] }
  0xe6   :  { %1021 = vperm.xlu0 %1973, %v795_v32   ;;  %v824_v32 = vld [vmem:[%s3705_s1 + $0xe8] sm:$0xff] }
  0xe9   :  { %1031 = vperm.xlu1 %1974, %v797_v23  }
  0xea   :  { %1066 = vperm.xlu0 %1973, %v804_v34  }
  0xed   :  { %1036 = vperm.xlu1 %1974, %v798_v0  }
  0xee   :  { %1076 = vperm.xlu0 %1973, %v806_v49   ;;  %v819_v49 = vld [vmem:[%s3705_s1 + $0xc0] sm:$0xff] }
  0xf1   :  { %1041 = vperm.xlu1 %1974, %v799_v16  }
  0xf2   :  { %1086 = vperm.xlu0 %1973, %v808_v42  }
  0xf5   :  { %1046 = vperm.xlu1 %1974, %v800_v30  }
  0xf6   :  { %1096 = vperm.xlu0 %1973, %v810_v46  }
  0xf9   :  { %1051 = vperm.xlu1 %1974, %v801_v48  }
  0xfa   :  { %1106 = vperm.xlu0 %1973, %v812_v50  }
  0xfd   :  { %1056 = vperm.xlu1 %1974, %v802_v39  }
  0xfe   :  { %1116 = vperm.xlu0 %1973, %v814_v52   ;;  %v821_v52 = vld [vmem:[%s3705_s1 + $0xd0] sm:$0xff] }
 0x101   :  { %1061 = vperm.xlu1 %1974, %v803_v20  }
 0x102   :  { %1126 = vperm.xlu0 %1973, %v816_v58  }
 0x105   :  { %1071 = vperm.xlu1 %1974, %v805_v36   ;;  %v826_v36 = vld [vmem:[%s3705_s1 + $0xf8] sm:$0xff] }
 0x106   :  { %1136 = vperm.xlu0 %1973, %v818_v62  }
 0x109   :  { %1081 = vperm.xlu1 %1974, %v807_v51  }
 0x10a   :  { %1146 = vperm.xlu0 %1973, %v820_v4  }
 0x10d   :  { %1091 = vperm.xlu1 %1974, %v809_v8  }
 0x10e   :  { %1156 = vperm.xlu0 %1973, %v822_v44  }
 0x111   :  { %1101 = vperm.xlu1 %1974, %v811_v24  }
 0x112   :  { %1166 = vperm.xlu0 %1973, %v824_v32  }
 0x115   :  { %1111 = vperm.xlu1 %1974, %v813_v40  }
 0x116   :  { %1176 = vperm.xlu0 %1973, %v826_v36  }
 0x119   :  { %1121 = vperm.xlu1 %1974, %v815_v12  }
 0x11d   :  { %v257_v3 = vpop.xlane.xlu0 %256  ;;  %1131 = vperm.xlu1 %1974, %v817_v22  }
 0x11e   :  { %v351_v56 = vmul.f32 0.0625, %v257_v3 }
 0x120   :  { %v383_v14 = vadd.f32 1e-05, %v351_v56  ;;  %v823_v56 = vld [vmem:[%s3705_s1 + $0xe0] sm:$0xff] }
 0x121   :  { %v260_v28 = vpop.xlane.xlu1 %259  ;;  %v305_v18 = vpop.xlane.xlu0 %304  ;;  %1141 = vperm.xlu1 %1974, %v819_v49  }
 0x122   :  { %1976 = vrsqrt.f32 %v383_v14  ;;  %v352_v60 = vmul.f32 0.0625, %v260_v28  ;;  %v367_v61 = vmul.f32 0.0625, %v305_v18  ;;  %v2732_v28 = vld [vmem:[%s3706_s2] ss:$0 sm:$0xff] }
 0x124   :  { %v384_v23 = vadd.f32 1e-05, %v352_v60  ;;  %v399_v0 = vadd.f32 1e-05, %v367_v61 }
 0x125   :  { %v308_v16 = vpop.xlane.xlu1 %307  ;;  %v263_v30 = vpop.xlane.xlu0 %262  ;;  %1151 = vperm.xlu1 %1974, %v821_v52  }
 0x126   :  { %1978 = vrsqrt.f32 %v384_v23  ;;  %v368_v34 = vmul.f32 0.0625, %v308_v16  ;;  %v353_v48 = vmul.f32 0.0625, %v263_v30  ;;  %v825_v16 = vld [vmem:[%s3705_s1 + $0xf0] sm:$0xff] }
 0x127   :  { %1980 = vrsqrt.f32 %v399_v0 }
 0x128   :  { %v400_v39 = vadd.f32 1e-05, %v368_v34  ;;  %v385_v42 = vadd.f32 1e-05, %v353_v48 }
 0x129   :  { %v266_v20 = vpop.xlane.xlu1 %265  ;;  %v311_v46 = vpop.xlane.xlu0 %310  ;;  %1161 = vperm.xlu1 %1974, %v823_v56  }
 0x12a   :  { %1982 = vrsqrt.f32 %v400_v39  ;;  %v354_v50 = vmul.f32 0.0625, %v266_v20  ;;  %v369_v51 = vmul.f32 0.0625, %v311_v46 }
 0x12b   :  { %1984 = vrsqrt.f32 %v385_v42 }
 0x12c   :  { %v386_v8 = vadd.f32 1e-05, %v354_v50  ;;  %v401_v58 = vadd.f32 1e-05, %v369_v51 }
 0x12d   :  { %v314_v24 = vpop.xlane.xlu1 %313  ;;  %v269_v62 = vpop.xlane.xlu0 %268  ;;  %1171 = vperm.xlu1 %1974, %v825_v16  }
 0x12e   :  { %1986 = vrsqrt.f32 %v386_v8  ;;  %v370_v40 = vmul.f32 0.0625, %v314_v24  ;;  %v355_v3 = vmul.f32 0.0625, %v269_v62 }
 0x12f   :  { %v1977_v4 = vpop.eup %1976  ;;  %1988 = vrsqrt.f32 %v401_v58 }
 0x130   :  { %v402_v12 = vadd.f32 1e-05, %v370_v40  ;;  %v387_v14 = vadd.f32 1e-05, %v355_v3  ;;  %v447_v18 = vmul.f32 %v1977_v4, %v2442_v10  ;;  %v2742_v10 = vld [vmem:[%s3707_s3] ss:$0 sm:$0xff] }
 0x131   :  { %v272_v44 = vpop.xlane.xlu1 %271  ;;  %v317_v60 = vpop.xlane.xlu0 %316 }
 0x132   :  { %1990 = vrsqrt.f32 %v402_v12  ;;  %v356_v61 = vmul.f32 0.0625, %v272_v44  ;;  %v371_v22 = vmul.f32 0.0625, %v317_v60  ;;  %v485_v0 = vmul.f32 %v2732_v28, %v447_v18 }
 0x133   :  { %v1979_v23 = vpop.eup %1978  ;;  %1992 = vrsqrt.f32 %v387_v14 }
 0x134   :  { %v1981_v30 = vpop.eup %1980  ;;  %v388_v32 = vadd.f32 1e-05, %v356_v61  ;;  %v403_v34 = vadd.f32 1e-05, %v371_v22  ;;  %v448_v48 = vmul.f32 %v1979_v23, %v2452_v26  ;;  %v523_v51 = vadd.f32 %v2742_v10, %v485_v0 }
 0x135   :  { %v320_v49 = vpop.xlane.xlu1 %319  ;;  %v275_v39 = vpop.xlane.xlu0 %274  ;;  %v463_v42 = vmul.f32 %v1981_v30, %v2445_v11 }
 0x136   :  { %1994 = vrsqrt.f32 %v388_v32  ;;  %v372_v20 = vmul.f32 0.0625, %v320_v49  ;;  %v357_v46 = vmul.f32 0.0625, %v275_v39  ;;  %v486_v36 = vmul.f32 %v2732_v28, %v448_v48 }
 0x137   :  { %v1983_v50 = vpop.eup %1982  ;;  %1996 = vrsqrt.f32 %v403_v34  ;;  %v501_v11 = vmul.f32 %v2732_v28, %v463_v42 }
 0x138   :  { %v1985_v52 = vpop.eup %1984  ;;  %v404_v8 = vadd.f32 1e-05, %v372_v20  ;;  %v389_v58 = vadd.f32 1e-05, %v357_v46  ;;  %v524_v24 = vadd.f32 %v2742_v10, %v486_v36  ;;  %v464_v26 = vmul.f32 %v1983_v50, %v2455_v27 }
 0x139   :  { %v278_v62 = vpop.xlane.xlu1 %277  ;;  %v323_v40 = vpop.xlane.xlu0 %322  ;;  %v449_v3 = vmul.f32 %v1985_v52, %v2464_v2  ;;  %v539_v2 = vadd.f32 %v2742_v10, %v501_v11 }
 0x13a   :  { %1998 = vrsqrt.f32 %v404_v8  ;;  %v358_v4 = vmul.f32 0.0625, %v278_v62  ;;  %v373_v56 = vmul.f32 0.0625, %v323_v40  ;;  %v555_v12 = vpack.c.bf16 %v524_v24, %v523_v51 }
 0x13b   :  { %v1987_v14 = vpop.eup %1986  ;;  %2000 = vrsqrt.f32 %v389_v58  ;;  %v502_v18 = vmul.f32 %v2732_v28, %v464_v26  ;;  %v487_v44 = vmul.f32 %v2732_v28, %v449_v3 }
 0x13c   :  { %v1989_v60 = vpop.eup %1988  ;;  %v390_v61 = vadd.f32 1e-05, %v358_v4  ;;  %v405_v22 = vadd.f32 1e-05, %v373_v56  ;;  %1935 = vmatprep.mubr.msk.bf16.mxu0 %vm61_vm0, %v555_v12  ;;  %v450_v27 = vmul.f32 %v1987_v14, %v2467_v5 }
 0x13d   :  { %v326_v23 = vpop.xlane.xlu1 %325  ;;  %v281_v0 = vpop.xlane.xlu0 %280  ;;  %v540_v16 = vadd.f32 %v2742_v10, %v502_v18  ;;  %v465_v30 = vmul.f32 %v1989_v60, %v2476_v55  ;;  %v525_v42 = vadd.f32 %v2742_v10, %v487_v44 }
 0x13e   :  { %2002 = vrsqrt.f32 %v390_v61  ;;  %v374_v32 = vmul.f32 0.0625, %v326_v23  ;;  %v359_v34 = vmul.f32 0.0625, %v281_v0  ;;  %v488_v48 = vmul.f32 %v2732_v28, %v450_v27 }
 0x13f   :  { %v1991_v49 = vpop.eup %1990  ;;  %2004 = vrsqrt.f32 %v405_v22  ;;  %v563_v39 = vpack.c.bf16 %v540_v16, %v539_v2  ;;  %v503_v52 = vmul.f32 %v2732_v28, %v465_v30 }
 0x140   :  { %v1993_v20 = vpop.eup %1992  ;;  %v406_v5 = vadd.f32 1e-05, %v374_v32  ;;  %v391_v46 = vadd.f32 1e-05, %v359_v34  ;;  %v526_v36 = vadd.f32 %v2742_v10, %v488_v48  ;;  %v466_v50 = vmul.f32 %v1991_v49, %v2479_v9 }
 0x141   :  { %1951 = vmatprep.mubr.msk.bf16.mxu1 %vm61_vm0, %v563_v39  ;;  %v284_v55 = vpop.xlane.xlu1 %283  ;;  %v329_v51 = vpop.xlane.xlu0 %328  ;;  %v451_v8 = vmul.f32 %v1993_v20, %v2488_v7  ;;  %v541_v7 = vadd.f32 %v2742_v10, %v503_v52 }
 0x142   :  { %2006 = vrsqrt.f32 %v406_v5  ;;  %v360_v58 = vmul.f32 0.0625, %v284_v55  ;;  %v375_v24 = vmul.f32 0.0625, %v329_v51  ;;  %v556_v26 = vpack.c.bf16 %v526_v36, %v525_v42 }
 0x143   :  { %v1995_v62 = vpop.eup %1994  ;;  %2008 = vrsqrt.f32 %v391_v46  ;;  %v504_v40 = vmul.f32 %v2732_v28, %v466_v50  ;;  %v489_v11 = vmul.f32 %v2732_v28, %v451_v8 }
 0x144   :  { %v1997_v3 = vpop.eup %1996  ;;  %v392_v9 = vadd.f32 1e-05, %v360_v58  ;;  %v407_v4 = vadd.f32 1e-05, %v375_v24  ;;  %1936 = vmatmul.mubr.msk.bf16.vlgmr.msra.gmra.mxu0 %vm61_vm0, %v556_v26  ;;  %v452_v56 = vmul.f32 %v1995_v62, %v2491_v13 }
 0x145   :  { %v332_v12 = vpop.xlane.xlu1 %331  ;;  %v287_v14 = vpop.xlane.xlu0 %286  ;;  %v542_v18 = vadd.f32 %v2742_v10, %v504_v40  ;;  %v467_v44 = vmul.f32 %v1997_v3, %v2500_v1  ;;  %v527_v0 = vadd.f32 %v2742_v10, %v489_v11 }
 0x146   :  { %2010 = vrsqrt.f32 %v392_v9  ;;  %v376_v60 = vmul.f32 0.0625, %v332_v12  ;;  %v361_v61 = vmul.f32 0.0625, %v287_v14  ;;  %v490_v22 = vmul.f32 %v2732_v28, %v452_v56 }
 0x147   :  { %v1999_v27 = vpop.eup %1998  ;;  %2012 = vrsqrt.f32 %v407_v4  ;;  %v564_v23 = vpack.c.bf16 %v542_v18, %v541_v7  ;;  %v505_v48 = vmul.f32 %v2732_v28, %v467_v44 }
 0x148   :  { %v2001_v2 = vpop.eup %2000  ;;  %v408_v13 = vadd.f32 1e-05, %v376_v60  ;;  %v393_v16 = vadd.f32 1e-05, %v361_v61  ;;  %v528_v30 = vadd.f32 %v2742_v10, %v490_v22  ;;  %v468_v32 = vmul.f32 %v1999_v27, %v2503_v17 }
 0x149   :  { %1952 = vmatmul.mubr.msk.bf16.vlgmr.msra.gmra.mxu1 %vm61_vm0, %v564_v23  ;;  %v290_v1 = vpop.xlane.xlu1 %289  ;;  %v335_v34 = vpop.xlane.xlu0 %334  ;;  %v453_v49 = vmul.f32 %v2001_v2, %v2512_v43  ;;  %v543_v43 = vadd.f32 %v2742_v10, %v505_v48 }
 0x14a   :  { %2014 = vrsqrt.f32 %v408_v13  ;;  %v362_v39 = vmul.f32 0.0625, %v290_v1  ;;  %v377_v42 = vmul.f32 0.0625, %v335_v34  ;;  %v557_v20 = vpack.c.bf16 %v528_v30, %v527_v0 }
 0x14b   :  { %v2003_v5 = vpop.eup %2002  ;;  %2016 = vrsqrt.f32 %v393_v16  ;;  %v506_v46 = vmul.f32 %v2732_v28, %v468_v32  ;;  %v491_v36 = vmul.f32 %v2732_v28, %v453_v49 }
 0x14c   :  { %v2005_v50 = vpop.eup %2004  ;;  %v394_v17 = vadd.f32 1e-05, %v362_v39  ;;  %v409_v55 = vadd.f32 1e-05, %v377_v42  ;;  %1939 = vmatprep.mubr.msk.bf16.mxu0 %vm61_vm0, %v557_v20  ;;  %v454_v51 = vmul.f32 %v2003_v5, %v2515_v21 }
 0x14d   :  { %v338_v52 = vpop.xlane.xlu1 %337  ;;  %v293_v8 = vpop.xlane.xlu0 %292  ;;  %v544_v58 = vadd.f32 %v2742_v10, %v506_v46  ;;  %v469_v24 = vmul.f32 %v2005_v50, %v2524_v59  ;;  %v529_v9 = vadd.f32 %v2742_v10, %v491_v36 }
 0x14e   :  { %2018 = vrsqrt.f32 %v394_v17  ;;  %v378_v26 = vmul.f32 0.0625, %v338_v52  ;;  %v363_v62 = vmul.f32 0.0625, %v293_v8  ;;  %v492_v40 = vmul.f32 %v2732_v28, %v454_v51 }
 0x14f   :  { %v2007_v11 = vpop.eup %2006  ;;  %2020 = vrsqrt.f32 %v409_v55  ;;  %v565_v3 = vpack.c.bf16 %v544_v58, %v543_v43  ;;  %v507_v18 = vmul.f32 %v2732_v28, %v469_v24 }
 0x150   :  { %v2009_v4 = vpop.eup %2008  ;;  %v410_v21 = vadd.f32 1e-05, %v378_v26  ;;  %v395_v56 = vadd.f32 1e-05, %v363_v62  ;;  %v530_v12 = vadd.f32 %v2742_v10, %v492_v40  ;;  %v470_v14 = vmul.f32 %v2007_v11, %v2527_v25 }
 0x151   :  { %1955 = vmatprep.mubr.msk.bf16.mxu1 %vm61_vm0, %v565_v3  ;;  %v296_v59 = vpop.xlane.xlu1 %295  ;;  %v341_v7 = vpop.xlane.xlu0 %340  ;;  %v455_v44 = vmul.f32 %v2009_v4, %v2536_v15  ;;  %v545_v15 = vadd.f32 %v2742_v10, %v507_v18 }
 0x152   :  { %2022 = vrsqrt.f32 %v410_v21  ;;  %v364_v60 = vmul.f32 0.0625, %v296_v59  ;;  %v379_v61 = vmul.f32 0.0625, %v341_v7  ;;  %v558_v22 = vpack.c.bf16 %v530_v12, %v529_v9 }
 0x153   :  { %v2011_v27 = vpop.eup %2010  ;;  %2024 = vrsqrt.f32 %v395_v56  ;;  %v508_v23 = vmul.f32 %v2732_v28, %v470_v14  ;;  %v493_v0 = vmul.f32 %v2732_v28, %v455_v44 }
 0x154   :  { %v2013_v2 = vpop.eup %2012  ;;  %v396_v25 = vadd.f32 1e-05, %v364_v60  ;;  %v411_v13 = vadd.f32 1e-05, %v379_v61  ;;  %1940 = vmatmul.mubr.msk.bf16.gmra.mxu0 %vm61_vm0, %v558_v22  ;;  %v456_v16 = vmul.f32 %v2011_v27, %v2539_v29 }
 0x155   :  { %v344_v30 = vpop.xlane.xlu1 %343  ;;  %v299_v32 = vpop.xlane.xlu0 %298  ;;  %v546_v1 = vadd.f32 %v2742_v10, %v508_v23  ;;  %v471_v34 = vmul.f32 %v2013_v2, %v2548_v31  ;;  %v531_v5 = vadd.f32 %v2742_v10, %v493_v0 }
 0x156   :  { %2026 = vrsqrt.f32 %v396_v25  ;;  %v380_v48 = vmul.f32 0.0625, %v344_v30  ;;  %v365_v49 = vmul.f32 0.0625, %v299_v32  ;;  %v494_v39 = vmul.f32 %v2732_v28, %v456_v16 }
 0x157   :  { %v2015_v42 = vpop.eup %2014  ;;  %2028 = vrsqrt.f32 %v411_v13  ;;  %v566_v20 = vpack.c.bf16 %v546_v1, %v545_v15  ;;  %v509_v51 = vmul.f32 %v2732_v28, %v471_v34 }
 0x158   :  { %v2017_v46 = vpop.eup %2016  ;;  %v412_v29 = vadd.f32 1e-05, %v380_v48  ;;  %v397_v36 = vadd.f32 1e-05, %v365_v49  ;;  %v532_v50 = vadd.f32 %v2742_v10, %v494_v39  ;;  %v472_v17 = vmul.f32 %v2015_v42, %v2551_v33 }
 0x159   :  { %1956 = vmatmul.mubr.msk.bf16.gmra.mxu1 %vm61_vm0, %v566_v20  ;;  %v302_v31 = vpop.xlane.xlu1 %301  ;;  %v347_v55 = vpop.xlane.xlu0 %346  ;;  %v457_v52 = vmul.f32 %v2017_v46, %v2560_v47  ;;  %v547_v47 = vadd.f32 %v2742_v10, %v509_v51 }
 0x15a   :  { %2030 = vrsqrt.f32 %v412_v29  ;;  %v366_v8 = vmul.f32 0.0625, %v302_v31  ;;  %v381_v43 = vmul.f32 0.0625, %v347_v55  ;;  %v559_v58 = vpack.c.bf16 %v532_v50, %v531_v5 }
 0x15b   :  { %v2019_v24 = vpop.eup %2018  ;;  %2032 = vrsqrt.f32 %v397_v36  ;;  %v510_v26 = vmul.f32 %v2732_v28, %v472_v17  ;;  %v495_v62 = vmul.f32 %v2732_v28, %v457_v52 }
 0x15c   :  { %v2021_v40 = vpop.eup %2020  ;;  %v398_v33 = vadd.f32 1e-05, %v366_v8  ;;  %v413_v11 = vadd.f32 1e-05, %v381_v43  ;;  %1943 = vmatprep.mubr.msk.bf16.mxu0 %vm61_vm0, %v559_v58  ;;  %v458_v3 = vmul.f32 %v2019_v24, %v2563_v37  ;;  %v2857_v24 = vld [vmem:[%s3708_s5] ss:$0 sm:$0xff] }
 0x15d   :  { %v350_v9 = vpop.xlane.xlu1 %349  ;;  %v548_v4 = vadd.f32 %v2742_v10, %v510_v26  ;;  %v473_v21 = vmul.f32 %v2021_v40, %v2572_v63  ;;  %v533_v7 = vadd.f32 %v2742_v10, %v495_v62  ;;  %s2170_s5 = smov 64  }
 0x15e   :  { %2034 = vrsqrt.f32 %v398_v33  ;;  %v382_v56 = vmul.f32 0.0625, %v350_v9  ;;  %v496_v12 = vmul.f32 %v2732_v28, %v458_v3 }
 0x15f   :  { %v2023_v14 = vpop.eup %2022  ;;  %2036 = vrsqrt.f32 %v413_v11  ;;  %v567_v59 = vpack.c.bf16 %v548_v4, %v547_v47  ;;  %v511_v61 = vmul.f32 %v2732_v28, %v473_v21 }
 0x160   :  { %v2025_v18 = vpop.eup %2024  ;;  %v414_v44 = vadd.f32 1e-05, %v382_v56  ;;  %v534_v37 = vadd.f32 %v2742_v10, %v496_v12  ;;  %v474_v60 = vmul.f32 %v2023_v14, %v2575_v41 }
 0x161   :  { %1959 = vmatprep.mubr.msk.bf16.mxu1 %vm61_vm0, %v567_v59  ;;  %v459_v63 = vmul.f32 %v2025_v18, %v2584_v19  ;;  %v549_v2 = vadd.f32 %v2742_v10, %v511_v61  ;;  %v2861_v40 = vpop.permute.xlu1 %1026 }
 0x162   :  { %2038 = vrsqrt.f32 %v414_v44  ;;  %v560_v22 = vpack.c.bf16 %v534_v37, %v533_v7  ;;  %v512_v27 = vmul.f32 %v2732_v28, %v474_v60 }
 0x163   :  { %v2027_v23 = vpop.eup %2026  ;;  %v497_v13 = vmul.f32 %v2732_v28, %v459_v63 }
 0x164   :  { %v2029_v0 = vpop.eup %2028  ;;  %1944 = vmatmul.mubr.msk.bf16.gmra.mxu0 %vm61_vm0, %v560_v22  ;;  %v550_v25 = vadd.f32 %v2742_v10, %v512_v27  ;;  %v460_v41 = vmul.f32 %v2027_v23, %v2587_v45 }
 0x165   :  { %v475_v16 = vmul.f32 %v2029_v0, %v2599_v35  ;;  %v535_v1 = vadd.f32 %v2742_v10, %v497_v13  ;;  %v2871_v21 = vpop.permute.xlu1 %1031 }
 0x166   :  { %v568_v30 = vpack.c.bf16 %v550_v25, %v549_v2  ;;  %v498_v19 = vmul.f32 %v2732_v28, %v460_v41 }
 0x167   :  { %v2031_v32 = vpop.eup %2030  ;;  %v513_v49 = vmul.f32 %v2732_v28, %v475_v16 }
 0x168   :  { %v2033_v15 = vpop.eup %2032  ;;  %1960 = vmatmul.mubr.msk.bf16.gmra.mxu1 %vm61_vm0, %v568_v30  ;;  %v536_v34 = vadd.f32 %v2742_v10, %v498_v19  ;;  %v476_v48 = vmul.f32 %v2031_v32, %v2602_v38 }
 0x169   :  { %v461_v45 = vmul.f32 %v2033_v15, %v2611_v53  ;;  %v551_v5 = vadd.f32 %v2742_v10, %v513_v49  ;;  %v2886_v18 = vpop.permute.xlu1 %1036 }
 0x16a   :  { %v561_v39 = vpack.c.bf16 %v536_v34, %v535_v1  ;;  %v514_v35 = vmul.f32 %v2732_v28, %v476_v48 }
 0x16b   :  { %v2035_v42 = vpop.eup %2034  ;;  %v499_v36 = vmul.f32 %v2732_v28, %v461_v45 }
 0x16c   :  { %v2037_v20 = vpop.eup %2036  ;;  %1947 = vmatprep.mubr.msk.bf16.mxu0 %vm61_vm0, %v561_v39  ;;  %v552_v46 = vadd.f32 %v2742_v10, %v514_v35  ;;  %v462_v29 = vmul.f32 %v2035_v42, %v2614_v54 }
 0x16d   :  { %v477_v38 = vmul.f32 %v2037_v20, %v2623_v6  ;;  %v537_v31 = vadd.f32 %v2742_v10, %v499_v36  ;;  %v2904_v23 = vpop.permute.xlu1 %1041 }
 0x16e   :  { %v569_v50 = vpack.c.bf16 %v552_v46, %v551_v5  ;;  %v500_v53 = vmul.f32 %v2732_v28, %v462_v29 }
 0x16f   :  { %v2039_v17 = vpop.eup %2038  ;;  %v515_v52 = vmul.f32 %v2732_v28, %v477_v38 }
 0x170   :  { %1963 = vmatprep.mubr.msk.bf16.mxu1 %vm61_vm0, %v569_v50  ;;  %v538_v55 = vadd.f32 %v2742_v10, %v500_v53  ;;  %v478_v51 = vmul.f32 %v2039_v17, %v2626_v57 }
 0x171   :  { %v553_v6 = vadd.f32 %v2742_v10, %v515_v52  ;;  %v2918_v30 = vpop.permute.xlu1 %1046 }
 0x172   :  { %v562_v8 = vpack.c.bf16 %v538_v55, %v537_v31  ;;  %v516_v54 = vmul.f32 %v2732_v28, %v478_v51 }
 0x174   :  { %1948 = vmatmul.mubr.msk.bf16.gmra.mxu0 %vm61_vm0, %v562_v8  ;;  %v554_v43 = vadd.f32 %v2742_v10, %v516_v54 }
 0x175   :  { %v2935_v5 = vpop.permute.xlu1 %1051 }
 0x176   :  { %v570_v58 = vpack.c.bf16 %v554_v43, %v553_v6 }
 0x178   :  { %1964 = vmatmul.mubr.msk.bf16.gmra.mxu1 %vm61_vm0, %v570_v58 }
 0x179   :  { %v2955_v54 = vpop.permute.xlu1 %1056 }
 0x204   :  { %v1937_v57 = vpop.f32.mrf.mxu0 }
 0x205   :  { %v677_v26 = vadd.f32 %v1937_v57, %v2857_v24 }
 0x206   :  { %v668_v62 = vpop.f32.mrf.mxu0 }
 0x207   :  { %1247 = vrot.lane.b32.xlu1 %v677_v26, %s2169_s22  ;;  %v669_v47 = vadd.f32 %v2857_v24, %v668_v62  ;;  %v829_v25 = vsub.f32 0.0, %v677_v26 }
 0x208   :  { %v1938_v28 = vpop.f32.mrf.mxu0 }
 0x209   :  { %v680_v10 = vadd.f32 %v1938_v28, %v2857_v24  ;;  %v1953_v33 = vpop.f32.mrf.mxu1  ;;  %v863_v32 = vmul.f32 1.442695, %v829_v25  ;;  %v827_v35 = vsub.f32 0.0, %v669_v47 }
 0x20a   :  { %v741_v11 = vadd.f32 %v1953_v33, %v2857_v24  ;;  %v671_v56 = vpop.f32.mrf.mxu0  ;;  %v2970_v33 = vpop.permute.xlu0 %1021 }
 0x20b   :  { %v732_v3 = vpop.f32.mrf.mxu1  ;;  %1249 = vrot.lane.b32.xlu0 %v680_v10, %s2169_s22  ;;  %v2877_v12 = vadd.f32 %v2857_v24, %v671_v56  ;;  %v830_v19 = vsub.f32 0.0, %v680_v10  ;;  %2040 = vpow2.f32 %v863_v32  ;;  %v859_v53 = vmul.f32 1.442695, %v827_v35 }
 0x20c   :  { %1279 = vrot.lane.b32.xlu1 %v741_v11, %s2169_s22  ;;  %v2880_v14 = vadd.f32 %v2857_v24, %v732_v3  ;;  %v845_v15 = vsub.f32 0.0, %v741_v11 }
 0x20d   :  { %v1954_v9 = vpop.f32.mrf.mxu1  ;;  %v865_v45 = vmul.f32 1.442695, %v830_v19  ;;  %v828_v51 = vsub.f32 0.0, %v2877_v12 }
 0x20e   :  { %v2869_v4 = vadd.f32 %v1954_v9, %v2857_v24  ;;  %v895_v42 = vmul.f32 1.442695, %v845_v15  ;;  %v843_v17 = vsub.f32 0.0, %v2880_v14 }
 0x20f   :  { %v735_v59 = vpop.f32.mrf.mxu1  ;;  %2042 = vpow2.f32 %v865_v45  ;;  %v861_v26 = vmul.f32 1.442695, %v828_v51 }
 0x210   :  { %1243 = vrot.lane.b32.xlu1 %v669_v47, %s2169_s22  ;;  %1281 = vrot.lane.b32.xlu0 %v2869_v4, %s2169_s22  ;;  %v2892_v37 = vadd.f32 %v2857_v24, %v735_v59  ;;  %v846_v46 = vsub.f32 0.0, %v2869_v4  ;;  %2044 = vpow2.f32 %v895_v42  ;;  %v891_v43 = vmul.f32 1.442695, %v843_v17  ;;  %v2977_v47 = vpop.permute.xlu1 %1061 }
 0x211   :  { %2046 = vpow2.f32 %v859_v53 }
 0x212   :  { %v897_v52 = vmul.f32 1.442695, %v846_v46  ;;  %v844_v62 = vsub.f32 0.0, %v2892_v37 }
 0x214   :  { %1245 = vrot.lane.b32.xlu0 %v2877_v12, %s2169_s22  ;;  %1275 = vrot.lane.b32.xlu1 %v2880_v14, %s2169_s22  ;;  %v1941_v7 = vpop.f32.mrf.mxu0  ;;  %2048 = vpow2.f32 %v897_v52  ;;  %v893_v4 = vmul.f32 1.442695, %v844_v62 }
 0x215   :  { %v2889_v44 = vadd.f32 %v1941_v7, %v2857_v24  ;;  %2050 = vpow2.f32 %v891_v43 }
 0x216   :  { %v684_v60 = vpop.f32.mrf.mxu0  ;;  %2052 = vpow2.f32 %v861_v26 }
 0x217   :  { %v2911_v41 = vadd.f32 %v2857_v24, %v684_v60  ;;  %v833_v58 = vsub.f32 0.0, %v2889_v44 }
 0x218   :  { %1277 = vrot.lane.b32.xlu0 %v2892_v37, %s2169_s22  ;;  %1255 = vrot.lane.b32.xlu1 %v2889_v44, %s2169_s22  ;;  %v1942_v61 = vpop.f32.mrf.mxu0  ;;  %v2041_v9 = vpop.eup %2040 }
 0x219   :  { %v2899_v63 = vadd.f32 %v1942_v61, %v2857_v24  ;;  %v1957_v22 = vpop.f32.mrf.mxu1  ;;  %v871_v11 = vmul.f32 1.442695, %v833_v58  ;;  %v831_v14 = vsub.f32 0.0, %v2911_v41  ;;  %v925_v61 = vadd.f32 1.0, %v2041_v9 }
 0x21a   :  { %v2902_v27 = vadd.f32 %v1957_v22, %v2857_v24  ;;  %v687_v16 = vpop.f32.mrf.mxu0 }
 0x21b   :  { %v748_v0 = vpop.f32.mrf.mxu1  ;;  %v2926_v34 = vadd.f32 %v2857_v24, %v687_v16  ;;  %v834_v56 = vsub.f32 0.0, %v2899_v63  ;;  %2054 = vpow2.f32 %v871_v11 }
 0x21c   :  { %1257 = vrot.lane.b32.xlu0 %v2899_v63, %s2169_s22  ;;  %1287 = vrot.lane.b32.xlu1 %v2902_v27, %s2169_s22  ;;  %v2923_v1 = vadd.f32 %v2857_v24, %v748_v0  ;;  %v849_v10 = vsub.f32 0.0, %v2902_v27  ;;  %v2043_v60 = vpop.eup %2042  ;;  %2056 = vpow2.f32 %v893_v4 }
 0x21d   :  { %v1958_v2 = vpop.f32.mrf.mxu1  ;;  %v2045_v22 = vpop.eup %2044  ;;  %v873_v27 = vmul.f32 1.442695, %v834_v56  ;;  %v832_v16 = vsub.f32 0.0, %v2926_v34  ;;  %v926_v15 = vadd.f32 1.0, %v2043_v60 }
 0x21e   :  { %v2914_v13 = vadd.f32 %v1958_v2, %v2857_v24  ;;  %v903_v44 = vmul.f32 1.442695, %v849_v10  ;;  %v2992_v2 = vpop.permute.xlu0 %1066  ;;  %v2047_v42 = vpop.eup %2046 }
 0x21f   :  { %v751_v48 = vpop.f32.mrf.mxu1  ;;  %v923_v52 = vadd.f32 1.0, %v2047_v42 }
 0x220   :  { %1251 = vrot.lane.b32.xlu1 %v2911_v41, %s2169_s22  ;;  %1289 = vrot.lane.b32.xlu0 %v2914_v13, %s2169_s22  ;;  %v2939_v29 = vadd.f32 %v2857_v24, %v751_v48  ;;  %v850_v0 = vsub.f32 0.0, %v2914_v13  ;;  %v867_v41 = vmul.f32 1.442695, %v831_v14  ;;  %v3000_v48 = vpop.permute.xlu1 %1071  ;;  %2058 = vpow2.f32 %v903_v44 }
 0x221   :  { %2060 = vrcp.f32 %v925_v61  ;;  %v941_v13 = vadd.f32 1.0, %v2045_v22  ;;  %v2049_v46 = vpop.eup %2048 }
 0x222   :  { %2062 = vpow2.f32 %v873_v27  ;;  %v3014_v17 = vpop.permute.xlu0 %1076  ;;  %v942_v43 = vadd.f32 1.0, %v2049_v46 }
 0x223   :  { %2064 = vpow2.f32 %v867_v41 }
 0x224   :  { %1283 = vrot.lane.b32.xlu1 %v2923_v1, %s2169_s22  ;;  %v1945_v49 = vpop.f32.mrf.mxu0  ;;  %1253 = vrot.lane.b32.xlu0 %v2926_v34, %s2169_s22  ;;  %2066 = vrcp.f32 %v926_v15  ;;  %v3025_v58 = vpop.permute.xlu1 %1081 }
 0x225   :  { %v2933_v39 = vadd.f32 %v1945_v49, %v2857_v24  ;;  %v847_v49 = vsub.f32 0.0, %v2923_v1  ;;  %v848_v1 = vsub.f32 0.0, %v2939_v29  ;;  %2068 = vrcp.f32 %v941_v13 }
 0x226   :  { %v700_v20 = vpop.f32.mrf.mxu0 }
 0x227   :  { %v2964_v57 = vadd.f32 %v2857_v24, %v700_v20  ;;  %v905_v20 = vmul.f32 1.442695, %v850_v0  ;;  %v899_v53 = vmul.f32 1.442695, %v847_v49  ;;  %v901_v62 = vmul.f32 1.442695, %v848_v1 }
 0x228   :  { %1263 = vrot.lane.b32.xlu1 %v2933_v39, %s2169_s22  ;;  %v1946_v36 = vpop.f32.mrf.mxu0  ;;  %v1961_v38 = vpop.f32.mrf.mxu1  ;;  %1285 = vrot.lane.b32.xlu0 %v2939_v29, %s2169_s22 }
 0x229   :  { %v2946_v50 = vadd.f32 %v1946_v36, %v2857_v24  ;;  %v2950_v31 = vadd.f32 %v1961_v38, %v2857_v24  ;;  %v869_v36 = vmul.f32 1.442695, %v832_v16  ;;  %2070 = vpow2.f32 %v905_v20  ;;  %v3044_v61 = vpop.permute.xlu1 %1091 }
 0x22a   :  { %v764_v55 = vpop.f32.mrf.mxu1  ;;  %v703_v28 = vpop.f32.mrf.mxu0 }
 0x22b   :  { %v2975_v3 = vadd.f32 %v2857_v24, %v764_v55  ;;  %v2981_v12 = vadd.f32 %v2857_v24, %v703_v28  ;;  %v837_v55 = vsub.f32 0.0, %v2933_v39  ;;  %2072 = vpow2.f32 %v869_v36 }
 0x22c   :  { %1295 = vrot.lane.b32.xlu1 %v2950_v31, %s2169_s22  ;;  %v1962_v8 = vpop.f32.mrf.mxu1  ;;  %1265 = vrot.lane.b32.xlu0 %v2946_v50, %s2169_s22  ;;  %v838_v39 = vsub.f32 0.0, %v2946_v50  ;;  %2074 = vpow2.f32 %v899_v53  ;;  %v853_v11 = vsub.f32 0.0, %v2950_v31  ;;  %v3036_v50 = vpop.permute.xlu0 %1086  ;;  %v835_v31 = vsub.f32 0.0, %v2964_v57 }
 0x22d   :  { %v2960_v6 = vadd.f32 %v1962_v8, %v2857_v24  ;;  %v2051_v8 = vpop.eup %2050  ;;  %v879_v10 = vmul.f32 1.442695, %v837_v55  ;;  %2076 = vrcp.f32 %v923_v52  ;;  %3713 = vst [vmem:[#allocation2_spill] sm:$0xff] %v3036_v50  ;;  %v3066_v46 = vpop.permute.xlu1 %1101 }
 0x22e   :  { %v767_v59 = vpop.f32.mrf.mxu1  ;;  %v2053_v26 = vpop.eup %2052  ;;  %v939_v9 = vadd.f32 1.0, %v2051_v8  ;;  %2078 = vrcp.f32 %v942_v43  ;;  %v881_v44 = vmul.f32 1.442695, %v838_v39 }
 0x22f   :  { %v2995_v25 = vadd.f32 %v2857_v24, %v767_v59  ;;  %v2055_v56 = vpop.eup %2054  ;;  %v924_v14 = vadd.f32 1.0, %v2053_v26  ;;  %2080 = vpow2.f32 %v901_v62  ;;  %v854_v0 = vsub.f32 0.0, %v2960_v6 }
 0x230   :  { %1259 = vrot.lane.b32.xlu1 %v2964_v57, %s2169_s22  ;;  %1297 = vrot.lane.b32.xlu0 %v2960_v6, %s2169_s22  ;;  %2082 = vpow2.f32 %v879_v10  ;;  %v929_v27 = vadd.f32 1.0, %v2055_v56  ;;  %v3056_v13 = vpop.permute.xlu0 %1096  ;;  %v836_v6 = vsub.f32 0.0, %v2981_v12 }
 0x231   :  { %2084 = vrcp.f32 %v939_v9  ;;  %v913_v42 = vmul.f32 1.442695, %v854_v0  ;;  %v852_v62 = vsub.f32 0.0, %v2995_v25 }
 0x232   :  { %2086 = vrcp.f32 %v924_v14  ;;  %v877_v53 = vmul.f32 1.442695, %v836_v6 }
 0x234   :  { %1291 = vrot.lane.b32.xlu1 %v2975_v3, %s2169_s22  ;;  %v1949_v7 = vpop.f32.mrf.mxu0  ;;  %1261 = vrot.lane.b32.xlu0 %v2981_v12, %s2169_s22  ;;  %v3075_v26 = vpop.permute.xlu0 %1106 }
 0x235   :  { %v2989_v37 = vadd.f32 %v1949_v7, %v2857_v24  ;;  %v2057_v7 = vpop.eup %2056  ;;  %2088 = vpow2.f32 %v881_v44 }
 0x236   :  { %v716_v63 = vpop.f32.mrf.mxu0  ;;  %v2059_v22 = vpop.eup %2058  ;;  %v940_v57 = vadd.f32 1.0, %v2057_v7  ;;  %v909_v7 = vmul.f32 1.442695, %v852_v62 }
 0x237   :  { %v3023_v29 = vadd.f32 %v2857_v24, %v716_v63  ;;  %v911_v63 = vmul.f32 1.442695, %v853_v11  ;;  %v3049_v41 = vpop.eup %2060  ;;  %v945_v49 = vadd.f32 1.0, %v2059_v22  ;;  %v841_v52 = vsub.f32 0.0, %v2989_v37  ;;  %v3082_v11 = vpop.permute.xlu1 %1111 }
 0x238   :  { %1271 = vrot.lane.b32.xlu1 %v2989_v37, %s2169_s22  ;;  %v1950_v19 = vpop.f32.mrf.mxu0  ;;  %v1965_v32 = vpop.f32.mrf.mxu1  ;;  %1293 = vrot.lane.b32.xlu0 %v2995_v25, %s2169_s22 }
 0x239   :  { %v3006_v45 = vadd.f32 %v1950_v19, %v2857_v24  ;;  %v3009_v34 = vadd.f32 %v1965_v32, %v2857_v24  ;;  %v2063_v19 = vpop.eup %2062  ;;  %v875_v32 = vmul.f32 1.442695, %v835_v31  ;;  %2090 = vpow2.f32 %v911_v63 }
 0x23a   :  { %v780_v35 = vpop.f32.mrf.mxu1  ;;  %v719_v28 = vpop.f32.mrf.mxu0  ;;  %2092 = vrcp.f32 %v929_v27  ;;  %v930_v36 = vadd.f32 1.0, %v2063_v19  ;;  %v887_v56 = vmul.f32 1.442695, %v841_v52  ;;  %v839_v25 = vsub.f32 0.0, %v3023_v29 }
 0x23b   :  { %v3034_v4 = vadd.f32 %v2857_v24, %v780_v35  ;;  %v3039_v59 = vadd.f32 %v2857_v24, %v719_v28  ;;  %v2065_v15 = vpop.eup %2064  ;;  %2094 = vrcp.f32 %v940_v57  ;;  %v842_v31 = vsub.f32 0.0, %v3006_v45  ;;  %v3094_v27 = vpop.permute.xlu0 %1116 }
 0x23c   :  { %1303 = vrot.lane.b32.xlu1 %v3009_v34, %s2169_s22  ;;  %v1966_v38 = vpop.f32.mrf.mxu1  ;;  %1273 = vrot.lane.b32.xlu0 %v3006_v45, %s2169_s22  ;;  %v3061_v35 = vpop.eup %2066  ;;  %2096 = vpow2.f32 %v875_v32  ;;  %v883_v0 = vmul.f32 1.442695, %v839_v25 }
 0x23d   :  { %v3020_v51 = vadd.f32 %v1966_v38, %v2857_v24  ;;  %v3064_v20 = vpop.eup %2068  ;;  %v927_v38 = vadd.f32 1.0, %v2065_v15  ;;  %2098 = vrcp.f32 %v945_v49  ;;  %v855_v45 = vsub.f32 0.0, %v3034_v4  ;;  %v3101_v19 = vpop.permute.xlu1 %1121 }
 0x23e   :  { %v783_v60 = vpop.f32.mrf.mxu1  ;;  %v2071_v1 = vpop.eup %2070  ;;  %2100 = vpow2.f32 %v913_v42  ;;  %v889_v32 = vmul.f32 1.442695, %v842_v31  ;;  %v840_v15 = vsub.f32 0.0, %v3039_v59  ;;  %v1182_v50 = vmul.f32 %v3061_v35, %v2886_v18 }
 0x23f   :  { %v3052_v16 = vadd.f32 %v2857_v24, %v783_v60  ;;  %v851_v24 = vsub.f32 0.0, %v2975_v3  ;;  %v2073_v12 = vpop.eup %2072  ;;  %2102 = vrcp.f32 %v930_v36  ;;  %v946_v43 = vadd.f32 1.0, %v2071_v1 }
 0x240   :  { %1267 = vrot.lane.b32.xlu1 %v3023_v29, %s2169_s22  ;;  %1305 = vrot.lane.b32.xlu0 %v3020_v51, %s2169_s22  ;;  %v2075_v3 = vpop.eup %2074  ;;  %2104 = vrcp.f32 %v927_v38  ;;  %v928_v28 = vadd.f32 1.0, %v2073_v12  ;;  %v915_v36 = vmul.f32 1.442695, %v855_v45  ;;  %v3112_v38 = vpop.permute.xlu0 %1126 }
 0x241   :  { %v907_v55 = vmul.f32 1.442695, %v851_v24  ;;  %v3073_v8 = vpop.eup %2076  ;;  %v943_v9 = vadd.f32 1.0, %v2075_v3  ;;  %2106 = vpow2.f32 %v877_v53  ;;  %v856_v12 = vsub.f32 0.0, %v3052_v16 }
 0x242   :  { %v3078_v39 = vpop.eup %2078 }
 0x243   :  { %v2081_v10 = vpop.eup %2080  ;;  %2108 = vpow2.f32 %v907_v55  ;;  %v3121_v55 = vpop.permute.xlu1 %1131 }
 0x244   :  { %1299 = vrot.lane.b32.xlu1 %v3034_v4, %s2169_s22  ;;  %1269 = vrot.lane.b32.xlu0 %v3039_v59, %s2169_s22  ;;  %v2083_v37 = vpop.eup %2082  ;;  %2110 = vrcp.f32 %v946_v43  ;;  %v944_v60 = vadd.f32 1.0, %v2081_v10  ;;  %v885_v59 = vmul.f32 1.442695, %v840_v15 }
 0x245   :  { %v3087_v14 = vpop.eup %2084  ;;  %2112 = vrcp.f32 %v928_v28  ;;  %v933_v22 = vadd.f32 1.0, %v2083_v37  ;;  %v3131_v37 = vpop.permute.xlu0 %1136 }
 0x246   :  { %v3090_v44 = vpop.eup %2086  ;;  %2114 = vrcp.f32 %v943_v9 }
 0x247   :  { %v2089_v63 = vpop.eup %2088  ;;  %2116 = vpow2.f32 %v887_v56  ;;  %v3137_v31 = vpop.permute.xlu1 %1141 }
 0x248   :  { %1696 = vrot.lane.b32.xlu1 %v3049_v41, %s2170_s5  ;;  %1301 = vrot.lane.b32.xlu0 %v3052_v16, %s2169_s22  ;;  %v2091_v29 = vpop.eup %2090  ;;  %2118 = vpow2.f32 %v909_v7  ;;  %v934_v6 = vadd.f32 1.0, %v2089_v63  ;;  %v917_v16 = vmul.f32 1.442695, %v856_v12 }
 0x249   :  { %v3099_v57 = vpop.eup %2092  ;;  %2120 = vrcp.f32 %v944_v60  ;;  %v949_v42 = vadd.f32 1.0, %v2091_v29  ;;  %v3147_v15 = vpop.permute.xlu0 %1146 }
 0x24a   :  { %v3104_v49 = vpop.eup %2094  ;;  %2122 = vrcp.f32 %v933_v22 }
 0x24b   :  { %v2097_v24 = vpop.eup %2096  ;;  %2124 = vpow2.f32 %v883_v0 }
 0x24c   :  { %1728 = vrot.lane.b32.xlu1 %v3064_v20, %s2170_s5  ;;  %1698 = vrot.lane.b32.xlu0 %v3061_v35, %s2170_s5  ;;  %v3110_v4 = vpop.eup %2098  ;;  %2126 = vpow2.f32 %v889_v32  ;;  %v931_v52 = vadd.f32 1.0, %v2097_v24  ;;  %v1179_v35 = vmul.f32 %v3073_v8, %v2970_v33 }
 0x24d   :  { %v2101_v1 = vpop.eup %2100  ;;  %2128 = vrcp.f32 %v934_v6 }
 0x24e   :  { %v3115_v53 = vpop.eup %2102  ;;  %2130 = vrcp.f32 %v949_v42  ;;  %v950_v62 = vadd.f32 1.0, %v2101_v1  ;;  %v3153_v42 = vpop.permute.xlu1 %1151 }
 0x24f   :  { %v3119_v3 = vpop.eup %2104  ;;  %2132 = vpow2.f32 %v915_v36 }
 0x250   :  { %1692 = vrot.lane.b32.xlu1 %v3073_v8, %s2170_s5  ;;  %1730 = vrot.lane.b32.xlu0 %v3078_v39, %s2170_s5  ;;  %v2107_v43 = vpop.eup %2106  ;;  %2134 = vpow2.f32 %v885_v59 }
 0x251   :  { %v2109_v28 = vpop.eup %2108  ;;  %2136 = vrcp.f32 %v931_v52  ;;  %v932_v60 = vadd.f32 1.0, %v2107_v43  ;;  %v3161_v43 = vpop.permute.xlu0 %1156 }
 0x252   :  { %v3125_v10 = vpop.eup %2110  ;;  %v947_v25 = vadd.f32 1.0, %v2109_v28  ;;  %2138 = vrcp.f32 %v950_v62 }
 0x253   :  { %v3129_v9 = vpop.eup %2112  ;;  %2140 = vpow2.f32 %v917_v16 }
 0x254   :  { %1724 = vrot.lane.b32.xlu1 %v3087_v14, %s2170_s5  ;;  %1694 = vrot.lane.b32.xlu0 %v3090_v44, %s2170_s5  ;;  %v3135_v56 = vpop.eup %2114  ;;  %2142 = vrcp.f32 %v947_v25  ;;  %v3169_v25 = vpop.permute.xlu1 %1161 }
 0x255   :  { %v2117_v7 = vpop.eup %2116  ;;  %2144 = vrcp.f32 %v932_v60  ;;  %3714 = vst [vmem:[#allocation3_spill] sm:$0xff] %v3169_v25 }
 0x256   :  { %v2119_v63 = vpop.eup %2118  ;;  %v937_v0 = vadd.f32 1.0, %v2117_v7 }
 0x257   :  { %v3141_v22 = vpop.eup %2120  ;;  %v948_v32 = vadd.f32 1.0, %v2119_v63 }
 0x258   :  { %1704 = vrot.lane.b32.xlu1 %v3099_v57, %s2170_s5  ;;  %1726 = vrot.lane.b32.xlu0 %v3104_v49, %s2170_s5  ;;  %v3145_v29 = vpop.eup %2122  ;;  %2146 = vrcp.f32 %v937_v0 }
 0x259   :  { %v2125_v45 = vpop.eup %2124  ;;  %2148 = vrcp.f32 %v948_v32 }
 0x25a   :  { %v2127_v6 = vpop.eup %2126  ;;  %v935_v1 = vadd.f32 1.0, %v2125_v45  ;;  %v3177_v45 = vpop.permute.xlu0 %1166 }
 0x25b   :  { %v3151_v24 = vpop.eup %2128  ;;  %v938_v12 = vadd.f32 1.0, %v2127_v6  ;;  %3715 = vst [vmem:[#allocation4_spill] sm:$0xff] %v3177_v45  ;;  %v3183_v6 = vpop.permute.xlu1 %1171 }
 0x25c   :  { %1736 = vrot.lane.b32.xlu1 %v3110_v4, %s2170_s5  ;;  %1706 = vrot.lane.b32.xlu0 %v3115_v53, %s2170_s5  ;;  %v3157_v36 = vpop.eup %2130  ;;  %2150 = vrcp.f32 %v935_v1 }
 0x25d   :  { %v2133_v59 = vpop.eup %2132  ;;  %2152 = vrcp.f32 %v938_v12  ;;  %v1181_v12 = vmul.f32 %v3049_v41, %v2871_v21  ;;  %v1197_v21 = vmul.f32 %v3064_v20, %v3082_v11  ;;  %v1198_v20 = vmul.f32 %v3078_v39, %v3094_v27 }
 0x25e   :  { %v2135_v52 = vpop.eup %2134  ;;  %v951_v28 = vadd.f32 1.0, %v2133_v59  ;;  %v857_v11 = vsub.f32 0.0, %v3009_v34  ;;  %v1195_v34 = vmul.f32 %v3087_v14, %v3066_v46 }
 0x25f   :  { %v3165_v62 = vpop.eup %2136  ;;  %v936_v7 = vadd.f32 1.0, %v2135_v52  ;;  %v3195_v52 = vpop.permute.xlu0 %1176 }
 0x260   :  { %1700 = vrot.lane.b32.xlu1 %v3119_v3, %s2170_s5  ;;  %1738 = vrot.lane.b32.xlu0 %v3125_v10, %s2170_s5  ;;  %v3167_v16 = vpop.eup %2138  ;;  %2154 = vrcp.f32 %v951_v28  ;;  %3716 = vst [vmem:[#allocation5_spill] sm:$0xff] %v3195_v52  ;;  %v919_v27 = vmul.f32 1.442695, %v857_v11 }
 0x261   :  { %v2141_v60 = vpop.eup %2140  ;;  %2156 = vrcp.f32 %v936_v7 }
 0x262   :  { %v3175_v63 = vpop.eup %2142  ;;  %v952_v0 = vadd.f32 1.0, %v2141_v60 }
 0x263   :  { %v3179_v32 = vpop.eup %2144 }
 0x264   :  { %1732 = vrot.lane.b32.xlu1 %v3135_v56, %s2170_s5  ;;  %1702 = vrot.lane.b32.xlu0 %v3129_v9, %s2170_s5  ;;  %2158 = vrcp.f32 %v952_v0 }
 0x265   :  { %v3187_v1 = vpop.eup %2146  ;;  %2160 = vpow2.f32 %v919_v27 }
 0x266   :  { %v3189_v59 = vpop.eup %2148 }
 0x268   :  { %1712 = vrot.lane.b32.xlu1 %v3145_v29, %s2170_s5  ;;  %1734 = vrot.lane.b32.xlu0 %v3141_v22, %s2170_s5 }
 0x269   :  { %v3199_v60 = vpop.eup %2150 }
 0x26a   :  { %3717 = vst [vmem:[#allocation6_spill] sm:$0xff] %v3199_v60  ;;  %v3201_v45 = vpop.eup %2152 }
 0x26c   :  { %1744 = vrot.lane.b32.xlu1 %v3157_v36, %s2170_s5  ;;  %1714 = vrot.lane.b32.xlu0 %v3151_v24, %s2170_s5 }
 0x270   :  { %1708 = vrot.lane.b32.xlu1 %v3165_v62, %s2170_s5  ;;  %1746 = vrot.lane.b32.xlu0 %v3167_v16, %s2170_s5 }
 0x274   :  { %1740 = vrot.lane.b32.xlu1 %v3175_v63, %s2170_s5  ;;  %1710 = vrot.lane.b32.xlu0 %v3179_v32, %s2170_s5 }
 0x278   :  { %1720 = vrot.lane.b32.xlu1 %v3187_v1, %s2170_s5  ;;  %1742 = vrot.lane.b32.xlu0 %v3189_v59, %s2170_s5 }
 0x279   :  { %v1248_v28 = vpop.permute.xlu1 %1247 }
 0x27a   :  { %v1341_v7 = vmul.f32 %v1248_v28, %v1181_v12 }
 0x27c   :  { %v1886_v0 = vpack.c.bf16 %v1341_v7, %v1341_v7  ;;  %1716 = vrot.lane.b32.xlu1 %v3199_v60, %s2170_s5  ;;  %1722 = vrot.lane.b32.xlu0 %v3201_v45, %s2170_s5  ;;  %v3215_v7 = vpop.eup %2154 }
 0x27d   :  { %v1250_v41 = vpop.permute.xlu0 %1249  ;;  %v3217_v52 = vpop.eup %2156 }
 0x27e   :  { %1502 = vst.msk [vmem:[%s3709_s6 + $0x8] sm:$0xf] %vm1499_vm1, %v1886_v0  ;;  %v1280_v12 = vpop.permute.xlu1 %1279  ;;  %v1342_v28 = vmul.f32 %v1250_v41, %v1182_v50  ;;  %v3236_v39 = vpop.eup %2158 }
 0x27f   :  { %v1357_v25 = vmul.f32 %v1280_v12, %v1197_v21  ;;  %v1180_v12 = vmul.f32 %v3090_v44, %v2861_v40  ;;  %v1185_v44 = vmul.f32 %v3099_v57, %v2935_v5  ;;  %v1201_v5 = vmul.f32 %v3110_v4, %v3121_v55 }
 0x280   :  { %v1887_v18 = vpack.c.bf16 %v1342_v28, %v1342_v28  ;;  %1748 = vrot.lane.b32.xlu1 %v3215_v7, %s2170_s5  ;;  %1718 = vrot.lane.b32.xlu0 %v3217_v52, %s2170_s5  ;;  %v858_v28 = vsub.f32 0.0, %v3020_v51 }
 0x281   :  { %v1902_v60 = vpack.c.bf16 %v1357_v25, %v1357_v25 }
 0x282   :  { %1503 = vst.msk [vmem:[%s3709_s6 + $0xc] sm:$0xf] %vm1499_vm1, %v1887_v18  ;;  %v1244_v50 = vpop.permute.xlu1 %1243  ;;  %v1282_v21 = vpop.permute.xlu0 %1281  ;;  %v921_v11 = vmul.f32 1.442695, %v858_v28 }
 0x283   :  { %1518 = vst.msk [vmem:[%s3709_s6 + $0x48] sm:$0xf] %vm1499_vm1, %v1902_v60  ;;  %v1339_v33 = vmul.f32 %v1244_v50, %v1179_v35  ;;  %v1358_v8 = vmul.f32 %v1282_v21, %v1198_v20 }
 0x284   :  { %1536 = vrot.lane.b32.xlu1 %v1886_v0, %s2171_s27  ;;  %1750 = vrot.lane.b32.xlu0 %v3236_v39, %s2170_s5  ;;  %v1196_v0 = vmul.f32 %v3104_v49, %v3075_v26  ;;  %2162 = vpow2.f32 %v921_v11 }
 0x285   :  { %v1884_v25 = vpack.c.bf16 %v1339_v33, %v1339_v33  ;;  %v1903_v41 = vpack.c.bf16 %v1358_v8, %v1358_v8 }
 0x286   :  { %v1276_v35 = vpop.permute.xlu1 %1275  ;;  %v1246_v20 = vpop.permute.xlu0 %1245 }
 0x287   :  { %1500 = vst.msk [vmem:[%s3709_s6] sm:$0xf] %vm1499_vm1, %v1884_v25  ;;  %1519 = vst.msk [vmem:[%s3709_s6 + $0x4c] sm:$0xf] %vm1499_vm1, %v1903_v41  ;;  %v1355_v46 = vmul.f32 %v1276_v35, %v1195_v34  ;;  %v1340_v14 = vmul.f32 %v1246_v20, %v1180_v12  ;;  %v1184_v20 = vmul.f32 %v3129_v9, %v2918_v30 }
 0x288   :  { %1568 = vrot.lane.b32.xlu1 %v1902_v60, %s2171_s27  ;;  %1538 = vrot.lane.b32.xlu0 %v1887_v18, %s2171_s27  ;;  %v1186_v18 = vmul.f32 %v3115_v53, %v2955_v54  ;;  %v1183_v54 = vmul.f32 %v3119_v3, %v2904_v23  ;;  %v1202_v53 = vmul.f32 %v3125_v10, %v3131_v37  ;;  %v2161_v10 = vpop.eup %2160 }
 0x289   :  { %v1900_v40 = vpack.c.bf16 %v1355_v46, %v1355_v46  ;;  %v1885_v51 = vpack.c.bf16 %v1340_v14, %v1340_v14  ;;  %v1199_v23 = vmul.f32 %v3135_v56, %v3101_v19  ;;  %v953_v56 = vadd.f32 1.0, %v2161_v10 }
 0x28a   :  { %v1256_v50 = vpop.permute.xlu1 %1255  ;;  %v1278_v21 = vpop.permute.xlu0 %1277  ;;  %v1189_v30 = vmul.f32 %v3145_v29, %v3000_v48  ;;  %v1200_v9 = vmul.f32 %v3141_v22, %v3112_v38  ;;  %v1205_v48 = vmul.f32 %v3157_v36, %v3153_v42 }
 0x28b   :  { %1516 = vst.msk [vmem:[%s3709_s6 + $0x40] sm:$0xf] %vm1499_vm1, %v1900_v40  ;;  %1501 = vst.msk [vmem:[%s3709_s6 + $0x4] sm:$0xf] %vm1499_vm1, %v1885_v51  ;;  %v1345_v26 = vmul.f32 %v1256_v50, %v1185_v44  ;;  %v1356_v49 = vmul.f32 %v1278_v21, %v1196_v0  ;;  %2164 = vrcp.f32 %v953_v56 }
 0x28c   :  { %1532 = vrot.lane.b32.xlu1 %v1884_v25, %s2171_s27  ;;  %1570 = vrot.lane.b32.xlu0 %v1903_v41, %s2171_s27 }
 0x28d   :  { %v1890_v57 = vpack.c.bf16 %v1345_v26, %v1345_v26  ;;  %v1901_v60 = vpack.c.bf16 %v1356_v49, %v1356_v49  ;;  %v1190_v49 = vmul.f32 %v3151_v24, %v3014_v17  ;;  %v1187_v17 = vmul.f32 %v3165_v62, %v2977_v47 }
 0x28e   :  { %v1288_v33 = vpop.permute.xlu1 %1287  ;;  %v1258_v8 = vpop.permute.xlu0 %1257  ;;  %v1206_v24 = vmul.f32 %v3167_v16, %v3161_v43  ;;  %v1203_v43 = vmul.f32 %v3175_v63, %v3137_v31 }
 0x28f   :  { %1506 = vst.msk [vmem:[%s3709_s6 + $0x18] sm:$0xf] %vm1499_vm1, %v1890_v57  ;;  %1517 = vst.msk [vmem:[%s3709_s6 + $0x44] sm:$0xf] %vm1499_vm1, %v1901_v60  ;;  %v1361_v4 = vmul.f32 %v1288_v33, %v1201_v5  ;;  %v1346_v55 = vmul.f32 %v1258_v8, %v1186_v18 }
 0x290   :  { %1564 = vrot.lane.b32.xlu1 %v1900_v40, %s2171_s27  ;;  %1534 = vrot.lane.b32.xlu0 %v1885_v51, %s2171_s27 }
 0x291   :  { %v1906_v34 = vpack.c.bf16 %v1361_v4, %v1361_v4  ;;  %v1891_v27 = vpack.c.bf16 %v1346_v55, %v1346_v55  ;;  %v2163_v44 = vpop.eup %2162  ;;  %v1188_v55 = vmul.f32 %v3179_v32, %v2992_v2  ;;  %v1193_v2 = vmul.f32 %v3187_v1, %v3044_v61 }
 0x292   :  { %v1252_v25 = vpop.permute.xlu1 %1251  ;;  %v1290_v12 = vpop.permute.xlu0 %1289  ;;  %v954_v22 = vadd.f32 1.0, %v2163_v44  ;;  %v1204_v32 = vmul.f32 %v3189_v59, %v3147_v15 }
 0x293   :  { %1522 = vst.msk [vmem:[%s3709_s6 + $0x58] sm:$0xf] %vm1499_vm1, %v1906_v34  ;;  %1507 = vst.msk [vmem:[%s3709_s6 + $0x1c] sm:$0xf] %vm1499_vm1, %v1891_v27  ;;  %v1343_v41 = vmul.f32 %v1252_v25, %v1183_v54  ;;  %v1362_v28 = vmul.f32 %v1290_v12, %v1202_v53 }
 0x294   :  { %1544 = vrot.lane.b32.xlu1 %v1890_v57, %s2171_s27  ;;  %1566 = vrot.lane.b32.xlu0 %v1901_v60, %s2171_s27  ;;  %2166 = vrcp.f32 %v954_v22  ;;  %v3722_v22 = vld [vmem:[#allocation4_spill] sm:$0xff] }
 0x295   :  { %v1888_v3 = vpack.c.bf16 %v1343_v41, %v1343_v41  ;;  %v1907_v37 = vpack.c.bf16 %v1362_v28, %v1362_v28 }
 0x296   :  { %v1284_v35 = vpop.permute.xlu1 %1283  ;;  %v1254_v14 = vpop.permute.xlu0 %1253 }
 0x297   :  { %1504 = vst.msk [vmem:[%s3709_s6 + $0x10] sm:$0xf] %vm1499_vm1, %v1888_v3  ;;  %v1359_v46 = vmul.f32 %v1284_v35, %v1199_v23  ;;  %1523 = vst.msk [vmem:[%s3709_s6 + $0x5c] sm:$0xf] %vm1499_vm1, %v1907_v37  ;;  %v1344_v19 = vmul.f32 %v1254_v14, %v1184_v20  ;;  %v1194_v23 = vmul.f32 %v3201_v45, %v3056_v13  ;;  %v3718_v13 = vld [vmem:[#allocation6_spill] sm:$0xff]  ;;  %v3719_v20 = vld [vmem:[#allocation5_spill] sm:$0xff] }
 0x298   :  { %1576 = vrot.lane.b32.xlu1 %v1906_v34, %s2171_s27  ;;  %1546 = vrot.lane.b32.xlu0 %v1891_v27, %s2171_s27  ;;  %v3370_v63 = vpop.eup %2164  ;;  %v1191_v45 = vmul.f32 %v3718_v13, %v3025_v58 }
 0x299   :  { %v1904_v0 = vpack.c.bf16 %v1359_v46, %v1359_v46  ;;  %v1889_v40 = vpack.c.bf16 %v1344_v19, %v1344_v19  ;;  %v1209_v15 = vmul.f32 %v3370_v63, %v3183_v6 }
 0x29a   :  { %v1264_v51 = vpop.permute.xlu1 %1263  ;;  %v1286_v50 = vpop.permute.xlu0 %1285 }
 0x29b   :  { %1520 = vst.msk [vmem:[%s3709_s6 + $0x50] sm:$0xf] %vm1499_vm1, %v1904_v0  ;;  %v1349_v11 = vmul.f32 %v1264_v51, %v1189_v30  ;;  %1505 = vst.msk [vmem:[%s3709_s6 + $0x14] sm:$0xf] %vm1499_vm1, %v1889_v40  ;;  %v1360_v21 = vmul.f32 %v1286_v50, %v1200_v9  ;;  %v3720_v9 = vld [vmem:[#allocation3_spill] sm:$0xff] }
 0x29c   :  { %1540 = vrot.lane.b32.xlu1 %v1888_v3, %s2171_s27  ;;  %1578 = vrot.lane.b32.xlu0 %v1907_v37, %s2171_s27 }
 0x29d   :  { %v1894_v38 = vpack.c.bf16 %v1349_v11, %v1349_v11  ;;  %v1905_v29 = vpack.c.bf16 %v1360_v21, %v1360_v21  ;;  %v3721_v11 = vld [vmem:[#allocation2_spill] sm:$0xff] }
 0x29e   :  { %v1296_v26 = vpop.permute.xlu1 %1295  ;;  %v1266_v57 = vpop.permute.xlu0 %1265  ;;  %v1192_v50 = vmul.f32 %v3217_v52, %v3721_v11  ;;  %v1208_v52 = vmul.f32 %v3236_v39, %v3722_v22 }
 0x29f   :  { %1510 = vst.msk [vmem:[%s3709_s6 + $0x28] sm:$0xf] %vm1499_vm1, %v1894_v38  ;;  %v1365_v5 = vmul.f32 %v1296_v26, %v1205_v48  ;;  %1521 = vst.msk [vmem:[%s3709_s6 + $0x54] sm:$0xf] %vm1499_vm1, %v1905_v29  ;;  %v1350_v42 = vmul.f32 %v1266_v57, %v1190_v49 }
 0x2a0   :  { %1572 = vrot.lane.b32.xlu1 %v1904_v0, %s2171_s27  ;;  %1542 = vrot.lane.b32.xlu0 %v1889_v40, %s2171_s27  ;;  %v1207_v40 = vmul.f32 %v3215_v7, %v3720_v9 }
 0x2a1   :  { %v1910_v36 = vpack.c.bf16 %v1365_v5, %v1365_v5  ;;  %v1895_v60 = vpack.c.bf16 %v1350_v42, %v1350_v42  ;;  %v2167_v3 = vpop.eup %2166 }
 0x2a2   :  { %v1260_v18 = vpop.permute.xlu1 %1259  ;;  %v1298_v8 = vpop.permute.xlu0 %1297  ;;  %v1210_v46 = vmul.f32 %v2167_v3, %v3719_v20 }
 0x2a3   :  { %1526 = vst.msk [vmem:[%s3709_s6 + $0x68] sm:$0xf] %vm1499_vm1, %v1910_v36  ;;  %v1347_v33 = vmul.f32 %v1260_v18, %v1187_v17  ;;  %1511 = vst.msk [vmem:[%s3709_s6 + $0x2c] sm:$0xf] %vm1499_vm1, %v1895_v60  ;;  %v1366_v4 = vmul.f32 %v1298_v8, %v1206_v24 }
 0x2a4   :  { %1552 = vrot.lane.b32.xlu1 %v1894_v38, %s2171_s27  ;;  %1574 = vrot.lane.b32.xlu0 %v1905_v29, %s2171_s27 }
 0x2a5   :  { %v1892_v47 = vpack.c.bf16 %v1347_v33, %v1347_v33  ;;  %v1911_v62 = vpack.c.bf16 %v1366_v4, %v1366_v4 }
 0x2a6   :  { %v1292_v16 = vpop.permute.xlu1 %1291  ;;  %v1262_v27 = vpop.permute.xlu0 %1261 }
 0x2a7   :  { %1508 = vst.msk [vmem:[%s3709_s6 + $0x20] sm:$0xf] %vm1499_vm1, %v1892_v47  ;;  %v1363_v34 = vmul.f32 %v1292_v16, %v1203_v43  ;;  %1527 = vst.msk [vmem:[%s3709_s6 + $0x6c] sm:$0xf] %vm1499_vm1, %v1911_v62  ;;  %v1348_v54 = vmul.f32 %v1262_v27, %v1188_v55 }
 0x2a8   :  { %1584 = vrot.lane.b32.xlu1 %v1910_v36, %s2171_s27  ;;  %1554 = vrot.lane.b32.xlu0 %v1895_v60, %s2171_s27 }
 0x2a9   :  { %v1908_v31 = vpack.c.bf16 %v1363_v34, %v1363_v34  ;;  %v1893_v53 = vpack.c.bf16 %v1348_v54, %v1348_v54 }
 0x2aa   :  { %v1272_v25 = vpop.permute.xlu1 %1271  ;;  %v1294_v12 = vpop.permute.xlu0 %1293 }
 0x2ab   :  { %1524 = vst.msk [vmem:[%s3709_s6 + $0x60] sm:$0xf] %vm1499_vm1, %v1908_v31  ;;  %v1353_v41 = vmul.f32 %v1272_v25, %v1193_v2  ;;  %1509 = vst.msk [vmem:[%s3709_s6 + $0x24] sm:$0xf] %vm1499_vm1, %v1893_v53  ;;  %v1364_v61 = vmul.f32 %v1294_v12, %v1204_v32 }
 0x2ac   :  { %1548 = vrot.lane.b32.xlu1 %v1892_v47, %s2171_s27  ;;  %1586 = vrot.lane.b32.xlu0 %v1911_v62, %s2171_s27 }
 0x2ad   :  { %v1898_v1 = vpack.c.bf16 %v1353_v41, %v1353_v41  ;;  %v1909_v59 = vpack.c.bf16 %v1364_v61, %v1364_v61 }
 0x2ae   :  { %v1304_v28 = vpop.permute.xlu1 %1303  ;;  %v1274_v37 = vpop.permute.xlu0 %1273 }
 0x2af   :  { %1514 = vst.msk [vmem:[%s3709_s6 + $0x38] sm:$0xf] %vm1499_vm1, %v1898_v1  ;;  %v1369_v10 = vmul.f32 %v1304_v28, %v1209_v15  ;;  %1525 = vst.msk [vmem:[%s3709_s6 + $0x64] sm:$0xf] %vm1499_vm1, %v1909_v59  ;;  %v1354_v35 = vmul.f32 %v1274_v37, %v1194_v23 }
 0x2b0   :  { %1580 = vrot.lane.b32.xlu1 %v1908_v31, %s2171_s27  ;;  %1550 = vrot.lane.b32.xlu0 %v1893_v53, %s2171_s27 }
 0x2b1   :  { %v1914_v6 = vpack.c.bf16 %v1369_v10, %v1369_v10  ;;  %v1899_v14 = vpack.c.bf16 %v1354_v35, %v1354_v35 }
 0x2b2   :  { %v1268_v19 = vpop.permute.xlu1 %1267  ;;  %v1306_v0 = vpop.permute.xlu0 %1305 }
 0x2b3   :  { %1530 = vst.msk [vmem:[%s3709_s6 + $0x78] sm:$0xf] %vm1499_vm1, %v1914_v6  ;;  %v1351_v56 = vmul.f32 %v1268_v19, %v1191_v45  ;;  %1515 = vst.msk [vmem:[%s3709_s6 + $0x3c] sm:$0xf] %vm1499_vm1, %v1899_v14  ;;  %v1370_v30 = vmul.f32 %v1306_v0, %v1210_v46 }
 0x2b4   :  { %1560 = vrot.lane.b32.xlu1 %v1898_v1, %s2171_s27  ;;  %1582 = vrot.lane.b32.xlu0 %v1909_v59, %s2171_s27 }
 0x2b5   :  { %v1896_v58 = vpack.c.bf16 %v1351_v56, %v1351_v56  ;;  %v1915_v51 = vpack.c.bf16 %v1370_v30, %v1370_v30 }
 0x2b6   :  { %v1300_v44 = vpop.permute.xlu1 %1299  ;;  %v1270_v48 = vpop.permute.xlu0 %1269 }
 0x2b7   :  { %1512 = vst.msk [vmem:[%s3709_s6 + $0x30] sm:$0xf] %vm1499_vm1, %v1896_v58  ;;  %v1367_v21 = vmul.f32 %v1300_v44, %v1207_v40  ;;  %1531 = vst.msk [vmem:[%s3709_s6 + $0x7c] sm:$0xf] %vm1499_vm1, %v1915_v51  ;;  %v1352_v38 = vmul.f32 %v1270_v48, %v1192_v50 }
 0x2b8   :  { %1592 = vrot.lane.b32.xlu1 %v1914_v6, %s2171_s27  ;;  %1562 = vrot.lane.b32.xlu0 %v1899_v14, %s2171_s27 }
 0x2b9   :  { %v1912_v7 = vpack.c.bf16 %v1367_v21, %v1367_v21  ;;  %v1897_v29 = vpack.c.bf16 %v1352_v38, %v1352_v38 }
 0x2ba   :  { %v1697_v26 = vpop.permute.xlu1 %1696  ;;  %v1302_v49 = vpop.permute.xlu0 %1301 }
 0x2bb   :  { %1528 = vst.msk [vmem:[%s3709_s6 + $0x70] sm:$0xf] %vm1499_vm1, %v1912_v7  ;;  %1513 = vst.msk [vmem:[%s3709_s6 + $0x34] sm:$0xf] %vm1499_vm1, %v1897_v29  ;;  %v1368_v5 = vmul.f32 %v1302_v49, %v1208_v52 }
 0x2bc   :  { %1790 = vst.msk [vmem:[%s3710_s8 + $0x10] sm:$0xff] %vm61_vm0, %v1697_v26  ;;  %1556 = vrot.lane.b32.xlu1 %v1896_v58, %s2171_s27  ;;  %1594 = vrot.lane.b32.xlu0 %v1915_v51, %s2171_s27 }
 0x2bd   :  { %v1913_v39 = vpack.c.bf16 %v1368_v5, %v1368_v5 }
 0x2be   :  { %v1729_v57 = vpop.permute.xlu1 %1728  ;;  %v1699_v42 = vpop.permute.xlu0 %1698 }
 0x2bf   :  { %1806 = vst.msk [vmem:[%s3710_s8 + $0x90] sm:$0xff] %vm61_vm0, %v1729_v57  ;;  %1791 = vst.msk [vmem:[%s3710_s8 + $0x18] sm:$0xff] %vm61_vm0, %v1699_v42 }
 0x2c0   :  { %1529 = vst.msk [vmem:[%s3709_s6 + $0x74] sm:$0xf] %vm1499_vm1, %v1913_v39  ;;  %1588 = vrot.lane.b32.xlu1 %v1912_v7, %s2171_s27  ;;  %1558 = vrot.lane.b32.xlu0 %v1897_v29, %s2171_s27 }
 0x2c2   :  { %v1693_v36 = vpop.permute.xlu1 %1692  ;;  %v1731_v17 = vpop.permute.xlu0 %1730 }
 0x2c3   :  { %1788 = vst.msk [vmem:[%s3710_s8] sm:$0xff] %vm61_vm0, %v1693_v36  ;;  %1807 = vst.msk [vmem:[%s3710_s8 + $0x98] sm:$0xff] %vm61_vm0, %v1731_v17 }
 0x2c4   :  { %1752 = vrot.lane.b32.xlu1 %v3370_v63, %s2170_s5  ;;  %1590 = vrot.lane.b32.xlu0 %v1913_v39, %s2171_s27 }
 0x2c6   :  { %v1725_v24 = vpop.permute.xlu1 %1724  ;;  %v1695_v60 = vpop.permute.xlu0 %1694 }
 0x2c7   :  { %1804 = vst.msk [vmem:[%s3710_s8 + $0x80] sm:$0xff] %vm61_vm0, %v1725_v24  ;;  %1789 = vst.msk [vmem:[%s3710_s8 + $0x8] sm:$0xff] %vm61_vm0, %v1695_v60 }
 0x2c8   :  { %1754 = vrot.lane.b32.xlu0 %v2167_v3, %s2170_s5 }
 0x2ca   :  { %v1705_v18 = vpop.permute.xlu1 %1704  ;;  %v1727_v33 = vpop.permute.xlu0 %1726 }
 0x2cb   :  { %1794 = vst.msk [vmem:[%s3710_s8 + $0x30] sm:$0xff] %vm61_vm0, %v1705_v18  ;;  %1805 = vst.msk [vmem:[%s3710_s8 + $0x88] sm:$0xff] %vm61_vm0, %v1727_v33 }
 0x2ce   :  { %v1737_v8 = vpop.permute.xlu1 %1736  ;;  %v1707_v4 = vpop.permute.xlu0 %1706 }
 0x2cf   :  { %1810 = vst.msk [vmem:[%s3710_s8 + $0xb0] sm:$0xff] %vm61_vm0, %v1737_v8  ;;  %1795 = vst.msk [vmem:[%s3710_s8 + $0x38] sm:$0xff] %vm61_vm0, %v1707_v4 }
 0x2d2   :  { %v1701_v47 = vpop.permute.xlu1 %1700  ;;  %v1739_v43 = vpop.permute.xlu0 %1738 }
 0x2d3   :  { %1792 = vst.msk [vmem:[%s3710_s8 + $0x20] sm:$0xff] %vm61_vm0, %v1701_v47  ;;  %1811 = vst.msk [vmem:[%s3710_s8 + $0xb8] sm:$0xff] %vm61_vm0, %v1739_v43 }
 0x2d6   :  { %v1733_v62 = vpop.permute.xlu1 %1732  ;;  %v1703_v16 = vpop.permute.xlu0 %1702 }
 0x2d7   :  { %1808 = vst.msk [vmem:[%s3710_s8 + $0xa0] sm:$0xff] %vm61_vm0, %v1733_v62  ;;  %1793 = vst.msk [vmem:[%s3710_s8 + $0x28] sm:$0xff] %vm61_vm0, %v1703_v16 }
 0x2da   :  { %v1713_v55 = vpop.permute.xlu1 %1712  ;;  %v1735_v34 = vpop.permute.xlu0 %1734 }
 0x2db   :  { %1798 = vst.msk [vmem:[%s3710_s8 + $0x50] sm:$0xff] %vm61_vm0, %v1713_v55  ;;  %1809 = vst.msk [vmem:[%s3710_s8 + $0xa8] sm:$0xff] %vm61_vm0, %v1735_v34 }
 0x2de   :  { %v1745_v27 = vpop.permute.xlu1 %1744  ;;  %v1715_v54 = vpop.permute.xlu0 %1714 }
 0x2df   :  { %1814 = vst.msk [vmem:[%s3710_s8 + $0xd0] sm:$0xff] %vm61_vm0, %v1745_v27  ;;  %1799 = vst.msk [vmem:[%s3710_s8 + $0x58] sm:$0xff] %vm61_vm0, %v1715_v54 }
 0x2e2   :  { %v1709_v31 = vpop.permute.xlu1 %1708  ;;  %v1747_v2 = vpop.permute.xlu0 %1746 }
 0x2e3   :  { %1796 = vst.msk [vmem:[%s3710_s8 + $0x40] sm:$0xff] %vm61_vm0, %v1709_v31  ;;  %1815 = vst.msk [vmem:[%s3710_s8 + $0xd8] sm:$0xff] %vm61_vm0, %v1747_v2 }
 0x2e6   :  { %v1741_v63 = vpop.permute.xlu1 %1740  ;;  %v1711_v32 = vpop.permute.xlu0 %1710 }
 0x2e7   :  { %1812 = vst.msk [vmem:[%s3710_s8 + $0xc0] sm:$0xff] %vm61_vm0, %v1741_v63  ;;  %1797 = vst.msk [vmem:[%s3710_s8 + $0x48] sm:$0xff] %vm61_vm0, %v1711_v32 }
 0x2ea   :  { %v1721_v53 = vpop.permute.xlu1 %1720  ;;  %v1743_v25 = vpop.permute.xlu0 %1742 }
 0x2eb   :  { %1802 = vst.msk [vmem:[%s3710_s8 + $0x70] sm:$0xff] %vm61_vm0, %v1721_v53  ;;  %1813 = vst.msk [vmem:[%s3710_s8 + $0xc8] sm:$0xff] %vm61_vm0, %v1743_v25 }
 0x2ee   :  { %v1717_v41 = vpop.permute.xlu1 %1716  ;;  %v1723_v12 = vpop.permute.xlu0 %1722 }
 0x2ef   :  { %1800 = vst.msk [vmem:[%s3710_s8 + $0x60] sm:$0xff] %vm61_vm0, %v1717_v41  ;;  %1803 = vst.msk [vmem:[%s3710_s8 + $0x78] sm:$0xff] %vm61_vm0, %v1723_v12 }
 0x2f2   :  { %v1749_v61 = vpop.permute.xlu1 %1748  ;;  %v1719_v1 = vpop.permute.xlu0 %1718 }
 0x2f3   :  { %1816 = vst.msk [vmem:[%s3710_s8 + $0xe0] sm:$0xff] %vm61_vm0, %v1749_v61  ;;  %1801 = vst.msk [vmem:[%s3710_s8 + $0x68] sm:$0xff] %vm61_vm0, %v1719_v1 }
 0x2f6   :  { %v1537_v15 = vpop.permute.xlu1 %1536  ;;  %v1751_v59 = vpop.permute.xlu0 %1750 }
 0x2f7   :  { %1630 = vst.msk [vmem:[%s3711_s7 + $0x8] sm:$0xf] %vm1499_vm1, %v1537_v15 }
 0x2f8   :  { %1817 = vst.msk [vmem:[%s3710_s8 + $0xe8] sm:$0xff] %vm61_vm0, %v1751_v59 }
 0x2fa   :  { %v1569_v28 = vpop.permute.xlu1 %1568  ;;  %v1539_v23 = vpop.permute.xlu0 %1538 }
 0x2fb   :  { %1646 = vst.msk [vmem:[%s3711_s7 + $0x48] sm:$0xf] %vm1499_vm1, %v1569_v28  ;;  %1631 = vst.msk [vmem:[%s3711_s7 + $0xc] sm:$0xf] %vm1499_vm1, %v1539_v23 }
 0x2fe   :  { %v1533_v3 = vpop.permute.xlu1 %1532  ;;  %v1571_v10 = vpop.permute.xlu0 %1570 }
 0x2ff   :  { %1628 = vst.msk [vmem:[%s3711_s7] sm:$0xf] %vm1499_vm1, %v1533_v3  ;;  %1647 = vst.msk [vmem:[%s3711_s7 + $0x4c] sm:$0xf] %vm1499_vm1, %v1571_v10 }
 0x302   :  { %v1565_v37 = vpop.permute.xlu1 %1564  ;;  %v1535_v35 = vpop.permute.xlu0 %1534 }
 0x303   :  { %1644 = vst.msk [vmem:[%s3711_s7 + $0x40] sm:$0xf] %vm1499_vm1, %v1565_v37  ;;  %1629 = vst.msk [vmem:[%s3711_s7 + $0x4] sm:$0xf] %vm1499_vm1, %v1535_v35 }
 0x306   :  { %v1545_v6 = vpop.permute.xlu1 %1544  ;;  %v1567_v13 = vpop.permute.xlu0 %1566 }
 0x307   :  { %1634 = vst.msk [vmem:[%s3711_s7 + $0x18] sm:$0xf] %vm1499_vm1, %v1545_v6  ;;  %1645 = vst.msk [vmem:[%s3711_s7 + $0x44] sm:$0xf] %vm1499_vm1, %v1567_v13 }
 0x30a   :  { %v1577_v45 = vpop.permute.xlu1 %1576  ;;  %v1547_v20 = vpop.permute.xlu0 %1546 }
 0x30b   :  { %1650 = vst.msk [vmem:[%s3711_s7 + $0x58] sm:$0xf] %vm1499_vm1, %v1577_v45  ;;  %1635 = vst.msk [vmem:[%s3711_s7 + $0x1c] sm:$0xf] %vm1499_vm1, %v1547_v20 }
 0x30e   :  { %v1541_v46 = vpop.permute.xlu1 %1540  ;;  %v1579_v14 = vpop.permute.xlu0 %1578 }
 0x30f   :  { %1632 = vst.msk [vmem:[%s3711_s7 + $0x10] sm:$0xf] %vm1499_vm1, %v1541_v46  ;;  %1651 = vst.msk [vmem:[%s3711_s7 + $0x5c] sm:$0xf] %vm1499_vm1, %v1579_v14 }
 0x312   :  { %v1573_v19 = vpop.permute.xlu1 %1572  ;;  %v1543_v56 = vpop.permute.xlu0 %1542 }
 0x313   :  { %1648 = vst.msk [vmem:[%s3711_s7 + $0x50] sm:$0xf] %vm1499_vm1, %v1573_v19  ;;  %1633 = vst.msk [vmem:[%s3711_s7 + $0x14] sm:$0xf] %vm1499_vm1, %v1543_v56 }
 0x316   :  { %v1553_v0 = vpop.permute.xlu1 %1552  ;;  %v1575_v30 = vpop.permute.xlu0 %1574 }
 0x317   :  { %1638 = vst.msk [vmem:[%s3711_s7 + $0x28] sm:$0xf] %vm1499_vm1, %v1553_v0  ;;  %1649 = vst.msk [vmem:[%s3711_s7 + $0x54] sm:$0xf] %vm1499_vm1, %v1575_v30 }
 0x31a   :  { %v1585_v58 = vpop.permute.xlu1 %1584  ;;  %v1555_v9 = vpop.permute.xlu0 %1554 }
 0x31b   :  { %1654 = vst.msk [vmem:[%s3711_s7 + $0x68] sm:$0xf] %vm1499_vm1, %v1585_v58  ;;  %1639 = vst.msk [vmem:[%s3711_s7 + $0x2c] sm:$0xf] %vm1499_vm1, %v1555_v9 }
 0x31e   :  { %v1549_v40 = vpop.permute.xlu1 %1548  ;;  %v1587_v51 = vpop.permute.xlu0 %1586 }
 0x31f   :  { %1636 = vst.msk [vmem:[%s3711_s7 + $0x20] sm:$0xf] %vm1499_vm1, %v1549_v40  ;;  %1655 = vst.msk [vmem:[%s3711_s7 + $0x6c] sm:$0xf] %vm1499_vm1, %v1587_v51 }
 0x322   :  { %v1581_v44 = vpop.permute.xlu1 %1580  ;;  %v1551_v11 = vpop.permute.xlu0 %1550 }
 0x323   :  { %1652 = vst.msk [vmem:[%s3711_s7 + $0x60] sm:$0xf] %vm1499_vm1, %v1581_v44  ;;  %1637 = vst.msk [vmem:[%s3711_s7 + $0x24] sm:$0xf] %vm1499_vm1, %v1551_v11 }
 0x326   :  { %v1561_v50 = vpop.permute.xlu1 %1560  ;;  %v1583_v21 = vpop.permute.xlu0 %1582 }
 0x327   :  { %1642 = vst.msk [vmem:[%s3711_s7 + $0x38] sm:$0xf] %vm1499_vm1, %v1561_v50  ;;  %1653 = vst.msk [vmem:[%s3711_s7 + $0x64] sm:$0xf] %vm1499_vm1, %v1583_v21 }
 0x32a   :  { %v1593_v48 = vpop.permute.xlu1 %1592  ;;  %v1563_v38 = vpop.permute.xlu0 %1562 }
 0x32b   :  { %1658 = vst.msk [vmem:[%s3711_s7 + $0x78] sm:$0xf] %vm1499_vm1, %v1593_v48  ;;  %1643 = vst.msk [vmem:[%s3711_s7 + $0x3c] sm:$0xf] %vm1499_vm1, %v1563_v38 }
 0x32e   :  { %v1557_v7 = vpop.permute.xlu1 %1556  ;;  %v1595_v22 = vpop.permute.xlu0 %1594 }
 0x32f   :  { %1640 = vst.msk [vmem:[%s3711_s7 + $0x30] sm:$0xf] %vm1499_vm1, %v1557_v7  ;;  %1659 = vst.msk [vmem:[%s3711_s7 + $0x7c] sm:$0xf] %vm1499_vm1, %v1595_v22 }
 0x332   :  { %v1589_v52 = vpop.permute.xlu1 %1588  ;;  %v1559_v29 = vpop.permute.xlu0 %1558 }
 0x333   :  { %1656 = vst.msk [vmem:[%s3711_s7 + $0x70] sm:$0xf] %vm1499_vm1, %v1589_v52  ;;  %1641 = vst.msk [vmem:[%s3711_s7 + $0x34] sm:$0xf] %vm1499_vm1, %v1559_v29 }
 0x336   :  { %v1753_v26 = vpop.permute.xlu1 %1752  ;;  %v1591_v49 = vpop.permute.xlu0 %1590 }
 0x337   :  { %1818 = vst.msk [vmem:[%s3710_s8 + $0xf0] sm:$0xff] %vm61_vm0, %v1753_v26 }
 0x338   :  { %1657 = vst.msk [vmem:[%s3711_s7 + $0x74] sm:$0xf] %vm1499_vm1, %v1591_v49 }
 0x33a   :  { %v1755_v5 = vpop.permute.xlu0 %1754 }
 0x33b   :  { %1819 = vst.msk [vmem:[%s3710_s8 + $0xf8] sm:$0xff] %vm61_vm0, %v1755_v5 }

// kernel: pair_transform_layer.13
= control target key start
LH: loop header
LB: loop body
LE: loop exit
PB: predicated region body
PF: predicated region fallthrough
CT: control target
= control target key end

     0   :  { %vm61_vm0 = vcmask 130048   ;;  %s2035_s0 = inlined_call_operand.vmem [shape: f32[256,16], index: 0, kind: input, shape index: {}]   ;;  %s2036_s5 = inlined_call_operand.vmem [shape: bf16[16,16], index: 5, kind: input, shape index: {}]   ;;  %s2037_s3 = inlined_call_operand.vmem [shape: f32[1,16], index: 3, kind: input, shape index: {}]   ;;  %s2038_s4 = inlined_call_operand.vmem [shape: f32[1,16], index: 4, kind: input, shape index: {}]   ;;  %s2039_s6 = inlined_call_operand.vmem [shape: f32[1,16], index: 6, kind: input, shape index: {}]   ;;  %s2040_s1 = inlined_call_operand.vmem [shape: f32[256,16], index: 1, kind: input, shape index: {}]   ;;  %s2041_s2 = inlined_call_operand.vmem [shape: f32[256,16], index: 2, kind: input, shape index: {}]   ;;  %s2042_s7 = inlined_call_operand.vmem [shape: f32[256,16], index: 7, kind: output, shape index: {}]  }
   0x1   :  { %v1140_v0 = vld [vmem:[%s2035_s0] sm:$0xff]  ;;  %v1150_v2 = vld [vmem:[%s2035_s0 + $0x8] sm:$0xff]  ;;  %v1168_v8 = vld [vmem:[%s2035_s0 + $0x10] sm:$0xff] }
   0x2   :  { %v1145_v1 = vld [vmem:[%s2035_s0 + $0x80] sm:$0xff]  ;;  %v62_v3 = vsel %vm61_vm0, %v1140_v0, 0.0  ;;  %v1159_v5 = vld [vmem:[%s2035_s0 + $0x88] sm:$0xff]  ;;  %v65_v6 = vsel %vm61_vm0, %v1150_v2, 0.0  ;;  %v1173_v9 = vld [vmem:[%s2035_s0 + $0x18] sm:$0xff]  ;;  %v68_v10 = vsel %vm61_vm0, %v1168_v8, 0.0 }
   0x3   :  { %v110_v4 = vsel %vm61_vm0, %v1145_v1, 0.0  ;;  %63 = vadd.xlane.f32.xlu0 %v62_v3  ;;  %v113_v7 = vsel %vm61_vm0, %v1159_v5, 0.0  ;;  %v71_v11 = vsel %vm61_vm0, %v1173_v9, 0.0  ;;  %v1182_v12 = vld [vmem:[%s2035_s0 + $0x90] sm:$0xff]  ;;  %v1187_v13 = vld [vmem:[%s2035_s0 + $0x98] sm:$0xff]  ;;  %v1196_v16 = vld [vmem:[%s2035_s0 + $0x20] sm:$0xff] }
   0x4   :  { %111 = vadd.xlane.f32.xlu1 %v110_v4  ;;  %v116_v14 = vsel %vm61_vm0, %v1182_v12, 0.0  ;;  %v119_v15 = vsel %vm61_vm0, %v1187_v13, 0.0  ;;  %v1201_v17 = vld [vmem:[%s2035_s0 + $0x28] sm:$0xff]  ;;  %v74_v18 = vsel %vm61_vm0, %v1196_v16, 0.0  ;;  %v1210_v20 = vld [vmem:[%s2035_s0 + $0xa0] sm:$0xff]  ;;  %v1224_v24 = vld [vmem:[%s2035_s0 + $0x30] sm:$0xff] }
   0x5   :  { %v77_v19 = vsel %vm61_vm0, %v1201_v17, 0.0  ;;  %v1215_v21 = vld [vmem:[%s2035_s0 + $0xa8] sm:$0xff]  ;;  %v122_v22 = vsel %vm61_vm0, %v1210_v20, 0.0  ;;  %v1229_v25 = vld [vmem:[%s2035_s0 + $0x38] sm:$0xff]  ;;  %v80_v26 = vsel %vm61_vm0, %v1224_v24, 0.0  ;;  %v1238_v28 = vld [vmem:[%s2035_s0 + $0xb0] sm:$0xff] }
   0x6   :  { %v125_v23 = vsel %vm61_vm0, %v1215_v21, 0.0  ;;  %v83_v27 = vsel %vm61_vm0, %v1229_v25, 0.0  ;;  %v1243_v29 = vld [vmem:[%s2035_s0 + $0xb8] sm:$0xff]  ;;  %v128_v30 = vsel %vm61_vm0, %v1238_v28, 0.0  ;;  %v1252_v32 = vld [vmem:[%s2035_s0 + $0x40] sm:$0xff]  ;;  %v1257_v33 = vld [vmem:[%s2035_s0 + $0x48] sm:$0xff] }
   0x7   :  { %66 = vadd.xlane.f32.xlu0 %v65_v6  ;;  %v131_v31 = vsel %vm61_vm0, %v1243_v29, 0.0  ;;  %v86_v34 = vsel %vm61_vm0, %v1252_v32, 0.0  ;;  %v89_v35 = vsel %vm61_vm0, %v1257_v33, 0.0  ;;  %v1266_v36 = vld [vmem:[%s2035_s0 + $0xc0] sm:$0xff]  ;;  %v1271_v37 = vld [vmem:[%s2035_s0 + $0xc8] sm:$0xff]  ;;  %v1280_v40 = vld [vmem:[%s2035_s0 + $0x50] sm:$0xff] }
   0x8   :  { %114 = vadd.xlane.f32.xlu1 %v113_v7  ;;  %v134_v38 = vsel %vm61_vm0, %v1266_v36, 0.0  ;;  %v137_v39 = vsel %vm61_vm0, %v1271_v37, 0.0  ;;  %v1285_v41 = vld [vmem:[%s2035_s0 + $0x58] sm:$0xff]  ;;  %v92_v42 = vsel %vm61_vm0, %v1280_v40, 0.0  ;;  %v1294_v44 = vld [vmem:[%s2035_s0 + $0xd0] sm:$0xff]  ;;  %v1308_v48 = vld [vmem:[%s2035_s0 + $0x60] sm:$0xff] }
   0x9   :  { %v95_v43 = vsel %vm61_vm0, %v1285_v41, 0.0  ;;  %v1299_v45 = vld [vmem:[%s2035_s0 + $0xd8] sm:$0xff]  ;;  %v140_v46 = vsel %vm61_vm0, %v1294_v44, 0.0  ;;  %v1313_v49 = vld [vmem:[%s2035_s0 + $0x68] sm:$0xff]  ;;  %v98_v50 = vsel %vm61_vm0, %v1308_v48, 0.0  ;;  %v1322_v52 = vld [vmem:[%s2035_s0 + $0xe0] sm:$0xff] }
   0xa   :  { %v143_v47 = vsel %vm61_vm0, %v1299_v45, 0.0  ;;  %v101_v51 = vsel %vm61_vm0, %v1313_v49, 0.0  ;;  %v1327_v53 = vld [vmem:[%s2035_s0 + $0xe8] sm:$0xff]  ;;  %v146_v54 = vsel %vm61_vm0, %v1322_v52, 0.0  ;;  %v1336_v56 = vld [vmem:[%s2035_s0 + $0x70] sm:$0xff]  ;;  %v1341_v57 = vld [vmem:[%s2035_s0 + $0x78] sm:$0xff] }
   0xb   :  { %69 = vadd.xlane.f32.xlu0 %v68_v10  ;;  %v149_v55 = vsel %vm61_vm0, %v1327_v53, 0.0  ;;  %v104_v58 = vsel %vm61_vm0, %v1336_v56, 0.0  ;;  %v107_v59 = vsel %vm61_vm0, %v1341_v57, 0.0  ;;  %v1350_v60 = vld [vmem:[%s2035_s0 + $0xf0] sm:$0xff]  ;;  %v1355_v61 = vld [vmem:[%s2035_s0 + $0xf8] sm:$0xff] }
   0xc   :  { %72 = vadd.xlane.f32.xlu1 %v71_v11  ;;  %v152_v62 = vsel %vm61_vm0, %v1350_v60, 0.0  ;;  %v155_v63 = vsel %vm61_vm0, %v1355_v61, 0.0 }
   0xf   :  { %117 = vadd.xlane.f32.xlu0 %v116_v14 }
  0x10   :  { %120 = vadd.xlane.f32.xlu1 %v119_v15 }
  0x13   :  { %75 = vadd.xlane.f32.xlu0 %v74_v18 }
  0x14   :  { %78 = vadd.xlane.f32.xlu1 %v77_v19 }
  0x17   :  { %123 = vadd.xlane.f32.xlu0 %v122_v22 }
  0x18   :  { %126 = vadd.xlane.f32.xlu1 %v125_v23 }
  0x1b   :  { %81 = vadd.xlane.f32.xlu0 %v80_v26 }
  0x1c   :  { %84 = vadd.xlane.f32.xlu1 %v83_v27 }
  0x1f   :  { %129 = vadd.xlane.f32.xlu0 %v128_v30 }
  0x20   :  { %132 = vadd.xlane.f32.xlu1 %v131_v31 }
  0x23   :  { %87 = vadd.xlane.f32.xlu0 %v86_v34 }
  0x24   :  { %90 = vadd.xlane.f32.xlu1 %v89_v35 }
  0x27   :  { %135 = vadd.xlane.f32.xlu0 %v134_v38 }
  0x28   :  { %138 = vadd.xlane.f32.xlu1 %v137_v39 }
  0x2b   :  { %93 = vadd.xlane.f32.xlu0 %v92_v42 }
  0x2c   :  { %96 = vadd.xlane.f32.xlu1 %v95_v43 }
  0x2f   :  { %141 = vadd.xlane.f32.xlu0 %v140_v46 }
  0x30   :  { %144 = vadd.xlane.f32.xlu1 %v143_v47 }
  0x33   :  { %99 = vadd.xlane.f32.xlu0 %v98_v50 }
  0x34   :  { %102 = vadd.xlane.f32.xlu1 %v101_v51 }
  0x37   :  { %147 = vadd.xlane.f32.xlu0 %v146_v54 }
  0x38   :  { %150 = vadd.xlane.f32.xlu1 %v149_v55 }
  0x3b   :  { %105 = vadd.xlane.f32.xlu0 %v104_v58 }
  0x3c   :  { %108 = vadd.xlane.f32.xlu1 %v107_v59 }
  0x3f   :  { %153 = vadd.xlane.f32.xlu0 %v152_v62 }
  0x40   :  { %156 = vadd.xlane.f32.xlu1 %v155_v63 }
  0x8c   :  { %v64_v3 = vpop.xlane.xlu0 %63 }
  0x8d   :  { %v112_v4 = vpop.xlane.xlu1 %111  ;;  %v159_v6 = vmul.f32 0.0625, %v64_v3 }
  0x8e   :  { %v175_v7 = vmul.f32 0.0625, %v112_v4 }
  0x8f   :  { %v1362_v10 = vsub.f32 %v1140_v0, %v159_v6 }
  0x90   :  { %v1365_v11 = vsub.f32 %v1145_v1, %v175_v7  ;;  %v67_v14 = vpop.xlane.xlu0 %66 }
  0x91   :  { %v115_v15 = vpop.xlane.xlu1 %114  ;;  %v160_v18 = vmul.f32 0.0625, %v67_v14  ;;  %v223_v22 = vmul.f32 %v1362_v10, %v1362_v10 }
  0x92   :  { %v176_v19 = vmul.f32 0.0625, %v115_v15  ;;  %v239_v23 = vmul.f32 %v1365_v11, %v1365_v11 }
  0x93   :  { %v1372_v26 = vsub.f32 %v1150_v2, %v160_v18  ;;  %v255_v0 = vsel %vm61_vm0, %v223_v22, 0.0 }
  0x94   :  { %v1375_v27 = vsub.f32 %v1159_v5, %v176_v19  ;;  %256 = vadd.xlane.f32.xlu0 %v255_v0  ;;  %v70_v1 = vpop.xlane.xlu0 %69  ;;  %v303_v31 = vsel %vm61_vm0, %v239_v23, 0.0 }
  0x95   :  { %v73_v30 = vpop.xlane.xlu1 %72  ;;  %v161_v34 = vmul.f32 0.0625, %v70_v1  ;;  %v224_v38 = vmul.f32 %v1372_v26, %v1372_v26 }
  0x96   :  { %v162_v35 = vmul.f32 0.0625, %v73_v30  ;;  %v240_v39 = vmul.f32 %v1375_v27, %v1375_v27 }
  0x97   :  { %v1384_v2 = vsub.f32 %v1168_v8, %v161_v34  ;;  %v258_v42 = vsel %vm61_vm0, %v224_v38, 0.0 }
  0x98   :  { %v1387_v5 = vsub.f32 %v1173_v9, %v162_v35  ;;  %304 = vadd.xlane.f32.xlu0 %v303_v31  ;;  %259 = vadd.xlane.f32.xlu1 %v258_v42  ;;  %v118_v43 = vpop.xlane.xlu0 %117  ;;  %v306_v47 = vsel %vm61_vm0, %v240_v39, 0.0 }
  0x99   :  { %v121_v46 = vpop.xlane.xlu1 %120  ;;  %v177_v50 = vmul.f32 0.0625, %v118_v43  ;;  %v225_v54 = vmul.f32 %v1384_v2, %v1384_v2 }
  0x9a   :  { %v178_v51 = vmul.f32 0.0625, %v121_v46  ;;  %v226_v8 = vmul.f32 %v1387_v5, %v1387_v5 }
  0x9b   :  { %v1396_v55 = vsub.f32 %v1182_v12, %v177_v50  ;;  %v261_v58 = vsel %vm61_vm0, %v225_v54, 0.0 }
  0x9c   :  { %v1399_v9 = vsub.f32 %v1187_v13, %v178_v51  ;;  %307 = vadd.xlane.f32.xlu1 %v306_v47  ;;  %262 = vadd.xlane.f32.xlu0 %v261_v58  ;;  %v76_v59 = vpop.xlane.xlu0 %75  ;;  %v264_v63 = vsel %vm61_vm0, %v226_v8, 0.0 }
  0x9d   :  { %v79_v62 = vpop.xlane.xlu1 %78  ;;  %v163_v3 = vmul.f32 0.0625, %v76_v59  ;;  %v241_v6 = vmul.f32 %v1396_v55, %v1396_v55 }
  0x9e   :  { %v164_v4 = vmul.f32 0.0625, %v79_v62  ;;  %v242_v12 = vmul.f32 %v1399_v9, %v1399_v9 }
  0x9f   :  { %v1408_v7 = vsub.f32 %v1196_v16, %v163_v3  ;;  %v309_v14 = vsel %vm61_vm0, %v241_v6, 0.0 }
  0xa0   :  { %v1411_v13 = vsub.f32 %v1201_v17, %v164_v4  ;;  %265 = vadd.xlane.f32.xlu1 %v264_v63  ;;  %310 = vadd.xlane.f32.xlu0 %v309_v14  ;;  %v124_v15 = vpop.xlane.xlu0 %123  ;;  %v312_v19 = vsel %vm61_vm0, %v242_v12, 0.0 }
  0xa1   :  { %v127_v18 = vpop.xlane.xlu1 %126  ;;  %v179_v22 = vmul.f32 0.0625, %v124_v15  ;;  %v227_v0 = vmul.f32 %v1408_v7, %v1408_v7 }
  0xa2   :  { %v180_v23 = vmul.f32 0.0625, %v127_v18  ;;  %v228_v16 = vmul.f32 %v1411_v13, %v1411_v13 }
  0xa3   :  { %v1420_v1 = vsub.f32 %v1210_v20, %v179_v22  ;;  %v267_v30 = vsel %vm61_vm0, %v227_v0, 0.0 }
  0xa4   :  { %v1423_v17 = vsub.f32 %v1215_v21, %v180_v23  ;;  %313 = vadd.xlane.f32.xlu1 %v312_v19  ;;  %268 = vadd.xlane.f32.xlu0 %v267_v30  ;;  %v82_v31 = vpop.xlane.xlu0 %81  ;;  %v270_v35 = vsel %vm61_vm0, %v228_v16, 0.0 }
  0xa5   :  { %v85_v34 = vpop.xlane.xlu1 %84  ;;  %v165_v38 = vmul.f32 0.0625, %v82_v31  ;;  %v243_v42 = vmul.f32 %v1420_v1, %v1420_v1 }
  0xa6   :  { %v166_v39 = vmul.f32 0.0625, %v85_v34  ;;  %v244_v20 = vmul.f32 %v1423_v17, %v1423_v17 }
  0xa7   :  { %v1432_v43 = vsub.f32 %v1224_v24, %v165_v38  ;;  %v315_v46 = vsel %vm61_vm0, %v243_v42, 0.0 }
  0xa8   :  { %v1435_v21 = vsub.f32 %v1229_v25, %v166_v39  ;;  %271 = vadd.xlane.f32.xlu1 %v270_v35  ;;  %316 = vadd.xlane.f32.xlu0 %v315_v46  ;;  %v130_v47 = vpop.xlane.xlu0 %129  ;;  %v318_v51 = vsel %vm61_vm0, %v244_v20, 0.0 }
  0xa9   :  { %v133_v50 = vpop.xlane.xlu1 %132  ;;  %v181_v54 = vmul.f32 0.0625, %v130_v47  ;;  %v229_v58 = vmul.f32 %v1432_v43, %v1432_v43 }
  0xaa   :  { %v182_v8 = vmul.f32 0.0625, %v133_v50  ;;  %v230_v24 = vmul.f32 %v1435_v21, %v1435_v21 }
  0xab   :  { %v1444_v59 = vsub.f32 %v1238_v28, %v181_v54  ;;  %v273_v62 = vsel %vm61_vm0, %v229_v58, 0.0 }
  0xac   :  { %v1447_v25 = vsub.f32 %v1243_v29, %v182_v8  ;;  %319 = vadd.xlane.f32.xlu1 %v318_v51  ;;  %274 = vadd.xlane.f32.xlu0 %v273_v62  ;;  %v88_v63 = vpop.xlane.xlu0 %87  ;;  %v276_v4 = vsel %vm61_vm0, %v230_v24, 0.0 }
  0xad   :  { %v91_v3 = vpop.xlane.xlu1 %90  ;;  %v167_v6 = vmul.f32 0.0625, %v88_v63  ;;  %v245_v14 = vmul.f32 %v1444_v59, %v1444_v59 }
  0xae   :  { %v168_v12 = vmul.f32 0.0625, %v91_v3  ;;  %v246_v28 = vmul.f32 %v1447_v25, %v1447_v25 }
  0xaf   :  { %v1456_v15 = vsub.f32 %v1252_v32, %v167_v6  ;;  %v321_v18 = vsel %vm61_vm0, %v245_v14, 0.0 }
  0xb0   :  { %v1459_v29 = vsub.f32 %v1257_v33, %v168_v12  ;;  %277 = vadd.xlane.f32.xlu1 %v276_v4  ;;  %322 = vadd.xlane.f32.xlu0 %v321_v18  ;;  %v136_v19 = vpop.xlane.xlu0 %135  ;;  %v324_v23 = vsel %vm61_vm0, %v246_v28, 0.0 }
  0xb1   :  { %v139_v22 = vpop.xlane.xlu1 %138  ;;  %v183_v0 = vmul.f32 0.0625, %v136_v19  ;;  %v231_v30 = vmul.f32 %v1456_v15, %v1456_v15 }
  0xb2   :  { %v184_v16 = vmul.f32 0.0625, %v139_v22  ;;  %v232_v32 = vmul.f32 %v1459_v29, %v1459_v29 }
  0xb3   :  { %v1468_v31 = vsub.f32 %v1266_v36, %v183_v0  ;;  %v279_v34 = vsel %vm61_vm0, %v231_v30, 0.0  ;;  %v1032_v30 = vld [vmem:[%s2036_s5] sm:$0xff]  }
  0xb4   :  { %v1471_v33 = vsub.f32 %v1271_v37, %v184_v16  ;;  %325 = vadd.xlane.f32.xlu1 %v324_v23  ;;  %280 = vadd.xlane.f32.xlu0 %v279_v34  ;;  %v94_v35 = vpop.xlane.xlu0 %93  ;;  %v282_v39 = vsel %vm61_vm0, %v232_v32, 0.0 }
  0xb5   :  { %v97_v38 = vpop.xlane.xlu1 %96  ;;  %v169_v42 = vmul.f32 0.0625, %v94_v35  ;;  %v247_v46 = vmul.f32 %v1468_v31, %v1468_v31  ;;  %996 = vmatprep.subr.bf16.mxu0 %v1032_v30  ;;  %1030 = vmatprep.subr.bf16.mxu1 %v1032_v30 }
  0xb6   :  { %v170_v20 = vmul.f32 0.0625, %v97_v38  ;;  %v248_v36 = vmul.f32 %v1471_v33, %v1471_v33  ;;  %997 = vmatpush3.bf16.msra.mxu0 %v1032_v30  ;;  %1031 = vmatpush3.bf16.msra.mxu1 %v1032_v30 }
  0xb7   :  { %v1480_v47 = vsub.f32 %v1280_v40, %v169_v42  ;;  %v327_v50 = vsel %vm61_vm0, %v247_v46, 0.0 }
  0xb8   :  { %v1483_v37 = vsub.f32 %v1285_v41, %v170_v20  ;;  %283 = vadd.xlane.f32.xlu1 %v282_v39  ;;  %328 = vadd.xlane.f32.xlu0 %v327_v50  ;;  %v142_v51 = vpop.xlane.xlu0 %141  ;;  %v330_v8 = vsel %vm61_vm0, %v248_v36, 0.0 }
  0xb9   :  { %v145_v54 = vpop.xlane.xlu1 %144  ;;  %v185_v58 = vmul.f32 0.0625, %v142_v51  ;;  %v233_v62 = vmul.f32 %v1480_v47, %v1480_v47 }
  0xba   :  { %v186_v24 = vmul.f32 0.0625, %v145_v54  ;;  %v234_v40 = vmul.f32 %v1483_v37, %v1483_v37 }
  0xbb   :  { %v1492_v63 = vsub.f32 %v1294_v44, %v185_v58  ;;  %v285_v3 = vsel %vm61_vm0, %v233_v62, 0.0 }
  0xbc   :  { %v1495_v41 = vsub.f32 %v1299_v45, %v186_v24  ;;  %331 = vadd.xlane.f32.xlu1 %v330_v8  ;;  %286 = vadd.xlane.f32.xlu0 %v285_v3  ;;  %v100_v4 = vpop.xlane.xlu0 %99  ;;  %v288_v12 = vsel %vm61_vm0, %v234_v40, 0.0 }
  0xbd   :  { %v103_v6 = vpop.xlane.xlu1 %102  ;;  %v171_v14 = vmul.f32 0.0625, %v100_v4  ;;  %v249_v18 = vmul.f32 %v1492_v63, %v1492_v63 }
  0xbe   :  { %v172_v28 = vmul.f32 0.0625, %v103_v6  ;;  %v250_v44 = vmul.f32 %v1495_v41, %v1495_v41 }
  0xbf   :  { %v1504_v19 = vsub.f32 %v1308_v48, %v171_v14  ;;  %v333_v22 = vsel %vm61_vm0, %v249_v18, 0.0 }
  0xc0   :  { %v1507_v45 = vsub.f32 %v1313_v49, %v172_v28  ;;  %289 = vadd.xlane.f32.xlu1 %v288_v12  ;;  %334 = vadd.xlane.f32.xlu0 %v333_v22  ;;  %v148_v23 = vpop.xlane.xlu0 %147  ;;  %v336_v16 = vsel %vm61_vm0, %v250_v44, 0.0 }
  0xc1   :  { %v151_v0 = vpop.xlane.xlu1 %150  ;;  %v187_v32 = vmul.f32 0.0625, %v148_v23  ;;  %v235_v48 = vmul.f32 %v1504_v19, %v1504_v19 }
  0xc2   :  { %v188_v34 = vmul.f32 0.0625, %v151_v0  ;;  %v236_v49 = vmul.f32 %v1507_v45, %v1507_v45 }
  0xc3   :  { %v1519_v35 = vsub.f32 %v1322_v52, %v187_v32  ;;  %v291_v39 = vsel %vm61_vm0, %v235_v48, 0.0 }
  0xc4   :  { %v1522_v38 = vsub.f32 %v1327_v53, %v188_v34  ;;  %337 = vadd.xlane.f32.xlu1 %v336_v16  ;;  %292 = vadd.xlane.f32.xlu0 %v291_v39  ;;  %v106_v42 = vpop.xlane.xlu0 %105  ;;  %v294_v46 = vsel %vm61_vm0, %v236_v49, 0.0 }
  0xc5   :  { %v109_v20 = vpop.xlane.xlu1 %108  ;;  %v173_v36 = vmul.f32 0.0625, %v106_v42  ;;  %v251_v51 = vmul.f32 %v1519_v35, %v1519_v35 }
  0xc6   :  { %v174_v50 = vmul.f32 0.0625, %v109_v20  ;;  %v252_v52 = vmul.f32 %v1522_v38, %v1522_v38 }
  0xc7   :  { %v1531_v53 = vsub.f32 %v1336_v56, %v173_v36  ;;  %v339_v8 = vsel %vm61_vm0, %v251_v51, 0.0 }
  0xc8   :  { %v1534_v54 = vsub.f32 %v1341_v57, %v174_v50  ;;  %295 = vadd.xlane.f32.xlu1 %v294_v46  ;;  %340 = vadd.xlane.f32.xlu0 %v339_v8  ;;  %v154_v58 = vpop.xlane.xlu0 %153  ;;  %v342_v62 = vsel %vm61_vm0, %v252_v52, 0.0 }
  0xc9   :  { %v157_v24 = vpop.xlane.xlu1 %156  ;;  %v189_v40 = vmul.f32 0.0625, %v154_v58  ;;  %v237_v4 = vmul.f32 %v1531_v53, %v1531_v53 }
  0xca   :  { %v190_v3 = vmul.f32 0.0625, %v157_v24  ;;  %v238_v56 = vmul.f32 %v1534_v54, %v1534_v54 }
  0xcb   :  { %v1543_v6 = vsub.f32 %v1350_v60, %v189_v40  ;;  %v297_v12 = vsel %vm61_vm0, %v237_v4, 0.0 }
  0xcc   :  { %v1546_v57 = vsub.f32 %v1355_v61, %v190_v3  ;;  %343 = vadd.xlane.f32.xlu1 %v342_v62  ;;  %298 = vadd.xlane.f32.xlu0 %v297_v12  ;;  %v300_v14 = vsel %vm61_vm0, %v238_v56, 0.0 }
  0xcd   :  { %v253_v28 = vmul.f32 %v1543_v6, %v1543_v6 }
  0xce   :  { %v254_v18 = vmul.f32 %v1546_v57, %v1546_v57 }
  0xcf   :  { %v345_v44 = vsel %vm61_vm0, %v253_v28, 0.0  ;;  %v1559_v28 = vld [vmem:[%s2037_s3] ss:$0 sm:$0xff] }
  0xd0   :  { %301 = vadd.xlane.f32.xlu1 %v300_v14  ;;  %346 = vadd.xlane.f32.xlu0 %v345_v44  ;;  %v348_v60 = vsel %vm61_vm0, %v254_v18, 0.0 }
  0xd4   :  { %349 = vadd.xlane.f32.xlu1 %v348_v60 }
 0x11d   :  { %v257_v61 = vpop.xlane.xlu0 %256 }
 0x11e   :  { %v351_v22 = vmul.f32 0.0625, %v257_v61 }
 0x120   :  { %v383_v23 = vadd.f32 1e-05, %v351_v22 }
 0x121   :  { %v260_v0 = vpop.xlane.xlu1 %259  ;;  %v305_v16 = vpop.xlane.xlu0 %304 }
 0x122   :  { %1033 = vrsqrt.f32 %v383_v23  ;;  %v352_v30 = vmul.f32 0.0625, %v260_v0  ;;  %v367_v32 = vmul.f32 0.0625, %v305_v16 }
 0x124   :  { %v384_v34 = vadd.f32 1e-05, %v352_v30  ;;  %v399_v48 = vadd.f32 1e-05, %v367_v32 }
 0x125   :  { %v308_v49 = vpop.xlane.xlu1 %307  ;;  %v263_v39 = vpop.xlane.xlu0 %262 }
 0x126   :  { %1035 = vrsqrt.f32 %v384_v34  ;;  %v368_v42 = vmul.f32 0.0625, %v308_v49  ;;  %v353_v20 = vmul.f32 0.0625, %v263_v39  ;;  %v1566_v34 = vld [vmem:[%s2038_s4] ss:$0 sm:$0xff] }
 0x127   :  { %1037 = vrsqrt.f32 %v399_v48 }
 0x128   :  { %v400_v46 = vadd.f32 1e-05, %v368_v42  ;;  %v385_v36 = vadd.f32 1e-05, %v353_v20 }
 0x129   :  { %v266_v50 = vpop.xlane.xlu1 %265  ;;  %v311_v51 = vpop.xlane.xlu0 %310 }
 0x12a   :  { %1039 = vrsqrt.f32 %v400_v46  ;;  %v354_v52 = vmul.f32 0.0625, %v266_v50  ;;  %v369_v8 = vmul.f32 0.0625, %v311_v51 }
 0x12b   :  { %1041 = vrsqrt.f32 %v385_v36 }
 0x12c   :  { %v386_v58 = vadd.f32 1e-05, %v354_v52  ;;  %v401_v24 = vadd.f32 1e-05, %v369_v8 }
 0x12d   :  { %v314_v62 = vpop.xlane.xlu1 %313  ;;  %v269_v40 = vpop.xlane.xlu0 %268 }
 0x12e   :  { %1043 = vrsqrt.f32 %v386_v58  ;;  %v370_v3 = vmul.f32 0.0625, %v314_v62  ;;  %v355_v4 = vmul.f32 0.0625, %v269_v40 }
 0x12f   :  { %v1034_v56 = vpop.eup %1033  ;;  %1045 = vrsqrt.f32 %v401_v24 }
 0x130   :  { %v402_v12 = vadd.f32 1e-05, %v370_v3  ;;  %v387_v14 = vadd.f32 1e-05, %v355_v4  ;;  %v447_v18 = vmul.f32 %v1034_v56, %v1362_v10 }
 0x131   :  { %v272_v44 = vpop.xlane.xlu1 %271  ;;  %v317_v60 = vpop.xlane.xlu0 %316 }
 0x132   :  { %1047 = vrsqrt.f32 %v402_v12  ;;  %v356_v61 = vmul.f32 0.0625, %v272_v44  ;;  %v371_v22 = vmul.f32 0.0625, %v317_v60  ;;  %v485_v0 = vmul.f32 %v1559_v28, %v447_v18 }
 0x133   :  { %v1036_v23 = vpop.eup %1035  ;;  %1049 = vrsqrt.f32 %v387_v14 }
 0x134   :  { %v1038_v16 = vpop.eup %1037  ;;  %v388_v30 = vadd.f32 1e-05, %v356_v61  ;;  %v403_v32 = vadd.f32 1e-05, %v371_v22  ;;  %v448_v48 = vmul.f32 %v1036_v23, %v1372_v26  ;;  %v523_v50 = vadd.f32 %v1566_v34, %v485_v0 }
 0x135   :  { %v320_v10 = vpop.xlane.xlu1 %319  ;;  %v275_v49 = vpop.xlane.xlu0 %274  ;;  %v463_v39 = vmul.f32 %v1038_v16, %v1365_v11 }
 0x136   :  { %1051 = vrsqrt.f32 %v388_v30  ;;  %v372_v42 = vmul.f32 0.0625, %v320_v10  ;;  %v357_v20 = vmul.f32 0.0625, %v275_v49  ;;  %v486_v46 = vmul.f32 %v1559_v28, %v448_v48 }
 0x137   :  { %v1040_v36 = vpop.eup %1039  ;;  %1053 = vrsqrt.f32 %v403_v32  ;;  %v501_v11 = vmul.f32 %v1559_v28, %v463_v39 }
 0x138   :  { %v1042_v51 = vpop.eup %1041  ;;  %v404_v52 = vadd.f32 1e-05, %v372_v42  ;;  %v389_v8 = vadd.f32 1e-05, %v357_v20  ;;  %v524_v58 = vadd.f32 %v1566_v34, %v486_v46  ;;  %v464_v26 = vmul.f32 %v1040_v36, %v1375_v27 }
 0x139   :  { %v278_v24 = vpop.xlane.xlu1 %277  ;;  %v323_v62 = vpop.xlane.xlu0 %322  ;;  %v449_v40 = vmul.f32 %v1042_v51, %v1384_v2  ;;  %v539_v2 = vadd.f32 %v1566_v34, %v501_v11 }
 0x13a   :  { %1055 = vrsqrt.f32 %v404_v52  ;;  %v358_v3 = vmul.f32 0.0625, %v278_v24  ;;  %v373_v4 = vmul.f32 0.0625, %v323_v62  ;;  %v555_v56 = vpack.c.bf16 %v524_v58, %v523_v50 }
 0x13b   :  { %v1044_v12 = vpop.eup %1043  ;;  %1057 = vrsqrt.f32 %v389_v8  ;;  %v502_v14 = vmul.f32 %v1559_v28, %v464_v26  ;;  %v487_v18 = vmul.f32 %v1559_v28, %v449_v40 }
 0x13c   :  { %v1046_v44 = vpop.eup %1045  ;;  %v390_v60 = vadd.f32 1e-05, %v358_v3  ;;  %v405_v61 = vadd.f32 1e-05, %v373_v4  ;;  %998 = vmatprep.mubr.msk.bf16.mxu0 %vm61_vm0, %v555_v56  ;;  %v450_v27 = vmul.f32 %v1044_v12, %v1387_v5 }
 0x13d   :  { %v326_v22 = vpop.xlane.xlu1 %325  ;;  %v281_v23 = vpop.xlane.xlu0 %280  ;;  %v540_v0 = vadd.f32 %v1566_v34, %v502_v14  ;;  %v465_v16 = vmul.f32 %v1046_v44, %v1396_v55  ;;  %v525_v39 = vadd.f32 %v1566_v34, %v487_v18 }
 0x13e   :  { %1059 = vrsqrt.f32 %v390_v60  ;;  %v374_v30 = vmul.f32 0.0625, %v326_v22  ;;  %v359_v32 = vmul.f32 0.0625, %v281_v23  ;;  %v488_v48 = vmul.f32 %v1559_v28, %v450_v27 }
 0x13f   :  { %v1048_v10 = vpop.eup %1047  ;;  %1061 = vrsqrt.f32 %v405_v61  ;;  %v563_v49 = vpack.c.bf16 %v540_v0, %v539_v2  ;;  %v503_v51 = vmul.f32 %v1559_v28, %v465_v16 }
 0x140   :  { %v1050_v42 = vpop.eup %1049  ;;  %v406_v5 = vadd.f32 1e-05, %v374_v30  ;;  %v391_v20 = vadd.f32 1e-05, %v359_v32  ;;  %v526_v46 = vadd.f32 %v1566_v34, %v488_v48  ;;  %v466_v36 = vmul.f32 %v1048_v10, %v1399_v9 }
 0x141   :  { %1014 = vmatprep.mubr.msk.bf16.mxu1 %vm61_vm0, %v563_v49  ;;  %v284_v55 = vpop.xlane.xlu1 %283  ;;  %v329_v50 = vpop.xlane.xlu0 %328  ;;  %v451_v52 = vmul.f32 %v1050_v42, %v1408_v7  ;;  %v541_v7 = vadd.f32 %v1566_v34, %v503_v51 }
 0x142   :  { %1063 = vrsqrt.f32 %v406_v5  ;;  %v360_v8 = vmul.f32 0.0625, %v284_v55  ;;  %v375_v58 = vmul.f32 0.0625, %v329_v50  ;;  %v556_v26 = vpack.c.bf16 %v526_v46, %v525_v39 }
 0x143   :  { %v1052_v24 = vpop.eup %1051  ;;  %1065 = vrsqrt.f32 %v391_v20  ;;  %v504_v62 = vmul.f32 %v1559_v28, %v466_v36  ;;  %v489_v11 = vmul.f32 %v1559_v28, %v451_v52 }
 0x144   :  { %v1054_v40 = vpop.eup %1053  ;;  %v392_v9 = vadd.f32 1e-05, %v360_v8  ;;  %v407_v3 = vadd.f32 1e-05, %v375_v58  ;;  %999 = vmatmul.mubr.msk.bf16.vlgmr.msra.gmra.mxu0 %vm61_vm0, %v556_v26  ;;  %v452_v4 = vmul.f32 %v1052_v24, %v1411_v13 }
 0x145   :  { %v332_v56 = vpop.xlane.xlu1 %331  ;;  %v287_v12 = vpop.xlane.xlu0 %286  ;;  %v542_v14 = vadd.f32 %v1566_v34, %v504_v62  ;;  %v467_v18 = vmul.f32 %v1054_v40, %v1420_v1  ;;  %v527_v23 = vadd.f32 %v1566_v34, %v489_v11 }
 0x146   :  { %1067 = vrsqrt.f32 %v392_v9  ;;  %v376_v44 = vmul.f32 0.0625, %v332_v56  ;;  %v361_v60 = vmul.f32 0.0625, %v287_v12  ;;  %v490_v61 = vmul.f32 %v1559_v28, %v452_v4 }
 0x147   :  { %v1056_v27 = vpop.eup %1055  ;;  %1069 = vrsqrt.f32 %v407_v3  ;;  %v564_v22 = vpack.c.bf16 %v542_v14, %v541_v7  ;;  %v505_v48 = vmul.f32 %v1559_v28, %v467_v18 }
 0x148   :  { %v1058_v2 = vpop.eup %1057  ;;  %v408_v13 = vadd.f32 1e-05, %v376_v44  ;;  %v393_v0 = vadd.f32 1e-05, %v361_v60  ;;  %v528_v16 = vadd.f32 %v1566_v34, %v490_v61  ;;  %v468_v30 = vmul.f32 %v1056_v27, %v1423_v17 }
 0x149   :  { %1015 = vmatmul.mubr.msk.bf16.vlgmr.msra.gmra.mxu1 %vm61_vm0, %v564_v22  ;;  %v290_v1 = vpop.xlane.xlu1 %289  ;;  %v335_v32 = vpop.xlane.xlu0 %334  ;;  %v453_v10 = vmul.f32 %v1058_v2, %v1432_v43  ;;  %v543_v43 = vadd.f32 %v1566_v34, %v505_v48 }
 0x14a   :  { %1071 = vrsqrt.f32 %v408_v13  ;;  %v362_v49 = vmul.f32 0.0625, %v290_v1  ;;  %v377_v39 = vmul.f32 0.0625, %v335_v32  ;;  %v557_v42 = vpack.c.bf16 %v528_v16, %v527_v23 }
 0x14b   :  { %v1060_v5 = vpop.eup %1059  ;;  %1073 = vrsqrt.f32 %v393_v0  ;;  %v506_v20 = vmul.f32 %v1559_v28, %v468_v30  ;;  %v491_v46 = vmul.f32 %v1559_v28, %v453_v10 }
 0x14c   :  { %v1062_v36 = vpop.eup %1061  ;;  %v394_v17 = vadd.f32 1e-05, %v362_v49  ;;  %v409_v55 = vadd.f32 1e-05, %v377_v39  ;;  %1002 = vmatprep.mubr.msk.bf16.mxu0 %vm61_vm0, %v557_v42  ;;  %v454_v50 = vmul.f32 %v1060_v5, %v1435_v21 }
 0x14d   :  { %v338_v51 = vpop.xlane.xlu1 %337  ;;  %v293_v52 = vpop.xlane.xlu0 %292  ;;  %v544_v8 = vadd.f32 %v1566_v34, %v506_v20  ;;  %v469_v58 = vmul.f32 %v1062_v36, %v1444_v59  ;;  %v529_v9 = vadd.f32 %v1566_v34, %v491_v46 }
 0x14e   :  { %1075 = vrsqrt.f32 %v394_v17  ;;  %v378_v26 = vmul.f32 0.0625, %v338_v51  ;;  %v363_v24 = vmul.f32 0.0625, %v293_v52  ;;  %v492_v62 = vmul.f32 %v1559_v28, %v454_v50 }
 0x14f   :  { %v1064_v11 = vpop.eup %1063  ;;  %1077 = vrsqrt.f32 %v409_v55  ;;  %v565_v40 = vpack.c.bf16 %v544_v8, %v543_v43  ;;  %v507_v14 = vmul.f32 %v1559_v28, %v469_v58 }
 0x150   :  { %v1066_v3 = vpop.eup %1065  ;;  %v410_v21 = vadd.f32 1e-05, %v378_v26  ;;  %v395_v4 = vadd.f32 1e-05, %v363_v24  ;;  %v530_v56 = vadd.f32 %v1566_v34, %v492_v62  ;;  %v470_v12 = vmul.f32 %v1064_v11, %v1447_v25 }
 0x151   :  { %1018 = vmatprep.mubr.msk.bf16.mxu1 %vm61_vm0, %v565_v40  ;;  %v296_v59 = vpop.xlane.xlu1 %295  ;;  %v341_v7 = vpop.xlane.xlu0 %340  ;;  %v455_v18 = vmul.f32 %v1066_v3, %v1456_v15  ;;  %v545_v15 = vadd.f32 %v1566_v34, %v507_v14 }
 0x152   :  { %1079 = vrsqrt.f32 %v410_v21  ;;  %v364_v44 = vmul.f32 0.0625, %v296_v59  ;;  %v379_v60 = vmul.f32 0.0625, %v341_v7  ;;  %v558_v61 = vpack.c.bf16 %v530_v56, %v529_v9 }
 0x153   :  { %v1068_v27 = vpop.eup %1067  ;;  %1081 = vrsqrt.f32 %v395_v4  ;;  %v508_v22 = vmul.f32 %v1559_v28, %v470_v12  ;;  %v493_v23 = vmul.f32 %v1559_v28, %v455_v18 }
 0x154   :  { %v1070_v2 = vpop.eup %1069  ;;  %v396_v25 = vadd.f32 1e-05, %v364_v44  ;;  %v411_v13 = vadd.f32 1e-05, %v379_v60  ;;  %1003 = vmatmul.mubr.msk.bf16.gmra.mxu0 %vm61_vm0, %v558_v61  ;;  %v456_v0 = vmul.f32 %v1068_v27, %v1459_v29 }
 0x155   :  { %v344_v16 = vpop.xlane.xlu1 %343  ;;  %v299_v30 = vpop.xlane.xlu0 %298  ;;  %v546_v1 = vadd.f32 %v1566_v34, %v508_v22  ;;  %v471_v32 = vmul.f32 %v1070_v2, %v1468_v31  ;;  %v531_v5 = vadd.f32 %v1566_v34, %v493_v23 }
 0x156   :  { %1083 = vrsqrt.f32 %v396_v25  ;;  %v380_v48 = vmul.f32 0.0625, %v344_v16  ;;  %v365_v10 = vmul.f32 0.0625, %v299_v30  ;;  %v494_v49 = vmul.f32 %v1559_v28, %v456_v0 }
 0x157   :  { %v1072_v39 = vpop.eup %1071  ;;  %1085 = vrsqrt.f32 %v411_v13  ;;  %v566_v42 = vpack.c.bf16 %v546_v1, %v545_v15  ;;  %v509_v50 = vmul.f32 %v1559_v28, %v471_v32 }
 0x158   :  { %v1074_v20 = vpop.eup %1073  ;;  %v412_v29 = vadd.f32 1e-05, %v380_v48  ;;  %v397_v46 = vadd.f32 1e-05, %v365_v10  ;;  %v532_v36 = vadd.f32 %v1566_v34, %v494_v49  ;;  %v472_v17 = vmul.f32 %v1072_v39, %v1471_v33 }
 0x159   :  { %1019 = vmatmul.mubr.msk.bf16.gmra.mxu1 %vm61_vm0, %v566_v42  ;;  %v302_v31 = vpop.xlane.xlu1 %301  ;;  %v347_v55 = vpop.xlane.xlu0 %346  ;;  %v457_v51 = vmul.f32 %v1074_v20, %v1480_v47  ;;  %v547_v47 = vadd.f32 %v1566_v34, %v509_v50 }
 0x15a   :  { %1087 = vrsqrt.f32 %v412_v29  ;;  %v366_v52 = vmul.f32 0.0625, %v302_v31  ;;  %v381_v43 = vmul.f32 0.0625, %v347_v55  ;;  %v559_v8 = vpack.c.bf16 %v532_v36, %v531_v5 }
 0x15b   :  { %v1076_v58 = vpop.eup %1075  ;;  %1089 = vrsqrt.f32 %v397_v46  ;;  %v510_v26 = vmul.f32 %v1559_v28, %v472_v17  ;;  %v495_v24 = vmul.f32 %v1559_v28, %v457_v51 }
 0x15c   :  { %v1078_v62 = vpop.eup %1077  ;;  %v398_v33 = vadd.f32 1e-05, %v366_v52  ;;  %v413_v11 = vadd.f32 1e-05, %v381_v43  ;;  %1006 = vmatprep.mubr.msk.bf16.mxu0 %vm61_vm0, %v559_v8  ;;  %v458_v40 = vmul.f32 %v1076_v58, %v1483_v37  ;;  %v1681_v58 = vld [vmem:[%s2039_s6] ss:$0 sm:$0xff] }
 0x15d   :  { %v350_v9 = vpop.xlane.xlu1 %349  ;;  %v548_v3 = vadd.f32 %v1566_v34, %v510_v26  ;;  %v473_v21 = vmul.f32 %v1078_v62, %v1492_v63  ;;  %v533_v7 = vadd.f32 %v1566_v34, %v495_v24  ;;  %v829_v26 = vld [vmem:[%s2040_s1 + $0x10] sm:$0xff]  ;;  %v827_v62 = vld [vmem:[%s2040_s1] sm:$0xff] }
 0x15e   :  { %1091 = vrsqrt.f32 %v398_v33  ;;  %v382_v4 = vmul.f32 0.0625, %v350_v9  ;;  %v496_v56 = vmul.f32 %v1559_v28, %v458_v40  ;;  %v797_v24 = vld [vmem:[%s2041_s2 + $0x10] sm:$0xff]  ;;  %v795_v40 = vld [vmem:[%s2041_s2] sm:$0xff] }
 0x15f   :  { %v1080_v12 = vpop.eup %1079  ;;  %1093 = vrsqrt.f32 %v413_v11  ;;  %v567_v59 = vpack.c.bf16 %v548_v3, %v547_v47  ;;  %v511_v60 = vmul.f32 %v1559_v28, %v473_v21  ;;  %v830_v47 = vld [vmem:[%s2040_s1 + $0x18] sm:$0xff] }
 0x160   :  { %v1082_v14 = vpop.eup %1081  ;;  %v414_v18 = vadd.f32 1e-05, %v382_v4  ;;  %v534_v37 = vadd.f32 %v1566_v34, %v496_v56  ;;  %v474_v44 = vmul.f32 %v1080_v12, %v1495_v41  ;;  %v845_v12 = vld [vmem:[%s2040_s1 + $0x90] sm:$0xff] }
 0x161   :  { %1022 = vmatprep.mubr.msk.bf16.mxu1 %vm61_vm0, %v567_v59  ;;  %v459_v63 = vmul.f32 %v1082_v14, %v1504_v19  ;;  %v549_v2 = vadd.f32 %v1566_v34, %v511_v60  ;;  %v798_v59 = vld [vmem:[%s2041_s2 + $0x18] sm:$0xff]  ;;  %v813_v60 = vld [vmem:[%s2041_s2 + $0x90] sm:$0xff] }
 0x162   :  { %1095 = vrsqrt.f32 %v414_v18  ;;  %v560_v61 = vpack.c.bf16 %v534_v37, %v533_v7  ;;  %v512_v27 = vmul.f32 %v1559_v28, %v474_v44  ;;  %v828_v18 = vld [vmem:[%s2040_s1 + $0x8] sm:$0xff] }
 0x163   :  { %v1084_v22 = vpop.eup %1083  ;;  %v497_v13 = vmul.f32 %v1559_v28, %v459_v63 }
 0x164   :  { %v1086_v23 = vpop.eup %1085  ;;  %1007 = vmatmul.mubr.msk.bf16.gmra.mxu0 %vm61_vm0, %v560_v61  ;;  %v550_v25 = vadd.f32 %v1566_v34, %v512_v27  ;;  %v460_v41 = vmul.f32 %v1084_v22, %v1507_v45  ;;  %v843_v27 = vld [vmem:[%s2040_s1 + $0x80] sm:$0xff] }
 0x165   :  { %v475_v0 = vmul.f32 %v1086_v23, %v1519_v35  ;;  %v535_v1 = vadd.f32 %v1566_v34, %v497_v13  ;;  %v796_v23 = vld [vmem:[%s2041_s2 + $0x8] sm:$0xff]  ;;  %v811_v13 = vld [vmem:[%s2041_s2 + $0x80] sm:$0xff] }
 0x166   :  { %v568_v16 = vpack.c.bf16 %v550_v25, %v549_v2  ;;  %v498_v19 = vmul.f32 %v1559_v28, %v460_v41 }
 0x167   :  { %v1088_v30 = vpop.eup %1087  ;;  %v513_v10 = vmul.f32 %v1559_v28, %v475_v0 }
 0x168   :  { %v1090_v15 = vpop.eup %1089  ;;  %1023 = vmatmul.mubr.msk.bf16.gmra.mxu1 %vm61_vm0, %v568_v16  ;;  %v536_v32 = vadd.f32 %v1566_v34, %v498_v19  ;;  %v476_v48 = vmul.f32 %v1088_v30, %v1522_v38  ;;  %v846_v16 = vld [vmem:[%s2040_s1 + $0x98] sm:$0xff] }
 0x169   :  { %v461_v45 = vmul.f32 %v1090_v15, %v1531_v53  ;;  %v551_v5 = vadd.f32 %v1566_v34, %v513_v10  ;;  %v844_v10 = vld [vmem:[%s2040_s1 + $0x88] sm:$0xff] }
 0x16a   :  { %v561_v49 = vpack.c.bf16 %v536_v32, %v535_v1  ;;  %v514_v35 = vmul.f32 %v1559_v28, %v476_v48  ;;  %v814_v32 = vld [vmem:[%s2041_s2 + $0x98] sm:$0xff] }
 0x16b   :  { %v1092_v39 = vpop.eup %1091  ;;  %v499_v46 = vmul.f32 %v1559_v28, %v461_v45 }
 0x16c   :  { %v1094_v42 = vpop.eup %1093  ;;  %1010 = vmatprep.mubr.msk.bf16.mxu0 %vm61_vm0, %v561_v49  ;;  %v552_v20 = vadd.f32 %v1566_v34, %v514_v35  ;;  %v462_v29 = vmul.f32 %v1092_v39, %v1534_v54  ;;  %v812_v39 = vld [vmem:[%s2041_s2 + $0x88] sm:$0xff] }
 0x16d   :  { %v477_v38 = vmul.f32 %v1094_v42, %v1543_v6  ;;  %v537_v31 = vadd.f32 %v1566_v34, %v499_v46  ;;  %v833_v46 = vld [vmem:[%s2040_s1 + $0x30] sm:$0xff] }
 0x16e   :  { %v569_v36 = vpack.c.bf16 %v552_v20, %v551_v5  ;;  %v500_v53 = vmul.f32 %v1559_v28, %v462_v29 }
 0x16f   :  { %v1096_v17 = vpop.eup %1095  ;;  %v515_v51 = vmul.f32 %v1559_v28, %v477_v38 }
 0x170   :  { %1026 = vmatprep.mubr.msk.bf16.mxu1 %vm61_vm0, %v569_v36  ;;  %v538_v55 = vadd.f32 %v1566_v34, %v500_v53  ;;  %v478_v50 = vmul.f32 %v1096_v17, %v1546_v57  ;;  %v801_v36 = vld [vmem:[%s2041_s2 + $0x30] sm:$0xff]  ;;  %v831_v17 = vld [vmem:[%s2040_s1 + $0x20] sm:$0xff] }
 0x171   :  { %v553_v6 = vadd.f32 %v1566_v34, %v515_v51 }
 0x172   :  { %v562_v52 = vpack.c.bf16 %v538_v55, %v537_v31  ;;  %v516_v54 = vmul.f32 %v1559_v28, %v478_v50  ;;  %v799_v50 = vld [vmem:[%s2041_s2 + $0x20] sm:$0xff] }
 0x174   :  { %1011 = vmatmul.mubr.msk.bf16.gmra.mxu0 %vm61_vm0, %v562_v52  ;;  %v554_v43 = vadd.f32 %v1566_v34, %v516_v54  ;;  %v834_v52 = vld [vmem:[%s2040_s1 + $0x38] sm:$0xff] }
 0x176   :  { %v570_v8 = vpack.c.bf16 %v554_v43, %v553_v6 }
 0x178   :  { %1027 = vmatmul.mubr.msk.bf16.gmra.mxu1 %vm61_vm0, %v570_v8 }
 0x204   :  { %v1000_v57 = vpop.f32.mrf.mxu0 }
 0x205   :  { %v677_v28 = vadd.f32 %v1000_v57, %v1681_v58  ;;  %v849_v57 = vld [vmem:[%s2040_s1 + $0xb0] sm:$0xff] }
 0x206   :  { %v668_v34 = vpop.f32.mrf.mxu0 }
 0x207   :  { %v861_v33 = vmul.f32 %v829_v26, %v677_v28  ;;  %v669_v11 = vadd.f32 %v1681_v58, %v668_v34  ;;  %v802_v26 = vld [vmem:[%s2041_s2 + $0x38] sm:$0xff]  ;;  %v832_v34 = vld [vmem:[%s2040_s1 + $0x28] sm:$0xff] }
 0x208   :  { %v1001_v9 = vpop.f32.mrf.mxu0 }
 0x209   :  { %v893_v3 = vadd.f32 %v861_v33, %v797_v24  ;;  %v859_v21 = vmul.f32 %v827_v62, %v669_v11  ;;  %v680_v4 = vadd.f32 %v1001_v9, %v1681_v58  ;;  %v1016_v56 = vpop.f32.mrf.mxu1  ;;  %v817_v11 = vld [vmem:[%s2041_s2 + $0xb0] sm:$0xff] }
 0x20a   :  { %v741_v7 = vadd.f32 %v1016_v56, %v1681_v58  ;;  %v671_v14 = vpop.f32.mrf.mxu0 }
 0x20b   :  { %925 = vst.msk [vmem:[%s2042_s7 + $0x10] sm:$0xff] %vm61_vm0, %v893_v3  ;;  %v891_v37 = vadd.f32 %v859_v21, %v795_v40  ;;  %v862_v44 = vmul.f32 %v830_v47, %v680_v4  ;;  %v672_v63 = vadd.f32 %v1681_v58, %v671_v14  ;;  %v732_v61 = vpop.f32.mrf.mxu1  ;;  %v847_v47 = vld [vmem:[%s2040_s1 + $0xa0] sm:$0xff]  ;;  %v800_v21 = vld [vmem:[%s2041_s2 + $0x28] sm:$0xff]  ;;  %v850_v14 = vld [vmem:[%s2040_s1 + $0xb8] sm:$0xff] }
 0x20c   :  { %v877_v22 = vmul.f32 %v845_v12, %v741_v7  ;;  %v733_v2 = vadd.f32 %v1681_v58, %v732_v61 }
 0x20d   :  { %923 = vst.msk [vmem:[%s2042_s7] sm:$0xff] %vm61_vm0, %v891_v37  ;;  %v894_v25 = vadd.f32 %v862_v44, %v798_v59  ;;  %v860_v41 = vmul.f32 %v828_v18, %v672_v63  ;;  %v1017_v0 = vpop.f32.mrf.mxu1  ;;  %v815_v59 = vld [vmem:[%s2041_s2 + $0xa0] sm:$0xff]  ;;  %v818_v63 = vld [vmem:[%s2041_s2 + $0xb8] sm:$0xff] }
 0x20e   :  { %v909_v19 = vadd.f32 %v877_v22, %v813_v60  ;;  %v875_v30 = vmul.f32 %v843_v27, %v733_v2  ;;  %v744_v15 = vadd.f32 %v1017_v0, %v1681_v58  ;;  %v848_v27 = vld [vmem:[%s2040_s1 + $0xa8] sm:$0xff] }
 0x20f   :  { %926 = vst.msk [vmem:[%s2042_s7 + $0x18] sm:$0xff] %vm61_vm0, %v894_v25  ;;  %v892_v1 = vadd.f32 %v860_v41, %v796_v23  ;;  %v735_v48 = vpop.f32.mrf.mxu1  ;;  %v816_v25 = vld [vmem:[%s2041_s2 + $0xa8] sm:$0xff] }
 0x210   :  { %941 = vst.msk [vmem:[%s2042_s7 + $0x90] sm:$0xff] %vm61_vm0, %v909_v19  ;;  %v907_v45 = vadd.f32 %v875_v30, %v811_v13  ;;  %v878_v49 = vmul.f32 %v846_v16, %v744_v15  ;;  %v736_v35 = vadd.f32 %v1681_v58, %v735_v48  ;;  %v837_v19 = vld [vmem:[%s2040_s1 + $0x50] sm:$0xff] }
 0x211   :  { %924 = vst.msk [vmem:[%s2042_s7 + $0x8] sm:$0xff] %vm61_vm0, %v892_v1  ;;  %v805_v15 = vld [vmem:[%s2041_s2 + $0x50] sm:$0xff] }
 0x212   :  { %939 = vst.msk [vmem:[%s2042_s7 + $0x80] sm:$0xff] %vm61_vm0, %v907_v45  ;;  %v910_v42 = vadd.f32 %v878_v49, %v814_v32  ;;  %v876_v5 = vmul.f32 %v844_v10, %v736_v35  ;;  %v835_v32 = vld [vmem:[%s2040_s1 + $0x40] sm:$0xff]  ;;  %v838_v35 = vld [vmem:[%s2040_s1 + $0x58] sm:$0xff] }
 0x213   :  { %v803_v45 = vld [vmem:[%s2041_s2 + $0x40] sm:$0xff] }
 0x214   :  { %942 = vst.msk [vmem:[%s2042_s7 + $0x98] sm:$0xff] %vm61_vm0, %v910_v42  ;;  %v908_v20 = vadd.f32 %v876_v5, %v812_v39  ;;  %v1004_v29 = vpop.f32.mrf.mxu0  ;;  %v853_v42 = vld [vmem:[%s2040_s1 + $0xd0] sm:$0xff] }
 0x215   :  { %v693_v38 = vadd.f32 %v1004_v29, %v1681_v58 }
 0x216   :  { %940 = vst.msk [vmem:[%s2042_s7 + $0x88] sm:$0xff] %vm61_vm0, %v908_v20  ;;  %v684_v53 = vpop.f32.mrf.mxu0 }
 0x217   :  { %v865_v31 = vmul.f32 %v833_v46, %v693_v38  ;;  %v685_v55 = vadd.f32 %v1681_v58, %v684_v53  ;;  %v806_v38 = vld [vmem:[%s2041_s2 + $0x58] sm:$0xff] }
 0x218   :  { %v1005_v51 = vpop.f32.mrf.mxu0 }
 0x219   :  { %v897_v54 = vadd.f32 %v865_v31, %v801_v36  ;;  %v863_v6 = vmul.f32 %v831_v17, %v685_v55  ;;  %v696_v43 = vadd.f32 %v1005_v51, %v1681_v58  ;;  %v1020_v8 = vpop.f32.mrf.mxu1  ;;  %v821_v36 = vld [vmem:[%s2041_s2 + $0xd0] sm:$0xff]  ;;  %v836_v17 = vld [vmem:[%s2040_s1 + $0x48] sm:$0xff] }
 0x21a   :  { %v757_v28 = vadd.f32 %v1020_v8, %v1681_v58  ;;  %v687_v24 = vpop.f32.mrf.mxu0 }
 0x21b   :  { %929 = vst.msk [vmem:[%s2042_s7 + $0x30] sm:$0xff] %vm61_vm0, %v897_v54  ;;  %v895_v62 = vadd.f32 %v863_v6, %v799_v50  ;;  %v866_v33 = vmul.f32 %v834_v52, %v696_v43  ;;  %v688_v40 = vadd.f32 %v1681_v58, %v687_v24  ;;  %v748_v9 = vpop.f32.mrf.mxu1  ;;  %v851_v54 = vld [vmem:[%s2040_s1 + $0xc0] sm:$0xff]  ;;  %v804_v6 = vld [vmem:[%s2041_s2 + $0x48] sm:$0xff] }
 0x21c   :  { %v881_v3 = vmul.f32 %v849_v57, %v757_v28  ;;  %v749_v4 = vadd.f32 %v1681_v58, %v748_v9  ;;  %v854_v57 = vld [vmem:[%s2040_s1 + $0xd8] sm:$0xff]  ;;  %v852_v9 = vld [vmem:[%s2040_s1 + $0xc8] sm:$0xff] }
 0x21d   :  { %927 = vst.msk [vmem:[%s2042_s7 + $0x20] sm:$0xff] %vm61_vm0, %v895_v62  ;;  %v898_v56 = vadd.f32 %v866_v33, %v802_v26  ;;  %v864_v12 = vmul.f32 %v832_v34, %v688_v40  ;;  %v1021_v7 = vpop.f32.mrf.mxu1  ;;  %v819_v34 = vld [vmem:[%s2041_s2 + $0xc0] sm:$0xff] }
 0x21e   :  { %v913_v18 = vadd.f32 %v881_v3, %v817_v11  ;;  %v879_v37 = vmul.f32 %v847_v47, %v749_v4  ;;  %v760_v44 = vadd.f32 %v1021_v7, %v1681_v58  ;;  %v822_v11 = vld [vmem:[%s2041_s2 + $0xd8] sm:$0xff] }
 0x21f   :  { %930 = vst.msk [vmem:[%s2042_s7 + $0x38] sm:$0xff] %vm61_vm0, %v898_v56  ;;  %v896_v60 = vadd.f32 %v864_v12, %v800_v21  ;;  %v751_v61 = vpop.f32.mrf.mxu1  ;;  %v820_v56 = vld [vmem:[%s2041_s2 + $0xc8] sm:$0xff] }
 0x220   :  { %945 = vst.msk [vmem:[%s2042_s7 + $0xb0] sm:$0xff] %vm61_vm0, %v913_v18  ;;  %v911_v22 = vadd.f32 %v879_v37, %v815_v59  ;;  %v882_v23 = vmul.f32 %v850_v14, %v760_v44  ;;  %v752_v2 = vadd.f32 %v1681_v58, %v751_v61  ;;  %v841_v18 = vld [vmem:[%s2040_s1 + $0x70] sm:$0xff] }
 0x221   :  { %928 = vst.msk [vmem:[%s2042_s7 + $0x28] sm:$0xff] %vm61_vm0, %v896_v60  ;;  %v809_v44 = vld [vmem:[%s2041_s2 + $0x70] sm:$0xff] }
 0x222   :  { %943 = vst.msk [vmem:[%s2042_s7 + $0xa0] sm:$0xff] %vm61_vm0, %v911_v22  ;;  %v914_v41 = vadd.f32 %v882_v23, %v818_v63  ;;  %v880_v13 = vmul.f32 %v848_v27, %v752_v2  ;;  %v839_v63 = vld [vmem:[%s2040_s1 + $0x60] sm:$0xff]  ;;  %v842_v2 = vld [vmem:[%s2040_s1 + $0x78] sm:$0xff] }
 0x223   :  { %v807_v22 = vld [vmem:[%s2041_s2 + $0x60] sm:$0xff] }
 0x224   :  { %946 = vst.msk [vmem:[%s2042_s7 + $0xb8] sm:$0xff] %vm61_vm0, %v914_v41  ;;  %v912_v0 = vadd.f32 %v880_v13, %v816_v25  ;;  %v1008_v16 = vpop.f32.mrf.mxu0  ;;  %v857_v41 = vld [vmem:[%s2040_s1 + $0xf0] sm:$0xff] }
 0x225   :  { %v709_v30 = vadd.f32 %v1008_v16, %v1681_v58 }
 0x226   :  { %944 = vst.msk [vmem:[%s2042_s7 + $0xa8] sm:$0xff] %vm61_vm0, %v912_v0  ;;  %v700_v1 = vpop.f32.mrf.mxu0 }
 0x227   :  { %v869_v48 = vmul.f32 %v837_v19, %v709_v30  ;;  %v701_v10 = vadd.f32 %v1681_v58, %v700_v1  ;;  %v810_v30 = vld [vmem:[%s2041_s2 + $0x78] sm:$0xff] }
 0x228   :  { %v1009_v49 = vpop.f32.mrf.mxu0  ;;  %v1024_v39 = vpop.f32.mrf.mxu1 }
 0x229   :  { %v901_v5 = vadd.f32 %v869_v48, %v805_v15  ;;  %v867_v20 = vmul.f32 %v835_v32, %v701_v10  ;;  %v712_v29 = vadd.f32 %v1009_v49, %v1681_v58  ;;  %v773_v46 = vadd.f32 %v1024_v39, %v1681_v58  ;;  %v825_v15 = vld [vmem:[%s2041_s2 + $0xf0] sm:$0xff]  ;;  %v840_v32 = vld [vmem:[%s2040_s1 + $0x68] sm:$0xff]  ;;  %v855_v39 = vld [vmem:[%s2040_s1 + $0xe0] sm:$0xff] }
 0x22a   :  { %v703_v53 = vpop.f32.mrf.mxu0  ;;  %v764_v31 = vpop.f32.mrf.mxu1 }
 0x22b   :  { %933 = vst.msk [vmem:[%s2042_s7 + $0x50] sm:$0xff] %vm61_vm0, %v901_v5  ;;  %v899_v55 = vadd.f32 %v867_v20, %v803_v45  ;;  %v870_v50 = vmul.f32 %v838_v35, %v712_v29  ;;  %v885_v51 = vmul.f32 %v853_v42, %v773_v46  ;;  %v704_v52 = vadd.f32 %v1681_v58, %v703_v53  ;;  %v808_v42 = vld [vmem:[%s2041_s2 + $0x68] sm:$0xff]  ;;  %v858_v29 = vld [vmem:[%s2040_s1 + $0xf8] sm:$0xff]  ;;  %v823_v53 = vld [vmem:[%s2041_s2 + $0xe0] sm:$0xff] }
 0x22c   :  { %v765_v43 = vadd.f32 %v1681_v58, %v764_v31  ;;  %v1025_v8 = vpop.f32.mrf.mxu1 }
 0x22d   :  { %931 = vst.msk [vmem:[%s2042_s7 + $0x40] sm:$0xff] %vm61_vm0, %v899_v55  ;;  %v902_v26 = vadd.f32 %v870_v50, %v806_v38  ;;  %v917_v28 = vadd.f32 %v885_v51, %v821_v36  ;;  %v868_v24 = vmul.f32 %v836_v17, %v704_v52  ;;  %v776_v62 = vadd.f32 %v1025_v8, %v1681_v58  ;;  %v826_v55 = vld [vmem:[%s2041_s2 + $0xf8] sm:$0xff]  ;;  %v856_v51 = vld [vmem:[%s2040_s1 + $0xe8] sm:$0xff] }
 0x22e   :  { %v883_v33 = vmul.f32 %v851_v54, %v765_v43  ;;  %v767_v40 = vpop.f32.mrf.mxu1  ;;  %v824_v8 = vld [vmem:[%s2041_s2 + $0xe8] sm:$0xff] }
 0x22f   :  { %934 = vst.msk [vmem:[%s2042_s7 + $0x58] sm:$0xff] %vm61_vm0, %v902_v26  ;;  %949 = vst.msk [vmem:[%s2042_s7 + $0xd0] sm:$0xff] %vm61_vm0, %v917_v28  ;;  %v900_v47 = vadd.f32 %v868_v24, %v804_v6  ;;  %v886_v3 = vmul.f32 %v854_v57, %v776_v62  ;;  %v768_v21 = vadd.f32 %v1681_v58, %v767_v40 }
 0x230   :  { %v915_v4 = vadd.f32 %v883_v33, %v819_v34 }
 0x231   :  { %932 = vst.msk [vmem:[%s2042_s7 + $0x48] sm:$0xff] %vm61_vm0, %v900_v47  ;;  %v918_v12 = vadd.f32 %v886_v3, %v822_v11  ;;  %v884_v59 = vmul.f32 %v852_v9, %v768_v21 }
 0x232   :  { %947 = vst.msk [vmem:[%s2042_s7 + $0xc0] sm:$0xff] %vm61_vm0, %v915_v4 }
 0x233   :  { %950 = vst.msk [vmem:[%s2042_s7 + $0xd8] sm:$0xff] %vm61_vm0, %v918_v12  ;;  %v916_v7 = vadd.f32 %v884_v59, %v820_v56 }
 0x234   :  { %v1012_v14 = vpop.f32.mrf.mxu0 }
 0x235   :  { %948 = vst.msk [vmem:[%s2042_s7 + $0xc8] sm:$0xff] %vm61_vm0, %v916_v7  ;;  %v725_v37 = vadd.f32 %v1012_v14, %v1681_v58 }
 0x236   :  { %v716_v60 = vpop.f32.mrf.mxu0 }
 0x237   :  { %v873_v61 = vmul.f32 %v841_v18, %v725_v37  ;;  %v717_v27 = vadd.f32 %v1681_v58, %v716_v60 }
 0x238   :  { %v1013_v23 = vpop.f32.mrf.mxu0  ;;  %v1028_v25 = vpop.f32.mrf.mxu1 }
 0x239   :  { %v905_v13 = vadd.f32 %v873_v61, %v809_v44  ;;  %v871_v0 = vmul.f32 %v839_v63, %v717_v27  ;;  %v728_v16 = vadd.f32 %v1013_v23, %v1681_v58  ;;  %v789_v19 = vadd.f32 %v1028_v25, %v1681_v58 }
 0x23a   :  { %v719_v1 = vpop.f32.mrf.mxu0  ;;  %v780_v48 = vpop.f32.mrf.mxu1 }
 0x23b   :  { %937 = vst.msk [vmem:[%s2042_s7 + $0x70] sm:$0xff] %vm61_vm0, %v905_v13  ;;  %v903_v10 = vadd.f32 %v871_v0, %v807_v22  ;;  %v874_v45 = vmul.f32 %v842_v2, %v728_v16  ;;  %v889_v49 = vmul.f32 %v857_v41, %v789_v19  ;;  %v720_v35 = vadd.f32 %v1681_v58, %v719_v1 }
 0x23c   :  { %v781_v5 = vadd.f32 %v1681_v58, %v780_v48  ;;  %v1029_v20 = vpop.f32.mrf.mxu1 }
 0x23d   :  { %935 = vst.msk [vmem:[%s2042_s7 + $0x60] sm:$0xff] %vm61_vm0, %v903_v10  ;;  %v906_v46 = vadd.f32 %v874_v45, %v810_v30  ;;  %v921_v38 = vadd.f32 %v889_v49, %v825_v15  ;;  %v872_v36 = vmul.f32 %v840_v32, %v720_v35  ;;  %v792_v17 = vadd.f32 %v1029_v20, %v1681_v58 }
 0x23e   :  { %v887_v31 = vmul.f32 %v855_v39, %v781_v5  ;;  %v783_v50 = vpop.f32.mrf.mxu1 }
 0x23f   :  { %938 = vst.msk [vmem:[%s2042_s7 + $0x78] sm:$0xff] %vm61_vm0, %v906_v46  ;;  %953 = vst.msk [vmem:[%s2042_s7 + $0xf0] sm:$0xff] %vm61_vm0, %v921_v38  ;;  %v904_v52 = vadd.f32 %v872_v36, %v808_v42  ;;  %v890_v54 = vmul.f32 %v858_v29, %v792_v17  ;;  %v784_v6 = vadd.f32 %v1681_v58, %v783_v50 }
 0x240   :  { %v919_v43 = vadd.f32 %v887_v31, %v823_v53 }
 0x241   :  { %936 = vst.msk [vmem:[%s2042_s7 + $0x68] sm:$0xff] %vm61_vm0, %v904_v52  ;;  %v922_v57 = vadd.f32 %v890_v54, %v826_v55  ;;  %v888_v26 = vmul.f32 %v856_v51, %v784_v6 }
 0x242   :  { %951 = vst.msk [vmem:[%s2042_s7 + $0xe0] sm:$0xff] %vm61_vm0, %v919_v43 }
 0x243   :  { %954 = vst.msk [vmem:[%s2042_s7 + $0xf8] sm:$0xff] %vm61_vm0, %v922_v57  ;;  %v920_v58 = vadd.f32 %v888_v26, %v824_v8 }
 0x245   :  { %952 = vst.msk [vmem:[%s2042_s7 + $0xe8] sm:$0xff] %vm61_vm0, %v920_v58 }

// kernel: pair_transform_layer.17
= control target key start
LH: loop header
LB: loop body
LE: loop exit
PB: predicated region body
PF: predicated region fallthrough
CT: control target
= control target key end

     0   :  { %vm60_vm0 = vcmask 130048   ;;  %s2113_s12 = smov 48   ;;  %vm915_vm1 = vcmask 125952   ;;  %s2115_s23 = smov 112   ;;  %vm1725_vm2 = vcmask 15360   ;;  %s3836_s0 = inlined_call_operand.vmem [shape: f32[256,16], index: 0, kind: input, shape index: {}]   ;;  %s3837_s3 = inlined_call_operand.vmem [shape: bf16[16,66], index: 3, kind: input, shape index: {}]   ;;  %s3838_s4 = inlined_call_operand.vmem [shape: f32[1,16], index: 4, kind: input, shape index: {}]   ;;  %s3839_s1 = inlined_call_operand.vmem [shape: f32[1,16], index: 1, kind: input, shape index: {}]   ;;  %s3840_s2 = inlined_call_operand.vmem [shape: f32[1,16], index: 2, kind: input, shape index: {}]   ;;  %s3841_s5 = inlined_call_operand.vmem [shape: bf16[256,16], index: 5, kind: output, shape index: {0}]   ;;  %s3842_s9 = inlined_call_operand.vmem [shape: f32[256,2], index: 9, kind: output, shape index: {4}]   ;;  %s3843_s6 = inlined_call_operand.vmem [shape: bf16[256,16], index: 6, kind: output, shape index: {1}]   ;;  %s3844_s7 = inlined_call_operand.vmem [shape: bf16[256,16], index: 7, kind: output, shape index: {2}]   ;;  %s3845_s8 = inlined_call_operand.vmem [shape: f32[256,16], index: 8, kind: output, shape index: {3}]  }
   0x1   :  { %v2171_v0 = vld [vmem:[%s3836_s0] sm:$0xff]  ;;  %v2181_v2 = vld [vmem:[%s3836_s0 + $0x8] sm:$0xff]  ;;  %v2199_v8 = vld [vmem:[%s3836_s0 + $0x10] sm:$0xff]  ;;  %s2116_s30 = smov 96   ;;  %s2117_s11 = smov 80  }
   0x2   :  { %v2176_v1 = vld [vmem:[%s3836_s0 + $0x80] sm:$0xff]  ;;  %v61_v3 = vsel %vm60_vm0, %v2171_v0, 0.0  ;;  %v2190_v5 = vld [vmem:[%s3836_s0 + $0x88] sm:$0xff]  ;;  %v64_v6 = vsel %vm60_vm0, %v2181_v2, 0.0  ;;  %v2204_v9 = vld [vmem:[%s3836_s0 + $0x18] sm:$0xff]  ;;  %v67_v10 = vsel %vm60_vm0, %v2199_v8, 0.0 }
   0x3   :  { %v109_v4 = vsel %vm60_vm0, %v2176_v1, 0.0  ;;  %62 = vadd.xlane.f32.xlu0 %v61_v3  ;;  %v112_v7 = vsel %vm60_vm0, %v2190_v5, 0.0  ;;  %v70_v11 = vsel %vm60_vm0, %v2204_v9, 0.0  ;;  %v2213_v12 = vld [vmem:[%s3836_s0 + $0x90] sm:$0xff]  ;;  %v2218_v13 = vld [vmem:[%s3836_s0 + $0x98] sm:$0xff]  ;;  %v2227_v16 = vld [vmem:[%s3836_s0 + $0x20] sm:$0xff] }
   0x4   :  { %110 = vadd.xlane.f32.xlu1 %v109_v4  ;;  %v115_v14 = vsel %vm60_vm0, %v2213_v12, 0.0  ;;  %v118_v15 = vsel %vm60_vm0, %v2218_v13, 0.0  ;;  %v2232_v17 = vld [vmem:[%s3836_s0 + $0x28] sm:$0xff]  ;;  %v73_v18 = vsel %vm60_vm0, %v2227_v16, 0.0  ;;  %v2241_v20 = vld [vmem:[%s3836_s0 + $0xa0] sm:$0xff]  ;;  %v2255_v24 = vld [vmem:[%s3836_s0 + $0x30] sm:$0xff] }
   0x5   :  { %v76_v19 = vsel %vm60_vm0, %v2232_v17, 0.0  ;;  %v2246_v21 = vld [vmem:[%s3836_s0 + $0xa8] sm:$0xff]  ;;  %v121_v22 = vsel %vm60_vm0, %v2241_v20, 0.0  ;;  %v2260_v25 = vld [vmem:[%s3836_s0 + $0x38] sm:$0xff]  ;;  %v79_v26 = vsel %vm60_vm0, %v2255_v24, 0.0  ;;  %v2269_v28 = vld [vmem:[%s3836_s0 + $0xb0] sm:$0xff] }
   0x6   :  { %v124_v23 = vsel %vm60_vm0, %v2246_v21, 0.0  ;;  %v82_v27 = vsel %vm60_vm0, %v2260_v25, 0.0  ;;  %v2274_v29 = vld [vmem:[%s3836_s0 + $0xb8] sm:$0xff]  ;;  %v127_v30 = vsel %vm60_vm0, %v2269_v28, 0.0  ;;  %v2283_v32 = vld [vmem:[%s3836_s0 + $0x40] sm:$0xff]  ;;  %v2288_v33 = vld [vmem:[%s3836_s0 + $0x48] sm:$0xff] }
   0x7   :  { %65 = vadd.xlane.f32.xlu0 %v64_v6  ;;  %v130_v31 = vsel %vm60_vm0, %v2274_v29, 0.0  ;;  %v85_v34 = vsel %vm60_vm0, %v2283_v32, 0.0  ;;  %v88_v35 = vsel %vm60_vm0, %v2288_v33, 0.0  ;;  %v2297_v36 = vld [vmem:[%s3836_s0 + $0xc0] sm:$0xff]  ;;  %v2302_v37 = vld [vmem:[%s3836_s0 + $0xc8] sm:$0xff]  ;;  %v2311_v40 = vld [vmem:[%s3836_s0 + $0x50] sm:$0xff] }
   0x8   :  { %113 = vadd.xlane.f32.xlu1 %v112_v7  ;;  %v133_v38 = vsel %vm60_vm0, %v2297_v36, 0.0  ;;  %v136_v39 = vsel %vm60_vm0, %v2302_v37, 0.0  ;;  %v2316_v41 = vld [vmem:[%s3836_s0 + $0x58] sm:$0xff]  ;;  %v91_v42 = vsel %vm60_vm0, %v2311_v40, 0.0  ;;  %v2325_v44 = vld [vmem:[%s3836_s0 + $0xd0] sm:$0xff]  ;;  %v2339_v48 = vld [vmem:[%s3836_s0 + $0x60] sm:$0xff] }
   0x9   :  { %v94_v43 = vsel %vm60_vm0, %v2316_v41, 0.0  ;;  %v2330_v45 = vld [vmem:[%s3836_s0 + $0xd8] sm:$0xff]  ;;  %v139_v46 = vsel %vm60_vm0, %v2325_v44, 0.0  ;;  %v2344_v49 = vld [vmem:[%s3836_s0 + $0x68] sm:$0xff]  ;;  %v97_v50 = vsel %vm60_vm0, %v2339_v48, 0.0  ;;  %v2353_v52 = vld [vmem:[%s3836_s0 + $0xe0] sm:$0xff] }
   0xa   :  { %v142_v47 = vsel %vm60_vm0, %v2330_v45, 0.0  ;;  %v100_v51 = vsel %vm60_vm0, %v2344_v49, 0.0  ;;  %v2358_v53 = vld [vmem:[%s3836_s0 + $0xe8] sm:$0xff]  ;;  %v145_v54 = vsel %vm60_vm0, %v2353_v52, 0.0  ;;  %v2367_v56 = vld [vmem:[%s3836_s0 + $0x70] sm:$0xff]  ;;  %v2372_v57 = vld [vmem:[%s3836_s0 + $0x78] sm:$0xff] }
   0xb   :  { %68 = vadd.xlane.f32.xlu0 %v67_v10  ;;  %v148_v55 = vsel %vm60_vm0, %v2358_v53, 0.0  ;;  %v103_v58 = vsel %vm60_vm0, %v2367_v56, 0.0  ;;  %v106_v59 = vsel %vm60_vm0, %v2372_v57, 0.0  ;;  %v2381_v60 = vld [vmem:[%s3836_s0 + $0xf0] sm:$0xff]  ;;  %v2386_v61 = vld [vmem:[%s3836_s0 + $0xf8] sm:$0xff] }
   0xc   :  { %71 = vadd.xlane.f32.xlu1 %v70_v11  ;;  %v151_v62 = vsel %vm60_vm0, %v2381_v60, 0.0  ;;  %v154_v63 = vsel %vm60_vm0, %v2386_v61, 0.0 }
   0xf   :  { %116 = vadd.xlane.f32.xlu0 %v115_v14 }
  0x10   :  { %119 = vadd.xlane.f32.xlu1 %v118_v15 }
  0x13   :  { %74 = vadd.xlane.f32.xlu0 %v73_v18 }
  0x14   :  { %77 = vadd.xlane.f32.xlu1 %v76_v19 }
  0x17   :  { %122 = vadd.xlane.f32.xlu0 %v121_v22 }
  0x18   :  { %125 = vadd.xlane.f32.xlu1 %v124_v23 }
  0x1b   :  { %80 = vadd.xlane.f32.xlu0 %v79_v26 }
  0x1c   :  { %83 = vadd.xlane.f32.xlu1 %v82_v27 }
  0x1f   :  { %128 = vadd.xlane.f32.xlu0 %v127_v30 }
  0x20   :  { %131 = vadd.xlane.f32.xlu1 %v130_v31 }
  0x23   :  { %86 = vadd.xlane.f32.xlu0 %v85_v34 }
  0x24   :  { %89 = vadd.xlane.f32.xlu1 %v88_v35 }
  0x27   :  { %134 = vadd.xlane.f32.xlu0 %v133_v38 }
  0x28   :  { %137 = vadd.xlane.f32.xlu1 %v136_v39 }
  0x2b   :  { %92 = vadd.xlane.f32.xlu0 %v91_v42 }
  0x2c   :  { %95 = vadd.xlane.f32.xlu1 %v94_v43 }
  0x2f   :  { %140 = vadd.xlane.f32.xlu0 %v139_v46 }
  0x30   :  { %143 = vadd.xlane.f32.xlu1 %v142_v47 }
  0x33   :  { %98 = vadd.xlane.f32.xlu0 %v97_v50 }
  0x34   :  { %101 = vadd.xlane.f32.xlu1 %v100_v51 }
  0x37   :  { %146 = vadd.xlane.f32.xlu0 %v145_v54 }
  0x38   :  { %149 = vadd.xlane.f32.xlu1 %v148_v55 }
  0x3b   :  { %104 = vadd.xlane.f32.xlu0 %v103_v58 }
  0x3c   :  { %107 = vadd.xlane.f32.xlu1 %v106_v59 }
  0x3f   :  { %152 = vadd.xlane.f32.xlu0 %v151_v62 }
  0x40   :  { %155 = vadd.xlane.f32.xlu1 %v154_v63 }
  0x8c   :  { %v63_v3 = vpop.xlane.xlu0 %62 }
  0x8d   :  { %v111_v4 = vpop.xlane.xlu1 %110  ;;  %v158_v6 = vmul.f32 0.0625, %v63_v3 }
  0x8e   :  { %v174_v7 = vmul.f32 0.0625, %v111_v4 }
  0x8f   :  { %v2393_v10 = vsub.f32 %v2171_v0, %v158_v6 }
  0x90   :  { %v2396_v11 = vsub.f32 %v2176_v1, %v174_v7  ;;  %v66_v14 = vpop.xlane.xlu0 %65 }
  0x91   :  { %v114_v15 = vpop.xlane.xlu1 %113  ;;  %v159_v18 = vmul.f32 0.0625, %v66_v14  ;;  %v222_v22 = vmul.f32 %v2393_v10, %v2393_v10 }
  0x92   :  { %v175_v19 = vmul.f32 0.0625, %v114_v15  ;;  %v238_v23 = vmul.f32 %v2396_v11, %v2396_v11 }
  0x93   :  { %v2403_v26 = vsub.f32 %v2181_v2, %v159_v18  ;;  %v254_v0 = vsel %vm60_vm0, %v222_v22, 0.0 }
  0x94   :  { %v2406_v27 = vsub.f32 %v2190_v5, %v175_v19  ;;  %255 = vadd.xlane.f32.xlu0 %v254_v0  ;;  %v69_v1 = vpop.xlane.xlu0 %68  ;;  %v302_v31 = vsel %vm60_vm0, %v238_v23, 0.0 }
  0x95   :  { %v72_v30 = vpop.xlane.xlu1 %71  ;;  %v160_v34 = vmul.f32 0.0625, %v69_v1  ;;  %v223_v38 = vmul.f32 %v2403_v26, %v2403_v26 }
  0x96   :  { %v161_v35 = vmul.f32 0.0625, %v72_v30  ;;  %v239_v39 = vmul.f32 %v2406_v27, %v2406_v27 }
  0x97   :  { %v2415_v2 = vsub.f32 %v2199_v8, %v160_v34  ;;  %v257_v42 = vsel %vm60_vm0, %v223_v38, 0.0 }
  0x98   :  { %v2418_v5 = vsub.f32 %v2204_v9, %v161_v35  ;;  %303 = vadd.xlane.f32.xlu0 %v302_v31  ;;  %258 = vadd.xlane.f32.xlu1 %v257_v42  ;;  %v117_v43 = vpop.xlane.xlu0 %116  ;;  %v305_v47 = vsel %vm60_vm0, %v239_v39, 0.0 }
  0x99   :  { %v120_v46 = vpop.xlane.xlu1 %119  ;;  %v176_v50 = vmul.f32 0.0625, %v117_v43  ;;  %v224_v54 = vmul.f32 %v2415_v2, %v2415_v2 }
  0x9a   :  { %v177_v51 = vmul.f32 0.0625, %v120_v46  ;;  %v225_v8 = vmul.f32 %v2418_v5, %v2418_v5 }
  0x9b   :  { %v2427_v55 = vsub.f32 %v2213_v12, %v176_v50  ;;  %v260_v58 = vsel %vm60_vm0, %v224_v54, 0.0 }
  0x9c   :  { %v2430_v9 = vsub.f32 %v2218_v13, %v177_v51  ;;  %306 = vadd.xlane.f32.xlu1 %v305_v47  ;;  %261 = vadd.xlane.f32.xlu0 %v260_v58  ;;  %v75_v59 = vpop.xlane.xlu0 %74  ;;  %v263_v63 = vsel %vm60_vm0, %v225_v8, 0.0 }
  0x9d   :  { %v78_v62 = vpop.xlane.xlu1 %77  ;;  %v162_v3 = vmul.f32 0.0625, %v75_v59  ;;  %v240_v6 = vmul.f32 %v2427_v55, %v2427_v55 }
  0x9e   :  { %v163_v4 = vmul.f32 0.0625, %v78_v62  ;;  %v241_v12 = vmul.f32 %v2430_v9, %v2430_v9 }
  0x9f   :  { %v2439_v7 = vsub.f32 %v2227_v16, %v162_v3  ;;  %v308_v14 = vsel %vm60_vm0, %v240_v6, 0.0 }
  0xa0   :  { %v2442_v13 = vsub.f32 %v2232_v17, %v163_v4  ;;  %264 = vadd.xlane.f32.xlu1 %v263_v63  ;;  %309 = vadd.xlane.f32.xlu0 %v308_v14  ;;  %v123_v15 = vpop.xlane.xlu0 %122  ;;  %v311_v19 = vsel %vm60_vm0, %v241_v12, 0.0 }
  0xa1   :  { %v126_v18 = vpop.xlane.xlu1 %125  ;;  %v178_v22 = vmul.f32 0.0625, %v123_v15  ;;  %v226_v0 = vmul.f32 %v2439_v7, %v2439_v7 }
  0xa2   :  { %v179_v23 = vmul.f32 0.0625, %v126_v18  ;;  %v227_v16 = vmul.f32 %v2442_v13, %v2442_v13 }
  0xa3   :  { %v2451_v1 = vsub.f32 %v2241_v20, %v178_v22  ;;  %v266_v30 = vsel %vm60_vm0, %v226_v0, 0.0 }
  0xa4   :  { %v2454_v17 = vsub.f32 %v2246_v21, %v179_v23  ;;  %312 = vadd.xlane.f32.xlu1 %v311_v19  ;;  %267 = vadd.xlane.f32.xlu0 %v266_v30  ;;  %v81_v31 = vpop.xlane.xlu0 %80  ;;  %v269_v35 = vsel %vm60_vm0, %v227_v16, 0.0 }
  0xa5   :  { %v84_v34 = vpop.xlane.xlu1 %83  ;;  %v164_v38 = vmul.f32 0.0625, %v81_v31  ;;  %v242_v42 = vmul.f32 %v2451_v1, %v2451_v1 }
  0xa6   :  { %v165_v39 = vmul.f32 0.0625, %v84_v34  ;;  %v243_v20 = vmul.f32 %v2454_v17, %v2454_v17 }
  0xa7   :  { %v2463_v43 = vsub.f32 %v2255_v24, %v164_v38  ;;  %v314_v46 = vsel %vm60_vm0, %v242_v42, 0.0 }
  0xa8   :  { %v2466_v21 = vsub.f32 %v2260_v25, %v165_v39  ;;  %270 = vadd.xlane.f32.xlu1 %v269_v35  ;;  %315 = vadd.xlane.f32.xlu0 %v314_v46  ;;  %v129_v47 = vpop.xlane.xlu0 %128  ;;  %v317_v51 = vsel %vm60_vm0, %v243_v20, 0.0 }
  0xa9   :  { %v132_v50 = vpop.xlane.xlu1 %131  ;;  %v180_v54 = vmul.f32 0.0625, %v129_v47  ;;  %v228_v58 = vmul.f32 %v2463_v43, %v2463_v43 }
  0xaa   :  { %v181_v8 = vmul.f32 0.0625, %v132_v50  ;;  %v229_v24 = vmul.f32 %v2466_v21, %v2466_v21 }
  0xab   :  { %v2475_v59 = vsub.f32 %v2269_v28, %v180_v54  ;;  %v272_v62 = vsel %vm60_vm0, %v228_v58, 0.0 }
  0xac   :  { %v2478_v25 = vsub.f32 %v2274_v29, %v181_v8  ;;  %318 = vadd.xlane.f32.xlu1 %v317_v51  ;;  %273 = vadd.xlane.f32.xlu0 %v272_v62  ;;  %v87_v63 = vpop.xlane.xlu0 %86  ;;  %v275_v4 = vsel %vm60_vm0, %v229_v24, 0.0 }
  0xad   :  { %v90_v3 = vpop.xlane.xlu1 %89  ;;  %v166_v6 = vmul.f32 0.0625, %v87_v63  ;;  %v244_v14 = vmul.f32 %v2475_v59, %v2475_v59 }
  0xae   :  { %v167_v12 = vmul.f32 0.0625, %v90_v3  ;;  %v245_v28 = vmul.f32 %v2478_v25, %v2478_v25 }
  0xaf   :  { %v2487_v15 = vsub.f32 %v2283_v32, %v166_v6  ;;  %v320_v18 = vsel %vm60_vm0, %v244_v14, 0.0 }
  0xb0   :  { %v2490_v29 = vsub.f32 %v2288_v33, %v167_v12  ;;  %276 = vadd.xlane.f32.xlu1 %v275_v4  ;;  %321 = vadd.xlane.f32.xlu0 %v320_v18  ;;  %v135_v19 = vpop.xlane.xlu0 %134  ;;  %v323_v23 = vsel %vm60_vm0, %v245_v28, 0.0 }
  0xb1   :  { %v138_v22 = vpop.xlane.xlu1 %137  ;;  %v182_v0 = vmul.f32 0.0625, %v135_v19  ;;  %v230_v30 = vmul.f32 %v2487_v15, %v2487_v15 }
  0xb2   :  { %v183_v16 = vmul.f32 0.0625, %v138_v22  ;;  %v231_v32 = vmul.f32 %v2490_v29, %v2490_v29 }
  0xb3   :  { %v2499_v31 = vsub.f32 %v2297_v36, %v182_v0  ;;  %v278_v34 = vsel %vm60_vm0, %v230_v30, 0.0  ;;  %v1920_v30 = vld [vmem:[%s3837_s3] sm:$0xff]  }
  0xb4   :  { %v2502_v33 = vsub.f32 %v2302_v37, %v183_v16  ;;  %324 = vadd.xlane.f32.xlu1 %v323_v23  ;;  %279 = vadd.xlane.f32.xlu0 %v278_v34  ;;  %v93_v35 = vpop.xlane.xlu0 %92  ;;  %v281_v39 = vsel %vm60_vm0, %v231_v32, 0.0 }
  0xb5   :  { %v96_v38 = vpop.xlane.xlu1 %95  ;;  %v168_v42 = vmul.f32 0.0625, %v93_v35  ;;  %v246_v46 = vmul.f32 %v2499_v31, %v2499_v31  ;;  %1879 = vmatprep.subr.bf16.mxu0 %v1920_v30  ;;  %1913 = vmatprep.subr.bf16.mxu1 %v1920_v30 }
  0xb6   :  { %v169_v20 = vmul.f32 0.0625, %v96_v38  ;;  %v247_v36 = vmul.f32 %v2502_v33, %v2502_v33  ;;  %1880 = vmatpush3.bf16.msra.mxu0 %v1920_v30  ;;  %1914 = vmatpush3.bf16.msra.mxu1 %v1920_v30 }
  0xb7   :  { %v2511_v47 = vsub.f32 %v2311_v40, %v168_v42  ;;  %v326_v50 = vsel %vm60_vm0, %v246_v46, 0.0 }
  0xb8   :  { %v2514_v37 = vsub.f32 %v2316_v41, %v169_v20  ;;  %282 = vadd.xlane.f32.xlu1 %v281_v39  ;;  %327 = vadd.xlane.f32.xlu0 %v326_v50  ;;  %v141_v51 = vpop.xlane.xlu0 %140  ;;  %v329_v8 = vsel %vm60_vm0, %v247_v36, 0.0 }
  0xb9   :  { %v144_v54 = vpop.xlane.xlu1 %143  ;;  %v184_v58 = vmul.f32 0.0625, %v141_v51  ;;  %v232_v62 = vmul.f32 %v2511_v47, %v2511_v47 }
  0xba   :  { %v185_v24 = vmul.f32 0.0625, %v144_v54  ;;  %v233_v40 = vmul.f32 %v2514_v37, %v2514_v37 }
  0xbb   :  { %v2523_v63 = vsub.f32 %v2325_v44, %v184_v58  ;;  %v284_v3 = vsel %vm60_vm0, %v232_v62, 0.0 }
  0xbc   :  { %v2526_v41 = vsub.f32 %v2330_v45, %v185_v24  ;;  %330 = vadd.xlane.f32.xlu1 %v329_v8  ;;  %285 = vadd.xlane.f32.xlu0 %v284_v3  ;;  %v99_v4 = vpop.xlane.xlu0 %98  ;;  %v287_v12 = vsel %vm60_vm0, %v233_v40, 0.0 }
  0xbd   :  { %v102_v6 = vpop.xlane.xlu1 %101  ;;  %v170_v14 = vmul.f32 0.0625, %v99_v4  ;;  %v248_v18 = vmul.f32 %v2523_v63, %v2523_v63 }
  0xbe   :  { %v171_v28 = vmul.f32 0.0625, %v102_v6  ;;  %v249_v44 = vmul.f32 %v2526_v41, %v2526_v41 }
  0xbf   :  { %v2535_v19 = vsub.f32 %v2339_v48, %v170_v14  ;;  %v332_v22 = vsel %vm60_vm0, %v248_v18, 0.0 }
  0xc0   :  { %v2538_v45 = vsub.f32 %v2344_v49, %v171_v28  ;;  %288 = vadd.xlane.f32.xlu1 %v287_v12  ;;  %333 = vadd.xlane.f32.xlu0 %v332_v22  ;;  %v147_v23 = vpop.xlane.xlu0 %146  ;;  %v335_v16 = vsel %vm60_vm0, %v249_v44, 0.0 }
  0xc1   :  { %v150_v0 = vpop.xlane.xlu1 %149  ;;  %v186_v32 = vmul.f32 0.0625, %v147_v23  ;;  %v234_v48 = vmul.f32 %v2535_v19, %v2535_v19 }
  0xc2   :  { %v187_v34 = vmul.f32 0.0625, %v150_v0  ;;  %v235_v49 = vmul.f32 %v2538_v45, %v2538_v45 }
  0xc3   :  { %v2550_v35 = vsub.f32 %v2353_v52, %v186_v32  ;;  %v290_v39 = vsel %vm60_vm0, %v234_v48, 0.0 }
  0xc4   :  { %v2553_v38 = vsub.f32 %v2358_v53, %v187_v34  ;;  %336 = vadd.xlane.f32.xlu1 %v335_v16  ;;  %291 = vadd.xlane.f32.xlu0 %v290_v39  ;;  %v105_v42 = vpop.xlane.xlu0 %104  ;;  %v293_v46 = vsel %vm60_vm0, %v235_v49, 0.0 }
  0xc5   :  { %v108_v20 = vpop.xlane.xlu1 %107  ;;  %v172_v36 = vmul.f32 0.0625, %v105_v42  ;;  %v250_v51 = vmul.f32 %v2550_v35, %v2550_v35 }
  0xc6   :  { %v173_v50 = vmul.f32 0.0625, %v108_v20  ;;  %v251_v52 = vmul.f32 %v2553_v38, %v2553_v38 }
  0xc7   :  { %v2562_v53 = vsub.f32 %v2367_v56, %v172_v36  ;;  %v338_v8 = vsel %vm60_vm0, %v250_v51, 0.0 }
  0xc8   :  { %v2565_v54 = vsub.f32 %v2372_v57, %v173_v50  ;;  %294 = vadd.xlane.f32.xlu1 %v293_v46  ;;  %339 = vadd.xlane.f32.xlu0 %v338_v8  ;;  %v153_v58 = vpop.xlane.xlu0 %152  ;;  %v341_v62 = vsel %vm60_vm0, %v251_v52, 0.0 }
  0xc9   :  { %v156_v24 = vpop.xlane.xlu1 %155  ;;  %v188_v40 = vmul.f32 0.0625, %v153_v58  ;;  %v236_v4 = vmul.f32 %v2562_v53, %v2562_v53 }
  0xca   :  { %v189_v3 = vmul.f32 0.0625, %v156_v24  ;;  %v237_v56 = vmul.f32 %v2565_v54, %v2565_v54 }
  0xcb   :  { %v2574_v6 = vsub.f32 %v2381_v60, %v188_v40  ;;  %v296_v12 = vsel %vm60_vm0, %v236_v4, 0.0 }
  0xcc   :  { %v2577_v57 = vsub.f32 %v2386_v61, %v189_v3  ;;  %342 = vadd.xlane.f32.xlu1 %v341_v62  ;;  %297 = vadd.xlane.f32.xlu0 %v296_v12  ;;  %v299_v14 = vsel %vm60_vm0, %v237_v56, 0.0  ;;  %v1829_v61 = vld [vmem:[%s3838_s4] ss:$0 sm:$0xff] }
  0xcd   :  { %v252_v28 = vmul.f32 %v2574_v6, %v2574_v6 }
  0xce   :  { %v253_v18 = vmul.f32 %v2577_v57, %v2577_v57 }
  0xcf   :  { %v344_v44 = vsel %vm60_vm0, %v252_v28, 0.0 }
  0xd0   :  { %300 = vadd.xlane.f32.xlu1 %v299_v14  ;;  %345 = vadd.xlane.f32.xlu0 %v344_v44  ;;  %v347_v60 = vsel %vm60_vm0, %v253_v18, 0.0  ;;  %v2593_v18 = vld [vmem:[%s3839_s1] ss:$0 sm:$0xff]  ;;  %s2114_s1 = smov 64  }
  0xd4   :  { %348 = vadd.xlane.f32.xlu1 %v347_v60 }
  0xe5   :  { %1210 = vrot.lane.b32.xlu1 %v1829_v61, %s2113_s12 }
 0x11d   :  { %v256_v22 = vpop.xlane.xlu0 %255 }
 0x11e   :  { %v350_v23 = vmul.f32 0.0625, %v256_v22 }
 0x120   :  { %v382_v0 = vadd.f32 1e-05, %v350_v23 }
 0x121   :  { %v259_v16 = vpop.xlane.xlu1 %258  ;;  %v304_v30 = vpop.xlane.xlu0 %303 }
 0x122   :  { %1921 = vrsqrt.f32 %v382_v0  ;;  %v351_v32 = vmul.f32 0.0625, %v259_v16  ;;  %v366_v34 = vmul.f32 0.0625, %v304_v30 }
 0x124   :  { %v383_v48 = vadd.f32 1e-05, %v351_v32  ;;  %v398_v49 = vadd.f32 1e-05, %v366_v34 }
 0x125   :  { %v307_v39 = vpop.xlane.xlu1 %306  ;;  %v262_v42 = vpop.xlane.xlu0 %261 }
 0x126   :  { %1923 = vrsqrt.f32 %v383_v48  ;;  %v367_v20 = vmul.f32 0.0625, %v307_v39  ;;  %v352_v46 = vmul.f32 0.0625, %v262_v42  ;;  %v2600_v48 = vld [vmem:[%s3840_s2] ss:$0 sm:$0xff] }
 0x127   :  { %1925 = vrsqrt.f32 %v398_v49 }
 0x128   :  { %v399_v36 = vadd.f32 1e-05, %v367_v20  ;;  %v384_v50 = vadd.f32 1e-05, %v352_v46 }
 0x129   :  { %v265_v51 = vpop.xlane.xlu1 %264  ;;  %v310_v52 = vpop.xlane.xlu0 %309 }
 0x12a   :  { %1927 = vrsqrt.f32 %v399_v36  ;;  %v353_v8 = vmul.f32 0.0625, %v265_v51  ;;  %v368_v58 = vmul.f32 0.0625, %v310_v52 }
 0x12b   :  { %1929 = vrsqrt.f32 %v384_v50 }
 0x12c   :  { %v385_v24 = vadd.f32 1e-05, %v353_v8  ;;  %v400_v62 = vadd.f32 1e-05, %v368_v58 }
 0x12d   :  { %v313_v40 = vpop.xlane.xlu1 %312  ;;  %v268_v3 = vpop.xlane.xlu0 %267 }
 0x12e   :  { %1931 = vrsqrt.f32 %v385_v24  ;;  %v369_v4 = vmul.f32 0.0625, %v313_v40  ;;  %v354_v56 = vmul.f32 0.0625, %v268_v3 }
 0x12f   :  { %v1922_v12 = vpop.eup %1921  ;;  %1933 = vrsqrt.f32 %v400_v62 }
 0x130   :  { %v401_v14 = vadd.f32 1e-05, %v369_v4  ;;  %v386_v28 = vadd.f32 1e-05, %v354_v56  ;;  %v446_v44 = vmul.f32 %v1922_v12, %v2393_v10 }
 0x131   :  { %v271_v60 = vpop.xlane.xlu1 %270  ;;  %v316_v61 = vpop.xlane.xlu0 %315 }
 0x132   :  { %1935 = vrsqrt.f32 %v401_v14  ;;  %v355_v22 = vmul.f32 0.0625, %v271_v60  ;;  %v370_v23 = vmul.f32 0.0625, %v316_v61  ;;  %v484_v16 = vmul.f32 %v2593_v18, %v446_v44 }
 0x133   :  { %v1924_v0 = vpop.eup %1923  ;;  %1937 = vrsqrt.f32 %v386_v28 }
 0x134   :  { %v1926_v30 = vpop.eup %1925  ;;  %v387_v32 = vadd.f32 1e-05, %v355_v22  ;;  %v402_v34 = vadd.f32 1e-05, %v370_v23  ;;  %v447_v49 = vmul.f32 %v1924_v0, %v2403_v26  ;;  %v522_v51 = vadd.f32 %v2600_v48, %v484_v16 }
 0x135   :  { %v319_v10 = vpop.xlane.xlu1 %318  ;;  %v274_v39 = vpop.xlane.xlu0 %273  ;;  %v462_v42 = vmul.f32 %v1926_v30, %v2396_v11 }
 0x136   :  { %1939 = vrsqrt.f32 %v387_v32  ;;  %v371_v20 = vmul.f32 0.0625, %v319_v10  ;;  %v356_v46 = vmul.f32 0.0625, %v274_v39  ;;  %v485_v36 = vmul.f32 %v2593_v18, %v447_v49 }
 0x137   :  { %v1928_v50 = vpop.eup %1927  ;;  %1941 = vrsqrt.f32 %v402_v34  ;;  %v500_v11 = vmul.f32 %v2593_v18, %v462_v42 }
 0x138   :  { %v1930_v52 = vpop.eup %1929  ;;  %v403_v8 = vadd.f32 1e-05, %v371_v20  ;;  %v388_v58 = vadd.f32 1e-05, %v356_v46  ;;  %v523_v24 = vadd.f32 %v2600_v48, %v485_v36  ;;  %v463_v26 = vmul.f32 %v1928_v50, %v2406_v27 }
 0x139   :  { %v277_v62 = vpop.xlane.xlu1 %276  ;;  %v322_v40 = vpop.xlane.xlu0 %321  ;;  %v448_v3 = vmul.f32 %v1930_v52, %v2415_v2  ;;  %v538_v2 = vadd.f32 %v2600_v48, %v500_v11 }
 0x13a   :  { %1943 = vrsqrt.f32 %v403_v8  ;;  %v357_v4 = vmul.f32 0.0625, %v277_v62  ;;  %v372_v56 = vmul.f32 0.0625, %v322_v40  ;;  %v554_v12 = vpack.c.bf16 %v523_v24, %v522_v51 }
 0x13b   :  { %v1932_v14 = vpop.eup %1931  ;;  %1945 = vrsqrt.f32 %v388_v58  ;;  %v501_v28 = vmul.f32 %v2593_v18, %v463_v26  ;;  %v486_v44 = vmul.f32 %v2593_v18, %v448_v3 }
 0x13c   :  { %v1934_v60 = vpop.eup %1933  ;;  %v389_v61 = vadd.f32 1e-05, %v357_v4  ;;  %v404_v22 = vadd.f32 1e-05, %v372_v56  ;;  %1881 = vmatprep.mubr.msk.bf16.mxu0 %vm60_vm0, %v554_v12  ;;  %v449_v27 = vmul.f32 %v1932_v14, %v2418_v5 }
 0x13d   :  { %v325_v23 = vpop.xlane.xlu1 %324  ;;  %v280_v0 = vpop.xlane.xlu0 %279  ;;  %v539_v16 = vadd.f32 %v2600_v48, %v501_v28  ;;  %v464_v30 = vmul.f32 %v1934_v60, %v2427_v55  ;;  %v524_v42 = vadd.f32 %v2600_v48, %v486_v44 }
 0x13e   :  { %1947 = vrsqrt.f32 %v389_v61  ;;  %v373_v32 = vmul.f32 0.0625, %v325_v23  ;;  %v358_v34 = vmul.f32 0.0625, %v280_v0  ;;  %v487_v49 = vmul.f32 %v2593_v18, %v449_v27 }
 0x13f   :  { %v1936_v10 = vpop.eup %1935  ;;  %1949 = vrsqrt.f32 %v404_v22  ;;  %v562_v39 = vpack.c.bf16 %v539_v16, %v538_v2  ;;  %v502_v52 = vmul.f32 %v2593_v18, %v464_v30 }
 0x140   :  { %v1938_v20 = vpop.eup %1937  ;;  %v405_v5 = vadd.f32 1e-05, %v373_v32  ;;  %v390_v46 = vadd.f32 1e-05, %v358_v34  ;;  %v525_v36 = vadd.f32 %v2600_v48, %v487_v49  ;;  %v465_v50 = vmul.f32 %v1936_v10, %v2430_v9 }
 0x141   :  { %1897 = vmatprep.mubr.msk.bf16.mxu1 %vm60_vm0, %v562_v39  ;;  %v283_v55 = vpop.xlane.xlu1 %282  ;;  %v328_v51 = vpop.xlane.xlu0 %327  ;;  %v450_v8 = vmul.f32 %v1938_v20, %v2439_v7  ;;  %v540_v7 = vadd.f32 %v2600_v48, %v502_v52 }
 0x142   :  { %1951 = vrsqrt.f32 %v405_v5  ;;  %v359_v58 = vmul.f32 0.0625, %v283_v55  ;;  %v374_v24 = vmul.f32 0.0625, %v328_v51  ;;  %v555_v26 = vpack.c.bf16 %v525_v36, %v524_v42 }
 0x143   :  { %v1940_v62 = vpop.eup %1939  ;;  %1953 = vrsqrt.f32 %v390_v46  ;;  %v503_v40 = vmul.f32 %v2593_v18, %v465_v50  ;;  %v488_v11 = vmul.f32 %v2593_v18, %v450_v8 }
 0x144   :  { %v1942_v3 = vpop.eup %1941  ;;  %v391_v9 = vadd.f32 1e-05, %v359_v58  ;;  %v406_v4 = vadd.f32 1e-05, %v374_v24  ;;  %1882 = vmatmul.mubr.msk.bf16.vlgmr.msra.gmra.mxu0 %vm60_vm0, %v555_v26  ;;  %v451_v56 = vmul.f32 %v1940_v62, %v2442_v13 }
 0x145   :  { %v331_v12 = vpop.xlane.xlu1 %330  ;;  %v286_v14 = vpop.xlane.xlu0 %285  ;;  %v541_v28 = vadd.f32 %v2600_v48, %v503_v40  ;;  %v466_v44 = vmul.f32 %v1942_v3, %v2451_v1  ;;  %v526_v0 = vadd.f32 %v2600_v48, %v488_v11 }
 0x146   :  { %1955 = vrsqrt.f32 %v391_v9  ;;  %v375_v60 = vmul.f32 0.0625, %v331_v12  ;;  %v360_v61 = vmul.f32 0.0625, %v286_v14  ;;  %v489_v22 = vmul.f32 %v2593_v18, %v451_v56 }
 0x147   :  { %v1944_v27 = vpop.eup %1943  ;;  %1957 = vrsqrt.f32 %v406_v4  ;;  %v563_v23 = vpack.c.bf16 %v541_v28, %v540_v7  ;;  %v504_v49 = vmul.f32 %v2593_v18, %v466_v44 }
 0x148   :  { %v1946_v2 = vpop.eup %1945  ;;  %v407_v13 = vadd.f32 1e-05, %v375_v60  ;;  %v392_v16 = vadd.f32 1e-05, %v360_v61  ;;  %v527_v30 = vadd.f32 %v2600_v48, %v489_v22  ;;  %v467_v32 = vmul.f32 %v1944_v27, %v2454_v17 }
 0x149   :  { %1898 = vmatmul.mubr.msk.bf16.vlgmr.msra.gmra.mxu1 %vm60_vm0, %v563_v23  ;;  %v289_v1 = vpop.xlane.xlu1 %288  ;;  %v334_v34 = vpop.xlane.xlu0 %333  ;;  %v452_v10 = vmul.f32 %v1946_v2, %v2463_v43  ;;  %v542_v43 = vadd.f32 %v2600_v48, %v504_v49 }
 0x14a   :  { %1959 = vrsqrt.f32 %v407_v13  ;;  %v361_v39 = vmul.f32 0.0625, %v289_v1  ;;  %v376_v42 = vmul.f32 0.0625, %v334_v34  ;;  %v556_v20 = vpack.c.bf16 %v527_v30, %v526_v0 }
 0x14b   :  { %v1948_v5 = vpop.eup %1947  ;;  %1961 = vrsqrt.f32 %v392_v16  ;;  %v505_v46 = vmul.f32 %v2593_v18, %v467_v32  ;;  %v490_v36 = vmul.f32 %v2593_v18, %v452_v10 }
 0x14c   :  { %v1950_v50 = vpop.eup %1949  ;;  %v393_v17 = vadd.f32 1e-05, %v361_v39  ;;  %v408_v55 = vadd.f32 1e-05, %v376_v42  ;;  %1885 = vmatprep.mubr.msk.bf16.mxu0 %vm60_vm0, %v556_v20  ;;  %v453_v51 = vmul.f32 %v1948_v5, %v2466_v21 }
 0x14d   :  { %v337_v52 = vpop.xlane.xlu1 %336  ;;  %v292_v8 = vpop.xlane.xlu0 %291  ;;  %v543_v58 = vadd.f32 %v2600_v48, %v505_v46  ;;  %v468_v24 = vmul.f32 %v1950_v50, %v2475_v59  ;;  %v528_v9 = vadd.f32 %v2600_v48, %v490_v36 }
 0x14e   :  { %1963 = vrsqrt.f32 %v393_v17  ;;  %v377_v26 = vmul.f32 0.0625, %v337_v52  ;;  %v362_v62 = vmul.f32 0.0625, %v292_v8  ;;  %v491_v40 = vmul.f32 %v2593_v18, %v453_v51 }
 0x14f   :  { %v1952_v11 = vpop.eup %1951  ;;  %1965 = vrsqrt.f32 %v408_v55  ;;  %v564_v3 = vpack.c.bf16 %v543_v58, %v542_v43  ;;  %v506_v28 = vmul.f32 %v2593_v18, %v468_v24 }
 0x150   :  { %v1954_v4 = vpop.eup %1953  ;;  %v409_v21 = vadd.f32 1e-05, %v377_v26  ;;  %v394_v56 = vadd.f32 1e-05, %v362_v62  ;;  %v529_v12 = vadd.f32 %v2600_v48, %v491_v40  ;;  %v469_v14 = vmul.f32 %v1952_v11, %v2478_v25 }
 0x151   :  { %1901 = vmatprep.mubr.msk.bf16.mxu1 %vm60_vm0, %v564_v3  ;;  %v295_v59 = vpop.xlane.xlu1 %294  ;;  %v340_v7 = vpop.xlane.xlu0 %339  ;;  %v454_v44 = vmul.f32 %v1954_v4, %v2487_v15  ;;  %v544_v15 = vadd.f32 %v2600_v48, %v506_v28 }
 0x152   :  { %1967 = vrsqrt.f32 %v409_v21  ;;  %v363_v60 = vmul.f32 0.0625, %v295_v59  ;;  %v378_v61 = vmul.f32 0.0625, %v340_v7  ;;  %v557_v22 = vpack.c.bf16 %v529_v12, %v528_v9 }
 0x153   :  { %v1956_v27 = vpop.eup %1955  ;;  %1969 = vrsqrt.f32 %v394_v56  ;;  %v507_v23 = vmul.f32 %v2593_v18, %v469_v14  ;;  %v492_v0 = vmul.f32 %v2593_v18, %v454_v44 }
 0x154   :  { %v1958_v2 = vpop.eup %1957  ;;  %v395_v25 = vadd.f32 1e-05, %v363_v60  ;;  %v410_v13 = vadd.f32 1e-05, %v378_v61  ;;  %1886 = vmatmul.mubr.msk.bf16.gmra.mxu0 %vm60_vm0, %v557_v22  ;;  %v455_v16 = vmul.f32 %v1956_v27, %v2490_v29 }
 0x155   :  { %v343_v30 = vpop.xlane.xlu1 %342  ;;  %v298_v32 = vpop.xlane.xlu0 %297  ;;  %v545_v1 = vadd.f32 %v2600_v48, %v507_v23  ;;  %v470_v34 = vmul.f32 %v1958_v2, %v2499_v31  ;;  %v530_v5 = vadd.f32 %v2600_v48, %v492_v0 }
 0x156   :  { %1971 = vrsqrt.f32 %v395_v25  ;;  %v379_v49 = vmul.f32 0.0625, %v343_v30  ;;  %v364_v10 = vmul.f32 0.0625, %v298_v32  ;;  %v493_v39 = vmul.f32 %v2593_v18, %v455_v16 }
 0x157   :  { %v1960_v42 = vpop.eup %1959  ;;  %1973 = vrsqrt.f32 %v410_v13  ;;  %v565_v20 = vpack.c.bf16 %v545_v1, %v544_v15  ;;  %v508_v51 = vmul.f32 %v2593_v18, %v470_v34 }
 0x158   :  { %v1962_v46 = vpop.eup %1961  ;;  %v411_v29 = vadd.f32 1e-05, %v379_v49  ;;  %v396_v36 = vadd.f32 1e-05, %v364_v10  ;;  %v531_v50 = vadd.f32 %v2600_v48, %v493_v39  ;;  %v471_v17 = vmul.f32 %v1960_v42, %v2502_v33 }
 0x159   :  { %1902 = vmatmul.mubr.msk.bf16.gmra.mxu1 %vm60_vm0, %v565_v20  ;;  %v301_v31 = vpop.xlane.xlu1 %300  ;;  %v346_v55 = vpop.xlane.xlu0 %345  ;;  %v456_v52 = vmul.f32 %v1962_v46, %v2511_v47  ;;  %v546_v47 = vadd.f32 %v2600_v48, %v508_v51 }
 0x15a   :  { %1975 = vrsqrt.f32 %v411_v29  ;;  %v365_v8 = vmul.f32 0.0625, %v301_v31  ;;  %v380_v43 = vmul.f32 0.0625, %v346_v55  ;;  %v558_v58 = vpack.c.bf16 %v531_v50, %v530_v5 }
 0x15b   :  { %v1964_v24 = vpop.eup %1963  ;;  %1977 = vrsqrt.f32 %v396_v36  ;;  %v509_v26 = vmul.f32 %v2593_v18, %v471_v17  ;;  %v494_v62 = vmul.f32 %v2593_v18, %v456_v52 }
 0x15c   :  { %v1966_v40 = vpop.eup %1965  ;;  %v397_v33 = vadd.f32 1e-05, %v365_v8  ;;  %v412_v11 = vadd.f32 1e-05, %v380_v43  ;;  %1889 = vmatprep.mubr.msk.bf16.mxu0 %vm60_vm0, %v558_v58  ;;  %v457_v3 = vmul.f32 %v1964_v24, %v2514_v37 }
 0x15d   :  { %v349_v9 = vpop.xlane.xlu1 %348  ;;  %v547_v4 = vadd.f32 %v2600_v48, %v509_v26  ;;  %v472_v21 = vmul.f32 %v1966_v40, %v2523_v63  ;;  %v532_v7 = vadd.f32 %v2600_v48, %v494_v62 }
 0x15e   :  { %1979 = vrsqrt.f32 %v397_v33  ;;  %v381_v56 = vmul.f32 0.0625, %v349_v9  ;;  %v495_v12 = vmul.f32 %v2593_v18, %v457_v3 }
 0x15f   :  { %v1968_v14 = vpop.eup %1967  ;;  %1981 = vrsqrt.f32 %v412_v11  ;;  %v566_v59 = vpack.c.bf16 %v547_v4, %v546_v47  ;;  %v510_v61 = vmul.f32 %v2593_v18, %v472_v21 }
 0x160   :  { %v1970_v28 = vpop.eup %1969  ;;  %v413_v44 = vadd.f32 1e-05, %v381_v56  ;;  %v533_v37 = vadd.f32 %v2600_v48, %v495_v12  ;;  %v473_v60 = vmul.f32 %v1968_v14, %v2526_v41 }
 0x161   :  { %1905 = vmatprep.mubr.msk.bf16.mxu1 %vm60_vm0, %v566_v59  ;;  %v458_v63 = vmul.f32 %v1970_v28, %v2535_v19  ;;  %v548_v2 = vadd.f32 %v2600_v48, %v510_v61 }
 0x162   :  { %1983 = vrsqrt.f32 %v413_v44  ;;  %v559_v22 = vpack.c.bf16 %v533_v37, %v532_v7  ;;  %v511_v27 = vmul.f32 %v2593_v18, %v473_v60 }
 0x163   :  { %v1972_v23 = vpop.eup %1971  ;;  %v496_v13 = vmul.f32 %v2593_v18, %v458_v63 }
 0x164   :  { %v1974_v0 = vpop.eup %1973  ;;  %1890 = vmatmul.mubr.msk.bf16.gmra.mxu0 %vm60_vm0, %v559_v22  ;;  %v549_v25 = vadd.f32 %v2600_v48, %v511_v27  ;;  %v459_v41 = vmul.f32 %v1972_v23, %v2538_v45 }
 0x165   :  { %v474_v16 = vmul.f32 %v1974_v0, %v2550_v35  ;;  %v534_v1 = vadd.f32 %v2600_v48, %v496_v13 }
 0x166   :  { %v567_v30 = vpack.c.bf16 %v549_v25, %v548_v2  ;;  %v497_v19 = vmul.f32 %v2593_v18, %v459_v41 }
 0x167   :  { %v1976_v32 = vpop.eup %1975  ;;  %v512_v10 = vmul.f32 %v2593_v18, %v474_v16 }
 0x168   :  { %v1978_v15 = vpop.eup %1977  ;;  %1906 = vmatmul.mubr.msk.bf16.gmra.mxu1 %vm60_vm0, %v567_v30  ;;  %v535_v34 = vadd.f32 %v2600_v48, %v497_v19  ;;  %v475_v49 = vmul.f32 %v1976_v32, %v2553_v38 }
 0x169   :  { %v460_v45 = vmul.f32 %v1978_v15, %v2562_v53  ;;  %v550_v5 = vadd.f32 %v2600_v48, %v512_v10 }
 0x16a   :  { %v560_v39 = vpack.c.bf16 %v535_v34, %v534_v1  ;;  %v513_v35 = vmul.f32 %v2593_v18, %v475_v49 }
 0x16b   :  { %v1980_v42 = vpop.eup %1979  ;;  %v498_v36 = vmul.f32 %v2593_v18, %v460_v45 }
 0x16c   :  { %v1982_v20 = vpop.eup %1981  ;;  %1893 = vmatprep.mubr.msk.bf16.mxu0 %vm60_vm0, %v560_v39  ;;  %v551_v46 = vadd.f32 %v2600_v48, %v513_v35  ;;  %v461_v29 = vmul.f32 %v1980_v42, %v2565_v54 }
 0x16d   :  { %v476_v38 = vmul.f32 %v1982_v20, %v2574_v6  ;;  %v536_v31 = vadd.f32 %v2600_v48, %v498_v36 }
 0x16e   :  { %v568_v50 = vpack.c.bf16 %v551_v46, %v550_v5  ;;  %v499_v53 = vmul.f32 %v2593_v18, %v461_v29 }
 0x16f   :  { %v1984_v17 = vpop.eup %1983  ;;  %v514_v52 = vmul.f32 %v2593_v18, %v476_v38 }
 0x170   :  { %1909 = vmatprep.mubr.msk.bf16.mxu1 %vm60_vm0, %v568_v50  ;;  %v537_v55 = vadd.f32 %v2600_v48, %v499_v53  ;;  %v477_v51 = vmul.f32 %v1984_v17, %v2577_v57 }
 0x171   :  { %v552_v6 = vadd.f32 %v2600_v48, %v514_v52 }
 0x172   :  { %v561_v8 = vpack.c.bf16 %v537_v55, %v536_v31  ;;  %v515_v54 = vmul.f32 %v2593_v18, %v477_v51 }
 0x174   :  { %1894 = vmatmul.mubr.msk.bf16.gmra.mxu0 %vm60_vm0, %v561_v8  ;;  %v553_v43 = vadd.f32 %v2600_v48, %v515_v54 }
 0x176   :  { %v569_v58 = vpack.c.bf16 %v553_v43, %v552_v6 }
 0x178   :  { %1910 = vmatmul.mubr.msk.bf16.gmra.mxu1 %vm60_vm0, %v569_v58 }
 0x204   :  { %v2712_v24 = vpop.f32.mrf.mxu0 }
 0x205   :  { %v1832_v57 = vpack.c.bf16 %v2712_v24, %v2712_v24  ;;  %1633 = vrot.lane.b32.xlu1 %v2712_v24, %s2114_s1 }
 0x206   :  { %v2718_v18 = vpop.f32.mrf.mxu0 }
 0x207   :  { %918 = vst.msk [vmem:[%s3841_s5 + $0x8] sm:$0xf] %vm915_vm1, %v1832_v57  ;;  %v1830_v48 = vpack.c.bf16 %v2718_v18, %v2718_v18 }
 0x208   :  { %v2726_v26 = vpop.f32.mrf.mxu0 }
 0x209   :  { %916 = vst.msk [vmem:[%s3841_s5] sm:$0xf] %vm915_vm1, %v1830_v48  ;;  %v1833_v62 = vpack.c.bf16 %v2726_v26, %v2726_v26  ;;  %v2734_v40 = vpop.f32.mrf.mxu1 }
 0x20a   :  { %v1848_v33 = vpack.c.bf16 %v2734_v40, %v2734_v40  ;;  %1665 = vrot.lane.b32.xlu1 %v2734_v40, %s2114_s1  ;;  %v2740_v11 = vpop.f32.mrf.mxu0 }
 0x20b   :  { %919 = vst.msk [vmem:[%s3841_s5 + $0xc] sm:$0xf] %vm915_vm1, %v1833_v62  ;;  %v2748_v3 = vpack.c.bf16 %v2740_v11, %v2740_v11  ;;  %v2750_v9 = vpop.f32.mrf.mxu1 }
 0x20c   :  { %934 = vst.msk [vmem:[%s3841_s5 + $0x48] sm:$0xf] %vm915_vm1, %v1848_v33  ;;  %v1846_v47 = vpack.c.bf16 %v2750_v9, %v2750_v9  ;;  %984 = vrot.lane.b32.xlu0 %v1848_v33, %s2115_s23 }
 0x20d   :  { %917 = vst.msk [vmem:[%s3841_s5 + $0x4] sm:$0xf] %vm915_vm1, %v2748_v3  ;;  %v2764_v4 = vpop.f32.mrf.mxu1 }
 0x20e   :  { %932 = vst.msk [vmem:[%s3841_s5 + $0x40] sm:$0xf] %vm915_vm1, %v1846_v47  ;;  %v1849_v21 = vpack.c.bf16 %v2764_v4, %v2764_v4  ;;  %952 = vrot.lane.b32.xlu1 %v1832_v57, %s2115_s23 }
 0x20f   :  { %v2773_v56 = vpop.f32.mrf.mxu1 }
 0x210   :  { %935 = vst.msk [vmem:[%s3841_s5 + $0x4c] sm:$0xf] %vm915_vm1, %v1849_v21  ;;  %v2781_v12 = vpack.c.bf16 %v2773_v56, %v2773_v56  ;;  %1080 = vrot.lane.b32.xlu0 %v1832_v57, %s2116_s30  ;;  %v3142_v57 = vpop.permute.xlu1 %1210 }
 0x212   :  { %933 = vst.msk [vmem:[%s3841_s5 + $0x44] sm:$0xf] %vm915_vm1, %v2781_v12  ;;  %1629 = vrot.lane.b32.xlu1 %v2718_v18, %s2114_s1 }
 0x214   :  { %1112 = vrot.lane.b32.xlu0 %v1848_v33, %s2116_s30  ;;  %v2792_v14 = vpop.f32.mrf.mxu0 }
 0x215   :  { %v2796_v59 = vpack.c.bf16 %v2792_v14, %v2792_v14 }
 0x216   :  { %1661 = vrot.lane.b32.xlu1 %v2750_v9, %s2114_s1  ;;  %v2800_v7 = vpop.f32.mrf.mxu0 }
 0x217   :  { %922 = vst.msk [vmem:[%s3841_s5 + $0x18] sm:$0xf] %vm915_vm1, %v2796_v59  ;;  %v2809_v28 = vpack.c.bf16 %v2800_v7, %v2800_v7 }
 0x218   :  { %948 = vrot.lane.b32.xlu0 %v1830_v48, %s2115_s23  ;;  %v2812_v44 = vpop.f32.mrf.mxu0 }
 0x219   :  { %920 = vst.msk [vmem:[%s3841_s5 + $0x10] sm:$0xf] %vm915_vm1, %v2809_v28  ;;  %v2821_v37 = vpack.c.bf16 %v2812_v44, %v2812_v44  ;;  %v2823_v60 = vpop.f32.mrf.mxu1 }
 0x21a   :  { %v2827_v61 = vpack.c.bf16 %v2823_v60, %v2823_v60  ;;  %954 = vrot.lane.b32.xlu1 %v1833_v62, %s2115_s23  ;;  %v2830_v63 = vpop.f32.mrf.mxu0 }
 0x21b   :  { %923 = vst.msk [vmem:[%s3841_s5 + $0x1c] sm:$0xf] %vm915_vm1, %v2821_v37  ;;  %v2839_v22 = vpack.c.bf16 %v2830_v63, %v2830_v63  ;;  %v2841_v27 = vpop.f32.mrf.mxu1 }
 0x21c   :  { %938 = vst.msk [vmem:[%s3841_s5 + $0x58] sm:$0xf] %vm915_vm1, %v2827_v61  ;;  %980 = vrot.lane.b32.xlu0 %v1846_v47, %s2115_s23  ;;  %v2856_v23 = vpack.c.bf16 %v2841_v27, %v2841_v27 }
 0x21d   :  { %921 = vst.msk [vmem:[%s3841_s5 + $0x14] sm:$0xf] %vm915_vm1, %v2839_v22  ;;  %v2858_v0 = vpop.f32.mrf.mxu1 }
 0x21e   :  { %986 = vrot.lane.b32.xlu1 %v1849_v21, %s2115_s23  ;;  %936 = vst.msk [vmem:[%s3841_s5 + $0x50] sm:$0xf] %vm915_vm1, %v2856_v23  ;;  %v2868_v2 = vpack.c.bf16 %v2858_v0, %v2858_v0 }
 0x21f   :  { %v2870_v25 = vpop.f32.mrf.mxu1 }
 0x220   :  { %v2874_v41 = vpack.c.bf16 %v2870_v25, %v2870_v25  ;;  %1076 = vrot.lane.b32.xlu0 %v1830_v48, %s2116_s30  ;;  %939 = vst.msk [vmem:[%s3841_s5 + $0x5c] sm:$0xf] %vm915_vm1, %v2868_v2 }
 0x222   :  { %937 = vst.msk [vmem:[%s3841_s5 + $0x54] sm:$0xf] %vm915_vm1, %v2874_v41  ;;  %1082 = vrot.lane.b32.xlu1 %v1833_v62, %s2116_s30 }
 0x224   :  { %1108 = vrot.lane.b32.xlu0 %v1846_v47, %s2116_s30  ;;  %v2889_v13 = vpop.f32.mrf.mxu0 }
 0x225   :  { %v2893_v16 = vpack.c.bf16 %v2889_v13, %v2889_v13 }
 0x226   :  { %1114 = vrot.lane.b32.xlu1 %v1849_v21, %s2116_s30  ;;  %v2896_v30 = vpop.f32.mrf.mxu0 }
 0x227   :  { %926 = vst.msk [vmem:[%s3841_s5 + $0x28] sm:$0xf] %vm915_vm1, %v2893_v16  ;;  %v2905_v19 = vpack.c.bf16 %v2896_v30, %v2896_v30 }
 0x228   :  { %1635 = vrot.lane.b32.xlu0 %v2726_v26, %s2114_s1  ;;  %v2909_v32 = vpop.f32.mrf.mxu0  ;;  %v2911_v15 = vpop.f32.mrf.mxu1 }
 0x229   :  { %924 = vst.msk [vmem:[%s3841_s5 + $0x20] sm:$0xf] %vm915_vm1, %v2905_v19  ;;  %v2920_v1 = vpack.c.bf16 %v2909_v32, %v2909_v32  ;;  %v2924_v34 = vpack.c.bf16 %v2911_v15, %v2911_v15 }
 0x22a   :  { %950 = vrot.lane.b32.xlu1 %v2748_v3, %s2115_s23  ;;  %v2928_v49 = vpop.f32.mrf.mxu0  ;;  %v2930_v10 = vpop.f32.mrf.mxu1 }
 0x22b   :  { %927 = vst.msk [vmem:[%s3841_s5 + $0x2c] sm:$0xf] %vm915_vm1, %v2920_v1  ;;  %v2939_v45 = vpack.c.bf16 %v2928_v49, %v2928_v49  ;;  %942 = vst.msk [vmem:[%s3841_s5 + $0x68] sm:$0xf] %vm915_vm1, %v2924_v34  ;;  %v2957_v35 = vpack.c.bf16 %v2930_v10, %v2930_v10 }
 0x22c   :  { %1667 = vrot.lane.b32.xlu0 %v2764_v4, %s2114_s1  ;;  %v2948_v39 = vpop.f32.mrf.mxu1 }
 0x22d   :  { %925 = vst.msk [vmem:[%s3841_s5 + $0x24] sm:$0xf] %vm915_vm1, %v2939_v45  ;;  %v2961_v42 = vpack.c.bf16 %v2948_v39, %v2948_v39  ;;  %940 = vst.msk [vmem:[%s3841_s5 + $0x60] sm:$0xf] %vm915_vm1, %v2957_v35 }
 0x22e   :  { %982 = vrot.lane.b32.xlu1 %v2781_v12, %s2115_s23  ;;  %v2965_v20 = vpop.f32.mrf.mxu1 }
 0x22f   :  { %943 = vst.msk [vmem:[%s3841_s5 + $0x6c] sm:$0xf] %vm915_vm1, %v2961_v42  ;;  %v2979_v5 = vpack.c.bf16 %v2965_v20, %v2965_v20 }
 0x230   :  { %1631 = vrot.lane.b32.xlu0 %v2740_v11, %s2114_s1 }
 0x231   :  { %941 = vst.msk [vmem:[%s3841_s5 + $0x64] sm:$0xf] %vm915_vm1, %v2979_v5 }
 0x232   :  { %1078 = vrot.lane.b32.xlu1 %v2748_v3, %s2116_s30 }
 0x234   :  { %1663 = vrot.lane.b32.xlu0 %v2773_v56, %s2114_s1  ;;  %v2992_v46 = vpop.f32.mrf.mxu0 }
 0x235   :  { %v2996_v29 = vpack.c.bf16 %v2992_v46, %v2992_v46 }
 0x236   :  { %1110 = vrot.lane.b32.xlu1 %v2781_v12, %s2116_s30  ;;  %v3000_v36 = vpop.f32.mrf.mxu0 }
 0x237   :  { %930 = vst.msk [vmem:[%s3841_s5 + $0x38] sm:$0xf] %vm915_vm1, %v2996_v29  ;;  %v3009_v38 = vpack.c.bf16 %v3000_v36, %v3000_v36 }
 0x238   :  { %960 = vrot.lane.b32.xlu0 %v2796_v59, %s2115_s23  ;;  %v3013_v50 = vpop.f32.mrf.mxu0  ;;  %v3015_v53 = vpop.f32.mrf.mxu1 }
 0x239   :  { %928 = vst.msk [vmem:[%s3841_s5 + $0x30] sm:$0xf] %vm915_vm1, %v3009_v38  ;;  %v3024_v17 = vpack.c.bf16 %v3013_v50, %v3013_v50  ;;  %v3028_v31 = vpack.c.bf16 %v3015_v53, %v3015_v53 }
 0x23a   :  { %1641 = vrot.lane.b32.xlu1 %v2792_v14, %s2114_s1  ;;  %v3032_v55 = vpop.f32.mrf.mxu0  ;;  %v3034_v51 = vpop.f32.mrf.mxu1 }
 0x23b   :  { %931 = vst.msk [vmem:[%s3841_s5 + $0x3c] sm:$0xf] %vm915_vm1, %v3024_v17  ;;  %v3043_v52 = vpack.c.bf16 %v3032_v55, %v3032_v55  ;;  %946 = vst.msk [vmem:[%s3841_s5 + $0x78] sm:$0xf] %vm915_vm1, %v3028_v31  ;;  %v3061_v54 = vpack.c.bf16 %v3034_v51, %v3034_v51 }
 0x23c   :  { %992 = vrot.lane.b32.xlu0 %v2827_v61, %s2115_s23  ;;  %v3052_v8 = vpop.f32.mrf.mxu1 }
 0x23d   :  { %929 = vst.msk [vmem:[%s3841_s5 + $0x34] sm:$0xf] %vm915_vm1, %v3043_v52  ;;  %944 = vst.msk [vmem:[%s3841_s5 + $0x70] sm:$0xf] %vm915_vm1, %v3061_v54  ;;  %v3074_v43 = vpack.c.bf16 %v3052_v8, %v3052_v8 }
 0x23e   :  { %1673 = vrot.lane.b32.xlu1 %v2823_v60, %s2114_s1  ;;  %v3065_v6 = vpop.f32.mrf.mxu1 }
 0x23f   :  { %947 = vst.msk [vmem:[%s3841_s5 + $0x7c] sm:$0xf] %vm915_vm1, %v3074_v43  ;;  %v3085_v58 = vpack.c.bf16 %v3065_v6, %v3065_v6 }
 0x240   :  { %1088 = vrot.lane.b32.xlu0 %v2796_v59, %s2116_s30 }
 0x241   :  { %945 = vst.msk [vmem:[%s3841_s5 + $0x74] sm:$0xf] %vm915_vm1, %v3085_v58 }
 0x242   :  { %1120 = vrot.lane.b32.xlu1 %v2827_v61, %s2116_s30 }
 0x244   :  { %956 = vrot.lane.b32.xlu0 %v2809_v28, %s2115_s23 }
 0x246   :  { %1637 = vrot.lane.b32.xlu1 %v2800_v7, %s2114_s1 }
 0x248   :  { %988 = vrot.lane.b32.xlu0 %v2856_v23, %s2115_s23 }
 0x24a   :  { %1669 = vrot.lane.b32.xlu1 %v2841_v27, %s2114_s1 }
 0x24c   :  { %1084 = vrot.lane.b32.xlu0 %v2809_v28, %s2116_s30 }
 0x24e   :  { %962 = vrot.lane.b32.xlu1 %v2821_v37, %s2115_s23 }
 0x250   :  { %1116 = vrot.lane.b32.xlu0 %v2856_v23, %s2116_s30 }
 0x252   :  { %994 = vrot.lane.b32.xlu1 %v2868_v2, %s2115_s23 }
 0x254   :  { %1643 = vrot.lane.b32.xlu0 %v2812_v44, %s2114_s1 }
 0x256   :  { %1090 = vrot.lane.b32.xlu1 %v2821_v37, %s2116_s30 }
 0x258   :  { %1675 = vrot.lane.b32.xlu0 %v2858_v0, %s2114_s1 }
 0x25a   :  { %958 = vrot.lane.b32.xlu1 %v2839_v22, %s2115_s23 }
 0x25c   :  { %1122 = vrot.lane.b32.xlu0 %v2868_v2, %s2116_s30  ;;  %v1215_v2 = vadd.f32 %v2712_v24, %v3142_v57  ;;  %v1231_v24 = vadd.f32 %v2734_v40, %v3142_v57  ;;  %v1213_v40 = vadd.f32 %v3142_v57, %v2718_v18 }
 0x25e   :  { %990 = vrot.lane.b32.xlu1 %v2874_v41, %s2115_s23  ;;  %v1245_v18 = vsub.f32 0.0, %v1213_v40  ;;  %v1236_v40 = vadd.f32 %v2858_v0, %v3142_v57 }
 0x260   :  { %1639 = vrot.lane.b32.xlu0 %v2830_v63, %s2114_s1 }
 0x262   :  { %1086 = vrot.lane.b32.xlu1 %v2839_v22, %s2116_s30 }
 0x264   :  { %1671 = vrot.lane.b32.xlu0 %v2870_v25, %s2114_s1 }
 0x266   :  { %1649 = vrot.lane.b32.xlu1 %v2889_v13, %s2114_s1 }
 0x268   :  { %1118 = vrot.lane.b32.xlu0 %v2874_v41, %s2116_s30 }
 0x26a   :  { %1681 = vrot.lane.b32.xlu1 %v2911_v15, %s2114_s1 }
 0x26c   :  { %968 = vrot.lane.b32.xlu0 %v2893_v16, %s2115_s23 }
 0x26e   :  { %1128 = vrot.lane.b32.xlu1 %v2924_v34, %s2116_s30 }
 0x270   :  { %1000 = vrot.lane.b32.xlu0 %v2924_v34, %s2115_s23  ;;  %v1216_v34 = vadd.f32 %v2726_v26, %v3142_v57 }
 0x272   :  { %1645 = vrot.lane.b32.xlu1 %v2896_v30, %s2114_s1 }
 0x274   :  { %1096 = vrot.lane.b32.xlu0 %v2893_v16, %s2116_s30 }
 0x276   :  { %1677 = vrot.lane.b32.xlu1 %v2930_v10, %s2114_s1 }
 0x277   :  { %v1634_v48 = vpop.permute.xlu1 %1633 }
 0x278   :  { %1728 = vst.msk [vmem:[%s3842_s9 + $0x10] sm:$0xff] %vm1725_vm2, %v1634_v48  ;;  %964 = vrot.lane.b32.xlu0 %v2905_v19, %s2115_s23  ;;  %v1232_v48 = vadd.f32 %v2764_v4, %v3142_v57 }
 0x27a   :  { %1124 = vrot.lane.b32.xlu1 %v2957_v35, %s2116_s30 }
 0x27c   :  { %v1666_v62 = vpop.permute.xlu1 %1665  ;;  %996 = vrot.lane.b32.xlu0 %v2957_v35, %s2115_s23 }
 0x27d   :  { %1744 = vst.msk [vmem:[%s3842_s9 + $0x90] sm:$0xff] %vm1725_vm2, %v1666_v62 }
 0x27e   :  { %970 = vrot.lane.b32.xlu1 %v2920_v1, %s2115_s23  ;;  %v985_v33 = vpop.permute.xlu0 %984 }
 0x27f   :  { %1062 = vst.msk [vmem:[%s3843_s6 + $0x48] sm:$0xf] %vm915_vm1, %v985_v33 }
 0x280   :  { %v953_v3 = vpop.permute.xlu1 %952  ;;  %1092 = vrot.lane.b32.xlu0 %v2905_v19, %s2116_s30  ;;  %v1247_v19 = vsub.f32 0.0, %v1215_v2  ;;  %v1235_v2 = vadd.f32 %v2823_v60, %v3142_v57 }
 0x281   :  { %1046 = vst.msk [vmem:[%s3843_s6 + $0x8] sm:$0xf] %vm915_vm1, %v953_v3  ;;  %v1229_v3 = vadd.f32 %v3142_v57, %v2750_v9  ;;  %v1219_v9 = vadd.f32 %v2792_v14, %v3142_v57 }
 0x282   :  { %1002 = vrot.lane.b32.xlu1 %v2961_v42, %s2115_s23  ;;  %v1081_v47 = vpop.permute.xlu0 %1080  ;;  %v1281_v35 = vmul.f32 1.442695, %v1247_v19 }
 0x283   :  { %1174 = vst.msk [vmem:[%s3844_s7 + $0x8] sm:$0xf] %vm915_vm1, %v1081_v47 }
 0x284   :  { %v1630_v21 = vpop.permute.xlu1 %1629  ;;  %1651 = vrot.lane.b32.xlu0 %v2909_v32, %s2114_s1  ;;  %1985 = vpow2.f32 %v1281_v35 }
 0x285   :  { %1726 = vst.msk [vmem:[%s3842_s9] sm:$0xff] %vm1725_vm2, %v1630_v21  ;;  %v1214_v21 = vadd.f32 %v3142_v57, %v2740_v11 }
 0x286   :  { %1098 = vrot.lane.b32.xlu1 %v2920_v1, %s2116_s30  ;;  %v1113_v12 = vpop.permute.xlu0 %1112 }
 0x287   :  { %1190 = vst.msk [vmem:[%s3844_s7 + $0x48] sm:$0xf] %vm915_vm1, %v1113_v12  ;;  %v1264_v12 = vsub.f32 0.0, %v1232_v48  ;;  %v1246_v11 = vsub.f32 0.0, %v1214_v21  ;;  %v1223_v21 = vadd.f32 %v2889_v13, %v3142_v57 }
 0x288   :  { %v1662_v59 = vpop.permute.xlu1 %1661  ;;  %1683 = vrot.lane.b32.xlu0 %v2948_v39, %s2114_s1 }
 0x289   :  { %1742 = vst.msk [vmem:[%s3842_s9 + $0x80] sm:$0xff] %vm1725_vm2, %v1662_v59  ;;  %v1315_v14 = vmul.f32 1.442695, %v1264_v12 }
 0x28a   :  { %966 = vrot.lane.b32.xlu1 %v2939_v45, %s2115_s23  ;;  %v949_v28 = vpop.permute.xlu0 %948 }
 0x28b   :  { %1044 = vst.msk [vmem:[%s3843_s6] sm:$0xf] %vm915_vm1, %v949_v28  ;;  %v1261_v28 = vsub.f32 0.0, %v1229_v3  ;;  %v1268_v3 = vsub.f32 0.0, %v1236_v40 }
 0x28c   :  { %v955_v37 = vpop.permute.xlu1 %954  ;;  %1130 = vrot.lane.b32.xlu0 %v2961_v42, %s2116_s30  ;;  %v1263_v42 = vsub.f32 0.0, %v1231_v24 }
 0x28d   :  { %1047 = vst.msk [vmem:[%s3843_s6 + $0xc] sm:$0xf] %vm915_vm1, %v955_v37  ;;  %v1323_v13 = vmul.f32 1.442695, %v1268_v3 }
 0x28e   :  { %998 = vrot.lane.b32.xlu1 %v2979_v5, %s2115_s23  ;;  %v981_v61 = vpop.permute.xlu0 %980  ;;  %v1313_v33 = vmul.f32 1.442695, %v1263_v42 }
 0x28f   :  { %1060 = vst.msk [vmem:[%s3843_s6 + $0x40] sm:$0xf] %vm915_vm1, %v981_v61  ;;  %v1230_v61 = vadd.f32 %v3142_v57, %v2773_v56  ;;  %v1220_v56 = vadd.f32 %v2812_v44, %v3142_v57 }
 0x290   :  { %v987_v22 = vpop.permute.xlu1 %986  ;;  %1647 = vrot.lane.b32.xlu0 %v2928_v49, %s2114_s1  ;;  %1987 = vpow2.f32 %v1313_v33  ;;  %v1218_v33 = vadd.f32 %v3142_v57, %v2830_v63 }
 0x291   :  { %1063 = vst.msk [vmem:[%s3843_s6 + $0x4c] sm:$0xf] %vm915_vm1, %v987_v22  ;;  %v1262_v19 = vsub.f32 0.0, %v1230_v61  ;;  %v1986_v44 = vpop.eup %1985  ;;  %v1252_v35 = vsub.f32 0.0, %v1220_v56  ;;  %v1239_v61 = vadd.f32 %v2911_v15, %v3142_v57 }
 0x292   :  { %1094 = vrot.lane.b32.xlu1 %v2939_v45, %s2116_s30  ;;  %v1077_v23 = vpop.permute.xlu0 %1076 }
 0x293   :  { %1172 = vst.msk [vmem:[%s3844_s7] sm:$0xf] %vm915_vm1, %v1077_v23  ;;  %v1251_v23 = vsub.f32 0.0, %v1219_v9  ;;  %v1250_v9 = vsub.f32 0.0, %v1218_v33 }
 0x294   :  { %v1083_v41 = vpop.permute.xlu1 %1082  ;;  %1679 = vrot.lane.b32.xlu0 %v2965_v20, %s2114_s1 }
 0x295   :  { %1175 = vst.msk [vmem:[%s3844_s7 + $0xc] sm:$0xf] %vm915_vm1, %v1083_v41  ;;  %v1289_v60 = vmul.f32 1.442695, %v1251_v23 }
 0x296   :  { %1657 = vrot.lane.b32.xlu1 %v2992_v46, %s2114_s1  ;;  %v1109_v16 = vpop.permute.xlu0 %1108 }
 0x297   :  { %1188 = vst.msk [vmem:[%s3844_s7 + $0x40] sm:$0xf] %vm915_vm1, %v1109_v16  ;;  %v1279_v16 = vmul.f32 1.442695, %v1246_v11 }
 0x298   :  { %v1115_v1 = vpop.permute.xlu1 %1114  ;;  %1126 = vrot.lane.b32.xlu0 %v2979_v5, %s2116_s30  ;;  %v1248_v5 = vsub.f32 0.0, %v1216_v34  ;;  %v1267_v34 = vsub.f32 0.0, %v1235_v2 }
 0x299   :  { %1191 = vst.msk [vmem:[%s3844_s7 + $0x4c] sm:$0xf] %vm915_vm1, %v1115_v1  ;;  %v1217_v1 = vadd.f32 %v3142_v57, %v2800_v7  ;;  %v1311_v7 = vmul.f32 1.442695, %v1262_v19  ;;  %v1221_v19 = vadd.f32 %v3142_v57, %v2896_v30 }
 0x29a   :  { %1136 = vrot.lane.b32.xlu1 %v3028_v31, %s2116_s30  ;;  %v1636_v45 = vpop.permute.xlu0 %1635  ;;  %v1283_v4 = vmul.f32 1.442695, %v1248_v5  ;;  %v1321_v48 = vmul.f32 1.442695, %v1267_v34 }
 0x29b   :  { %1729 = vst.msk [vmem:[%s3842_s9 + $0x18] sm:$0xff] %vm1725_vm2, %v1636_v45  ;;  %v1249_v5 = vsub.f32 0.0, %v1217_v1 }
 0x29c   :  { %v951_v26 = vpop.permute.xlu1 %950  ;;  %976 = vrot.lane.b32.xlu0 %v2996_v29, %s2115_s23  ;;  %1989 = vpow2.f32 %v1283_v4 }
 0x29d   :  { %1045 = vst.msk [vmem:[%s3843_s6 + $0x4] sm:$0xf] %vm915_vm1, %v951_v26  ;;  %v1343_v26 = vadd.f32 1.0, %v1986_v44  ;;  %v1988_v0 = vpop.eup %1987  ;;  %v1285_v4 = vmul.f32 1.442695, %v1249_v5 }
 0x29e   :  { %1653 = vrot.lane.b32.xlu1 %v3000_v36, %s2114_s1  ;;  %v1668_v62 = vpop.permute.xlu0 %1667  ;;  %v1359_v63 = vadd.f32 1.0, %v1988_v0 }
 0x29f   :  { %1745 = vst.msk [vmem:[%s3842_s9 + $0x98] sm:$0xff] %vm1725_vm2, %v1668_v62 }
 0x2a0   :  { %v983_v47 = vpop.permute.xlu1 %982  ;;  %1008 = vrot.lane.b32.xlu0 %v3028_v31, %s2115_s23  ;;  %v1277_v31 = vmul.f32 1.442695, %v1245_v18  ;;  %v1291_v18 = vmul.f32 1.442695, %v1252_v35 }
 0x2a1   :  { %1061 = vst.msk [vmem:[%s3843_s6 + $0x44] sm:$0xf] %vm915_vm1, %v983_v47 }
 0x2a2   :  { %1685 = vrot.lane.b32.xlu1 %v3034_v51, %s2114_s1  ;;  %v1632_v59 = vpop.permute.xlu0 %1631  ;;  %1991 = vpow2.f32 %v1277_v31  ;;  %v1234_v31 = vadd.f32 %v3142_v57, %v2870_v25 }
 0x2a3   :  { %1727 = vst.msk [vmem:[%s3842_s9 + $0x8] sm:$0xff] %vm1725_vm2, %v1632_v59  ;;  %1993 = vpow2.f32 %v1315_v14  ;;  %v1255_v14 = vsub.f32 0.0, %v1223_v21 }
 0x2a4   :  { %v1079_v37 = vpop.permute.xlu1 %1078  ;;  %1104 = vrot.lane.b32.xlu0 %v2996_v29, %s2116_s30  ;;  %v1309_v29 = vmul.f32 1.442695, %v1261_v28  ;;  %v1266_v2 = vsub.f32 0.0, %v1234_v31 }
 0x2a5   :  { %1173 = vst.msk [vmem:[%s3844_s7 + $0x4] sm:$0xf] %vm915_vm1, %v1079_v37 }
 0x2a6   :  { %1132 = vrot.lane.b32.xlu1 %v3061_v54, %s2116_s30  ;;  %v1664_v22 = vpop.permute.xlu0 %1663  ;;  %1995 = vpow2.f32 %v1309_v29  ;;  %v1287_v29 = vmul.f32 1.442695, %v1250_v9  ;;  %v1319_v44 = vmul.f32 1.442695, %v1266_v2  ;;  %v1238_v9 = vadd.f32 %v3142_v57, %v2965_v20 }
 0x2a7   :  { %1743 = vst.msk [vmem:[%s3842_s9 + $0x88] sm:$0xff] %vm1725_vm2, %v1664_v22  ;;  %1997 = vpow2.f32 %v1279_v16 }
 0x2a8   :  { %v1111_v41 = vpop.permute.xlu1 %1110  ;;  %972 = vrot.lane.b32.xlu0 %v3009_v38, %s2115_s23  ;;  %1999 = vpow2.f32 %v1289_v60  ;;  %v1271_v60 = vsub.f32 0.0, %v1239_v61 }
 0x2a9   :  { %1189 = vst.msk [vmem:[%s3844_s7 + $0x44] sm:$0xf] %vm915_vm1, %v1111_v41  ;;  %2001 = vpow2.f32 %v1311_v7  ;;  %v1224_v41 = vadd.f32 %v2909_v32, %v3142_v57 }
 0x2aa   :  { %978 = vrot.lane.b32.xlu1 %v3024_v17, %s2115_s23  ;;  %v961_v24 = vpop.permute.xlu0 %960  ;;  %2003 = vrcp.f32 %v1343_v26  ;;  %v1329_v5 = vmul.f32 1.442695, %v1271_v60 }
 0x2ab   :  { %1050 = vst.msk [vmem:[%s3843_s6 + $0x18] sm:$0xf] %vm915_vm1, %v961_v24  ;;  %2005 = vpow2.f32 %v1321_v48  ;;  %v1256_v34 = vsub.f32 0.0, %v1224_v41 }
 0x2ac   :  { %v1642_v45 = vpop.permute.xlu1 %1641  ;;  %1004 = vrot.lane.b32.xlu0 %v3061_v54, %s2115_s23  ;;  %v1233_v54 = vadd.f32 %v3142_v57, %v2841_v27  ;;  %v1990_v27 = vpop.eup %1989  ;;  %2007 = vpow2.f32 %v1291_v18 }
 0x2ad   :  { %1732 = vst.msk [vmem:[%s3842_s9 + $0x30] sm:$0xff] %vm1725_vm2, %v1642_v45  ;;  %2009 = vpow2.f32 %v1285_v4  ;;  %v1240_v45 = vadd.f32 %v2948_v39, %v3142_v57  ;;  %v1299_v48 = vmul.f32 1.442695, %v1256_v34  ;;  %v1227_v4 = vadd.f32 %v2992_v46, %v3142_v57 }
 0x2ae   :  { %1010 = vrot.lane.b32.xlu1 %v3074_v43, %s2115_s23  ;;  %v993_v42 = vpop.permute.xlu0 %992  ;;  %2011 = vrcp.f32 %v1359_v63 }
 0x2af   :  { %1066 = vst.msk [vmem:[%s3843_s6 + $0x58] sm:$0xf] %vm915_vm1, %v993_v42  ;;  %v1992_v59 = vpop.eup %1991  ;;  %v1253_v42 = vsub.f32 0.0, %v1221_v19  ;;  %v1272_v33 = vsub.f32 0.0, %v1240_v45 }
 0x2b0   :  { %v1674_v62 = vpop.permute.xlu1 %1673  ;;  %1100 = vrot.lane.b32.xlu0 %v3009_v38, %s2116_s30  ;;  %v1265_v38 = vsub.f32 0.0, %v1233_v54  ;;  %v1994_v37 = vpop.eup %1993  ;;  %v1341_v25 = vadd.f32 1.0, %v1992_v59  ;;  %v1237_v54 = vadd.f32 %v3142_v57, %v2930_v10 }
 0x2b1   :  { %1748 = vst.msk [vmem:[%s3842_s9 + $0xb0] sm:$0xff] %vm1725_vm2, %v1674_v62  ;;  %v1360_v56 = vadd.f32 1.0, %v1994_v37  ;;  %v1222_v62 = vadd.f32 %v3142_v57, %v2928_v49  ;;  %v1259_v37 = vsub.f32 0.0, %v1227_v4 }
 0x2b2   :  { %1106 = vrot.lane.b32.xlu1 %v3024_v17, %s2116_s30  ;;  %v1089_v47 = vpop.permute.xlu0 %1088  ;;  %v1344_v17 = vadd.f32 1.0, %v1990_v27  ;;  %v1317_v11 = vmul.f32 1.442695, %v1265_v38  ;;  %v1293_v27 = vmul.f32 1.442695, %v1253_v42  ;;  %v1241_v42 = vadd.f32 %v3142_v57, %v3034_v51 }
 0x2b3   :  { %1178 = vst.msk [vmem:[%s3844_s7 + $0x18] sm:$0xf] %vm915_vm1, %v1089_v47  ;;  %v1996_v23 = vpop.eup %1995  ;;  %v1269_v47 = vsub.f32 0.0, %v1237_v54 }
 0x2b4   :  { %v1121_v12 = vpop.permute.xlu1 %1120  ;;  %1659 = vrot.lane.b32.xlu0 %v3013_v50, %s2114_s1  ;;  %2013 = vrcp.f32 %v1344_v17  ;;  %v1998_v16 = vpop.eup %1997  ;;  %v1357_v24 = vadd.f32 1.0, %v1996_v23  ;;  %v1331_v17 = vmul.f32 1.442695, %v1272_v33  ;;  %v1270_v23 = vsub.f32 0.0, %v1238_v9 }
 0x2b5   :  { %1194 = vst.msk [vmem:[%s3844_s7 + $0x58] sm:$0xf] %vm915_vm1, %v1121_v12  ;;  %2015 = vpow2.f32 %v1323_v13  ;;  %v2000_v32 = vpop.eup %1999  ;;  %v1342_v30 = vadd.f32 1.0, %v1998_v16  ;;  %v1254_v12 = vsub.f32 0.0, %v1222_v62 }
 0x2b6   :  { %974 = vrot.lane.b32.xlu1 %v3043_v52, %s2115_s23  ;;  %v957_v28 = vpop.permute.xlu0 %956  ;;  %2017 = vpow2.f32 %v1317_v11  ;;  %v2002_v7 = vpop.eup %2001  ;;  %v1347_v40 = vadd.f32 1.0, %v2000_v32  ;;  %v1243_v11 = vadd.f32 %v3015_v53, %v3142_v57  ;;  %v1327_v60 = vmul.f32 1.442695, %v1270_v23 }
 0x2b7   :  { %1048 = vst.msk [vmem:[%s3843_s6 + $0x10] sm:$0xf] %vm915_vm1, %v957_v28  ;;  %2019 = vrcp.f32 %v1341_v25  ;;  %v2004_v26 = vpop.eup %2003  ;;  %v1358_v18 = vadd.f32 1.0, %v2002_v7  ;;  %v1325_v28 = vmul.f32 1.442695, %v1269_v47 }
 0x2b8   :  { %v1638_v22 = vpop.permute.xlu1 %1637  ;;  %1138 = vrot.lane.b32.xlu0 %v3074_v43, %s2116_s30  ;;  %v1297_v43 = vmul.f32 1.442695, %v1255_v14  ;;  %2021 = vpow2.f32 %v1287_v29  ;;  %v1295_v25 = vmul.f32 1.442695, %v1254_v12  ;;  %v1228_v29 = vadd.f32 %v3013_v50, %v3142_v57 }
 0x2b9   :  { %1730 = vst.msk [vmem:[%s3842_s9 + $0x20] sm:$0xff] %vm1725_vm2, %v1638_v22  ;;  %2023 = vrcp.f32 %v1360_v56  ;;  %v1275_v19 = vsub.f32 0.0, %v1243_v11 }
 0x2ba   :  { %1006 = vrot.lane.b32.xlu1 %v3085_v58, %s2115_s23  ;;  %v989_v15 = vpop.permute.xlu0 %988  ;;  %2025 = vpow2.f32 %v1297_v43  ;;  %v1305_v43 = vmul.f32 1.442695, %v1259_v37 }
 0x2bb   :  { %1064 = vst.msk [vmem:[%s3843_s6 + $0x50] sm:$0xf] %vm915_vm1, %v989_v15  ;;  %2027 = vrcp.f32 %v1357_v24  ;;  %v1225_v15 = vadd.f32 %v3142_v57, %v3000_v36 }
 0x2bc   :  { %v1670_v1 = vpop.permute.xlu1 %1669  ;;  %1655 = vrot.lane.b32.xlu0 %v3032_v55, %s2114_s1  ;;  %2029 = vpow2.f32 %v1319_v44  ;;  %v1244_v44 = vadd.f32 %v3052_v8, %v3142_v57 }
 0x2bd   :  { %1746 = vst.msk [vmem:[%s3842_s9 + $0xa0] sm:$0xff] %vm1725_vm2, %v1670_v1  ;;  %2031 = vrcp.f32 %v1342_v30  ;;  %v1260_v1 = vsub.f32 0.0, %v1228_v29 }
 0x2be   :  { %1102 = vrot.lane.b32.xlu1 %v3043_v52, %s2116_s30  ;;  %v1085_v35 = vpop.permute.xlu0 %1084  ;;  %v2006_v52 = vpop.eup %2005  ;;  %2033 = vrcp.f32 %v1347_v40  ;;  %v1337_v40 = vmul.f32 1.442695, %v1275_v19  ;;  %v1276_v62 = vsub.f32 0.0, %v1244_v44 }
 0x2bf   :  { %1176 = vst.msk [vmem:[%s3844_s7 + $0x10] sm:$0xf] %vm915_vm1, %v1085_v35  ;;  %v2008_v0 = vpop.eup %2007  ;;  %v1363_v3 = vadd.f32 1.0, %v2006_v52  ;;  %2035 = vpow2.f32 %v1329_v5  ;;  %v1257_v35 = vsub.f32 0.0, %v1225_v15 }
 0x2c0   :  { %v963_v39 = vpop.permute.xlu1 %962  ;;  %1687 = vrot.lane.b32.xlu0 %v3065_v6, %s2114_s1  ;;  %v2010_v49 = vpop.eup %2009  ;;  %v1348_v63 = vadd.f32 1.0, %v2008_v0  ;;  %2037 = vpow2.f32 %v1299_v48  ;;  %v1307_v48 = vmul.f32 1.442695, %v1260_v1 }
 0x2c1   :  { %1051 = vst.msk [vmem:[%s3843_s6 + $0x1c] sm:$0xf] %vm915_vm1, %v963_v39  ;;  %v2012_v21 = vpop.eup %2011  ;;  %2039 = vrcp.f32 %v1358_v18  ;;  %v1226_v39 = vadd.f32 %v3142_v57, %v3032_v55  ;;  %v1301_v18 = vmul.f32 1.442695, %v1257_v35 }
 0x2c2   :  { %1473 = vrot.lane.b32.xlu1 %v2004_v26, %s2117_s11  ;;  %v1117_v10 = vpop.permute.xlu0 %1116  ;;  %v2014_v59 = vpop.eup %2013  ;;  %2041 = vpow2.f32 %v1293_v27 }
 0x2c3   :  { %1192 = vst.msk [vmem:[%s3844_s7 + $0x50] sm:$0xf] %vm915_vm1, %v1117_v10  ;;  %v2016_v31 = vpop.eup %2015  ;;  %2043 = vrcp.f32 %v1363_v3  ;;  %v1273_v10 = vsub.f32 0.0, %v1241_v42  ;;  %v1258_v47 = vsub.f32 0.0, %v1226_v39 }
 0x2c4   :  { %v995_v38 = vpop.permute.xlu1 %994  ;;  %1134 = vrot.lane.b32.xlu0 %v3085_v58, %s2116_s30  ;;  %v1345_v58 = vadd.f32 1.0, %v2010_v49  ;;  %v2018_v13 = vpop.eup %2017  ;;  %2045 = vrcp.f32 %v1348_v63  ;;  %v1364_v22 = vadd.f32 1.0, %v2016_v31 }
 0x2c5   :  { %1067 = vst.msk [vmem:[%s3843_s6 + $0x5c] sm:$0xf] %vm915_vm1, %v995_v38  ;;  %v2020_v20 = vpop.eup %2019  ;;  %2047 = vpow2.f32 %v1331_v17  ;;  %v1361_v56 = vadd.f32 1.0, %v2018_v13  ;;  %v1339_v38 = vmul.f32 1.442695, %v1276_v62 }
 0x2c6   :  { %1505 = vrot.lane.b32.xlu1 %v2012_v21, %s2117_s11  ;;  %v1644_v46 = vpop.permute.xlu0 %1643  ;;  %v2022_v61 = vpop.eup %2021  ;;  %2049 = vrcp.f32 %v1345_v58  ;;  %v1242_v21 = vadd.f32 %v3142_v57, %v3065_v6  ;;  %v1333_v9 = vmul.f32 1.442695, %v1273_v10  ;;  %v1303_v6 = vmul.f32 1.442695, %v1258_v47 }
 0x2c7   :  { %1733 = vst.msk [vmem:[%s3842_s9 + $0x38] sm:$0xff] %vm1725_vm2, %v1644_v46  ;;  %v2024_v41 = vpop.eup %2023  ;;  %2051 = vpow2.f32 %v1325_v28  ;;  %v1346_v24 = vadd.f32 1.0, %v2022_v61 }
 0x2c8   :  { %v1091_v14 = vpop.permute.xlu1 %1090  ;;  %1475 = vrot.lane.b32.xlu0 %v2014_v59, %s2117_s11  ;;  %v2026_v16 = vpop.eup %2025  ;;  %2053 = vpow2.f32 %v1295_v25  ;;  %v1274_v13 = vsub.f32 0.0, %v1242_v21 }
 0x2c9   :  { %1179 = vst.msk [vmem:[%s3844_s7 + $0x1c] sm:$0xf] %vm915_vm1, %v1091_v14  ;;  %v2028_v50 = vpop.eup %2027  ;;  %2055 = vrcp.f32 %v1364_v22  ;;  %v1351_v45 = vadd.f32 1.0, %v2026_v16 }
 0x2ca   :  { %1469 = vrot.lane.b32.xlu1 %v2020_v20, %s2117_s11  ;;  %v1676_v2 = vpop.permute.xlu0 %1675  ;;  %v2030_v36 = vpop.eup %2029  ;;  %2057 = vrcp.f32 %v1361_v56  ;;  %v1335_v23 = vmul.f32 1.442695, %v1274_v13 }
 0x2cb   :  { %1749 = vst.msk [vmem:[%s3842_s9 + $0xb8] sm:$0xff] %vm1725_vm2, %v1676_v2  ;;  %v2032_v30 = vpop.eup %2031  ;;  %2059 = vpow2.f32 %v1305_v43  ;;  %v1362_v54 = vadd.f32 1.0, %v2030_v36 }
 0x2cc   :  { %v959_v32 = vpop.permute.xlu1 %958  ;;  %1507 = vrot.lane.b32.xlu0 %v2024_v41, %s2117_s11  ;;  %v2034_v7 = vpop.eup %2033  ;;  %2061 = vrcp.f32 %v1346_v24 }
 0x2cd   :  { %1049 = vst.msk [vmem:[%s3843_s6 + $0x14] sm:$0xf] %vm915_vm1, %v959_v32  ;;  %v2036_v5 = vpop.eup %2035  ;;  %2063 = vpow2.f32 %v1327_v60 }
 0x2ce   :  { %1501 = vrot.lane.b32.xlu1 %v2028_v50, %s2117_s11  ;;  %v1123_v34 = vpop.permute.xlu0 %1122  ;;  %v2038_v52 = vpop.eup %2037  ;;  %2065 = vrcp.f32 %v1351_v45  ;;  %v1367_v33 = vadd.f32 1.0, %v2036_v5 }
 0x2cf   :  { %1195 = vst.msk [vmem:[%s3844_s7 + $0x5c] sm:$0xf] %vm915_vm1, %v1123_v34  ;;  %v2040_v0 = vpop.eup %2039  ;;  %2067 = vpow2.f32 %v1337_v40  ;;  %v1352_v3 = vadd.f32 1.0, %v2038_v52 }
 0x2d0   :  { %v991_v26 = vpop.permute.xlu1 %990  ;;  %1471 = vrot.lane.b32.xlu0 %v2032_v30, %s2117_s11  ;;  %v2042_v55 = vpop.eup %2041  ;;  %2069 = vrcp.f32 %v1362_v54 }
 0x2d1   :  { %1065 = vst.msk [vmem:[%s3843_s6 + $0x54] sm:$0xf] %vm915_vm1, %v991_v26  ;;  %v2044_v49 = vpop.eup %2043  ;;  %2071 = vpow2.f32 %v1307_v48  ;;  %v1349_v59 = vadd.f32 1.0, %v2042_v55 }
 0x2d2   :  { %1481 = vrot.lane.b32.xlu1 %v2034_v7, %s2117_s11  ;;  %v1640_v51 = vpop.permute.xlu0 %1639  ;;  %v2046_v4 = vpop.eup %2045  ;;  %2073 = vpow2.f32 %v1301_v18 }
 0x2d3   :  { %1731 = vst.msk [vmem:[%s3842_s9 + $0x28] sm:$0xff] %vm1725_vm2, %v1640_v51  ;;  %v2048_v12 = vpop.eup %2047  ;;  %2075 = vrcp.f32 %v1367_v33 }
 0x2d4   :  { %v1087_v27 = vpop.permute.xlu1 %1086  ;;  %1503 = vrot.lane.b32.xlu0 %v2040_v0, %s2117_s11  ;;  %v2050_v17 = vpop.eup %2049  ;;  %2077 = vrcp.f32 %v1352_v3  ;;  %v1368_v58 = vadd.f32 1.0, %v2048_v12 }
 0x2d5   :  { %1177 = vst.msk [vmem:[%s3844_s7 + $0x14] sm:$0xf] %vm915_vm1, %v1087_v27  ;;  %v2052_v31 = vpop.eup %2051  ;;  %2079 = vpow2.f32 %v1339_v38 }
 0x2d6   :  { %1513 = vrot.lane.b32.xlu1 %v2044_v49, %s2117_s11  ;;  %v1672_v63 = vpop.permute.xlu0 %1671  ;;  %v2054_v57 = vpop.eup %2053  ;;  %2081 = vrcp.f32 %v1349_v59  ;;  %v1365_v14 = vadd.f32 1.0, %v2052_v31 }
 0x2d7   :  { %1747 = vst.msk [vmem:[%s3842_s9 + $0xa8] sm:$0xff] %vm1725_vm2, %v1672_v63  ;;  %v2056_v37 = vpop.eup %2055  ;;  %2083 = vpow2.f32 %v1333_v9  ;;  %v1350_v61 = vadd.f32 1.0, %v2054_v57 }
 0x2d8   :  { %v1650_v46 = vpop.permute.xlu1 %1649  ;;  %1483 = vrot.lane.b32.xlu0 %v2046_v4, %s2117_s11  ;;  %v2058_v11 = vpop.eup %2057  ;;  %2085 = vpow2.f32 %v1303_v6 }
 0x2d9   :  { %1736 = vst.msk [vmem:[%s3842_s9 + $0x50] sm:$0xff] %vm1725_vm2, %v1650_v46  ;;  %v2060_v25 = vpop.eup %2059  ;;  %2087 = vrcp.f32 %v1368_v58 }
 0x2da   :  { %1477 = vrot.lane.b32.xlu1 %v2050_v17, %s2117_s11  ;;  %v1119_v28 = vpop.permute.xlu0 %1118  ;;  %v2062_v22 = vpop.eup %2061  ;;  %2089 = vrcp.f32 %v1365_v14  ;;  %v1355_v56 = vadd.f32 1.0, %v2060_v25 }
 0x2db   :  { %1193 = vst.msk [vmem:[%s3844_s7 + $0x54] sm:$0xf] %vm915_vm1, %v1119_v28  ;;  %v2064_v2 = vpop.eup %2063  ;;  %2091 = vrcp.f32 %v1350_v61 }
 0x2dc   :  { %v1682_v20 = vpop.permute.xlu1 %1681  ;;  %1515 = vrot.lane.b32.xlu0 %v2056_v37, %s2117_s11  ;;  %v2066_v41 = vpop.eup %2065  ;;  %v1366_v19 = vadd.f32 1.0, %v2064_v2  ;;  %2093 = vpow2.f32 %v1335_v23 }
 0x2dd   :  { %1752 = vst.msk [vmem:[%s3842_s9 + $0xd0] sm:$0xff] %vm1725_vm2, %v1682_v20  ;;  %v2068_v16 = vpop.eup %2067  ;;  %2095 = vrcp.f32 %v1355_v56 }
 0x2de   :  { %1509 = vrot.lane.b32.xlu1 %v2058_v11, %s2117_s11  ;;  %v969_v29 = vpop.permute.xlu0 %968  ;;  %v2070_v43 = vpop.eup %2069  ;;  %v1371_v36 = vadd.f32 1.0, %v2068_v16  ;;  %2097 = vrcp.f32 %v1366_v19 }
 0x2df   :  { %1054 = vst.msk [vmem:[%s3843_s6 + $0x28] sm:$0xf] %vm915_vm1, %v969_v29  ;;  %v2072_v50 = vpop.eup %2071 }
 0x2e0   :  { %v1129_v15 = vpop.permute.xlu1 %1128  ;;  %1479 = vrot.lane.b32.xlu0 %v2062_v22, %s2117_s11  ;;  %v2074_v24 = vpop.eup %2073  ;;  %v1356_v34 = vadd.f32 1.0, %v2072_v50  ;;  %2099 = vrcp.f32 %v1371_v36 }
 0x2e1   :  { %1198 = vst.msk [vmem:[%s3844_s7 + $0x68] sm:$0xf] %vm915_vm1, %v1129_v15  ;;  %v2076_v1 = vpop.eup %2075  ;;  %v1353_v7 = vadd.f32 1.0, %v2074_v24 }
 0x2e2   :  { %1489 = vrot.lane.b32.xlu1 %v2066_v41, %s2117_s11  ;;  %v1001_v32 = vpop.permute.xlu0 %1000  ;;  %v2078_v44 = vpop.eup %2077  ;;  %2101 = vrcp.f32 %v1356_v34 }
 0x2e3   :  { %1070 = vst.msk [vmem:[%s3843_s6 + $0x68] sm:$0xf] %vm915_vm1, %v1001_v32  ;;  %v2080_v45 = vpop.eup %2079  ;;  %2103 = vrcp.f32 %v1353_v7 }
 0x2e4   :  { %v1646_v60 = vpop.permute.xlu1 %1645  ;;  %1511 = vrot.lane.b32.xlu0 %v2070_v43, %s2117_s11  ;;  %v2082_v35 = vpop.eup %2081  ;;  %v1372_v5 = vadd.f32 1.0, %v2080_v45 }
 0x2e5   :  { %1734 = vst.msk [vmem:[%s3842_s9 + $0x40] sm:$0xff] %vm1725_vm2, %v1646_v60  ;;  %v2084_v42 = vpop.eup %2083 }
 0x2e6   :  { %1521 = vrot.lane.b32.xlu1 %v2076_v1, %s2117_s11  ;;  %v1097_v30 = vpop.permute.xlu0 %1096  ;;  %v2086_v26 = vpop.eup %2085  ;;  %v1369_v52 = vadd.f32 1.0, %v2084_v42  ;;  %2105 = vrcp.f32 %v1372_v5 }
 0x2e7   :  { %1182 = vst.msk [vmem:[%s3844_s7 + $0x28] sm:$0xf] %vm915_vm1, %v1097_v30  ;;  %v2088_v39 = vpop.eup %2087  ;;  %v1354_v0 = vadd.f32 1.0, %v2086_v26 }
 0x2e8   :  { %v1678_v40 = vpop.permute.xlu1 %1677  ;;  %1491 = vrot.lane.b32.xlu0 %v2078_v44, %s2117_s11  ;;  %v2090_v62 = vpop.eup %2089  ;;  %2107 = vrcp.f32 %v1369_v52 }
 0x2e9   :  { %1750 = vst.msk [vmem:[%s3842_s9 + $0xc0] sm:$0xff] %vm1725_vm2, %v1678_v40  ;;  %v2092_v51 = vpop.eup %2091  ;;  %2109 = vrcp.f32 %v1354_v0 }
 0x2ea   :  { %1485 = vrot.lane.b32.xlu1 %v2082_v35, %s2117_s11  ;;  %v965_v54 = vpop.permute.xlu0 %964  ;;  %v2094_v55 = vpop.eup %2093 }
 0x2eb   :  { %1052 = vst.msk [vmem:[%s3843_s6 + $0x20] sm:$0xf] %vm915_vm1, %v965_v54  ;;  %v2096_v10 = vpop.eup %2095  ;;  %v1370_v27 = vadd.f32 1.0, %v2094_v55 }
 0x2ec   :  { %v1125_v48 = vpop.permute.xlu1 %1124  ;;  %1523 = vrot.lane.b32.xlu0 %v2088_v39, %s2117_s11  ;;  %v2098_v3 = vpop.eup %2097 }
 0x2ed   :  { %1196 = vst.msk [vmem:[%s3844_s7 + $0x60] sm:$0xf] %vm915_vm1, %v1125_v48  ;;  %v2100_v4 = vpop.eup %2099  ;;  %2111 = vrcp.f32 %v1370_v27 }
 0x2ee   :  { %1517 = vrot.lane.b32.xlu1 %v2090_v62, %s2117_s11  ;;  %v997_v18 = vpop.permute.xlu0 %996 }
 0x2ef   :  { %1068 = vst.msk [vmem:[%s3843_s6 + $0x60] sm:$0xf] %vm915_vm1, %v997_v18  ;;  %v2102_v21 = vpop.eup %2101 }
 0x2f0   :  { %v971_v33 = vpop.permute.xlu1 %970  ;;  %1487 = vrot.lane.b32.xlu0 %v2092_v51, %s2117_s11  ;;  %v2104_v12 = vpop.eup %2103 }
 0x2f1   :  { %1055 = vst.msk [vmem:[%s3843_s6 + $0x2c] sm:$0xf] %vm915_vm1, %v971_v33 }
 0x2f2   :  { %1497 = vrot.lane.b32.xlu1 %v2096_v10, %s2117_s11  ;;  %v1093_v49 = vpop.permute.xlu0 %1092 }
 0x2f3   :  { %1180 = vst.msk [vmem:[%s3844_s7 + $0x20] sm:$0xf] %vm915_vm1, %v1093_v49  ;;  %v2106_v17 = vpop.eup %2105 }
 0x2f4   :  { %v1003_v47 = vpop.permute.xlu1 %1002  ;;  %1519 = vrot.lane.b32.xlu0 %v2098_v3, %s2117_s11 }
 0x2f5   :  { %1071 = vst.msk [vmem:[%s3843_s6 + $0x6c] sm:$0xf] %vm915_vm1, %v1003_v47  ;;  %v2108_v46 = vpop.eup %2107 }
 0x2f6   :  { %1529 = vrot.lane.b32.xlu1 %v2100_v4, %s2117_s11  ;;  %v1652_v38 = vpop.permute.xlu0 %1651  ;;  %v2110_v6 = vpop.eup %2109 }
 0x2f7   :  { %1737 = vst.msk [vmem:[%s3842_s9 + $0x58] sm:$0xff] %vm1725_vm2, %v1652_v38 }
 0x2f8   :  { %v1099_v63 = vpop.permute.xlu1 %1098  ;;  %1499 = vrot.lane.b32.xlu0 %v2102_v21, %s2117_s11 }
 0x2f9   :  { %1183 = vst.msk [vmem:[%s3844_s7 + $0x2c] sm:$0xf] %vm915_vm1, %v1099_v63 }
 0x2fa   :  { %1493 = vrot.lane.b32.xlu1 %v2104_v12, %s2117_s11  ;;  %v1684_v59 = vpop.permute.xlu0 %1683  ;;  %v2112_v13 = vpop.eup %2111 }
 0x2fb   :  { %1753 = vst.msk [vmem:[%s3842_s9 + $0xd8] sm:$0xff] %vm1725_vm2, %v1684_v59 }
 0x2fc   :  { %v967_v9 = vpop.permute.xlu1 %966  ;;  %1531 = vrot.lane.b32.xlu0 %v2106_v17, %s2117_s11 }
 0x2fd   :  { %1053 = vst.msk [vmem:[%s3843_s6 + $0x24] sm:$0xf] %vm915_vm1, %v967_v9 }
 0x2fe   :  { %1525 = vrot.lane.b32.xlu1 %v2108_v46, %s2117_s11  ;;  %v1131_v31 = vpop.permute.xlu0 %1130 }
 0x2ff   :  { %1199 = vst.msk [vmem:[%s3844_s7 + $0x6c] sm:$0xf] %vm915_vm1, %v1131_v31 }
 0x300   :  { %v999_v57 = vpop.permute.xlu1 %998  ;;  %1495 = vrot.lane.b32.xlu0 %v2110_v6, %s2117_s11 }
 0x301   :  { %1069 = vst.msk [vmem:[%s3843_s6 + $0x64] sm:$0xf] %vm915_vm1, %v999_v57 }
 0x302   :  { %1689 = vrot.lane.b32.xlu1 %v3015_v53, %s2114_s1  ;;  %v1648_v58 = vpop.permute.xlu0 %1647 }
 0x303   :  { %1735 = vst.msk [vmem:[%s3842_s9 + $0x48] sm:$0xff] %vm1725_vm2, %v1648_v58 }
 0x304   :  { %v1095_v28 = vpop.permute.xlu1 %1094  ;;  %1527 = vrot.lane.b32.xlu0 %v2112_v13, %s2117_s11 }
 0x305   :  { %1181 = vst.msk [vmem:[%s3844_s7 + $0x24] sm:$0xf] %vm915_vm1, %v1095_v28 }
 0x306   :  { %v1680_v37 = vpop.permute.xlu0 %1679 }
 0x307   :  { %1751 = vst.msk [vmem:[%s3842_s9 + $0xc8] sm:$0xff] %vm1725_vm2, %v1680_v37 }
 0x308   :  { %v1658_v53 = vpop.permute.xlu1 %1657  ;;  %1691 = vrot.lane.b32.xlu0 %v3052_v8, %s2114_s1 }
 0x309   :  { %1740 = vst.msk [vmem:[%s3842_s9 + $0x70] sm:$0xff] %vm1725_vm2, %v1658_v53 }
 0x30a   :  { %v1127_v11 = vpop.permute.xlu0 %1126 }
 0x30b   :  { %1197 = vst.msk [vmem:[%s3844_s7 + $0x64] sm:$0xf] %vm915_vm1, %v1127_v11 }
 0x30c   :  { %v1137_v14 = vpop.permute.xlu1 %1136 }
 0x30d   :  { %1202 = vst.msk [vmem:[%s3844_s7 + $0x78] sm:$0xf] %vm915_vm1, %v1137_v14 }
 0x30e   :  { %v977_v20 = vpop.permute.xlu0 %976 }
 0x30f   :  { %1058 = vst.msk [vmem:[%s3843_s6 + $0x38] sm:$0xf] %vm915_vm1, %v977_v20 }
 0x310   :  { %v1654_v8 = vpop.permute.xlu1 %1653 }
 0x311   :  { %1738 = vst.msk [vmem:[%s3842_s9 + $0x60] sm:$0xff] %vm1725_vm2, %v1654_v8 }
 0x312   :  { %v1009_v25 = vpop.permute.xlu0 %1008 }
 0x313   :  { %1074 = vst.msk [vmem:[%s3843_s6 + $0x78] sm:$0xf] %vm915_vm1, %v1009_v25 }
 0x314   :  { %v1686_v61 = vpop.permute.xlu1 %1685 }
 0x315   :  { %1754 = vst.msk [vmem:[%s3842_s9 + $0xe0] sm:$0xff] %vm1725_vm2, %v1686_v61 }
 0x316   :  { %v1105_v22 = vpop.permute.xlu0 %1104 }
 0x317   :  { %1186 = vst.msk [vmem:[%s3844_s7 + $0x38] sm:$0xf] %vm915_vm1, %v1105_v22 }
 0x318   :  { %v1133_v23 = vpop.permute.xlu1 %1132 }
 0x319   :  { %1200 = vst.msk [vmem:[%s3844_s7 + $0x70] sm:$0xf] %vm915_vm1, %v1133_v23 }
 0x31a   :  { %v973_v29 = vpop.permute.xlu0 %972 }
 0x31b   :  { %1056 = vst.msk [vmem:[%s3843_s6 + $0x30] sm:$0xf] %vm915_vm1, %v973_v29 }
 0x31c   :  { %v979_v2 = vpop.permute.xlu1 %978 }
 0x31d   :  { %1059 = vst.msk [vmem:[%s3843_s6 + $0x3c] sm:$0xf] %vm915_vm1, %v979_v2 }
 0x31e   :  { %v1005_v41 = vpop.permute.xlu0 %1004 }
 0x31f   :  { %1072 = vst.msk [vmem:[%s3843_s6 + $0x70] sm:$0xf] %vm915_vm1, %v1005_v41 }
 0x320   :  { %v1011_v56 = vpop.permute.xlu1 %1010 }
 0x321   :  { %1075 = vst.msk [vmem:[%s3843_s6 + $0x7c] sm:$0xf] %vm915_vm1, %v1011_v56 }
 0x322   :  { %v1101_v15 = vpop.permute.xlu0 %1100 }
 0x323   :  { %1184 = vst.msk [vmem:[%s3844_s7 + $0x30] sm:$0xf] %vm915_vm1, %v1101_v15 }
 0x324   :  { %v1107_v16 = vpop.permute.xlu1 %1106 }
 0x325   :  { %1187 = vst.msk [vmem:[%s3844_s7 + $0x3c] sm:$0xf] %vm915_vm1, %v1107_v16 }
 0x326   :  { %v1660_v43 = vpop.permute.xlu0 %1659 }
 0x327   :  { %1741 = vst.msk [vmem:[%s3842_s9 + $0x78] sm:$0xff] %vm1725_vm2, %v1660_v43 }
 0x328   :  { %v975_v19 = vpop.permute.xlu1 %974 }
 0x329   :  { %1057 = vst.msk [vmem:[%s3843_s6 + $0x34] sm:$0xf] %vm915_vm1, %v975_v19 }
 0x32a   :  { %v1139_v32 = vpop.permute.xlu0 %1138 }
 0x32b   :  { %1203 = vst.msk [vmem:[%s3844_s7 + $0x7c] sm:$0xf] %vm915_vm1, %v1139_v32 }
 0x32c   :  { %v1007_v50 = vpop.permute.xlu1 %1006 }
 0x32d   :  { %1073 = vst.msk [vmem:[%s3843_s6 + $0x74] sm:$0xf] %vm915_vm1, %v1007_v50 }
 0x32e   :  { %v1656_v24 = vpop.permute.xlu0 %1655 }
 0x32f   :  { %1739 = vst.msk [vmem:[%s3842_s9 + $0x68] sm:$0xff] %vm1725_vm2, %v1656_v24 }
 0x330   :  { %v1103_v36 = vpop.permute.xlu1 %1102 }
 0x331   :  { %1185 = vst.msk [vmem:[%s3844_s7 + $0x34] sm:$0xf] %vm915_vm1, %v1103_v36 }
 0x332   :  { %v1688_v60 = vpop.permute.xlu0 %1687 }
 0x333   :  { %1755 = vst.msk [vmem:[%s3842_s9 + $0xe8] sm:$0xff] %vm1725_vm2, %v1688_v60 }
 0x334   :  { %v1474_v1 = vpop.permute.xlu1 %1473 }
 0x335   :  { %1567 = vst.msk [vmem:[%s3845_s8 + $0x10] sm:$0xff] %vm60_vm0, %v1474_v1 }
 0x336   :  { %v1135_v44 = vpop.permute.xlu0 %1134 }
 0x337   :  { %1201 = vst.msk [vmem:[%s3844_s7 + $0x74] sm:$0xf] %vm915_vm1, %v1135_v44 }
 0x338   :  { %v1506_v34 = vpop.permute.xlu1 %1505 }
 0x339   :  { %1583 = vst.msk [vmem:[%s3845_s8 + $0x90] sm:$0xff] %vm60_vm0, %v1506_v34 }
 0x33a   :  { %v1476_v30 = vpop.permute.xlu0 %1475 }
 0x33b   :  { %1568 = vst.msk [vmem:[%s3845_s8 + $0x18] sm:$0xff] %vm60_vm0, %v1476_v30 }
 0x33c   :  { %v1470_v45 = vpop.permute.xlu1 %1469 }
 0x33d   :  { %1565 = vst.msk [vmem:[%s3845_s8] sm:$0xff] %vm60_vm0, %v1470_v45 }
 0x33e   :  { %v1508_v35 = vpop.permute.xlu0 %1507 }
 0x33f   :  { %1584 = vst.msk [vmem:[%s3845_s8 + $0x98] sm:$0xff] %vm60_vm0, %v1508_v35 }
 0x340   :  { %v1502_v7 = vpop.permute.xlu1 %1501 }
 0x341   :  { %1581 = vst.msk [vmem:[%s3845_s8 + $0x80] sm:$0xff] %vm60_vm0, %v1502_v7 }
 0x342   :  { %v1472_v40 = vpop.permute.xlu0 %1471 }
 0x343   :  { %1566 = vst.msk [vmem:[%s3845_s8 + $0x8] sm:$0xff] %vm60_vm0, %v1472_v40 }
 0x344   :  { %v1482_v42 = vpop.permute.xlu1 %1481 }
 0x345   :  { %1571 = vst.msk [vmem:[%s3845_s8 + $0x30] sm:$0xff] %vm60_vm0, %v1482_v42 }
 0x346   :  { %v1504_v26 = vpop.permute.xlu0 %1503 }
 0x347   :  { %1582 = vst.msk [vmem:[%s3845_s8 + $0x88] sm:$0xff] %vm60_vm0, %v1504_v26 }
 0x348   :  { %v1514_v5 = vpop.permute.xlu1 %1513 }
 0x349   :  { %1587 = vst.msk [vmem:[%s3845_s8 + $0xb0] sm:$0xff] %vm60_vm0, %v1514_v5 }
 0x34a   :  { %v1484_v54 = vpop.permute.xlu0 %1483 }
 0x34b   :  { %1572 = vst.msk [vmem:[%s3845_s8 + $0x38] sm:$0xff] %vm60_vm0, %v1484_v54 }
 0x34c   :  { %v1478_v39 = vpop.permute.xlu1 %1477 }
 0x34d   :  { %1569 = vst.msk [vmem:[%s3845_s8 + $0x20] sm:$0xff] %vm60_vm0, %v1478_v39 }
 0x34e   :  { %v1516_v52 = vpop.permute.xlu0 %1515 }
 0x34f   :  { %1588 = vst.msk [vmem:[%s3845_s8 + $0xb8] sm:$0xff] %vm60_vm0, %v1516_v52 }
 0x350   :  { %v1510_v48 = vpop.permute.xlu1 %1509 }
 0x351   :  { %1585 = vst.msk [vmem:[%s3845_s8 + $0xa0] sm:$0xff] %vm60_vm0, %v1510_v48 }
 0x352   :  { %v1480_v62 = vpop.permute.xlu0 %1479 }
 0x353   :  { %1570 = vst.msk [vmem:[%s3845_s8 + $0x28] sm:$0xff] %vm60_vm0, %v1480_v62 }
 0x354   :  { %v1490_v51 = vpop.permute.xlu1 %1489 }
 0x355   :  { %1575 = vst.msk [vmem:[%s3845_s8 + $0x50] sm:$0xff] %vm60_vm0, %v1490_v51 }
 0x356   :  { %v1512_v0 = vpop.permute.xlu0 %1511 }
 0x357   :  { %1586 = vst.msk [vmem:[%s3845_s8 + $0xa8] sm:$0xff] %vm60_vm0, %v1512_v0 }
 0x358   :  { %v1522_v18 = vpop.permute.xlu1 %1521 }
 0x359   :  { %1591 = vst.msk [vmem:[%s3845_s8 + $0xd0] sm:$0xff] %vm60_vm0, %v1522_v18 }
 0x35a   :  { %v1492_v55 = vpop.permute.xlu0 %1491 }
 0x35b   :  { %1576 = vst.msk [vmem:[%s3845_s8 + $0x58] sm:$0xff] %vm60_vm0, %v1492_v55 }
 0x35c   :  { %v1486_v33 = vpop.permute.xlu1 %1485 }
 0x35d   :  { %1573 = vst.msk [vmem:[%s3845_s8 + $0x40] sm:$0xff] %vm60_vm0, %v1486_v33 }
 0x35e   :  { %v1524_v10 = vpop.permute.xlu0 %1523 }
 0x35f   :  { %1592 = vst.msk [vmem:[%s3845_s8 + $0xd8] sm:$0xff] %vm60_vm0, %v1524_v10 }
 0x360   :  { %v1518_v27 = vpop.permute.xlu1 %1517 }
 0x361   :  { %1589 = vst.msk [vmem:[%s3845_s8 + $0xc0] sm:$0xff] %vm60_vm0, %v1518_v27 }
 0x362   :  { %v1488_v49 = vpop.permute.xlu0 %1487 }
 0x363   :  { %1574 = vst.msk [vmem:[%s3845_s8 + $0x48] sm:$0xff] %vm60_vm0, %v1488_v49 }
 0x364   :  { %v1498_v3 = vpop.permute.xlu1 %1497 }
 0x365   :  { %1579 = vst.msk [vmem:[%s3845_s8 + $0x70] sm:$0xff] %vm60_vm0, %v1498_v3 }
 0x366   :  { %v1520_v47 = vpop.permute.xlu0 %1519 }
 0x367   :  { %1590 = vst.msk [vmem:[%s3845_s8 + $0xc8] sm:$0xff] %vm60_vm0, %v1520_v47 }
 0x368   :  { %v1530_v4 = vpop.permute.xlu1 %1529 }
 0x369   :  { %1595 = vst.msk [vmem:[%s3845_s8 + $0xf0] sm:$0xff] %vm60_vm0, %v1530_v4 }
 0x36a   :  { %v1500_v38 = vpop.permute.xlu0 %1499 }
 0x36b   :  { %1580 = vst.msk [vmem:[%s3845_s8 + $0x78] sm:$0xff] %vm60_vm0, %v1500_v38 }
 0x36c   :  { %v1494_v21 = vpop.permute.xlu1 %1493 }
 0x36d   :  { %1577 = vst.msk [vmem:[%s3845_s8 + $0x60] sm:$0xff] %vm60_vm0, %v1494_v21 }
 0x36e   :  { %v1532_v63 = vpop.permute.xlu0 %1531 }
 0x36f   :  { %1596 = vst.msk [vmem:[%s3845_s8 + $0xf8] sm:$0xff] %vm60_vm0, %v1532_v63 }
 0x370   :  { %v1526_v12 = vpop.permute.xlu1 %1525 }
 0x371   :  { %1593 = vst.msk [vmem:[%s3845_s8 + $0xe0] sm:$0xff] %vm60_vm0, %v1526_v12 }
 0x372   :  { %v1496_v59 = vpop.permute.xlu0 %1495 }
 0x373   :  { %1578 = vst.msk [vmem:[%s3845_s8 + $0x68] sm:$0xff] %vm60_vm0, %v1496_v59 }
 0x374   :  { %v1690_v17 = vpop.permute.xlu1 %1689 }
 0x375   :  { %1756 = vst.msk [vmem:[%s3842_s9 + $0xf0] sm:$0xff] %vm1725_vm2, %v1690_v17 }
 0x376   :  { %v1528_v9 = vpop.permute.xlu0 %1527 }
 0x377   :  { %1594 = vst.msk [vmem:[%s3845_s8 + $0xe8] sm:$0xff] %vm60_vm0, %v1528_v9 }
 0x37a   :  { %v1692_v46 = vpop.permute.xlu0 %1691 }
 0x37b   :  { %1757 = vst.msk [vmem:[%s3842_s9 + $0xf8] sm:$0xff] %vm1725_vm2, %v1692_v46 }

// kernel: pair_transform_layer.21
= control target key start
LH: loop header
LB: loop body
LE: loop exit
PB: predicated region body
PF: predicated region fallthrough
CT: control target
= control target key end

     0   :  { %vm65_vm0 = vcmask 130048   ;;  %s2672_s0 = inlined_call_operand.vmem [shape: f32[256,16], index: 0, kind: input, shape index: {}]   ;;  %s2673_s1 = inlined_call_operand.vmem [shape: f32[256,1], index: 1, kind: input, shape index: {}]   ;;  %s2674_s2 = inlined_call_operand.vmem [shape: f32[1,16], index: 2, kind: input, shape index: {}]   ;;  %s2675_s3 = inlined_call_operand.vmem [shape: f32[1,16], index: 3, kind: input, shape index: {}]   ;;  %s2676_s4 = inlined_call_operand.vmem [shape: bf16[16,32], index: 4, kind: input, shape index: {}]   ;;  %s2677_s5 = inlined_call_operand.vmem [shape: f32[1,32], index: 5, kind: input, shape index: {}]   ;;  %s2678_s6 = inlined_call_operand.vmem [shape: bf16[32,16], index: 6, kind: input, shape index: {}]   ;;  %s2679_s7 = inlined_call_operand.vmem [shape: f32[1,16], index: 7, kind: input, shape index: {}]   ;;  %s2680_s8 = inlined_call_operand.hbm [shape: f32[256,16], index: 8, kind: output, shape index: {}]  }
   0x1   :  { %v1739_v0 = vld [vmem:[%s2672_s0] sm:$0xff]  ;;  %v1744_v1 = vld [vmem:[%s2672_s0 + $0x10] sm:$0xff]  ;;  %v1749_v2 = vld [vmem:[%s2672_s0 + $0x8] sm:$0xff] }
   0x2   :  { %v66_v3 = vsel %vm65_vm0, %v1739_v0, 0.0  ;;  %v72_v4 = vsel %vm65_vm0, %v1744_v1, 0.0  ;;  %v1758_v5 = vld [vmem:[%s2672_s0 + $0x18] sm:$0xff]  ;;  %v69_v6 = vsel %vm65_vm0, %v1749_v2, 0.0  ;;  %v1767_v8 = vld [vmem:[%s2672_s0 + $0x20] sm:$0xff]  ;;  %v1772_v9 = vld [vmem:[%s2672_s0 + $0x28] sm:$0xff] }
   0x3   :  { %67 = vadd.xlane.f32.xlu0 %v66_v3  ;;  %73 = vadd.xlane.f32.xlu1 %v72_v4  ;;  %v75_v7 = vsel %vm65_vm0, %v1758_v5, 0.0  ;;  %v78_v10 = vsel %vm65_vm0, %v1767_v8, 0.0  ;;  %v81_v11 = vsel %vm65_vm0, %v1772_v9, 0.0  ;;  %v1781_v12 = vld [vmem:[%s2672_s0 + $0x30] sm:$0xff]  ;;  %v1786_v13 = vld [vmem:[%s2672_s0 + $0x38] sm:$0xff]  ;;  %v1793_v15 = vld [vmem:[%s2672_s0 + $0x40] sm:$0xff] }
   0x4   :  { %v84_v14 = vsel %vm65_vm0, %v1781_v12, 0.0  ;;  %v87_v16 = vsel %vm65_vm0, %v1786_v13, 0.0  ;;  %v1800_v17 = vld [vmem:[%s2672_s0 + $0x48] sm:$0xff] }
   0x7   :  { %70 = vadd.xlane.f32.xlu0 %v69_v6  ;;  %76 = vadd.xlane.f32.xlu1 %v75_v7 }
   0xb   :  { %79 = vadd.xlane.f32.xlu0 %v78_v10  ;;  %82 = vadd.xlane.f32.xlu1 %v81_v11 }
   0xc   :  { %13 = vsyncpa [#allocation3], 0  ;;  %v90_v18 = vsel %vm65_vm0, %v1793_v15, 0.0  ;;  %v93_v19 = vsel %vm65_vm0, %v1800_v17, 0.0  ;;  %v1809_v20 = vld [vmem:[%s2672_s0 + $0x50] sm:$0xff]  ;;  %v1814_v21 = vld [vmem:[%s2672_s0 + $0x58] sm:$0xff] }
   0xd   :  { %v96_v22 = vsel %vm65_vm0, %v1809_v20, 0.0  ;;  %v99_v23 = vsel %vm65_vm0, %v1814_v21, 0.0  ;;  %v1823_v24 = vld [vmem:[%s2672_s0 + $0x60] sm:$0xff]  ;;  %v1828_v25 = vld [vmem:[%s2672_s0 + $0x68] sm:$0xff]  ;;  %v1837_v28 = vld [vmem:[%s2672_s0 + $0x70] sm:$0xff]  ;;  %vm870_vm1 = vcmask 261120  }
   0xe   :  { %v102_v26 = vsel %vm65_vm0, %v1823_v24, 0.0  ;;  %v105_v27 = vsel %vm65_vm0, %v1828_v25, 0.0  ;;  %v1842_v29 = vld [vmem:[%s2672_s0 + $0x78] sm:$0xff]  ;;  %v108_v30 = vsel %vm65_vm0, %v1837_v28, 0.0  ;;  %v1851_v32 = vld [vmem:[%s2672_s0 + $0x80] sm:$0xff]  ;;  %v1856_v33 = vld [vmem:[%s2672_s0 + $0x88] sm:$0xff] }
   0xf   :  { %85 = vadd.xlane.f32.xlu0 %v84_v14  ;;  %88 = vadd.xlane.f32.xlu1 %v87_v16  ;;  %v111_v31 = vsel %vm65_vm0, %v1842_v29, 0.0  ;;  %v114_v34 = vsel %vm65_vm0, %v1851_v32, 0.0  ;;  %v117_v35 = vsel %vm65_vm0, %v1856_v33, 0.0  ;;  %v1865_v36 = vld [vmem:[%s2672_s0 + $0x90] sm:$0xff]  ;;  %v1870_v37 = vld [vmem:[%s2672_s0 + $0x98] sm:$0xff]  ;;  %v1879_v40 = vld [vmem:[%s2672_s0 + $0xa0] sm:$0xff] }
  0x10   :  { %v120_v38 = vsel %vm65_vm0, %v1865_v36, 0.0  ;;  %v123_v39 = vsel %vm65_vm0, %v1870_v37, 0.0  ;;  %v1884_v41 = vld [vmem:[%s2672_s0 + $0xa8] sm:$0xff]  ;;  %v126_v42 = vsel %vm65_vm0, %v1879_v40, 0.0  ;;  %v1893_v44 = vld [vmem:[%s2672_s0 + $0xb0] sm:$0xff]  ;;  %v1898_v45 = vld [vmem:[%s2672_s0 + $0xb8] sm:$0xff] }
  0x11   :  { %v129_v43 = vsel %vm65_vm0, %v1884_v41, 0.0  ;;  %v132_v46 = vsel %vm65_vm0, %v1893_v44, 0.0  ;;  %v135_v47 = vsel %vm65_vm0, %v1898_v45, 0.0  ;;  %v1907_v48 = vld [vmem:[%s2672_s0 + $0xc0] sm:$0xff]  ;;  %v1912_v49 = vld [vmem:[%s2672_s0 + $0xc8] sm:$0xff]  ;;  %v1921_v52 = vld [vmem:[%s2672_s0 + $0xd0] sm:$0xff] }
  0x12   :  { %v138_v50 = vsel %vm65_vm0, %v1907_v48, 0.0  ;;  %v141_v51 = vsel %vm65_vm0, %v1912_v49, 0.0  ;;  %v1926_v53 = vld [vmem:[%s2672_s0 + $0xd8] sm:$0xff]  ;;  %v144_v54 = vsel %vm65_vm0, %v1921_v52, 0.0  ;;  %v1935_v56 = vld [vmem:[%s2672_s0 + $0xe0] sm:$0xff]  ;;  %v1940_v57 = vld [vmem:[%s2672_s0 + $0xe8] sm:$0xff] }
  0x13   :  { %91 = vadd.xlane.f32.xlu0 %v90_v18  ;;  %94 = vadd.xlane.f32.xlu1 %v93_v19  ;;  %v147_v55 = vsel %vm65_vm0, %v1926_v53, 0.0  ;;  %v150_v58 = vsel %vm65_vm0, %v1935_v56, 0.0  ;;  %v153_v59 = vsel %vm65_vm0, %v1940_v57, 0.0  ;;  %v1949_v60 = vld [vmem:[%s2672_s0 + $0xf0] sm:$0xff]  ;;  %v1954_v61 = vld [vmem:[%s2672_s0 + $0xf8] sm:$0xff]  ;;  %s1688_s26 = smov [#allocation2]  }
  0x14   :  { %v156_v62 = vsel %vm65_vm0, %v1949_v60, 0.0  ;;  %v159_v63 = vsel %vm65_vm0, %v1954_v61, 0.0 }
  0x17   :  { %97 = vadd.xlane.f32.xlu0 %v96_v22  ;;  %100 = vadd.xlane.f32.xlu1 %v99_v23 }
  0x1b   :  { %103 = vadd.xlane.f32.xlu0 %v102_v26  ;;  %106 = vadd.xlane.f32.xlu1 %v105_v27 }
  0x1f   :  { %109 = vadd.xlane.f32.xlu0 %v108_v30  ;;  %112 = vadd.xlane.f32.xlu1 %v111_v31 }
  0x23   :  { %115 = vadd.xlane.f32.xlu0 %v114_v34  ;;  %118 = vadd.xlane.f32.xlu1 %v117_v35 }
  0x27   :  { %121 = vadd.xlane.f32.xlu0 %v120_v38  ;;  %124 = vadd.xlane.f32.xlu1 %v123_v39 }
  0x2b   :  { %127 = vadd.xlane.f32.xlu0 %v126_v42  ;;  %130 = vadd.xlane.f32.xlu1 %v129_v43 }
  0x2f   :  { %133 = vadd.xlane.f32.xlu0 %v132_v46  ;;  %136 = vadd.xlane.f32.xlu1 %v135_v47 }
  0x33   :  { %139 = vadd.xlane.f32.xlu0 %v138_v50  ;;  %142 = vadd.xlane.f32.xlu1 %v141_v51 }
  0x37   :  { %145 = vadd.xlane.f32.xlu0 %v144_v54  ;;  %148 = vadd.xlane.f32.xlu1 %v147_v55 }
  0x3b   :  { %151 = vadd.xlane.f32.xlu0 %v150_v58  ;;  %154 = vadd.xlane.f32.xlu1 %v153_v59 }
  0x3f   :  { %157 = vadd.xlane.f32.xlu0 %v156_v62  ;;  %160 = vadd.xlane.f32.xlu1 %v159_v63 }
  0x8c   :  { %v68_v3 = vpop.xlane.xlu0 %67  ;;  %v74_v4 = vpop.xlane.xlu1 %73 }
  0x8d   :  { %v163_v6 = vmul.f32 0.0625, %v68_v3  ;;  %v165_v7 = vmul.f32 0.0625, %v74_v4 }
  0x8f   :  { %v1961_v10 = vsub.f32 %v1739_v0, %v163_v6  ;;  %v1964_v11 = vsub.f32 %v1744_v1, %v165_v7 }
  0x90   :  { %v71_v14 = vpop.xlane.xlu0 %70  ;;  %v77_v16 = vpop.xlane.xlu1 %76 }
  0x91   :  { %v164_v18 = vmul.f32 0.0625, %v71_v14  ;;  %v166_v19 = vmul.f32 0.0625, %v77_v16  ;;  %v227_v22 = vmul.f32 %v1961_v10, %v1961_v10  ;;  %v229_v23 = vmul.f32 %v1964_v11, %v1964_v11 }
  0x93   :  { %v1971_v26 = vsub.f32 %v1749_v2, %v164_v18  ;;  %v1974_v27 = vsub.f32 %v1758_v5, %v166_v19  ;;  %v259_v0 = vsel %vm65_vm0, %v227_v22, 0.0  ;;  %v265_v31 = vsel %vm65_vm0, %v229_v23, 0.0 }
  0x94   :  { %260 = vadd.xlane.f32.xlu0 %v259_v0  ;;  %v80_v1 = vpop.xlane.xlu0 %79  ;;  %v83_v30 = vpop.xlane.xlu1 %82 }
  0x95   :  { %v167_v34 = vmul.f32 0.0625, %v80_v1  ;;  %v168_v35 = vmul.f32 0.0625, %v83_v30  ;;  %v228_v38 = vmul.f32 %v1971_v26, %v1971_v26  ;;  %v230_v39 = vmul.f32 %v1974_v27, %v1974_v27 }
  0x97   :  { %v1983_v2 = vsub.f32 %v1767_v8, %v167_v34  ;;  %v1986_v5 = vsub.f32 %v1772_v9, %v168_v35  ;;  %v262_v42 = vsel %vm65_vm0, %v228_v38, 0.0  ;;  %v268_v47 = vsel %vm65_vm0, %v230_v39, 0.0 }
  0x98   :  { %266 = vadd.xlane.f32.xlu0 %v265_v31  ;;  %263 = vadd.xlane.f32.xlu1 %v262_v42  ;;  %v86_v43 = vpop.xlane.xlu0 %85  ;;  %v89_v46 = vpop.xlane.xlu1 %88 }
  0x99   :  { %v169_v50 = vmul.f32 0.0625, %v86_v43  ;;  %v170_v51 = vmul.f32 0.0625, %v89_v46  ;;  %v231_v54 = vmul.f32 %v1983_v2, %v1983_v2  ;;  %v232_v8 = vmul.f32 %v1986_v5, %v1986_v5 }
  0x9b   :  { %v1995_v55 = vsub.f32 %v1781_v12, %v169_v50  ;;  %v1998_v9 = vsub.f32 %v1786_v13, %v170_v51  ;;  %v271_v58 = vsel %vm65_vm0, %v231_v54, 0.0  ;;  %v274_v63 = vsel %vm65_vm0, %v232_v8, 0.0 }
  0x9c   :  { %269 = vadd.xlane.f32.xlu1 %v268_v47  ;;  %272 = vadd.xlane.f32.xlu0 %v271_v58  ;;  %v92_v59 = vpop.xlane.xlu0 %91  ;;  %v95_v62 = vpop.xlane.xlu1 %94 }
  0x9d   :  { %v171_v3 = vmul.f32 0.0625, %v92_v59  ;;  %v172_v4 = vmul.f32 0.0625, %v95_v62  ;;  %v233_v6 = vmul.f32 %v1995_v55, %v1995_v55  ;;  %v234_v12 = vmul.f32 %v1998_v9, %v1998_v9 }
  0x9f   :  { %v2007_v7 = vsub.f32 %v1793_v15, %v171_v3  ;;  %v2010_v13 = vsub.f32 %v1800_v17, %v172_v4  ;;  %v277_v14 = vsel %vm65_vm0, %v233_v6, 0.0  ;;  %v280_v19 = vsel %vm65_vm0, %v234_v12, 0.0 }
  0xa0   :  { %275 = vadd.xlane.f32.xlu1 %v274_v63  ;;  %278 = vadd.xlane.f32.xlu0 %v277_v14  ;;  %v98_v16 = vpop.xlane.xlu0 %97  ;;  %v101_v18 = vpop.xlane.xlu1 %100 }
  0xa1   :  { %v173_v22 = vmul.f32 0.0625, %v98_v16  ;;  %v174_v23 = vmul.f32 0.0625, %v101_v18  ;;  %v235_v0 = vmul.f32 %v2007_v7, %v2007_v7  ;;  %v236_v15 = vmul.f32 %v2010_v13, %v2010_v13 }
  0xa3   :  { %v2019_v1 = vsub.f32 %v1809_v20, %v173_v22  ;;  %v2022_v17 = vsub.f32 %v1814_v21, %v174_v23  ;;  %v283_v30 = vsel %vm65_vm0, %v235_v0, 0.0  ;;  %v286_v35 = vsel %vm65_vm0, %v236_v15, 0.0 }
  0xa4   :  { %281 = vadd.xlane.f32.xlu1 %v280_v19  ;;  %284 = vadd.xlane.f32.xlu0 %v283_v30  ;;  %v104_v31 = vpop.xlane.xlu0 %103  ;;  %v107_v34 = vpop.xlane.xlu1 %106 }
  0xa5   :  { %v175_v38 = vmul.f32 0.0625, %v104_v31  ;;  %v176_v39 = vmul.f32 0.0625, %v107_v34  ;;  %v237_v42 = vmul.f32 %v2019_v1, %v2019_v1  ;;  %v238_v20 = vmul.f32 %v2022_v17, %v2022_v17 }
  0xa7   :  { %v2031_v43 = vsub.f32 %v1823_v24, %v175_v38  ;;  %v2034_v21 = vsub.f32 %v1828_v25, %v176_v39  ;;  %v289_v46 = vsel %vm65_vm0, %v237_v42, 0.0  ;;  %v292_v51 = vsel %vm65_vm0, %v238_v20, 0.0 }
  0xa8   :  { %287 = vadd.xlane.f32.xlu1 %v286_v35  ;;  %290 = vadd.xlane.f32.xlu0 %v289_v46  ;;  %v110_v47 = vpop.xlane.xlu0 %109  ;;  %v113_v50 = vpop.xlane.xlu1 %112 }
  0xa9   :  { %v177_v54 = vmul.f32 0.0625, %v110_v47  ;;  %v178_v8 = vmul.f32 0.0625, %v113_v50  ;;  %v239_v58 = vmul.f32 %v2031_v43, %v2031_v43  ;;  %v240_v24 = vmul.f32 %v2034_v21, %v2034_v21 }
  0xab   :  { %v2043_v59 = vsub.f32 %v1837_v28, %v177_v54  ;;  %v2046_v25 = vsub.f32 %v1842_v29, %v178_v8  ;;  %v295_v62 = vsel %vm65_vm0, %v239_v58, 0.0  ;;  %v298_v4 = vsel %vm65_vm0, %v240_v24, 0.0 }
  0xac   :  { %293 = vadd.xlane.f32.xlu1 %v292_v51  ;;  %296 = vadd.xlane.f32.xlu0 %v295_v62  ;;  %v116_v63 = vpop.xlane.xlu0 %115  ;;  %v119_v3 = vpop.xlane.xlu1 %118 }
  0xad   :  { %v179_v6 = vmul.f32 0.0625, %v116_v63  ;;  %v180_v12 = vmul.f32 0.0625, %v119_v3  ;;  %v241_v14 = vmul.f32 %v2043_v59, %v2043_v59  ;;  %v242_v28 = vmul.f32 %v2046_v25, %v2046_v25 }
  0xaf   :  { %v2055_v16 = vsub.f32 %v1851_v32, %v179_v6  ;;  %v2058_v29 = vsub.f32 %v1856_v33, %v180_v12  ;;  %v301_v18 = vsel %vm65_vm0, %v241_v14, 0.0  ;;  %v304_v23 = vsel %vm65_vm0, %v242_v28, 0.0 }
  0xb0   :  { %299 = vadd.xlane.f32.xlu1 %v298_v4  ;;  %302 = vadd.xlane.f32.xlu0 %v301_v18  ;;  %v122_v19 = vpop.xlane.xlu0 %121  ;;  %v125_v22 = vpop.xlane.xlu1 %124  ;;  %v1566_v4 = vld [vmem:[%s2676_s4] sm:$0xff]   ;;  %s1405_s4 = sshll.u32 %s1688_s26, 4  ;;  %s1406_s4 = int_to_ptr.vmem [resolvable:$true] %s1405_s4 }
  0xb1   :  { %v181_v0 = vmul.f32 0.0625, %v122_v19  ;;  %v182_v15 = vmul.f32 0.0625, %v125_v22  ;;  %v243_v30 = vmul.f32 %v2055_v16, %v2055_v16  ;;  %v244_v32 = vmul.f32 %v2058_v29, %v2058_v29  ;;  %1490 = vmatprep.subr.bf16.mxu0 %v1566_v4  ;;  %s1665_s29 = scalar_lea.vmem %s1406_s4, 4096  ;;  %p1670_p1 = scmp.lt.s32.totalorder %s1406_s4, %s1406_s4 }
  0xb2   :  { %1491 = vmatpush3.bf16.msra.mxu0 %v1566_v4  ;;  %p1666_p0 = scmp.ne.s32.totalorder %s1406_s4, %s1665_s29  ;;  %p1671_p2 = scmp.lt.s32.totalorder %s1665_s29, %s1665_s29 }
  0xb3   :  { %v2067_v31 = vsub.f32 %v1865_v36, %v181_v0  ;;  %v2070_v33 = vsub.f32 %v1870_v37, %v182_v15  ;;  %v307_v34 = vsel %vm65_vm0, %v243_v30, 0.0  ;;  %v310_v39 = vsel %vm65_vm0, %v244_v32, 0.0 }
  0xb4   :  { %305 = vadd.xlane.f32.xlu1 %v304_v23  ;;  %308 = vadd.xlane.f32.xlu0 %v307_v34  ;;  %v128_v35 = vpop.xlane.xlu0 %127  ;;  %v131_v38 = vpop.xlane.xlu1 %130  ;;  %p1672_p3 = por %p1671_p2, %p1670_p1 }
  0xb5   :  { %v183_v42 = vmul.f32 0.0625, %v128_v35  ;;  %v184_v20 = vmul.f32 0.0625, %v131_v38  ;;  %v245_v46 = vmul.f32 %v2067_v31, %v2067_v31  ;;  %v246_v36 = vmul.f32 %v2070_v33, %v2070_v33 }
  0xb6   :  { %p1673_p4 = pnand %p1672_p3, %p1666_p0 }
  0xb7   :  { %v2079_v47 = vsub.f32 %v1879_v40, %v183_v42  ;;  %v2082_v37 = vsub.f32 %v1884_v41, %v184_v20  ;;  %v313_v50 = vsel %vm65_vm0, %v245_v46, 0.0  ;;  %v316_v8 = vsel %vm65_vm0, %v246_v36, 0.0 }
  0xb8   :  { %311 = vadd.xlane.f32.xlu1 %v310_v39  ;;  %314 = vadd.xlane.f32.xlu0 %v313_v50  ;;  %v134_v51 = vpop.xlane.xlu0 %133  ;;  %v137_v54 = vpop.xlane.xlu1 %136 }
  0xb9   :  { %v185_v58 = vmul.f32 0.0625, %v134_v51  ;;  %v186_v24 = vmul.f32 0.0625, %v137_v54  ;;  %v247_v62 = vmul.f32 %v2079_v47, %v2079_v47  ;;  %v248_v40 = vmul.f32 %v2082_v37, %v2082_v37 }
  0xbb   :  { %v2091_v63 = vsub.f32 %v1893_v44, %v185_v58  ;;  %v2094_v41 = vsub.f32 %v1898_v45, %v186_v24  ;;  %v319_v3 = vsel %vm65_vm0, %v247_v62, 0.0  ;;  %v322_v14 = vsel %vm65_vm0, %v248_v40, 0.0 }
  0xbc   :  { %317 = vadd.xlane.f32.xlu1 %v316_v8  ;;  %320 = vadd.xlane.f32.xlu0 %v319_v3  ;;  %v140_v6 = vpop.xlane.xlu0 %139  ;;  %v143_v12 = vpop.xlane.xlu1 %142 }
  0xbd   :  { %v187_v28 = vmul.f32 0.0625, %v140_v6  ;;  %v188_v18 = vmul.f32 0.0625, %v143_v12  ;;  %v249_v44 = vmul.f32 %v2091_v63, %v2091_v63  ;;  %v250_v45 = vmul.f32 %v2094_v41, %v2094_v41 }
  0xbf   :  { %v2106_v19 = vsub.f32 %v1907_v48, %v187_v28  ;;  %v2109_v22 = vsub.f32 %v1912_v49, %v188_v18  ;;  %v325_v23 = vsel %vm65_vm0, %v249_v44, 0.0  ;;  %v328_v30 = vsel %vm65_vm0, %v250_v45, 0.0 }
  0xc0   :  { %323 = vadd.xlane.f32.xlu1 %v322_v14  ;;  %326 = vadd.xlane.f32.xlu0 %v325_v23  ;;  %v146_v0 = vpop.xlane.xlu0 %145  ;;  %v149_v15 = vpop.xlane.xlu1 %148 }
  0xc1   :  { %v189_v32 = vmul.f32 0.0625, %v146_v0  ;;  %v190_v34 = vmul.f32 0.0625, %v149_v15  ;;  %v251_v35 = vmul.f32 %v2106_v19, %v2106_v19  ;;  %v252_v48 = vmul.f32 %v2109_v22, %v2109_v22 }
  0xc3   :  { %v2118_v38 = vsub.f32 %v1921_v52, %v189_v32  ;;  %v2121_v49 = vsub.f32 %v1926_v53, %v190_v34  ;;  %v331_v39 = vsel %vm65_vm0, %v251_v35, 0.0  ;;  %v334_v46 = vsel %vm65_vm0, %v252_v48, 0.0 }
  0xc4   :  { %329 = vadd.xlane.f32.xlu1 %v328_v30  ;;  %332 = vadd.xlane.f32.xlu0 %v331_v39  ;;  %v152_v42 = vpop.xlane.xlu0 %151  ;;  %v155_v20 = vpop.xlane.xlu1 %154 }
  0xc5   :  { %v191_v36 = vmul.f32 0.0625, %v152_v42  ;;  %v192_v50 = vmul.f32 0.0625, %v155_v20  ;;  %v253_v51 = vmul.f32 %v2118_v38, %v2118_v38  ;;  %v254_v52 = vmul.f32 %v2121_v49, %v2121_v49 }
  0xc7   :  { %v2130_v54 = vsub.f32 %v1935_v56, %v191_v36  ;;  %v2133_v53 = vsub.f32 %v1940_v57, %v192_v50  ;;  %v337_v8 = vsel %vm65_vm0, %v253_v51, 0.0  ;;  %v340_v62 = vsel %vm65_vm0, %v254_v52, 0.0 }
  0xc8   :  { %335 = vadd.xlane.f32.xlu1 %v334_v46  ;;  %338 = vadd.xlane.f32.xlu0 %v337_v8  ;;  %v158_v58 = vpop.xlane.xlu0 %157  ;;  %v161_v24 = vpop.xlane.xlu1 %160 }
  0xc9   :  { %v193_v40 = vmul.f32 0.0625, %v158_v58  ;;  %v194_v3 = vmul.f32 0.0625, %v161_v24  ;;  %v255_v4 = vmul.f32 %v2130_v54, %v2130_v54  ;;  %v256_v56 = vmul.f32 %v2133_v53, %v2133_v53 }
  0xcb   :  { %v2142_v6 = vsub.f32 %v1949_v60, %v193_v40  ;;  %v2145_v57 = vsub.f32 %v1954_v61, %v194_v3  ;;  %v343_v12 = vsel %vm65_vm0, %v255_v4, 0.0  ;;  %v346_v14 = vsel %vm65_vm0, %v256_v56, 0.0 }
  0xcc   :  { %341 = vadd.xlane.f32.xlu1 %v340_v62  ;;  %344 = vadd.xlane.f32.xlu0 %v343_v12 }
  0xcd   :  { %v257_v28 = vmul.f32 %v2142_v6, %v2142_v6  ;;  %v258_v18 = vmul.f32 %v2145_v57, %v2145_v57 }
  0xcf   :  { %v349_v44 = vsel %vm65_vm0, %v257_v28, 0.0  ;;  %v352_v60 = vsel %vm65_vm0, %v258_v18, 0.0  ;;  %v2158_v28 = vld [vmem:[%s2674_s2] ss:$0 sm:$0xff] }
  0xd0   :  { %347 = vadd.xlane.f32.xlu1 %v346_v14  ;;  %350 = vadd.xlane.f32.xlu0 %v349_v44 }
  0xd4   :  { %353 = vadd.xlane.f32.xlu1 %v352_v60 }
 0x11d   :  { %v261_v61 = vpop.xlane.xlu0 %260 }
 0x11e   :  { %v355_v45 = vmul.f32 0.0625, %v261_v61 }
 0x120   :  { %v387_v23 = vadd.f32 1e-05, %v355_v45 }
 0x121   :  { %v264_v0 = vpop.xlane.xlu1 %263  ;;  %v267_v15 = vpop.xlane.xlu0 %266 }
 0x122   :  { %1569 = vrsqrt.f32 %v387_v23  ;;  %v356_v30 = vmul.f32 0.0625, %v264_v0  ;;  %v357_v32 = vmul.f32 0.0625, %v267_v15 }
 0x124   :  { %v388_v34 = vadd.f32 1e-05, %v356_v30  ;;  %v389_v35 = vadd.f32 1e-05, %v357_v32 }
 0x125   :  { %v270_v48 = vpop.xlane.xlu1 %269  ;;  %v273_v39 = vpop.xlane.xlu0 %272 }
 0x126   :  { %1571 = vrsqrt.f32 %v388_v34  ;;  %v358_v42 = vmul.f32 0.0625, %v270_v48  ;;  %v359_v20 = vmul.f32 0.0625, %v273_v39  ;;  %v2165_v34 = vld [vmem:[%s2675_s3] ss:$0 sm:$0xff] }
 0x127   :  { %1573 = vrsqrt.f32 %v389_v35 }
 0x128   :  { %v390_v46 = vadd.f32 1e-05, %v358_v42  ;;  %v391_v36 = vadd.f32 1e-05, %v359_v20 }
 0x129   :  { %v276_v50 = vpop.xlane.xlu1 %275  ;;  %v279_v51 = vpop.xlane.xlu0 %278 }
 0x12a   :  { %1575 = vrsqrt.f32 %v390_v46  ;;  %v360_v52 = vmul.f32 0.0625, %v276_v50  ;;  %v361_v8 = vmul.f32 0.0625, %v279_v51 }
 0x12b   :  { %1577 = vrsqrt.f32 %v391_v36 }
 0x12c   :  { %v392_v58 = vadd.f32 1e-05, %v360_v52  ;;  %v393_v24 = vadd.f32 1e-05, %v361_v8 }
 0x12d   :  { %v282_v62 = vpop.xlane.xlu1 %281  ;;  %v285_v40 = vpop.xlane.xlu0 %284 }
 0x12e   :  { %1579 = vrsqrt.f32 %v392_v58  ;;  %v362_v3 = vmul.f32 0.0625, %v282_v62  ;;  %v363_v4 = vmul.f32 0.0625, %v285_v40 }
 0x12f   :  { %v1570_v56 = vpop.eup %1569  ;;  %1581 = vrsqrt.f32 %v393_v24 }
 0x130   :  { %v394_v12 = vadd.f32 1e-05, %v362_v3  ;;  %v395_v14 = vadd.f32 1e-05, %v363_v4  ;;  %v451_v18 = vmul.f32 %v1570_v56, %v1961_v10 }
 0x131   :  { %v288_v44 = vpop.xlane.xlu1 %287  ;;  %v291_v60 = vpop.xlane.xlu0 %290 }
 0x132   :  { %1583 = vrsqrt.f32 %v394_v12  ;;  %v364_v61 = vmul.f32 0.0625, %v288_v44  ;;  %v365_v45 = vmul.f32 0.0625, %v291_v60  ;;  %v489_v0 = vmul.f32 %v2158_v28, %v451_v18 }
 0x133   :  { %v1572_v23 = vpop.eup %1571  ;;  %1585 = vrsqrt.f32 %v395_v14 }
 0x134   :  { %v1574_v15 = vpop.eup %1573  ;;  %v396_v30 = vadd.f32 1e-05, %v364_v61  ;;  %v397_v32 = vadd.f32 1e-05, %v365_v45  ;;  %v452_v35 = vmul.f32 %v1572_v23, %v1971_v26  ;;  %v527_v50 = vadd.f32 %v2165_v34, %v489_v0 }
 0x135   :  { %v294_v10 = vpop.xlane.xlu1 %293  ;;  %v297_v48 = vpop.xlane.xlu0 %296  ;;  %v453_v39 = vmul.f32 %v1574_v15, %v1964_v11 }
 0x136   :  { %1587 = vrsqrt.f32 %v396_v30  ;;  %v366_v42 = vmul.f32 0.0625, %v294_v10  ;;  %v367_v20 = vmul.f32 0.0625, %v297_v48  ;;  %v490_v46 = vmul.f32 %v2158_v28, %v452_v35 }
 0x137   :  { %v1576_v36 = vpop.eup %1575  ;;  %1589 = vrsqrt.f32 %v397_v32  ;;  %v491_v11 = vmul.f32 %v2158_v28, %v453_v39 }
 0x138   :  { %v1578_v51 = vpop.eup %1577  ;;  %v398_v52 = vadd.f32 1e-05, %v366_v42  ;;  %v399_v8 = vadd.f32 1e-05, %v367_v20  ;;  %v528_v58 = vadd.f32 %v2165_v34, %v490_v46  ;;  %v454_v26 = vmul.f32 %v1576_v36, %v1974_v27 }
 0x139   :  { %v300_v24 = vpop.xlane.xlu1 %299  ;;  %v303_v62 = vpop.xlane.xlu0 %302  ;;  %v455_v40 = vmul.f32 %v1578_v51, %v1983_v2  ;;  %v529_v2 = vadd.f32 %v2165_v34, %v491_v11 }
 0x13a   :  { %1591 = vrsqrt.f32 %v398_v52  ;;  %v368_v3 = vmul.f32 0.0625, %v300_v24  ;;  %v369_v4 = vmul.f32 0.0625, %v303_v62  ;;  %v559_v56 = vpack.c.bf16 %v528_v58, %v527_v50 }
 0x13b   :  { %v1580_v12 = vpop.eup %1579  ;;  %1593 = vrsqrt.f32 %v399_v8  ;;  %v492_v14 = vmul.f32 %v2158_v28, %v454_v26  ;;  %v493_v18 = vmul.f32 %v2158_v28, %v455_v40 }
 0x13c   :  { %v1582_v44 = vpop.eup %1581  ;;  %v400_v60 = vadd.f32 1e-05, %v368_v3  ;;  %v401_v61 = vadd.f32 1e-05, %v369_v4  ;;  %1492 = vmatprep.mubr.msk.bf16.mxu0 %vm65_vm0, %v559_v56  ;;  %v456_v27 = vmul.f32 %v1580_v12, %v1986_v5 }
 0x13d   :  { %v306_v45 = vpop.xlane.xlu1 %305  ;;  %v309_v23 = vpop.xlane.xlu0 %308  ;;  %v530_v0 = vadd.f32 %v2165_v34, %v492_v14  ;;  %v457_v15 = vmul.f32 %v1582_v44, %v1995_v55  ;;  %v531_v39 = vadd.f32 %v2165_v34, %v493_v18 }
 0x13e   :  { %1595 = vrsqrt.f32 %v400_v60  ;;  %v370_v30 = vmul.f32 0.0625, %v306_v45  ;;  %v371_v32 = vmul.f32 0.0625, %v309_v23  ;;  %v494_v35 = vmul.f32 %v2158_v28, %v456_v27 }
 0x13f   :  { %v1584_v10 = vpop.eup %1583  ;;  %1597 = vrsqrt.f32 %v401_v61  ;;  %v560_v48 = vpack.c.bf16 %v530_v0, %v529_v2  ;;  %v495_v51 = vmul.f32 %v2158_v28, %v457_v15 }
 0x140   :  { %v1586_v42 = vpop.eup %1585  ;;  %v402_v5 = vadd.f32 1e-05, %v370_v30  ;;  %v403_v20 = vadd.f32 1e-05, %v371_v32  ;;  %v532_v46 = vadd.f32 %v2165_v34, %v494_v35  ;;  %v458_v36 = vmul.f32 %v1584_v10, %v1998_v9 }
 0x141   :  { %1493 = vmatmul.mubr.msk.bf16.vlgmr.msra.gmra.mxu0 %vm65_vm0, %v560_v48  ;;  %v312_v55 = vpop.xlane.xlu1 %311  ;;  %v315_v50 = vpop.xlane.xlu0 %314  ;;  %v459_v52 = vmul.f32 %v1586_v42, %v2007_v7  ;;  %v533_v7 = vadd.f32 %v2165_v34, %v495_v51 }
 0x142   :  { %1599 = vrsqrt.f32 %v402_v5  ;;  %v372_v8 = vmul.f32 0.0625, %v312_v55  ;;  %v373_v58 = vmul.f32 0.0625, %v315_v50  ;;  %v561_v26 = vpack.c.bf16 %v532_v46, %v531_v39 }
 0x143   :  { %v1588_v24 = vpop.eup %1587  ;;  %1601 = vrsqrt.f32 %v403_v20  ;;  %v496_v62 = vmul.f32 %v2158_v28, %v458_v36  ;;  %v497_v11 = vmul.f32 %v2158_v28, %v459_v52 }
 0x144   :  { %v1590_v40 = vpop.eup %1589  ;;  %v404_v9 = vadd.f32 1e-05, %v372_v8  ;;  %v405_v3 = vadd.f32 1e-05, %v373_v58  ;;  %1496 = vmatprep.mubr.msk.bf16.mxu0 %vm65_vm0, %v561_v26  ;;  %v460_v4 = vmul.f32 %v1588_v24, %v2010_v13 }
 0x145   :  { %v318_v56 = vpop.xlane.xlu1 %317  ;;  %v321_v12 = vpop.xlane.xlu0 %320  ;;  %v534_v14 = vadd.f32 %v2165_v34, %v496_v62  ;;  %v461_v18 = vmul.f32 %v1590_v40, %v2019_v1  ;;  %v535_v23 = vadd.f32 %v2165_v34, %v497_v11 }
 0x146   :  { %1603 = vrsqrt.f32 %v404_v9  ;;  %v374_v44 = vmul.f32 0.0625, %v318_v56  ;;  %v375_v60 = vmul.f32 0.0625, %v321_v12  ;;  %v498_v61 = vmul.f32 %v2158_v28, %v460_v4 }
 0x147   :  { %v1592_v27 = vpop.eup %1591  ;;  %1605 = vrsqrt.f32 %v405_v3  ;;  %v562_v45 = vpack.c.bf16 %v534_v14, %v533_v7  ;;  %v499_v35 = vmul.f32 %v2158_v28, %v461_v18 }
 0x148   :  { %v1594_v2 = vpop.eup %1593  ;;  %v406_v13 = vadd.f32 1e-05, %v374_v44  ;;  %v407_v0 = vadd.f32 1e-05, %v375_v60  ;;  %v536_v15 = vadd.f32 %v2165_v34, %v498_v61  ;;  %v462_v30 = vmul.f32 %v1592_v27, %v2022_v17 }
 0x149   :  { %1497 = vmatmul.mubr.msk.bf16.gmra.mxu0 %vm65_vm0, %v562_v45  ;;  %v324_v1 = vpop.xlane.xlu1 %323  ;;  %v327_v32 = vpop.xlane.xlu0 %326  ;;  %v463_v10 = vmul.f32 %v1594_v2, %v2031_v43  ;;  %v537_v43 = vadd.f32 %v2165_v34, %v499_v35 }
 0x14a   :  { %1607 = vrsqrt.f32 %v406_v13  ;;  %v376_v48 = vmul.f32 0.0625, %v324_v1  ;;  %v377_v39 = vmul.f32 0.0625, %v327_v32  ;;  %v563_v42 = vpack.c.bf16 %v536_v15, %v535_v23 }
 0x14b   :  { %v1596_v5 = vpop.eup %1595  ;;  %1609 = vrsqrt.f32 %v407_v0  ;;  %v500_v20 = vmul.f32 %v2158_v28, %v462_v30  ;;  %v501_v46 = vmul.f32 %v2158_v28, %v463_v10 }
 0x14c   :  { %v1598_v36 = vpop.eup %1597  ;;  %v408_v17 = vadd.f32 1e-05, %v376_v48  ;;  %v409_v55 = vadd.f32 1e-05, %v377_v39  ;;  %1500 = vmatprep.mubr.msk.bf16.mxu0 %vm65_vm0, %v563_v42  ;;  %v464_v50 = vmul.f32 %v1596_v5, %v2034_v21 }
 0x14d   :  { %v330_v51 = vpop.xlane.xlu1 %329  ;;  %v333_v52 = vpop.xlane.xlu0 %332  ;;  %v538_v8 = vadd.f32 %v2165_v34, %v500_v20  ;;  %v465_v58 = vmul.f32 %v1598_v36, %v2043_v59  ;;  %v539_v9 = vadd.f32 %v2165_v34, %v501_v46 }
 0x14e   :  { %1611 = vrsqrt.f32 %v408_v17  ;;  %v378_v26 = vmul.f32 0.0625, %v330_v51  ;;  %v379_v24 = vmul.f32 0.0625, %v333_v52  ;;  %v502_v62 = vmul.f32 %v2158_v28, %v464_v50 }
 0x14f   :  { %v1600_v11 = vpop.eup %1599  ;;  %1613 = vrsqrt.f32 %v409_v55  ;;  %v564_v40 = vpack.c.bf16 %v538_v8, %v537_v43  ;;  %v503_v14 = vmul.f32 %v2158_v28, %v465_v58 }
 0x150   :  { %v1602_v3 = vpop.eup %1601  ;;  %v410_v21 = vadd.f32 1e-05, %v378_v26  ;;  %v411_v4 = vadd.f32 1e-05, %v379_v24  ;;  %v540_v56 = vadd.f32 %v2165_v34, %v502_v62  ;;  %v466_v12 = vmul.f32 %v1600_v11, %v2046_v25 }
 0x151   :  { %1501 = vmatmul.mubr.msk.bf16.gmra.mxu0 %vm65_vm0, %v564_v40  ;;  %v336_v59 = vpop.xlane.xlu1 %335  ;;  %v339_v7 = vpop.xlane.xlu0 %338  ;;  %v467_v18 = vmul.f32 %v1602_v3, %v2055_v16  ;;  %v541_v16 = vadd.f32 %v2165_v34, %v503_v14 }
 0x152   :  { %1615 = vrsqrt.f32 %v410_v21  ;;  %v380_v44 = vmul.f32 0.0625, %v336_v59  ;;  %v381_v60 = vmul.f32 0.0625, %v339_v7  ;;  %v565_v61 = vpack.c.bf16 %v540_v56, %v539_v9 }
 0x153   :  { %v1604_v27 = vpop.eup %1603  ;;  %1617 = vrsqrt.f32 %v411_v4  ;;  %v504_v45 = vmul.f32 %v2158_v28, %v466_v12  ;;  %v505_v23 = vmul.f32 %v2158_v28, %v467_v18 }
 0x154   :  { %v1606_v2 = vpop.eup %1605  ;;  %v412_v25 = vadd.f32 1e-05, %v380_v44  ;;  %v413_v13 = vadd.f32 1e-05, %v381_v60  ;;  %1504 = vmatprep.mubr.msk.bf16.mxu0 %vm65_vm0, %v565_v61  ;;  %v468_v0 = vmul.f32 %v1604_v27, %v2058_v29 }
 0x155   :  { %v342_v15 = vpop.xlane.xlu1 %341  ;;  %v345_v30 = vpop.xlane.xlu0 %344  ;;  %v542_v1 = vadd.f32 %v2165_v34, %v504_v45  ;;  %v469_v32 = vmul.f32 %v1606_v2, %v2067_v31  ;;  %v543_v5 = vadd.f32 %v2165_v34, %v505_v23 }
 0x156   :  { %1619 = vrsqrt.f32 %v412_v25  ;;  %v382_v35 = vmul.f32 0.0625, %v342_v15  ;;  %v383_v10 = vmul.f32 0.0625, %v345_v30  ;;  %v506_v48 = vmul.f32 %v2158_v28, %v468_v0 }
 0x157   :  { %v1608_v39 = vpop.eup %1607  ;;  %1621 = vrsqrt.f32 %v413_v13  ;;  %v566_v42 = vpack.c.bf16 %v542_v1, %v541_v16  ;;  %v507_v50 = vmul.f32 %v2158_v28, %v469_v32 }
 0x158   :  { %v1610_v20 = vpop.eup %1609  ;;  %v414_v29 = vadd.f32 1e-05, %v382_v35  ;;  %v415_v46 = vadd.f32 1e-05, %v383_v10  ;;  %v544_v36 = vadd.f32 %v2165_v34, %v506_v48  ;;  %v470_v17 = vmul.f32 %v1608_v39, %v2070_v33 }
 0x159   :  { %1505 = vmatmul.mubr.msk.bf16.gmra.mxu0 %vm65_vm0, %v566_v42  ;;  %v348_v31 = vpop.xlane.xlu1 %347  ;;  %v351_v55 = vpop.xlane.xlu0 %350  ;;  %v471_v51 = vmul.f32 %v1610_v20, %v2079_v47  ;;  %v545_v47 = vadd.f32 %v2165_v34, %v507_v50 }
 0x15a   :  { %1623 = vrsqrt.f32 %v414_v29  ;;  %v384_v52 = vmul.f32 0.0625, %v348_v31  ;;  %v385_v43 = vmul.f32 0.0625, %v351_v55  ;;  %v567_v8 = vpack.c.bf16 %v544_v36, %v543_v5 }
 0x15b   :  { %v1612_v58 = vpop.eup %1611  ;;  %1625 = vrsqrt.f32 %v415_v46  ;;  %v508_v26 = vmul.f32 %v2158_v28, %v470_v17  ;;  %v509_v24 = vmul.f32 %v2158_v28, %v471_v51 }
 0x15c   :  { %v1614_v62 = vpop.eup %1613  ;;  %v416_v33 = vadd.f32 1e-05, %v384_v52  ;;  %v417_v11 = vadd.f32 1e-05, %v385_v43  ;;  %1508 = vmatprep.mubr.msk.bf16.mxu0 %vm65_vm0, %v567_v8  ;;  %v472_v40 = vmul.f32 %v1612_v58, %v2082_v37  ;;  %v1687_v58 = vmov 0  }
 0x15d   :  { %v354_v9 = vpop.xlane.xlu1 %353  ;;  %v546_v3 = vadd.f32 %v2165_v34, %v508_v26  ;;  %v473_v21 = vmul.f32 %v1614_v62, %v2091_v63  ;;  %v547_v7 = vadd.f32 %v2165_v34, %v509_v24  ;;  %1565 = vset.pattern.permute.xlu1 %v1687_v58  ;;  %1564 = vset.pattern.permute.xlu0 %v1687_v58  ;;  %v1568_v26 = vld [vmem:[%s2678_s6] sm:$0xff]   ;;  %v1083_v24 = vld [vmem:[%s2673_s1 + $0x18] sm:$0xff] }
 0x15e   :  { %1627 = vrsqrt.f32 %v416_v33  ;;  %v386_v4 = vmul.f32 0.0625, %v354_v9  ;;  %v510_v56 = vmul.f32 %v2158_v28, %v472_v40  ;;  %v1084_v62 = vld [vmem:[%s2673_s1 + $0x20] sm:$0xff]  ;;  %v1085_v33 = vld [vmem:[%s2673_s1 + $0x28] sm:$0xff]  ;;  %v1087_v40 = vld [vmem:[%s2673_s1 + $0x38] sm:$0xff] }
 0x15f   :  { %v1616_v12 = vpop.eup %1615  ;;  %1629 = vrsqrt.f32 %v417_v11  ;;  %v568_v59 = vpack.c.bf16 %v546_v3, %v545_v47  ;;  %v511_v60 = vmul.f32 %v2158_v28, %v473_v21  ;;  %v1086_v11 = vld [vmem:[%s2673_s1 + $0x30] sm:$0xff]  ;;  %v1088_v9 = vld [vmem:[%s2673_s1 + $0x40] sm:$0xff] }
 0x160   :  { %v1618_v14 = vpop.eup %1617  ;;  %v418_v18 = vadd.f32 1e-05, %v386_v4  ;;  %v548_v37 = vadd.f32 %v2165_v34, %v510_v56  ;;  %v474_v44 = vmul.f32 %v1616_v12, %v2094_v41  ;;  %v1090_v47 = vld [vmem:[%s2673_s1 + $0x50] sm:$0xff]  ;;  %v1092_v3 = vld [vmem:[%s2673_s1 + $0x60] sm:$0xff] }
 0x161   :  { %1509 = vmatmul.mubr.msk.bf16.gmra.mxu0 %vm65_vm0, %v568_v59  ;;  %v475_v63 = vmul.f32 %v1618_v14, %v2106_v19  ;;  %v549_v2 = vadd.f32 %v2165_v34, %v511_v60  ;;  %v1094_v21 = vld [vmem:[%s2673_s1 + $0x70] sm:$0xff]  ;;  %v1096_v4 = vld [vmem:[%s2673_s1 + $0x80] sm:$0xff] }
 0x162   :  { %1631 = vrsqrt.f32 %v418_v18  ;;  %v569_v61 = vpack.c.bf16 %v548_v37, %v547_v7  ;;  %v512_v27 = vmul.f32 %v2158_v28, %v474_v44  ;;  %v1098_v56 = vld [vmem:[%s2673_s1 + $0x90] sm:$0xff]  ;;  %v1080_v12 = vld [vmem:[%s2673_s1] sm:$0xff]  ;;  %v1089_v7 = vld [vmem:[%s2673_s1 + $0x48] sm:$0xff] }
 0x163   :  { %v1620_v45 = vpop.eup %1619  ;;  %v513_v13 = vmul.f32 %v2158_v28, %v475_v63  ;;  %1114 = vperm.xlu0 %1564, %v1080_v12   ;;  %v1100_v59 = vld [vmem:[%s2673_s1 + $0xa0] sm:$0xff]  ;;  %v1102_v14 = vld [vmem:[%s2673_s1 + $0xb0] sm:$0xff]  ;;  %v1091_v18 = vld [vmem:[%s2673_s1 + $0x58] sm:$0xff] }
 0x164   :  { %v1622_v23 = vpop.eup %1621  ;;  %1512 = vmatprep.mubr.msk.bf16.mxu0 %vm65_vm0, %v569_v61  ;;  %v550_v25 = vadd.f32 %v2165_v34, %v512_v27  ;;  %v476_v41 = vmul.f32 %v1620_v45, %v2109_v22  ;;  %v1104_v37 = vld [vmem:[%s2673_s1 + $0xc0] sm:$0xff]  ;;  %v1093_v44 = vld [vmem:[%s2673_s1 + $0x68] sm:$0xff]  ;;  %v1106_v60 = vld [vmem:[%s2673_s1 + $0xd0] sm:$0xff] }
 0x165   :  { %v477_v0 = vmul.f32 %v1622_v23, %v2118_v38  ;;  %v551_v1 = vadd.f32 %v2165_v34, %v513_v13  ;;  %v1095_v63 = vld [vmem:[%s2673_s1 + $0x78] sm:$0xff]  ;;  %v1108_v61 = vld [vmem:[%s2673_s1 + $0xe0] sm:$0xff]  ;;  %v1097_v27 = vld [vmem:[%s2673_s1 + $0x88] sm:$0xff] }
 0x166   :  { %v570_v15 = vpack.c.bf16 %v550_v25, %v549_v2  ;;  %v514_v19 = vmul.f32 %v2158_v28, %v476_v41  ;;  %v1110_v45 = vld [vmem:[%s2673_s1 + $0xf0] sm:$0xff]  ;;  %v1099_v23 = vld [vmem:[%s2673_s1 + $0x98] sm:$0xff]  ;;  %v1101_v2 = vld [vmem:[%s2673_s1 + $0xa8] sm:$0xff] }
 0x167   :  { %v1624_v30 = vpop.eup %1623  ;;  %v515_v10 = vmul.f32 %v2158_v28, %v477_v0  ;;  %1159 = vperm.xlu0 %1564, %v1089_v7   ;;  %v1103_v25 = vld [vmem:[%s2673_s1 + $0xb8] sm:$0xff]  ;;  %v1105_v41 = vld [vmem:[%s2673_s1 + $0xc8] sm:$0xff] }
 0x168   :  { %v1626_v16 = vpop.eup %1625  ;;  %v552_v32 = vadd.f32 %v2165_v34, %v514_v19  ;;  %v478_v35 = vmul.f32 %v1624_v30, %v2121_v49  ;;  %v1107_v13 = vld [vmem:[%s2673_s1 + $0xd8] sm:$0xff]  ;;  %v1109_v0 = vld [vmem:[%s2673_s1 + $0xe8] sm:$0xff] }
 0x169   :  { %1513 = vmatmul.mubr.msk.bf16.gmra.mxu0 %vm65_vm0, %v570_v15  ;;  %v479_v22 = vmul.f32 %v1626_v16, %v2130_v54  ;;  %v553_v5 = vadd.f32 %v2165_v34, %v515_v10  ;;  %v1111_v15 = vld [vmem:[%s2673_s1 + $0xf8] sm:$0xff]  ;;  %v2382_v16 = vld [vmem:[%s2677_s5] ss:$0 sm:$0xff] }
 0x16a   :  { %v571_v48 = vpack.c.bf16 %v552_v32, %v551_v1  ;;  %v516_v38 = vmul.f32 %v2158_v28, %v478_v35 }
 0x16b   :  { %v1628_v39 = vpop.eup %1627  ;;  %v517_v49 = vmul.f32 %v2158_v28, %v479_v22  ;;  %1169 = vperm.xlu0 %1564, %v1091_v18  }
 0x16c   :  { %v1630_v42 = vpop.eup %1629  ;;  %1516 = vmatprep.mubr.msk.bf16.mxu0 %vm65_vm0, %v571_v48  ;;  %v554_v20 = vadd.f32 %v2165_v34, %v516_v38  ;;  %v480_v29 = vmul.f32 %v1628_v39, %v2133_v53 }
 0x16d   :  { %v481_v46 = vmul.f32 %v1630_v42, %v2142_v6  ;;  %v555_v31 = vadd.f32 %v2165_v34, %v517_v49 }
 0x16e   :  { %v572_v36 = vpack.c.bf16 %v554_v20, %v553_v5  ;;  %v518_v54 = vmul.f32 %v2158_v28, %v480_v29 }
 0x16f   :  { %v1632_v17 = vpop.eup %1631  ;;  %v519_v51 = vmul.f32 %v2158_v28, %v481_v46  ;;  %1179 = vperm.xlu0 %1564, %v1093_v44  }
 0x170   :  { %v556_v55 = vadd.f32 %v2165_v34, %v518_v54  ;;  %v482_v50 = vmul.f32 %v1632_v17, %v2145_v57  ;;  %v1081_v57 = vld [vmem:[%s2673_s1 + $0x8] sm:$0xff] }
 0x171   :  { %1517 = vmatmul.mubr.msk.bf16.gmra.mxu0 %vm65_vm0, %v572_v36  ;;  %v557_v6 = vadd.f32 %v2165_v34, %v519_v51  ;;  %1119 = vperm.xlu1 %1565, %v1081_v57  }
 0x172   :  { %v573_v52 = vpack.c.bf16 %v556_v55, %v555_v31  ;;  %v520_v53 = vmul.f32 %v2158_v28, %v482_v50  ;;  %v1567_v28 = vld [vmem:[%s2678_s6 + $0x8] sm:$0xff]  }
 0x173   :  { %1524 = vmatprep.subr.bf16.mxu1 %v1567_v28  ;;  %1189 = vperm.xlu0 %1564, %v1095_v63  }
 0x174   :  { %1520 = vmatprep.mubr.msk.bf16.mxu0 %vm65_vm0, %v573_v52  ;;  %v558_v43 = vadd.f32 %v2165_v34, %v520_v53  ;;  %v1082_v34 = vld [vmem:[%s2673_s1 + $0x10] sm:$0xff]  ;;  %1525 = vmatpush3.bf16.msra.mxu1 %v1567_v28 }
 0x175   :  { %1124 = vperm.xlu1 %1565, %v1082_v34   ;;  %1526 = vmatprep.subr.bf16.mxu1 %v1568_v26 }
 0x176   :  { %v574_v8 = vpack.c.bf16 %v558_v43, %v557_v6 }
 0x177   :  { %1199 = vperm.xlu0 %1564, %v1097_v27  }
 0x178   :  { %1527 = vmatpush3.bf16.msra.mxu1 %v1568_v26 }
 0x179   :  { %1521 = vmatmul.mubr.msk.bf16.gmra.mxu0 %vm65_vm0, %v574_v8  ;;  %1129 = vperm.xlu1 %1565, %v1083_v24  }
 0x17b   :  { %1209 = vperm.xlu0 %1564, %v1099_v23  }
 0x17d   :  { %1134 = vperm.xlu1 %1565, %v1084_v62  }
 0x17f   :  { %1219 = vperm.xlu0 %1564, %v1101_v2  }
 0x181   :  { %1139 = vperm.xlu1 %1565, %v1085_v33  }
 0x183   :  { %1229 = vperm.xlu0 %1564, %v1103_v25  }
 0x185   :  { %1144 = vperm.xlu1 %1565, %v1086_v11  }
 0x187   :  { %1239 = vperm.xlu0 %1564, %v1105_v41  }
 0x189   :  { %1149 = vperm.xlu1 %1565, %v1087_v40  }
 0x18b   :  { %1249 = vperm.xlu0 %1564, %v1107_v13  }
 0x18d   :  { %1154 = vperm.xlu1 %1565, %v1088_v9  }
 0x18f   :  { %1259 = vperm.xlu0 %1564, %v1109_v0  }
 0x191   :  { %1164 = vperm.xlu1 %1565, %v1090_v47  }
 0x193   :  { %1269 = vperm.xlu0 %1564, %v1111_v15  }
 0x195   :  { %1174 = vperm.xlu1 %1565, %v1092_v3  }
 0x199   :  { %1184 = vperm.xlu1 %1565, %v1094_v21  }
 0x19d   :  { %1194 = vperm.xlu1 %1565, %v1096_v4  }
 0x1a1   :  { %1204 = vperm.xlu1 %1565, %v1098_v56  }
 0x1a5   :  { %1214 = vperm.xlu1 %1565, %v1100_v59  }
 0x1a9   :  { %1224 = vperm.xlu1 %1565, %v1102_v14  }
 0x1ad   :  { %1234 = vperm.xlu1 %1565, %v1104_v37  }
 0x1b1   :  { %1244 = vperm.xlu1 %1565, %v1106_v60  }
 0x1b5   :  { %1254 = vperm.xlu1 %1565, %v1108_v61  }
 0x1b9   :  { %1264 = vperm.xlu1 %1565, %v1110_v45  }
 0x201   :  { %v1494_v19 = vpop.f32.mrf.mxu0 }
 0x202   :  { %v681_v10 = vadd.f32 %v1494_v19, %v2382_v16 }
 0x203   :  { %v672_v30 = vpop.f32.mrf.mxu0 }
 0x204   :  { %v673_v32 = vadd.f32 %v2382_v16, %v672_v30  ;;  %v801_v20 = vmax.f32 %v681_v10, 0.0 }
 0x205   :  { %v1495_v1 = vpop.f32.mrf.mxu0 }
 0x206   :  { %v684_v35 = vadd.f32 %v1495_v1, %v2382_v16  ;;  %v799_v42 = vmax.f32 %v673_v32, 0.0 }
 0x207   :  { %v675_v22 = vpop.f32.mrf.mxu0 }
 0x208   :  { %v676_v48 = vadd.f32 %v2382_v16, %v675_v22  ;;  %v802_v38 = vmax.f32 %v684_v35, 0.0 }
 0x209   :  { %v1498_v39 = vpop.f32.mrf.mxu0 }
 0x20a   :  { %v800_v5 = vmax.f32 %v676_v48, 0.0  ;;  %v832_v46 = vpack.c.bf16 %v802_v38, %v801_v20  ;;  %v697_v31 = vadd.f32 %v1498_v39, %v2382_v16 }
 0x20b   :  { %v688_v29 = vpop.f32.mrf.mxu0 }
 0x20c   :  { %v831_v49 = vpack.c.bf16 %v800_v5, %v799_v42  ;;  %v689_v54 = vadd.f32 %v2382_v16, %v688_v29  ;;  %v805_v43 = vmax.f32 %v697_v31, 0.0 }
 0x20d   :  { %v1499_v36 = vpop.f32.mrf.mxu0 }
 0x20e   :  { %v700_v17 = vadd.f32 %v1499_v36, %v2382_v16  ;;  %1528 = vmatprep.mubr.msk.bf16.mxu1 %vm870_vm1, %v831_v49  ;;  %v803_v53 = vmax.f32 %v689_v54, 0.0 }
 0x20f   :  { %v691_v55 = vpop.f32.mrf.mxu0  ;;  %1529 = vmatmul.mubr.msk.bf16.vlgmr.msra.gmra.mxu1 %vm870_vm1, %v832_v46 }
 0x210   :  { %v692_v50 = vadd.f32 %v2382_v16, %v691_v55  ;;  %v806_v51 = vmax.f32 %v700_v17, 0.0 }
 0x211   :  { %v1502_v52 = vpop.f32.mrf.mxu0 }
 0x212   :  { %v804_v6 = vmax.f32 %v692_v50, 0.0  ;;  %v834_v57 = vpack.c.bf16 %v806_v51, %v805_v43  ;;  %v713_v24 = vadd.f32 %v1502_v52, %v2382_v16 }
 0x213   :  { %v704_v8 = vpop.f32.mrf.mxu0 }
 0x214   :  { %v833_v58 = vpack.c.bf16 %v804_v6, %v803_v53  ;;  %v705_v34 = vadd.f32 %v2382_v16, %v704_v8  ;;  %v809_v3 = vmax.f32 %v713_v24, 0.0 }
 0x215   :  { %v1503_v28 = vpop.f32.mrf.mxu0 }
 0x216   :  { %v716_v26 = vadd.f32 %v1503_v28, %v2382_v16  ;;  %1532 = vmatprep.mubr.msk.bf16.mxu1 %vm870_vm1, %v833_v58  ;;  %v807_v9 = vmax.f32 %v705_v34, 0.0 }
 0x217   :  { %v707_v62 = vpop.f32.mrf.mxu0  ;;  %1533 = vmatmul.mubr.msk.bf16.gmra.mxu1 %vm870_vm1, %v834_v57 }
 0x218   :  { %v708_v33 = vadd.f32 %v2382_v16, %v707_v62  ;;  %v810_v11 = vmax.f32 %v716_v26, 0.0 }
 0x219   :  { %v1506_v40 = vpop.f32.mrf.mxu0 }
 0x21a   :  { %v808_v47 = vmax.f32 %v708_v33, 0.0  ;;  %v836_v56 = vpack.c.bf16 %v810_v11, %v809_v3  ;;  %v729_v14 = vadd.f32 %v1506_v40, %v2382_v16 }
 0x21b   :  { %v720_v21 = vpop.f32.mrf.mxu0 }
 0x21c   :  { %v835_v4 = vpack.c.bf16 %v808_v47, %v807_v9  ;;  %v721_v59 = vadd.f32 %v2382_v16, %v720_v21  ;;  %v813_v27 = vmax.f32 %v729_v14, 0.0 }
 0x21d   :  { %v1507_v12 = vpop.f32.mrf.mxu0 }
 0x21e   :  { %v732_v7 = vadd.f32 %v1507_v12, %v2382_v16  ;;  %1536 = vmatprep.mubr.msk.bf16.mxu1 %vm870_vm1, %v835_v4  ;;  %v811_v63 = vmax.f32 %v721_v59, 0.0 }
 0x21f   :  { %v723_v18 = vpop.f32.mrf.mxu0  ;;  %1537 = vmatmul.mubr.msk.bf16.gmra.mxu1 %vm870_vm1, %v836_v56 }
 0x220   :  { %v724_v37 = vadd.f32 %v2382_v16, %v723_v18  ;;  %v814_v44 = vmax.f32 %v732_v7, 0.0 }
 0x221   :  { %v1510_v60 = vpop.f32.mrf.mxu0 }
 0x222   :  { %v812_v61 = vmax.f32 %v724_v37, 0.0  ;;  %v838_v2 = vpack.c.bf16 %v814_v44, %v813_v27  ;;  %v745_v0 = vadd.f32 %v1510_v60, %v2382_v16  ;;  %v1120_v37 = vpop.permute.xlu1 %1119 }
 0x223   :  { %v736_v45 = vpop.f32.mrf.mxu0 }
 0x224   :  { %v837_v23 = vpack.c.bf16 %v812_v61, %v811_v63  ;;  %v737_v41 = vadd.f32 %v2382_v16, %v736_v45  ;;  %v817_v10 = vmax.f32 %v745_v0, 0.0 }
 0x225   :  { %v1511_v25 = vpop.f32.mrf.mxu0 }
 0x226   :  { %v748_v13 = vadd.f32 %v1511_v25, %v2382_v16  ;;  %1540 = vmatprep.mubr.msk.bf16.mxu1 %vm870_vm1, %v837_v23  ;;  %v815_v32 = vmax.f32 %v737_v41, 0.0  ;;  %v1125_v44 = vpop.permute.xlu1 %1124  ;;  %v2445_v41 = vld [vmem:[%s2679_s7] ss:$0 sm:$0xff] }
 0x227   :  { %v739_v15 = vpop.f32.mrf.mxu0  ;;  %1541 = vmatmul.mubr.msk.bf16.gmra.mxu1 %vm870_vm1, %v838_v2 }
 0x228   :  { %v740_v19 = vadd.f32 %v2382_v16, %v739_v15  ;;  %v818_v30 = vmax.f32 %v748_v13, 0.0 }
 0x229   :  { %v1514_v1 = vpop.f32.mrf.mxu0 }
 0x22a   :  { %v816_v35 = vmax.f32 %v740_v19, 0.0  ;;  %v840_v38 = vpack.c.bf16 %v818_v30, %v817_v10  ;;  %v761_v20 = vadd.f32 %v1514_v1, %v2382_v16  ;;  %v1130_v60 = vpop.permute.xlu1 %1129  ;;  %v1633_v10 = vld [vmem:[%s2672_s0 + $0x10] sm:$0xff] }
 0x22b   :  { %v752_v22 = vpop.f32.mrf.mxu0 }
 0x22c   :  { %v839_v48 = vpack.c.bf16 %v816_v35, %v815_v32  ;;  %v753_v42 = vadd.f32 %v2382_v16, %v752_v22  ;;  %v821_v31 = vmax.f32 %v761_v20, 0.0 }
 0x22d   :  { %v1515_v39 = vpop.f32.mrf.mxu0 }
 0x22e   :  { %v764_v5 = vadd.f32 %v1515_v39, %v2382_v16  ;;  %1544 = vmatprep.mubr.msk.bf16.mxu1 %vm870_vm1, %v839_v48  ;;  %v819_v54 = vmax.f32 %v753_v42, 0.0  ;;  %v1135_v63 = vpop.permute.xlu1 %1134 }
 0x22f   :  { %v755_v29 = vpop.f32.mrf.mxu0  ;;  %1545 = vmatmul.mubr.msk.bf16.gmra.mxu1 %vm870_vm1, %v840_v38 }
 0x230   :  { %v756_v49 = vadd.f32 %v2382_v16, %v755_v29  ;;  %v822_v46 = vmax.f32 %v764_v5, 0.0  ;;  %v1634_v5 = vld [vmem:[%s2672_s0] sm:$0xff] }
 0x231   :  { %v1518_v36 = vpop.f32.mrf.mxu0 }
 0x232   :  { %v820_v17 = vmax.f32 %v756_v49, 0.0  ;;  %v842_v51 = vpack.c.bf16 %v822_v46, %v821_v31  ;;  %v777_v43 = vadd.f32 %v1518_v36, %v2382_v16  ;;  %v2432_v61 = vpop.permute.xlu1 %1139 }
 0x233   :  { %v768_v55 = vpop.f32.mrf.mxu0 }
 0x234   :  { %v841_v50 = vpack.c.bf16 %v820_v17, %v819_v54  ;;  %v769_v53 = vadd.f32 %v2382_v16, %v768_v55  ;;  %v825_v24 = vmax.f32 %v777_v43, 0.0  ;;  %v1635_v17 = vld [vmem:[%s2672_s0 + $0x18] sm:$0xff] }
 0x235   :  { %v1519_v52 = vpop.f32.mrf.mxu0 }
 0x236   :  { %v780_v6 = vadd.f32 %v1519_v52, %v2382_v16  ;;  %1548 = vmatprep.mubr.msk.bf16.mxu1 %vm870_vm1, %v841_v50  ;;  %v823_v34 = vmax.f32 %v769_v53, 0.0  ;;  %v1145_v27 = vpop.permute.xlu1 %1144 }
 0x237   :  { %v771_v8 = vpop.f32.mrf.mxu0  ;;  %1549 = vmatmul.mubr.msk.bf16.gmra.mxu1 %vm870_vm1, %v842_v51 }
 0x238   :  { %v772_v58 = vadd.f32 %v2382_v16, %v771_v8  ;;  %v826_v57 = vmax.f32 %v780_v6, 0.0  ;;  %v1636_v6 = vld [vmem:[%s2672_s0 + $0x8] sm:$0xff] }
 0x239   :  { %v1522_v28 = vpop.f32.mrf.mxu0 }
 0x23a   :  { %v824_v26 = vmax.f32 %v772_v58, 0.0  ;;  %v844_v11 = vpack.c.bf16 %v826_v57, %v825_v24  ;;  %v793_v3 = vadd.f32 %v1522_v28, %v2382_v16  ;;  %v2434_v45 = vpop.permute.xlu1 %1149 }
 0x23b   :  { %v784_v62 = vpop.f32.mrf.mxu0 }
 0x23c   :  { %v843_v33 = vpack.c.bf16 %v824_v26, %v823_v34  ;;  %v785_v9 = vadd.f32 %v2382_v16, %v784_v62  ;;  %v829_v7 = vmax.f32 %v793_v3, 0.0  ;;  %v1637_v34 = vld [vmem:[%s2672_s0 + $0x30] sm:$0xff] }
 0x23d   :  { %v1523_v40 = vpop.f32.mrf.mxu0 }
 0x23e   :  { %v796_v47 = vadd.f32 %v1523_v40, %v2382_v16  ;;  %1552 = vmatprep.mubr.msk.bf16.mxu1 %vm870_vm1, %v843_v33  ;;  %v827_v12 = vmax.f32 %v785_v9, 0.0  ;;  %v2436_v23 = vpop.permute.xlu1 %1154  ;;  %v1638_v9 = vld [vmem:[%s2672_s0 + $0x20] sm:$0xff] }
 0x23f   :  { %v787_v21 = vpop.f32.mrf.mxu0  ;;  %1553 = vmatmul.mubr.msk.bf16.gmra.mxu1 %vm870_vm1, %v844_v11 }
 0x240   :  { %v788_v4 = vadd.f32 %v2382_v16, %v787_v21  ;;  %v830_v56 = vmax.f32 %v796_v47, 0.0  ;;  %v1115_v16 = vpop.permute.xlu0 %1114 }
 0x242   :  { %v828_v59 = vmax.f32 %v788_v4, 0.0  ;;  %v846_v18 = vpack.c.bf16 %v830_v56, %v829_v7  ;;  %v2440_v25 = vpop.permute.xlu1 %1164 }
 0x244   :  { %v845_v14 = vpack.c.bf16 %v828_v59, %v827_v12  ;;  %v2438_v2 = vpop.permute.xlu0 %1159  ;;  %v1639_v59 = vld [vmem:[%s2672_s0 + $0x38] sm:$0xff] }
 0x246   :  { %1556 = vmatprep.mubr.msk.bf16.mxu1 %vm870_vm1, %v845_v14  ;;  %v2451_v32 = vpop.permute.xlu1 %1174 }
 0x247   :  { %1557 = vmatmul.mubr.msk.bf16.gmra.mxu1 %vm870_vm1, %v846_v18 }
 0x248   :  { %v2448_v15 = vpop.permute.xlu0 %1169 }
 0x24a   :  { %v2468_v51 = vpop.permute.xlu1 %1184 }
 0x24c   :  { %v2461_v46 = vpop.permute.xlu0 %1179 }
 0x24e   :  { %v2488_v4 = vpop.permute.xlu1 %1194 }
 0x250   :  { %v2480_v33 = vpop.permute.xlu0 %1189 }
 0x2cf   :  { %v1530_v13 = vpop.f32.mrf.mxu1 }
 0x2d0   :  { %v962_v0 = vadd.f32 %v1530_v13, %v2445_v41  ;;  %v2503_v13 = vpop.permute.xlu0 %1199 }
 0x2d1   :  { %v953_v19 = vpop.f32.mrf.mxu1 }
 0x2d2   :  { %v1274_v30 = vmul.f32 %v1125_v44, %v962_v0  ;;  %v954_v1 = vadd.f32 %v2445_v41, %v953_v19 }
 0x2d3   :  { %v1531_v35 = vpop.f32.mrf.mxu1 }
 0x2d4   :  { %v1306_v22 = vadd.f32 %v1633_v10, %v1274_v30  ;;  %v1272_v48 = vmul.f32 %v1115_v16, %v954_v1  ;;  %v965_v38 = vadd.f32 %v1531_v35, %v2445_v41  ;;  %v2512_v10 = vpop.permute.xlu1 %1204 }
 0x2d5   :  { %v956_v39 = vpop.f32.mrf.mxu1 }
 0x2d6   :  { %v1338_v42 = vmul.f32 %v1306_v22, %v1125_v44  ;;  %v1304_v20 = vadd.f32 %v1634_v5, %v1272_v48  ;;  %v1275_v29 = vmul.f32 %v1130_v60, %v965_v38  ;;  %v957_v49 = vadd.f32 %v2445_v41, %v956_v39 }
 0x2d7   :  { %v1534_v36 = vpop.f32.mrf.mxu1 }
 0x2d8   :  { %1370 = vst.msk [vmem:[#allocation2 + $0x10] sm:$0xff] %vm65_vm0, %v1338_v42  ;;  %v1336_v54 = vmul.f32 %v1304_v20, %v1115_v16  ;;  %v1307_v31 = vadd.f32 %v1635_v17, %v1275_v29  ;;  %v1273_v55 = vmul.f32 %v1120_v37, %v957_v49  ;;  %v978_v50 = vadd.f32 %v1534_v36, %v2445_v41  ;;  %v1643_v29 = vld [vmem:[%s2672_s0 + $0x58] sm:$0xff] }
 0x2d9   :  { %v969_v52 = vpop.f32.mrf.mxu1 }
 0x2da   :  { %1368 = vst.msk [vmem:[#allocation2] sm:$0xff] %vm65_vm0, %v1336_v54  ;;  %v1339_v53 = vmul.f32 %v1307_v31, %v1130_v60  ;;  %v1305_v43 = vadd.f32 %v1636_v6, %v1273_v55  ;;  %v1278_v8 = vmul.f32 %v1145_v27, %v978_v50  ;;  %v970_v58 = vadd.f32 %v2445_v41, %v969_v52  ;;  %v1640_v60 = vld [vmem:[%s2672_s0 + $0x28] sm:$0xff]  ;;  %v2528_v54 = vpop.permute.xlu0 %1209 }
 0x2db   :  { %v1535_v57 = vpop.f32.mrf.mxu1 }
 0x2dc   :  { %1371 = vst.msk [vmem:[#allocation2 + $0x18] sm:$0xff] %vm65_vm0, %v1339_v53  ;;  %v1337_v28 = vmul.f32 %v1305_v43, %v1120_v37  ;;  %v1310_v26 = vadd.f32 %v1637_v34, %v1278_v8  ;;  %v1276_v24 = vmul.f32 %v1135_v63, %v970_v58  ;;  %v981_v62 = vadd.f32 %v1535_v57, %v2445_v41  ;;  %v2537_v53 = vpop.permute.xlu1 %1214 }
 0x2dd   :  { %v972_v11 = vpop.f32.mrf.mxu1 }
 0x2de   :  { %1369 = vst.msk [vmem:[#allocation2 + $0x8] sm:$0xff] %vm65_vm0, %v1337_v28  ;;  %v1342_v40 = vmul.f32 %v1310_v26, %v1145_v27  ;;  %v1308_v47 = vadd.f32 %v1638_v9, %v1276_v24  ;;  %v1279_v3 = vmul.f32 %v2434_v45, %v981_v62  ;;  %v973_v21 = vadd.f32 %v2445_v41, %v972_v11  ;;  %v1646_v26 = vld [vmem:[%s2672_s0 + $0x60] sm:$0xff]  ;;  %v2553_v11 = vpop.permute.xlu0 %1219 }
 0x2df   :  { %v1538_v56 = vpop.f32.mrf.mxu1 }
 0x2e0   :  { %1374 = vst.msk [vmem:[#allocation2 + $0x30] sm:$0xff] %vm65_vm0, %v1342_v40  ;;  %v1340_v12 = vmul.f32 %v1308_v47, %v1135_v63  ;;  %v1311_v7 = vadd.f32 %v1639_v59, %v1279_v3  ;;  %v1277_v14 = vmul.f32 %v2432_v61, %v973_v21  ;;  %v994_v18 = vadd.f32 %v1538_v56, %v2445_v41  ;;  %v1225_v56 = vpop.permute.xlu1 %1224 }
 0x2e1   :  { %v985_v37 = vpop.f32.mrf.mxu1 }
 0x2e2   :  { %1372 = vst.msk [vmem:[#allocation2 + $0x20] sm:$0xff] %vm65_vm0, %v1340_v12  ;;  %v1343_v44 = vmul.f32 %v1311_v7, %v2434_v45  ;;  %v1309_v27 = vadd.f32 %v1640_v60, %v1277_v14  ;;  %v1282_v63 = vmul.f32 %v2440_v25, %v994_v18  ;;  %v986_v16 = vadd.f32 %v2445_v41, %v985_v37  ;;  %v1641_v45 = vld [vmem:[%s2672_s0 + $0x50] sm:$0xff]  ;;  %v1648_v7 = vld [vmem:[%s2672_s0 + $0x68] sm:$0xff] }
 0x2e3   :  { %v1539_v0 = vpop.f32.mrf.mxu1  ;;  %v1649_v60 = vld [vmem:[%s2672_s0 + $0x90] sm:$0xff] }
 0x2e4   :  { %1375 = vst.msk [vmem:[#allocation2 + $0x38] sm:$0xff] %vm65_vm0, %v1343_v44  ;;  %v1341_v19 = vmul.f32 %v1309_v27, %v2432_v61  ;;  %v1314_v30 = vadd.f32 %v1641_v45, %v1282_v63  ;;  %v1280_v1 = vmul.f32 %v2436_v23, %v986_v16  ;;  %v997_v35 = vadd.f32 %v1539_v0, %v2445_v41  ;;  %v1642_v61 = vld [vmem:[%s2672_s0 + $0x40] sm:$0xff]  ;;  %v1230_v16 = vpop.permute.xlu0 %1229 }
 0x2e5   :  { %v988_v22 = vpop.f32.mrf.mxu1  ;;  %v1650_v45 = vld [vmem:[%s2672_s0 + $0x80] sm:$0xff] }
 0x2e6   :  { %1373 = vst.msk [vmem:[#allocation2 + $0x28] sm:$0xff] %vm65_vm0, %v1341_v19  ;;  %v1346_v48 = vmul.f32 %v1314_v30, %v2440_v25  ;;  %v1312_v38 = vadd.f32 %v1642_v61, %v1280_v1  ;;  %v1283_v39 = vmul.f32 %v2448_v15, %v997_v35  ;;  %v989_v42 = vadd.f32 %v2445_v41, %v988_v22  ;;  %v2583_v35 = vpop.permute.xlu1 %1234 }
 0x2e7   :  { %v1542_v5 = vpop.f32.mrf.mxu1 }
 0x2e8   :  { %1378 = vst.msk [vmem:[#allocation2 + $0x50] sm:$0xff] %vm65_vm0, %v1346_v48  ;;  %v1344_v20 = vmul.f32 %v1312_v38, %v2436_v23  ;;  %v1315_v49 = vadd.f32 %v1643_v29, %v1283_v39  ;;  %v1281_v25 = vmul.f32 %v2438_v2, %v989_v42  ;;  %v1010_v36 = vadd.f32 %v1542_v5, %v2445_v41  ;;  %v1644_v23 = vld [vmem:[%s2672_s0 + $0x48] sm:$0xff] }
 0x2e9   :  { %v1001_v17 = vpop.f32.mrf.mxu1 }
 0x2ea   :  { %1376 = vst.msk [vmem:[#allocation2 + $0x40] sm:$0xff] %vm65_vm0, %v1344_v20  ;;  %v1347_v31 = vmul.f32 %v1315_v49, %v2448_v15  ;;  %v1313_v55 = vadd.f32 %v1644_v23, %v1281_v25  ;;  %v1286_v50 = vmul.f32 %v2468_v51, %v1010_v36  ;;  %v1002_v52 = vadd.f32 %v2445_v41, %v1001_v17  ;;  %v1645_v15 = vld [vmem:[%s2672_s0 + $0x70] sm:$0xff]  ;;  %v1652_v20 = vld [vmem:[%s2672_s0 + $0x88] sm:$0xff]  ;;  %v2598_v25 = vpop.permute.xlu0 %1239 }
 0x2eb   :  { %v1543_v6 = vpop.f32.mrf.mxu1 }
 0x2ec   :  { %1379 = vst.msk [vmem:[#allocation2 + $0x58] sm:$0xff] %vm65_vm0, %v1347_v31  ;;  %v1345_v43 = vmul.f32 %v1313_v55, %v2438_v2  ;;  %v1318_v8 = vadd.f32 %v1645_v15, %v1286_v50  ;;  %v1284_v58 = vmul.f32 %v2451_v32, %v1002_v52  ;;  %v1013_v57 = vadd.f32 %v1543_v6, %v2445_v41  ;;  %v1653_v31 = vld [vmem:[%s2672_s0 + $0xb0] sm:$0xff]  ;;  %v1245_v50 = vpop.permute.xlu1 %1244 }
 0x2ed   :  { %v1004_v28 = vpop.f32.mrf.mxu1 }
 0x2ee   :  { %1377 = vst.msk [vmem:[#allocation2 + $0x48] sm:$0xff] %vm65_vm0, %v1345_v43  ;;  %v1350_v34 = vmul.f32 %v1318_v8, %v2468_v51  ;;  %v1316_v24 = vadd.f32 %v1646_v26, %v1284_v58  ;;  %v1287_v2 = vmul.f32 %v2480_v33, %v1013_v57  ;;  %v1005_v62 = vadd.f32 %v2445_v41, %v1004_v28  ;;  %v1647_v51 = vld [vmem:[%s2672_s0 + $0x78] sm:$0xff]  ;;  %v1654_v43 = vld [vmem:[%s2672_s0 + $0xa0] sm:$0xff] }
 0x2ef   :  { %v1546_v40 = vpop.f32.mrf.mxu1  ;;  %v1655_v28 = vld [vmem:[%s2672_s0 + $0xb8] sm:$0xff] }
 0x2f0   :  { %1382 = vst.msk [vmem:[#allocation2 + $0x70] sm:$0xff] %vm65_vm0, %v1350_v34  ;;  %v1348_v9 = vmul.f32 %v1316_v24, %v2451_v32  ;;  %v1319_v47 = vadd.f32 %v1647_v51, %v1287_v2  ;;  %v1285_v3 = vmul.f32 %v2461_v46, %v1005_v62  ;;  %v1026_v21 = vadd.f32 %v1546_v40, %v2445_v41  ;;  %v1250_v2 = vpop.permute.xlu0 %1249 }
 0x2f1   :  { %v1017_v12 = vpop.f32.mrf.mxu1 }
 0x2f2   :  { %1380 = vst.msk [vmem:[#allocation2 + $0x60] sm:$0xff] %vm65_vm0, %v1348_v9  ;;  %v1351_v59 = vmul.f32 %v1319_v47, %v2480_v33  ;;  %v1317_v32 = vadd.f32 %v1648_v7, %v1285_v3  ;;  %v1290_v14 = vmul.f32 %v2512_v10, %v1026_v21  ;;  %v1018_v18 = vadd.f32 %v2445_v41, %v1017_v12  ;;  %v1656_v9 = vld [vmem:[%s2672_s0 + $0xa8] sm:$0xff]  ;;  %v1255_v3 = vpop.permute.xlu1 %1254  ;;  %v1657_v12 = vld [vmem:[%s2672_s0 + $0xd0] sm:$0xff] }
 0x2f3   :  { %v1547_v37 = vpop.f32.mrf.mxu1 }
 0x2f4   :  { %1383 = vst.msk [vmem:[#allocation2 + $0x78] sm:$0xff] %vm65_vm0, %v1351_v59  ;;  %v1349_v44 = vmul.f32 %v1317_v32, %v2461_v46  ;;  %v1322_v27 = vadd.f32 %v1649_v60, %v1290_v14  ;;  %v1288_v33 = vmul.f32 %v2488_v4, %v1018_v18  ;;  %v1029_v63 = vadd.f32 %v1547_v37, %v2445_v41  ;;  %v1658_v37 = vld [vmem:[%s2672_s0 + $0xc0] sm:$0xff] }
 0x2f5   :  { %v1020_v0 = vpop.f32.mrf.mxu1 }
 0x2f6   :  { %1381 = vst.msk [vmem:[#allocation2 + $0x68] sm:$0xff] %vm65_vm0, %v1349_v44  ;;  %v1354_v19 = vmul.f32 %v1322_v27, %v2512_v10  ;;  %v1320_v46 = vadd.f32 %v1650_v45, %v1288_v33  ;;  %v1291_v30 = vmul.f32 %v2528_v54, %v1029_v63  ;;  %v1021_v1 = vadd.f32 %v2445_v41, %v1020_v0  ;;  %v1651_v10 = vld [vmem:[%s2672_s0 + $0x98] sm:$0xff]  ;;  %v1260_v27 = vpop.permute.xlu0 %1259 }
 0x2f7   :  { %v1550_v22 = vpop.f32.mrf.mxu1 }
 0x2f8   :  { %1386 = vst.msk [vmem:[#allocation2 + $0x90] sm:$0xff] %vm65_vm0, %v1354_v19  ;;  %v1352_v48 = vmul.f32 %v1320_v46, %v2488_v4  ;;  %v1323_v61 = vadd.f32 %v1651_v10, %v1291_v30  ;;  %v1289_v38 = vmul.f32 %v2503_v13, %v1021_v1  ;;  %v1042_v39 = vadd.f32 %v1550_v22, %v2445_v41  ;;  %v1265_v46 = vpop.permute.xlu1 %1264  ;;  %v1660_v22 = vld [vmem:[%s2672_s0 + $0xc8] sm:$0xff] }
 0x2f9   :  { %v1033_v42 = vpop.f32.mrf.mxu1 }
 0x2fa   :  { %1384 = vst.msk [vmem:[#allocation2 + $0x80] sm:$0xff] %vm65_vm0, %v1352_v48  ;;  %v1355_v5 = vmul.f32 %v1323_v61, %v2528_v54  ;;  %v1321_v29 = vadd.f32 %v1652_v20, %v1289_v38  ;;  %v1294_v4 = vmul.f32 %v1225_v56, %v1042_v39  ;;  %v1034_v49 = vadd.f32 %v2445_v41, %v1033_v42  ;;  %v1661_v39 = vld [vmem:[%s2672_s0 + $0xf0] sm:$0xff] }
 0x2fb   :  { %v1551_v36 = vpop.f32.mrf.mxu1 }
 0x2fc   :  { %1387 = vst.msk [vmem:[#allocation2 + $0x98] sm:$0xff] %vm65_vm0, %v1355_v5  ;;  %v1353_v17 = vmul.f32 %v1321_v29, %v2503_v13  ;;  %v1326_v54 = vadd.f32 %v1653_v31, %v1294_v4  ;;  %v1292_v23 = vmul.f32 %v2537_v53, %v1034_v49  ;;  %v1045_v55 = vadd.f32 %v1551_v36, %v2445_v41  ;;  %v1270_v29 = vpop.permute.xlu0 %1269  ;;  %v1662_v36 = vld [vmem:[%s2672_s0 + $0xe0] sm:$0xff] }
 0x2fd   :  { %v1036_v52 = vpop.f32.mrf.mxu1 }
 0x2fe   :  { %1385 = vst.msk [vmem:[#allocation2 + $0x88] sm:$0xff] %vm65_vm0, %v1353_v17  ;;  %v1358_v6 = vmul.f32 %v1326_v54, %v1225_v56  ;;  %v1324_v15 = vadd.f32 %v1654_v43, %v1292_v23  ;;  %v1295_v13 = vmul.f32 %v1230_v16, %v1045_v55  ;;  %v1037_v8 = vadd.f32 %v2445_v41, %v1036_v52  ;;  %v1663_v23 = vld [vmem:[%s2672_s0 + $0xf8] sm:$0xff] }
 0x2ff   :  { %v1554_v58 = vpop.f32.mrf.mxu1 }
 0x300   :  { %1390 = vst.msk [vmem:[#allocation2 + $0xb0] sm:$0xff] %vm65_vm0, %v1358_v6  ;;  %v1356_v57 = vmul.f32 %v1324_v15, %v2537_v53  ;;  %v1327_v34 = vadd.f32 %v1655_v28, %v1295_v13  ;;  %v1293_v26 = vmul.f32 %v2553_v11, %v1037_v8  ;;  %v1058_v24 = vadd.f32 %v1554_v58, %v2445_v41  ;;  %v1664_v6 = vld [vmem:[%s2672_s0 + $0xe8] sm:$0xff] }
 0x301   :  { %v1049_v62 = vpop.f32.mrf.mxu1 }
 0x302   :  { %1388 = vst.msk [vmem:[#allocation2 + $0xa0] sm:$0xff] %vm65_vm0, %v1356_v57  ;;  %v1359_v40 = vmul.f32 %v1327_v34, %v1230_v16  ;;  %v1325_v51 = vadd.f32 %v1656_v9, %v1293_v26  ;;  %v1298_v53 = vmul.f32 %v1245_v50, %v1058_v24  ;;  %v1050_v47 = vadd.f32 %v2445_v41, %v1049_v62  ;;  %v1659_v16 = vld [vmem:[%s2672_s0 + $0xd8] sm:$0xff] }
 0x303   :  { %v1555_v21 = vpop.f32.mrf.mxu1 }
 0x304   :  { %1391 = vst.msk [vmem:[#allocation2 + $0xb8] sm:$0xff] %vm65_vm0, %v1359_v40  ;;  %v1357_v56 = vmul.f32 %v1325_v51, %v2553_v11  ;;  %v1330_v59 = vadd.f32 %v1657_v12, %v1298_v53  ;;  %v1296_v7 = vmul.f32 %v2583_v35, %v1050_v47  ;;  %v1061_v32 = vadd.f32 %v1555_v21, %v2445_v41 }
 0x305   :  { %v1052_v14 = vpop.f32.mrf.mxu1 }
 0x306   :  { %1389 = vst.msk [vmem:[#allocation2 + $0xa8] sm:$0xff] %vm65_vm0, %v1357_v56  ;;  %v1362_v18 = vmul.f32 %v1330_v59, %v1245_v50  ;;  %v1328_v44 = vadd.f32 %v1658_v37, %v1296_v7  ;;  %v1299_v60 = vmul.f32 %v1250_v2, %v1061_v32  ;;  %v1053_v11 = vadd.f32 %v2445_v41, %v1052_v14 }
 0x307   :  { %v1558_v33 = vpop.f32.mrf.mxu1 }
 0x308   :  { %1394 = vst.msk [vmem:[#allocation2 + $0xd0] sm:$0xff] %vm65_vm0, %v1362_v18  ;;  %v1360_v63 = vmul.f32 %v1328_v44, %v2583_v35  ;;  %v1331_v0 = vadd.f32 %v1659_v16, %v1299_v60  ;;  %v1297_v19 = vmul.f32 %v2598_v25, %v1053_v11  ;;  %v1074_v45 = vadd.f32 %v1558_v33, %v2445_v41 }
 0x309   :  { %v1065_v30 = vpop.f32.mrf.mxu1 }
 0x30a   :  { %1392 = vst.msk [vmem:[#allocation2 + $0xc0] sm:$0xff] %vm65_vm0, %v1360_v63  ;;  %v1363_v1 = vmul.f32 %v1331_v0, %v1250_v2  ;;  %v1329_v48 = vadd.f32 %v1660_v22, %v1297_v19  ;;  %v1302_v35 = vmul.f32 %v1265_v46, %v1074_v45  ;;  %v1066_v10 = vadd.f32 %v2445_v41, %v1065_v30 }
 0x30b   :  { %v1559_v61 = vpop.f32.mrf.mxu1 }
 0x30c   :  { %1395 = vst.msk [vmem:[#allocation2 + $0xd8] sm:$0xff] %vm65_vm0, %v1363_v1  ;;  %v1361_v38 = vmul.f32 %v1329_v48, %v2598_v25  ;;  %v1334_v42 = vadd.f32 %v1661_v39, %v1302_v35  ;;  %v1300_v5 = vmul.f32 %v1255_v3, %v1066_v10  ;;  %v1077_v20 = vadd.f32 %v1559_v61, %v2445_v41 }
 0x30d   :  { %v1068_v4 = vpop.f32.mrf.mxu1 }
 0x30e   :  { %1393 = vst.msk [vmem:[#allocation2 + $0xc8] sm:$0xff] %vm65_vm0, %v1361_v38  ;;  %v1366_v49 = vmul.f32 %v1334_v42, %v1265_v46  ;;  %v1332_v17 = vadd.f32 %v1662_v36, %v1300_v5  ;;  %v1303_v31 = vmul.f32 %v1270_v29, %v1077_v20  ;;  %v1069_v25 = vadd.f32 %v2445_v41, %v1068_v4 }
 0x310   :  { %1398 = vst.msk [vmem:[#allocation2 + $0xf0] sm:$0xff] %vm65_vm0, %v1366_v49  ;;  %v1364_v54 = vmul.f32 %v1332_v17, %v1255_v3  ;;  %v1335_v55 = vadd.f32 %v1663_v23, %v1303_v31  ;;  %v1301_v50 = vmul.f32 %v1260_v27, %v1069_v25 }
 0x312   :  { %1396 = vst.msk [vmem:[#allocation2 + $0xe0] sm:$0xff] %vm65_vm0, %v1364_v54  ;;  %v1367_v52 = vmul.f32 %v1335_v55, %v1270_v29  ;;  %v1333_v43 = vadd.f32 %v1664_v6, %v1301_v50 }
 0x314   :  { %1399 = vst.msk [vmem:[#allocation2 + $0xf8] sm:$0xff] %vm65_vm0, %v1367_v52  ;;  %v1365_v41 = vmul.f32 %v1333_v43, %v1260_v27 }
 0x316   :  { %1397 = vst.msk [vmem:[#allocation2 + $0xe8] sm:$0xff] %vm65_vm0, %v1365_v41 }
 0x317   :  { %1676 = shalt.err (!%p1673_p4)
}
 0x318   :  { %s1689_s2 = smov 128   ;;  %s1690_s3 = smov 8  }
 0x319   :  { %1411 = dma.vmem_to_hbm [thread:$0]  %s1406_s4, 4096, %s2680_s8, [#allocation3], %s1689_s2, %s1689_s2, %s1690_s3  }
 0x31a   :  { %1685 = dma.done.wait [#allocation3], 4096  }
 0x31b   :  { %1686 = vsyncadd [#allocation3], 4294963200 }
 0x31c   :  { %1415 = vsyncpa [#allocation3], 1 }

// kernel: pair_transform_layer.18
= control target key start
LH: loop header
LB: loop body
LE: loop exit
PB: predicated region body
PF: predicated region fallthrough
CT: control target
= control target key end

     0   :  { %vm179_vm0 = vcmask 64512   ;;  %v8791_v0 = vmov 0.0   ;;  %vm6493_vm1 = vmmov 0   ;;  %v6494_v49 = vmov 1966171168   ;;  %s6495_s23 = smov 120   ;;  %s8781_s1 = inlined_call_operand.vmem [shape: bf16[16,16,16], index: 1, kind: input, shape index: {}]   ;;  %s8782_s0 = inlined_call_operand.vmem [shape: bf16[16,16,16], index: 0, kind: input, shape index: {}]   ;;  %s8783_s4 = inlined_call_operand.vmem [shape: f32[16,16], index: 4, kind: input, shape index: {}]   ;;  %s8784_s5 = inlined_call_operand.vmem [shape: f32[2,16,16], index: 5, kind: input, shape index: {}]   ;;  %s8785_s2 = inlined_call_operand.vmem [shape: bf16[16,16,16], index: 2, kind: input, shape index: {}]   ;;  %s8786_s3 = inlined_call_operand.vmem [shape: f32[16,16,16], index: 3, kind: input, shape index: {}]   ;;  %s8787_s6 = inlined_call_operand.vmem [shape: bf16[16,16], index: 6, kind: input, shape index: {}]   ;;  %s8788_s7 = inlined_call_operand.vmem [shape: f32[1,16], index: 7, kind: input, shape index: {}]   ;;  %s8789_s8 = inlined_call_operand.vmem [shape: f32[16,16,16], index: 8, kind: input, shape index: {}]   ;;  %s8790_s9 = inlined_call_operand.vmem [shape: f32[16,16,16], index: 9, kind: output, shape index: {}]  }
   0x1   :  { %5663 = vmatprep.subr.bf16.mxu0 %v8791_v0  ;;  %5669 = vmatprep.subr.bf16.mxu1 %v8791_v0  ;;  %v6121_v1 = vld [vmem:[%s8781_s1] sm:$0xff]   ;;  %v6122_v2 = vld [vmem:[%s8781_s1 + $0x8] sm:$0xff]   ;;  %v6125_v5 = vld [vmem:[%s8781_s1 + $0x10] sm:$0xff]   ;;  %v1118_v50 = vunpack.c.l.s4 %v6494_v49  ;;  %v1120_v51 = vlaneseq  ;;  %vm1360_vm2 = vcmask 130048   ;;  %vm4836_vm3 = vcmask 1043456  }
   0x2   :  { %5665 = vmatprep.mubr.msk.bf16.mxu0 %vm6493_vm1, %v8791_v0  ;;  %5671 = vmatprep.mubr.msk.bf16.mxu1 %vm6493_vm1, %v8791_v0  ;;  %v184_v3 = vsel %vm179_vm0, %v6121_v1, 0  ;;  %v241_v4 = vsel %vm179_vm0, %v6122_v2, 0  ;;  %v6126_v6 = vld [vmem:[%s8781_s1 + $0x18] sm:$0xff]   ;;  %v6123_v7 = vld [vmem:[%s8782_s0] sm:$0xff]   ;;  %v6124_v8 = vld [vmem:[%s8782_s0 + $0x8] sm:$0xff]   ;;  %v298_v9 = vsel %vm179_vm0, %v6125_v5, 0 }
   0x3   :  { %5664 = vmatpush3.bf16.xpose.msra.mxu0 %v184_v3  ;;  %5670 = vmatpush3.bf16.xpose.msra.mxu1 %v241_v4  ;;  %v355_v10 = vsel %vm179_vm0, %v6126_v6, 0  ;;  %v6129_v11 = vld [vmem:[%s8781_s1 + $0x20] sm:$0xff]   ;;  %v6130_v12 = vld [vmem:[%s8781_s1 + $0x28] sm:$0xff]   ;;  %v6127_v13 = vld [vmem:[%s8782_s0 + $0x10] sm:$0xff]   ;;  %v1119_v54 = vunpack.c.0.s8 %v1118_v50  ;;  %v1121_v55 = vshrl.u32 %v1120_v51, 7 }
   0x4   :  { %5675 = vmatprep.subr.bf16.mxu0 %v8791_v0  ;;  %5681 = vmatprep.subr.bf16.mxu1 %v8791_v0  ;;  %v6128_v14 = vld [vmem:[%s8782_s0 + $0x18] sm:$0xff]   ;;  %v412_v15 = vsel %vm179_vm0, %v6129_v11, 0  ;;  %v469_v16 = vsel %vm179_vm0, %v6130_v12, 0  ;;  %v6133_v17 = vld [vmem:[%s8781_s1 + $0x30] sm:$0xff]   ;;  %v6131_v19 = vld [vmem:[%s8782_s0 + $0x20] sm:$0xff]  }
   0x5   :  { %v6134_v18 = vld [vmem:[%s8781_s1 + $0x38] sm:$0xff]   ;;  %v6132_v20 = vld [vmem:[%s8782_s0 + $0x28] sm:$0xff]   ;;  %v526_v21 = vsel %vm179_vm0, %v6133_v17, 0  ;;  %v6137_v23 = vld [vmem:[%s8781_s1 + $0x40] sm:$0xff]   ;;  %v6731_v57 = vsub.s32 %v1119_v54, %v1121_v55  ;;  %v6735_v61 = vsub.s32 0, %v1121_v55 }
   0x6   :  { %v583_v22 = vsel %vm179_vm0, %v6134_v18, 0  ;;  %v6138_v24 = vld [vmem:[%s8781_s1 + $0x48] sm:$0xff]   ;;  %v6135_v25 = vld [vmem:[%s8782_s0 + $0x30] sm:$0xff]   ;;  %v6136_v26 = vld [vmem:[%s8782_s0 + $0x38] sm:$0xff]   ;;  %v640_v27 = vsel %vm179_vm0, %v6137_v23, 0 }
   0x7   :  { %v697_v28 = vsel %vm179_vm0, %v6138_v24, 0  ;;  %v6141_v29 = vld [vmem:[%s8781_s1 + $0x50] sm:$0xff]   ;;  %v6142_v30 = vld [vmem:[%s8781_s1 + $0x58] sm:$0xff]   ;;  %v6139_v31 = vld [vmem:[%s8782_s0 + $0x40] sm:$0xff]  }
   0x8   :  { %v6140_v32 = vld [vmem:[%s8782_s0 + $0x48] sm:$0xff]   ;;  %v754_v33 = vsel %vm179_vm0, %v6141_v29, 0  ;;  %v811_v34 = vsel %vm179_vm0, %v6142_v30, 0  ;;  %v6145_v35 = vld [vmem:[%s8781_s1 + $0x60] sm:$0xff]   ;;  %v6143_v37 = vld [vmem:[%s8782_s0 + $0x50] sm:$0xff]  }
   0x9   :  { %v6146_v36 = vld [vmem:[%s8781_s1 + $0x68] sm:$0xff]   ;;  %v6144_v38 = vld [vmem:[%s8782_s0 + $0x58] sm:$0xff]   ;;  %v868_v39 = vsel %vm179_vm0, %v6145_v35, 0  ;;  %v6149_v41 = vld [vmem:[%s8781_s1 + $0x70] sm:$0xff]  }
   0xa   :  { %5666 = vmatmul.mubr.msk.bf16.vlgmr.msra.gmra.mxu0 %vm179_vm0, %v6123_v7  ;;  %5672 = vmatmul.mubr.msk.bf16.vlgmr.msra.gmra.mxu1 %vm179_vm0, %v6124_v8  ;;  %v925_v40 = vsel %vm179_vm0, %v6146_v36, 0  ;;  %v6150_v42 = vld [vmem:[%s8781_s1 + $0x78] sm:$0xff]   ;;  %v6147_v43 = vld [vmem:[%s8782_s0 + $0x60] sm:$0xff]   ;;  %v6148_v44 = vld [vmem:[%s8782_s0 + $0x68] sm:$0xff]   ;;  %v982_v45 = vsel %vm179_vm0, %v6149_v41, 0 }
   0xb   :  { %5676 = vmatpush3.bf16.xpose.msra.mxu0 %v298_v9  ;;  %5682 = vmatpush3.bf16.xpose.msra.mxu1 %v355_v10  ;;  %v1039_v46 = vsel %vm179_vm0, %v6150_v42, 0  ;;  %v6151_v47 = vld [vmem:[%s8782_s0 + $0x70] sm:$0xff]   ;;  %v6152_v48 = vld [vmem:[%s8782_s0 + $0x78] sm:$0xff]   ;;  %v163_v52 = vld [vmem:[%s8783_s4] sm:$0xff] }
   0xc   :  { %5677 = vmatprep.mubr.msk.bf16.mxu0 %vm6493_vm1, %v8791_v0  ;;  %5683 = vmatprep.mubr.msk.bf16.mxu1 %vm6493_vm1, %v8791_v0  ;;  %v5352_v53 = vadd.f32 -1.0, %v163_v52  ;;  %v6747_v7 = vld [vmem:[%s8784_s5] sm:$0xff]  ;;  %v164_v42 = vld [vmem:[%s8783_s4 + $0x8] sm:$0xff] }
   0xd   :  { %5687 = vmatprep.subr.bf16.mxu0 %v8791_v0  ;;  %5693 = vmatprep.subr.bf16.mxu1 %v8791_v0 }
   0xe   :  { %v167_v56 = vmul.f32 1e+09, %v5352_v53  ;;  %v5353_v53 = vadd.f32 -1.0, %v164_v42 }
  0x10   :  { %v1123_v58 = vrot.slane %v167_v56, %v6731_v57  ;;  %v1116_v8 = vcombine.high %v167_v56, %v167_v56 }
  0x12   :  { %5678 = vmatmul.mubr.msk.bf16.vlgmr.msra.gmra.mxu0 %vm179_vm0, %v6127_v13  ;;  %5684 = vmatmul.mubr.msk.bf16.vlgmr.msra.gmra.mxu1 %vm179_vm0, %v6128_v14  ;;  %v1131_v59 = vcombine.high %v1123_v58, %v1123_v58  ;;  %v1139_v60 = vrot.slane %v1123_v58, %v6731_v57 }
  0x13   :  { %5688 = vmatpush3.bf16.xpose.msra.mxu0 %v412_v15  ;;  %5694 = vmatpush3.bf16.xpose.msra.mxu1 %v469_v16 }
  0x14   :  { %5689 = vmatprep.mubr.msk.bf16.mxu0 %vm6493_vm1, %v8791_v0  ;;  %5695 = vmatprep.mubr.msk.bf16.mxu1 %vm6493_vm1, %v8791_v0  ;;  %v1153_v62 = vrot.slane %v1131_v59, %v6731_v57  ;;  %v6739_v63 = vrot.slane %v1139_v60, %v6735_v61  ;;  %v1161_v11 = vcombine.high %v1139_v60, %v1139_v60 }
  0x15   :  { %5699 = vmatprep.subr.bf16.mxu0 %v8791_v0  ;;  %5705 = vmatprep.subr.bf16.mxu1 %v8791_v0 }
  0x16   :  { %v6742_v2 = vrot.slane %v1153_v62, %v6735_v61  ;;  %v1163_v14 = vcombine.high %v1153_v62, %v1153_v62 }
  0x18   :  { %v6773_v29 = vrot.slane %v1163_v14, %v6735_v61 }
  0x1a   :  { %5690 = vmatmul.mubr.msk.bf16.vlgmr.msra.gmra.mxu0 %vm179_vm0, %v6131_v19  ;;  %5696 = vmatmul.mubr.msk.bf16.vlgmr.msra.gmra.mxu1 %vm179_vm0, %v6132_v20 }
  0x1b   :  { %5700 = vmatpush3.bf16.xpose.msra.mxu0 %v526_v21  ;;  %5706 = vmatpush3.bf16.xpose.msra.mxu1 %v583_v22  ;;  %v6760_v21 = vld [vmem:[%s8784_s5 + $0x8] sm:$0xff]  ;;  %v1130_v22 = vrot.slane %v1116_v8, %v6731_v57 }
  0x1c   :  { %5701 = vmatprep.mubr.msk.bf16.mxu0 %vm6493_vm1, %v8791_v0  ;;  %5707 = vmatprep.mubr.msk.bf16.mxu1 %vm6493_vm1, %v8791_v0 }
  0x1d   :  { %5711 = vmatprep.subr.bf16.mxu0 %v8791_v0  ;;  %5717 = vmatprep.subr.bf16.mxu1 %v8791_v0  ;;  %v1146_v41 = vrot.slane %v1130_v22, %v6731_v57 }
  0x1f   :  { %v6802_v58 = vrot.slane %v1146_v41, %v6735_v61  ;;  %v1162_v14 = vcombine.high %v1146_v41, %v1146_v41 }
  0x22   :  { %5702 = vmatmul.mubr.msk.bf16.vlgmr.msra.gmra.mxu0 %vm179_vm0, %v6135_v25  ;;  %5708 = vmatmul.mubr.msk.bf16.vlgmr.msra.gmra.mxu1 %vm179_vm0, %v6136_v26  ;;  %v6767_v26 = vrot.slane %v1161_v11, %v6735_v61 }
  0x23   :  { %5712 = vmatpush3.bf16.xpose.msra.mxu0 %v640_v27  ;;  %5718 = vmatpush3.bf16.xpose.msra.mxu1 %v697_v28 }
  0x24   :  { %5713 = vmatprep.mubr.msk.bf16.mxu0 %vm6493_vm1, %v8791_v0  ;;  %5719 = vmatprep.mubr.msk.bf16.mxu1 %vm6493_vm1, %v8791_v0 }
  0x25   :  { %5723 = vmatprep.subr.bf16.mxu0 %v8791_v0  ;;  %5729 = vmatprep.subr.bf16.mxu1 %v8791_v0 }
  0x2a   :  { %5714 = vmatmul.mubr.msk.bf16.vlgmr.msra.gmra.mxu0 %vm179_vm0, %v6139_v31  ;;  %5720 = vmatmul.mubr.msk.bf16.vlgmr.msra.gmra.mxu1 %vm179_vm0, %v6140_v32  ;;  %v1132_v31 = vcombine.high %v1130_v22, %v1130_v22 }
  0x2b   :  { %5724 = vmatpush3.bf16.xpose.msra.mxu0 %v754_v33  ;;  %5730 = vmatpush3.bf16.xpose.msra.mxu1 %v811_v34 }
  0x2c   :  { %5725 = vmatprep.mubr.msk.bf16.mxu0 %vm6493_vm1, %v8791_v0  ;;  %5731 = vmatprep.mubr.msk.bf16.mxu1 %vm6493_vm1, %v8791_v0 }
  0x2d   :  { %5735 = vmatprep.subr.bf16.mxu0 %v8791_v0  ;;  %5741 = vmatprep.subr.bf16.mxu1 %v8791_v0 }
  0x32   :  { %5726 = vmatmul.mubr.msk.bf16.vlgmr.msra.gmra.mxu0 %vm179_vm0, %v6143_v37  ;;  %5732 = vmatmul.mubr.msk.bf16.vlgmr.msra.gmra.mxu1 %vm179_vm0, %v6144_v38 }
  0x33   :  { %5736 = vmatpush3.bf16.xpose.msra.mxu0 %v868_v39  ;;  %5742 = vmatpush3.bf16.xpose.msra.mxu1 %v925_v40 }
  0x34   :  { %5737 = vmatprep.mubr.msk.bf16.mxu0 %vm6493_vm1, %v8791_v0  ;;  %5743 = vmatprep.mubr.msk.bf16.mxu1 %vm6493_vm1, %v8791_v0 }
  0x35   :  { %5747 = vmatprep.subr.bf16.mxu0 %v8791_v0  ;;  %5753 = vmatprep.subr.bf16.mxu1 %v8791_v0 }
  0x3a   :  { %5738 = vmatmul.mubr.msk.bf16.vlgmr.msra.gmra.mxu0 %vm179_vm0, %v6147_v43  ;;  %5744 = vmatmul.mubr.msk.bf16.vlgmr.msra.gmra.mxu1 %vm179_vm0, %v6148_v44 }
  0x3b   :  { %5748 = vmatpush3.bf16.xpose.msra.mxu0 %v982_v45  ;;  %5754 = vmatpush3.bf16.xpose.msra.mxu1 %v1039_v46  ;;  %v1160_v46 = vrot.slane %v1132_v31, %v6731_v57 }
  0x3c   :  { %5749 = vmatprep.mubr.msk.bf16.mxu0 %vm6493_vm1, %v8791_v0  ;;  %5755 = vmatprep.mubr.msk.bf16.mxu1 %vm6493_vm1, %v8791_v0 }
  0x3d   :  { %5759 = vmatprep.subr.bf16.mxu0 %v8791_v0  ;;  %5765 = vmatprep.subr.bf16.mxu1 %v8791_v0  ;;  %v6806_v60 = vrot.slane %v1160_v46, %v6735_v61 }
  0x42   :  { %5750 = vmatmul.mubr.msk.bf16.vlgmr.msra.gmra.mxu0 %vm179_vm0, %v6151_v47  ;;  %5756 = vmatmul.mubr.msk.bf16.vlgmr.msra.gmra.mxu1 %vm179_vm0, %v6152_v48 }
  0x43   :  { %5761 = vmatprep.mubr.msk.bf16.mxu0 %vm6493_vm1, %v8791_v0  ;;  %5767 = vmatprep.mubr.msk.bf16.mxu1 %vm6493_vm1, %v8791_v0 }
  0xca   :  { %v220_v1 = vpop.f32.mrf.mxu0  ;;  %v277_v4 = vpop.f32.mrf.mxu1 }
  0xcb   :  { %v1082_v3 = vmul.f32 0.35355338, %v220_v1  ;;  %v1084_v5 = vmul.f32 0.35355338, %v277_v4 }
  0xcc   :  { %v5667_v6 = vpop.f32.mrf.mxu0  ;;  %v5673_v10 = vpop.f32.mrf.mxu1 }
  0xcd   :  { %v1294_v9 = vadd.f32 %v6739_v63, %v1082_v3  ;;  %v1296_v12 = vadd.f32 %v6742_v2, %v1084_v5 }
  0xce   :  { %v223_v13 = vpop.f32.mrf.mxu0  ;;  %v280_v16 = vpop.f32.mrf.mxu1 }
  0xcf   :  { %v1083_v15 = vmul.f32 0.35355338, %v223_v13  ;;  %v6752_v17 = vadd.f32 %v6747_v7, %v1294_v9  ;;  %v1085_v18 = vmul.f32 0.35355338, %v280_v16  ;;  %v6755_v20 = vadd.f32 %v6747_v7, %v1296_v12 }
  0xd0   :  { %v5668_v19 = vpop.f32.mrf.mxu0  ;;  %v5674_v24 = vpop.f32.mrf.mxu1  ;;  %v6813_v9 = vmul.f32 1e+09, %v5353_v53 }
  0xd1   :  { %v1295_v23 = vadd.f32 %v6739_v63, %v1083_v15  ;;  %v1361_v25 = vsel %vm1360_vm2, %v6752_v17, -inf  ;;  %v1297_v27 = vadd.f32 %v6742_v2, %v1085_v18  ;;  %v1367_v28 = vsel %vm1360_vm2, %v6755_v20, -inf }
  0xd2   :  { %1362 = vmax.xlane.f32.xlu0 %v1361_v25  ;;  %v334_v30 = vpop.f32.mrf.mxu0  ;;  %1368 = vmax.xlane.f32.xlu1 %v1367_v28  ;;  %v391_v32 = vpop.f32.mrf.mxu1  ;;  %v1164_v18 = vcombine.high %v1160_v46, %v1160_v46  ;;  %v1172_v28 = vrot.slane %v6813_v9, %v6731_v57 }
  0xd3   :  { %v1086_v33 = vmul.f32 0.35355338, %v334_v30  ;;  %v6776_v34 = vadd.f32 %v6760_v21, %v1295_v23  ;;  %v1088_v35 = vmul.f32 0.35355338, %v391_v32  ;;  %v6779_v37 = vadd.f32 %v6760_v21, %v1297_v27 }
  0xd4   :  { %v5679_v36 = vpop.f32.mrf.mxu0  ;;  %v5685_v39 = vpop.f32.mrf.mxu1  ;;  %v1188_v53 = vrot.slane %v1172_v28, %v6731_v57 }
  0xd5   :  { %v1298_v38 = vadd.f32 %v6767_v26, %v1086_v33  ;;  %v1364_v40 = vsel %vm1360_vm2, %v6776_v34, -inf  ;;  %v1300_v43 = vadd.f32 %v6773_v29, %v1088_v35  ;;  %v1370_v44 = vsel %vm1360_vm2, %v6779_v37, -inf }
  0xd6   :  { %1365 = vmax.xlane.f32.xlu0 %v1364_v40  ;;  %v337_v45 = vpop.f32.mrf.mxu0  ;;  %1371 = vmax.xlane.f32.xlu1 %v1370_v44  ;;  %v394_v47 = vpop.f32.mrf.mxu1  ;;  %v6836_v35 = vrot.slane %v1162_v14, %v6735_v61  ;;  %v1180_v40 = vcombine.high %v1172_v28, %v1172_v28  ;;  %v6868_v14 = vrot.slane %v1188_v53, %v6735_v61 }
  0xd7   :  { %v1087_v48 = vmul.f32 0.35355338, %v337_v45  ;;  %v6793_v49 = vadd.f32 %v6747_v7, %v1298_v38  ;;  %v1089_v50 = vmul.f32 0.35355338, %v394_v47  ;;  %v6796_v52 = vadd.f32 %v6747_v7, %v1300_v43 }
  0xd8   :  { %v5680_v51 = vpop.f32.mrf.mxu0  ;;  %v5686_v55 = vpop.f32.mrf.mxu1  ;;  %v6840_v38 = vrot.slane %v1164_v18, %v6735_v61 }
  0xd9   :  { %v1299_v54 = vadd.f32 %v6767_v26, %v1087_v48  ;;  %v1373_v56 = vsel %vm1360_vm2, %v6793_v49, -inf  ;;  %v1301_v59 = vadd.f32 %v6773_v29, %v1089_v50  ;;  %v1379_v4 = vsel %vm1360_vm2, %v6796_v52, -inf }
  0xda   :  { %1374 = vmax.xlane.f32.xlu0 %v1373_v56  ;;  %v448_v62 = vpop.f32.mrf.mxu0  ;;  %v505_v1 = vpop.f32.mrf.mxu1  ;;  %v1202_v56 = vrot.slane %v1180_v40, %v6731_v57  ;;  %v1210_v40 = vcombine.high %v1188_v53, %v1188_v53 }
  0xdb   :  { %v1090_v3 = vmul.f32 0.35355338, %v448_v62  ;;  %v6811_v5 = vadd.f32 %v6760_v21, %v1299_v54  ;;  %v1092_v6 = vmul.f32 0.35355338, %v505_v1  ;;  %v6819_v13 = vadd.f32 %v6760_v21, %v1301_v59 }
  0xdc   :  { %v5691_v8 = vpop.f32.mrf.mxu0  ;;  %v5697_v11 = vpop.f32.mrf.mxu1 }
  0xdd   :  { %v1302_v10 = vadd.f32 %v6802_v58, %v1090_v3  ;;  %v1376_v12 = vsel %vm1360_vm2, %v6811_v5, -inf  ;;  %v1304_v15 = vadd.f32 %v6806_v60, %v1092_v6  ;;  %v1382_v32 = vsel %vm1360_vm2, %v6819_v13, -inf }
  0xde   :  { %1380 = vmax.xlane.f32.xlu0 %v1379_v4  ;;  %1377 = vmax.xlane.f32.xlu1 %v1376_v12  ;;  %v451_v16 = vpop.f32.mrf.mxu0  ;;  %v508_v19 = vpop.f32.mrf.mxu1 }
  0xdf   :  { %v1091_v22 = vmul.f32 0.35355338, %v451_v16  ;;  %v6823_v23 = vadd.f32 %v6747_v7, %v1302_v10  ;;  %v1093_v24 = vmul.f32 0.35355338, %v508_v19  ;;  %v6826_v27 = vadd.f32 %v6747_v7, %v1304_v15 }
  0xe0   :  { %v5692_v25 = vpop.f32.mrf.mxu0  ;;  %v5698_v31 = vpop.f32.mrf.mxu1  ;;  %v6872_v16 = vrot.slane %v1202_v56, %v6735_v61 }
  0xe1   :  { %v1303_v30 = vadd.f32 %v6802_v58, %v1091_v22  ;;  %v1385_v33 = vsel %vm1360_vm2, %v6823_v23, -inf  ;;  %v1305_v36 = vadd.f32 %v6806_v60, %v1093_v24  ;;  %v1391_v43 = vsel %vm1360_vm2, %v6826_v27, -inf }
  0xe2   :  { %1383 = vmax.xlane.f32.xlu1 %v1382_v32  ;;  %1386 = vmax.xlane.f32.xlu0 %v1385_v33  ;;  %v562_v39 = vpop.f32.mrf.mxu0  ;;  %v619_v41 = vpop.f32.mrf.mxu1  ;;  %v1165_v31 = vcombine.high %v6813_v9, %v6813_v9 }
  0xe3   :  { %v1094_v42 = vmul.f32 0.35355338, %v562_v39  ;;  %v6845_v44 = vadd.f32 %v6760_v21, %v1303_v30  ;;  %v1096_v45 = vmul.f32 0.35355338, %v619_v41  ;;  %v6851_v51 = vadd.f32 %v6760_v21, %v1305_v36 }
  0xe4   :  { %v5703_v46 = vpop.f32.mrf.mxu0  ;;  %v5709_v48 = vpop.f32.mrf.mxu1 }
  0xe5   :  { %v1306_v47 = vadd.f32 %v6836_v35, %v1094_v42  ;;  %v1388_v50 = vsel %vm1360_vm2, %v6845_v44, -inf  ;;  %v1308_v54 = vadd.f32 %v6840_v38, %v1096_v45  ;;  %v1394_v11 = vsel %vm1360_vm2, %v6851_v51, -inf }
  0xe6   :  { %1392 = vmax.xlane.f32.xlu0 %v1391_v43  ;;  %1389 = vmax.xlane.f32.xlu1 %v1388_v50  ;;  %v565_v55 = vpop.f32.mrf.mxu0  ;;  %v622_v59 = vpop.f32.mrf.mxu1  ;;  %v1212_v43 = vcombine.high %v1202_v56, %v1202_v56 }
  0xe7   :  { %v1095_v62 = vmul.f32 0.35355338, %v565_v55  ;;  %v6857_v1 = vadd.f32 %v6747_v7, %v1306_v47  ;;  %v1097_v3 = vmul.f32 0.35355338, %v622_v59  ;;  %v6860_v6 = vadd.f32 %v6747_v7, %v1308_v54 }
  0xe8   :  { %v5704_v4 = vpop.f32.mrf.mxu0  ;;  %v5710_v10 = vpop.f32.mrf.mxu1  ;;  %v1179_v54 = vrot.slane %v1165_v31, %v6731_v57 }
  0xe9   :  { %v1307_v8 = vadd.f32 %v6836_v35, %v1095_v62  ;;  %v1397_v12 = vsel %vm1360_vm2, %v6857_v1, -inf  ;;  %v1309_v15 = vadd.f32 %v6840_v38, %v1097_v3  ;;  %v1403_v24 = vsel %vm1360_vm2, %v6860_v6, -inf }
  0xea   :  { %1395 = vmax.xlane.f32.xlu1 %v1394_v11  ;;  %1398 = vmax.xlane.f32.xlu0 %v1397_v12  ;;  %v676_v18 = vpop.f32.mrf.mxu0  ;;  %v733_v19 = vpop.f32.mrf.mxu1  ;;  %v6901_v62 = vrot.slane %v1210_v40, %v6735_v61  ;;  %v6905_v4 = vrot.slane %v1212_v43, %v6735_v61  ;;  %v1181_v10 = vcombine.high %v1179_v54, %v1179_v54 }
  0xeb   :  { %v1098_v22 = vmul.f32 0.35355338, %v676_v18  ;;  %v6877_v25 = vadd.f32 %v6760_v21, %v1307_v8  ;;  %v1100_v28 = vmul.f32 0.35355338, %v733_v19  ;;  %v6885_v39 = vadd.f32 %v6760_v21, %v1309_v15 }
  0xec   :  { %v5715_v30 = vpop.f32.mrf.mxu0  ;;  %v5721_v33 = vpop.f32.mrf.mxu1  ;;  %v1209_v40 = vrot.slane %v1181_v10, %v6731_v57 }
  0xed   :  { %v1310_v32 = vadd.f32 %v6868_v14, %v1098_v22  ;;  %v1400_v36 = vsel %vm1360_vm2, %v6877_v25, -inf  ;;  %v1312_v41 = vadd.f32 %v6872_v16, %v1100_v28  ;;  %v1406_v59 = vsel %vm1360_vm2, %v6885_v39, -inf }
  0xee   :  { %1404 = vmax.xlane.f32.xlu0 %v1403_v24  ;;  %1401 = vmax.xlane.f32.xlu1 %v1400_v36  ;;  %v679_v42 = vpop.f32.mrf.mxu0  ;;  %v736_v45 = vpop.f32.mrf.mxu1 }
  0xef   :  { %v1099_v46 = vmul.f32 0.35355338, %v679_v42  ;;  %v6889_v9 = vadd.f32 %v6747_v7, %v1310_v32  ;;  %v1101_v47 = vmul.f32 0.35355338, %v736_v45  ;;  %v6892_v50 = vadd.f32 %v6747_v7, %v1312_v41 }
  0xf0   :  { %v5716_v48 = vpop.f32.mrf.mxu0  ;;  %v5722_v55 = vpop.f32.mrf.mxu1  ;;  %v1195_v32 = vrot.slane %v1179_v54, %v6731_v57 }
  0xf1   :  { %v1311_v53 = vadd.f32 %v6868_v14, %v1099_v46  ;;  %v1409_v56 = vsel %vm1360_vm2, %v6889_v9, -inf  ;;  %v1313_v3 = vadd.f32 %v6872_v16, %v1101_v47  ;;  %v1415_v15 = vsel %vm1360_vm2, %v6892_v50, -inf }
  0xf2   :  { %1407 = vmax.xlane.f32.xlu1 %v1406_v59  ;;  %1410 = vmax.xlane.f32.xlu0 %v1409_v56  ;;  %v790_v8 = vpop.f32.mrf.mxu0  ;;  %v847_v11 = vpop.f32.mrf.mxu1  ;;  %v6933_v57 = vrot.slane %v1195_v32, %v6735_v61  ;;  %v6937_v56 = vrot.slane %v1209_v40, %v6735_v61 }
  0xf3   :  { %v1102_v12 = vmul.f32 0.35355338, %v790_v8  ;;  %v6910_v18 = vadd.f32 %v6760_v21, %v1311_v53  ;;  %v1104_v19 = vmul.f32 0.35355338, %v847_v11  ;;  %v6916_v31 = vadd.f32 %v6760_v21, %v1313_v3 }
  0xf4   :  { %v5727_v22 = vpop.f32.mrf.mxu0  ;;  %v5733_v28 = vpop.f32.mrf.mxu1 }
  0xf5   :  { %v1314_v24 = vadd.f32 %v6901_v62, %v1102_v12  ;;  %v1412_v30 = vsel %vm1360_vm2, %v6910_v18, -inf  ;;  %v1316_v33 = vadd.f32 %v6905_v4, %v1104_v19  ;;  %v1418_v53 = vsel %vm1360_vm2, %v6916_v31, -inf }
  0xf6   :  { %1416 = vmax.xlane.f32.xlu0 %v1415_v15  ;;  %1413 = vmax.xlane.f32.xlu1 %v1412_v30  ;;  %v793_v36 = vpop.f32.mrf.mxu0  ;;  %v850_v41 = vpop.f32.mrf.mxu1 }
  0xf7   :  { %v1103_v42 = vmul.f32 0.35355338, %v793_v36  ;;  %v6922_v43 = vadd.f32 %v6747_v7, %v1314_v24  ;;  %v1105_v45 = vmul.f32 0.35355338, %v850_v41  ;;  %v6925_v47 = vadd.f32 %v6747_v7, %v1316_v33 }
  0xf8   :  { %v5728_v46 = vpop.f32.mrf.mxu0  ;;  %v5734_v54 = vpop.f32.mrf.mxu1  ;;  %v1211_v33 = vcombine.high %v1195_v32, %v1195_v32 }
  0xf9   :  { %v1315_v48 = vadd.f32 %v6901_v62, %v1103_v42  ;;  %v1421_v55 = vsel %vm1360_vm2, %v6922_v43, -inf  ;;  %v1317_v59 = vadd.f32 %v6905_v4, %v1105_v45  ;;  %v1427_v11 = vsel %vm1360_vm2, %v6925_v47, -inf }
  0xfa   :  { %1419 = vmax.xlane.f32.xlu1 %v1418_v53  ;;  %1422 = vmax.xlane.f32.xlu0 %v1421_v55  ;;  %v904_v3 = vpop.f32.mrf.mxu0  ;;  %v961_v8 = vpop.f32.mrf.mxu1  ;;  %v1213_v42 = vcombine.high %v1209_v40, %v1209_v40  ;;  %v6963_v40 = vrot.slane %v1211_v33, %v6735_v61 }
  0xfb   :  { %v1106_v10 = vmul.f32 0.35355338, %v904_v3  ;;  %v6942_v12 = vadd.f32 %v6760_v21, %v1315_v48  ;;  %v1108_v15 = vmul.f32 0.35355338, %v961_v8  ;;  %v6948_v30 = vadd.f32 %v6760_v21, %v1317_v59 }
  0xfc   :  { %v5739_v19 = vpop.f32.mrf.mxu0  ;;  %v5745_v24 = vpop.f32.mrf.mxu1 }
  0xfd   :  { %v1318_v22 = vadd.f32 %v6933_v57, %v1106_v10  ;;  %v1424_v28 = vsel %vm1360_vm2, %v6942_v12, -inf  ;;  %v1320_v36 = vadd.f32 %v6937_v56, %v1108_v15  ;;  %v1430_v32 = vsel %vm1360_vm2, %v6948_v30, -inf }
  0xfe   :  { %1428 = vmax.xlane.f32.xlu0 %v1427_v11  ;;  %1425 = vmax.xlane.f32.xlu1 %v1424_v28  ;;  %v907_v41 = vpop.f32.mrf.mxu0  ;;  %v964_v45 = vpop.f32.mrf.mxu1  ;;  %v6967_v15 = vrot.slane %v1213_v42, %v6735_v61 }
  0xff   :  { %v1107_v46 = vmul.f32 0.35355338, %v907_v41  ;;  %v6952_v48 = vadd.f32 %v6747_v7, %v1318_v22  ;;  %v1109_v54 = vmul.f32 0.35355338, %v964_v45  ;;  %v6955_v55 = vadd.f32 %v6747_v7, %v1320_v36 }
 0x100   :  { %v5740_v53 = vpop.f32.mrf.mxu0  ;;  %v5746_v3 = vpop.f32.mrf.mxu1 }
 0x101   :  { %v1319_v59 = vadd.f32 %v6933_v57, %v1107_v46  ;;  %v1433_v8 = vsel %vm1360_vm2, %v6952_v48, -inf  ;;  %v1321_v10 = vadd.f32 %v6937_v56, %v1109_v54  ;;  %v1439_v24 = vsel %vm1360_vm2, %v6955_v55, -inf }
 0x102   :  { %1431 = vmax.xlane.f32.xlu1 %v1430_v32  ;;  %1434 = vmax.xlane.f32.xlu0 %v1433_v8  ;;  %v1018_v11 = vpop.f32.mrf.mxu0  ;;  %v1075_v22 = vpop.f32.mrf.mxu1 }
 0x103   :  { %v1110_v19 = vmul.f32 0.35355338, %v1018_v11  ;;  %v6972_v28 = vadd.f32 %v6760_v21, %v1319_v59  ;;  %v1112_v41 = vmul.f32 0.35355338, %v1075_v22  ;;  %v6978_v54 = vadd.f32 %v6760_v21, %v1321_v10 }
 0x104   :  { %v5751_v36 = vpop.f32.mrf.mxu0  ;;  %v5757_v46 = vpop.f32.mrf.mxu1 }
 0x105   :  { %v1322_v33 = vadd.f32 %v6963_v40, %v1110_v19  ;;  %v1436_v45 = vsel %vm1360_vm2, %v6972_v28, -inf  ;;  %v1324_v61 = vadd.f32 %v6967_v15, %v1112_v41  ;;  %v1442_v10 = vsel %vm1360_vm2, %v6978_v54, -inf }
 0x106   :  { %1440 = vmax.xlane.f32.xlu0 %v1439_v24  ;;  %1437 = vmax.xlane.f32.xlu1 %v1436_v45  ;;  %v1021_v42 = vpop.f32.mrf.mxu0  ;;  %v1078_v3 = vpop.f32.mrf.mxu1 }
 0x107   :  { %v1111_v53 = vmul.f32 0.35355338, %v1021_v42  ;;  %v6982_v59 = vadd.f32 %v6747_v7, %v1322_v33  ;;  %v1113_v32 = vmul.f32 0.35355338, %v1078_v3  ;;  %v6985_v8 = vadd.f32 %v6747_v7, %v1324_v61 }
 0x108   :  { %v5752_v11 = vpop.f32.mrf.mxu0  ;;  %v5758_v24 = vpop.f32.mrf.mxu1 }
 0x109   :  { %v1323_v19 = vadd.f32 %v6963_v40, %v1111_v53  ;;  %v1445_v22 = vsel %vm1360_vm2, %v6982_v59, -inf  ;;  %v1325_v36 = vadd.f32 %v6967_v15, %v1113_v32  ;;  %v1451_v41 = vsel %vm1360_vm2, %v6985_v8, -inf }
 0x10a   :  { %1443 = vmax.xlane.f32.xlu1 %v1442_v10  ;;  %1446 = vmax.xlane.f32.xlu0 %v1445_v22 }
 0x10b   :  { %v6996_v7 = vadd.f32 %v6760_v21, %v1323_v19  ;;  %v6999_v33 = vadd.f32 %v6760_v21, %v1325_v36 }
 0x10d   :  { %v1448_v45 = vsel %vm1360_vm2, %v6996_v7, -inf  ;;  %v1454_v46 = vsel %vm1360_vm2, %v6999_v33, -inf }
 0x10e   :  { %1452 = vmax.xlane.f32.xlu0 %v1451_v41  ;;  %1449 = vmax.xlane.f32.xlu1 %v1448_v45 }
 0x112   :  { %1455 = vmax.xlane.f32.xlu1 %v1454_v46 }
 0x15b   :  { %v1363_v61 = vpop.xlane.xlu0 %1362  ;;  %v1369_v42 = vpop.xlane.xlu1 %1368 }
 0x15c   :  { %v1457_v53 = vsub.f32 %v6752_v17, %v1363_v61  ;;  %v1459_v3 = vsub.f32 %v6755_v20, %v1369_v42 }
 0x15e   :  { %v1489_v32 = vmul.f32 1.442695, %v1457_v53  ;;  %v1493_v11 = vmul.f32 1.442695, %v1459_v3 }
 0x15f   :  { %v1366_v19 = vpop.xlane.xlu0 %1365  ;;  %v1372_v21 = vpop.xlane.xlu1 %1371 }
 0x160   :  { %6169 = vpow2.f32 %v1489_v32  ;;  %v1458_v10 = vsub.f32 %v6776_v34, %v1366_v19  ;;  %v1460_v22 = vsub.f32 %v6779_v37, %v1372_v21 }
 0x161   :  { %6171 = vpow2.f32 %v1493_v11 }
 0x162   :  { %v1491_v24 = vmul.f32 1.442695, %v1458_v10  ;;  %v1495_v36 = vmul.f32 1.442695, %v1460_v22 }
 0x163   :  { %v1375_v41 = vpop.xlane.xlu0 %1374 }
 0x164   :  { %6173 = vpow2.f32 %v1491_v24  ;;  %v1461_v45 = vsub.f32 %v6793_v49, %v1375_v41 }
 0x165   :  { %6175 = vpow2.f32 %v1495_v36 }
 0x166   :  { %v1497_v17 = vmul.f32 1.442695, %v1461_v45 }
 0x167   :  { %v1381_v46 = vpop.xlane.xlu0 %1380  ;;  %v1378_v20 = vpop.xlane.xlu1 %1377 }
 0x168   :  { %6177 = vpow2.f32 %v1497_v17  ;;  %v1463_v61 = vsub.f32 %v6796_v52, %v1381_v46  ;;  %v1462_v42 = vsub.f32 %v6811_v5, %v1378_v20 }
 0x16a   :  { %v1501_v53 = vmul.f32 1.442695, %v1463_v61  ;;  %v1499_v34 = vmul.f32 1.442695, %v1462_v42 }
 0x16b   :  { %v1384_v3 = vpop.xlane.xlu1 %1383  ;;  %v1387_v37 = vpop.xlane.xlu0 %1386 }
 0x16c   :  { %6179 = vpow2.f32 %v1501_v53  ;;  %v1464_v32 = vsub.f32 %v6819_v13, %v1384_v3  ;;  %v1465_v11 = vsub.f32 %v6823_v23, %v1387_v37 }
 0x16d   :  { %v7014_v19 = vpop.eup %6169  ;;  %6181 = vpow2.f32 %v1499_v34 }
 0x16e   :  { %v1503_v49 = vmul.f32 1.442695, %v1464_v32  ;;  %v1505_v21 = vmul.f32 1.442695, %v1465_v11  ;;  %v1553_v10 = vsel %vm1360_vm2, %v7014_v19, 0.0  ;;  %v7018_v52 = vpop.eup %6171 }
 0x16f   :  { %v1393_v5 = vpop.xlane.xlu0 %1392  ;;  %v1390_v22 = vpop.xlane.xlu1 %1389  ;;  %1554 = vadd.xlane.f32.xlu0 %v1553_v10  ;;  %v1559_v45 = vsel %vm1360_vm2, %v7018_v52, 0.0 }
 0x170   :  { %6183 = vpow2.f32 %v1503_v49  ;;  %v1467_v24 = vsub.f32 %v6826_v27, %v1393_v5  ;;  %v1466_v13 = vsub.f32 %v6845_v44, %v1390_v22 }
 0x171   :  { %v7022_v36 = vpop.eup %6173  ;;  %6185 = vpow2.f32 %v1505_v21 }
 0x172   :  { %v1509_v23 = vmul.f32 1.442695, %v1467_v24  ;;  %v1507_v41 = vmul.f32 1.442695, %v1466_v13  ;;  %v1556_v17 = vsel %vm1360_vm2, %v7022_v36, 0.0  ;;  %v7028_v46 = vpop.eup %6175 }
 0x173   :  { %v1396_v20 = vpop.xlane.xlu1 %1395  ;;  %v1399_v61 = vpop.xlane.xlu0 %1398  ;;  %1560 = vadd.xlane.f32.xlu0 %v1559_v45  ;;  %1557 = vadd.xlane.f32.xlu1 %v1556_v17  ;;  %v1562_v37 = vsel %vm1360_vm2, %v7028_v46, 0.0 }
 0x174   :  { %6187 = vpow2.f32 %v1509_v23  ;;  %v1468_v27 = vsub.f32 %v6851_v51, %v1396_v20  ;;  %v1469_v44 = vsub.f32 %v6857_v1, %v1399_v61 }
 0x175   :  { %v7032_v42 = vpop.eup %6177  ;;  %6189 = vpow2.f32 %v1507_v41 }
 0x176   :  { %v1511_v53 = vmul.f32 1.442695, %v1468_v27  ;;  %v1513_v34 = vmul.f32 1.442695, %v1469_v44  ;;  %v1565_v3 = vsel %vm1360_vm2, %v7032_v42, 0.0 }
 0x177   :  { %v1405_v32 = vpop.xlane.xlu0 %1404  ;;  %v1402_v11 = vpop.xlane.xlu1 %1401  ;;  %1566 = vadd.xlane.f32.xlu0 %v1565_v3  ;;  %1563 = vadd.xlane.f32.xlu1 %v1562_v37 }
 0x178   :  { %6191 = vpow2.f32 %v1511_v53  ;;  %v1471_v51 = vsub.f32 %v6860_v6, %v1405_v32  ;;  %v1470_v1 = vsub.f32 %v6877_v25, %v1402_v11 }
 0x179   :  { %v7040_v49 = vpop.eup %6179  ;;  %6193 = vpow2.f32 %v1513_v34 }
 0x17a   :  { %v7042_v21 = vpop.eup %6181  ;;  %v1517_v10 = vmul.f32 1.442695, %v1471_v51  ;;  %v1515_v5 = vmul.f32 1.442695, %v1470_v1  ;;  %v1571_v22 = vsel %vm1360_vm2, %v7040_v49, 0.0 }
 0x17b   :  { %v1408_v24 = vpop.xlane.xlu1 %1407  ;;  %v1411_v13 = vpop.xlane.xlu0 %1410  ;;  %1572 = vadd.xlane.f32.xlu0 %v1571_v22  ;;  %v1568_v23 = vsel %vm1360_vm2, %v7042_v21, 0.0 }
 0x17c   :  { %6195 = vpow2.f32 %v1517_v10  ;;  %v1472_v6 = vsub.f32 %v6885_v39, %v1408_v24  ;;  %v1473_v25 = vsub.f32 %v6889_v9, %v1411_v13  ;;  %1569 = vadd.xlane.f32.xlu1 %v1568_v23 }
 0x17d   :  { %v7050_v41 = vpop.eup %6183  ;;  %6197 = vpow2.f32 %v1515_v5 }
 0x17e   :  { %v7052_v45 = vpop.eup %6185  ;;  %v1519_v17 = vmul.f32 1.442695, %v1472_v6  ;;  %v1521_v20 = vmul.f32 1.442695, %v1473_v25  ;;  %v1574_v61 = vsel %vm1360_vm2, %v7050_v41, 0.0 }
 0x17f   :  { %v1417_v27 = vpop.xlane.xlu0 %1416  ;;  %v1414_v44 = vpop.xlane.xlu1 %1413  ;;  %v1577_v53 = vsel %vm1360_vm2, %v7052_v45, 0.0 }
 0x180   :  { %6199 = vpow2.f32 %v1519_v17  ;;  %v1475_v39 = vsub.f32 %v6892_v50, %v1417_v27  ;;  %v1474_v9 = vsub.f32 %v6910_v18, %v1414_v44  ;;  %1578 = vadd.xlane.f32.xlu0 %v1577_v53  ;;  %1575 = vadd.xlane.f32.xlu1 %v1574_v61 }
 0x181   :  { %v7060_v34 = vpop.eup %6187  ;;  %6201 = vpow2.f32 %v1521_v20 }
 0x182   :  { %v7062_v3 = vpop.eup %6189  ;;  %v1525_v37 = vmul.f32 1.442695, %v1475_v39  ;;  %v1523_v32 = vmul.f32 1.442695, %v1474_v9  ;;  %v1583_v11 = vsel %vm1360_vm2, %v7060_v34, 0.0 }
 0x183   :  { %v1420_v51 = vpop.xlane.xlu1 %1419  ;;  %v1423_v1 = vpop.xlane.xlu0 %1422  ;;  %v1580_v10 = vsel %vm1360_vm2, %v7062_v3, 0.0 }
 0x184   :  { %6203 = vpow2.f32 %v1525_v37  ;;  %v1476_v50 = vsub.f32 %v6916_v31, %v1420_v51  ;;  %v1477_v18 = vsub.f32 %v6922_v43, %v1423_v1  ;;  %1584 = vadd.xlane.f32.xlu0 %v1583_v11  ;;  %1581 = vadd.xlane.f32.xlu1 %v1580_v10 }
 0x185   :  { %v7070_v5 = vpop.eup %6191  ;;  %6205 = vpow2.f32 %v1523_v32  ;;  %v7093_v32 = vld [vmem:[%s8785_s2] sm:$0xff]  }
 0x186   :  { %v7072_v22 = vpop.eup %6193  ;;  %v1527_v24 = vmul.f32 1.442695, %v1476_v50  ;;  %v1529_v13 = vmul.f32 1.442695, %v1477_v18  ;;  %v1586_v23 = vsel %vm1360_vm2, %v7070_v5, 0.0  ;;  %5760 = vmatpush3.bf16.msra.mxu0 %v7093_v32 }
 0x187   :  { %v1429_v6 = vpop.xlane.xlu0 %1428  ;;  %v1426_v25 = vpop.xlane.xlu1 %1425  ;;  %v1589_v17 = vsel %vm1360_vm2, %v7072_v22, 0.0  ;;  %5771 = vmatprep.subr.bf16.mxu0 %v8791_v0 }
 0x188   :  { %6207 = vpow2.f32 %v1527_v24  ;;  %v1479_v31 = vsub.f32 %v6925_v47, %v1429_v6  ;;  %v1478_v43 = vsub.f32 %v6942_v12, %v1426_v25  ;;  %1590 = vadd.xlane.f32.xlu0 %v1589_v17  ;;  %1587 = vadd.xlane.f32.xlu1 %v1586_v23  ;;  %v7110_v23 = vld [vmem:[%s8785_s2 + $0x8] sm:$0xff]  }
 0x189   :  { %v7080_v20 = vpop.eup %6195  ;;  %6209 = vpow2.f32 %v1529_v13  ;;  %5766 = vmatpush3.bf16.msra.mxu1 %v7110_v23 }
 0x18a   :  { %v7082_v61 = vpop.eup %6197  ;;  %v1533_v27 = vmul.f32 1.442695, %v1479_v31  ;;  %v1531_v44 = vmul.f32 1.442695, %v1478_v43  ;;  %v1595_v53 = vsel %vm1360_vm2, %v7080_v20, 0.0  ;;  %5777 = vmatprep.subr.bf16.mxu1 %v8791_v0 }
 0x18b   :  { %v1432_v39 = vpop.xlane.xlu1 %1431  ;;  %v1435_v9 = vpop.xlane.xlu0 %1434  ;;  %v1592_v37 = vsel %vm1360_vm2, %v7082_v61, 0.0 }
 0x18c   :  { %6211 = vpow2.f32 %v1533_v27  ;;  %v1480_v47 = vsub.f32 %v6948_v30, %v1432_v39  ;;  %v1481_v12 = vsub.f32 %v6952_v48, %v1435_v9  ;;  %1596 = vadd.xlane.f32.xlu0 %v1595_v53  ;;  %1593 = vadd.xlane.f32.xlu1 %v1592_v37 }
 0x18d   :  { %v7095_v11 = vpop.eup %6199  ;;  %6213 = vpow2.f32 %v1531_v44 }
 0x18e   :  { %v7097_v51 = vpop.eup %6201  ;;  %v1535_v1 = vmul.f32 1.442695, %v1480_v47  ;;  %v1537_v10 = vmul.f32 1.442695, %v1481_v12  ;;  %v1598_v50 = vsel %vm1360_vm2, %v7095_v11, 0.0 }
 0x18f   :  { %v1441_v30 = vpop.xlane.xlu0 %1440  ;;  %v1438_v48 = vpop.xlane.xlu1 %1437  ;;  %v1601_v18 = vsel %vm1360_vm2, %v7097_v51, 0.0 }
 0x190   :  { %6215 = vpow2.f32 %v1535_v1  ;;  %v1483_v24 = vsub.f32 %v6955_v55, %v1441_v30  ;;  %v1482_v13 = vsub.f32 %v6972_v28, %v1438_v48  ;;  %1602 = vadd.xlane.f32.xlu0 %v1601_v18  ;;  %1599 = vadd.xlane.f32.xlu1 %v1598_v50 }
 0x191   :  { %v7112_v6 = vpop.eup %6203  ;;  %6217 = vpow2.f32 %v1537_v10 }
 0x192   :  { %v7114_v25 = vpop.eup %6205  ;;  %v1541_v17 = vmul.f32 1.442695, %v1483_v24  ;;  %v1539_v31 = vmul.f32 1.442695, %v1482_v13  ;;  %v1607_v43 = vsel %vm1360_vm2, %v7112_v6, 0.0 }
 0x193   :  { %v1444_v55 = vpop.xlane.xlu1 %1443  ;;  %v1447_v28 = vpop.xlane.xlu0 %1446  ;;  %v1604_v27 = vsel %vm1360_vm2, %v7114_v25, 0.0 }
 0x194   :  { %6219 = vpow2.f32 %v1541_v17  ;;  %v1484_v44 = vsub.f32 %v6978_v54, %v1444_v55  ;;  %1608 = vadd.xlane.f32.xlu0 %v1607_v43  ;;  %v1485_v53 = vsub.f32 %v6982_v59, %v1447_v28  ;;  %1605 = vadd.xlane.f32.xlu1 %v1604_v27 }
 0x195   :  { %v7124_v39 = vpop.eup %6207  ;;  %6221 = vpow2.f32 %v1539_v31 }
 0x196   :  { %v7126_v9 = vpop.eup %6209  ;;  %v1543_v37 = vmul.f32 1.442695, %v1484_v44  ;;  %v1545_v47 = vmul.f32 1.442695, %v1485_v53  ;;  %v1610_v12 = vsel %vm1360_vm2, %v7124_v39, 0.0 }
 0x197   :  { %v1613_v1 = vsel %vm1360_vm2, %v7126_v9, 0.0  ;;  %v1453_v10 = vpop.xlane.xlu0 %1452 }
 0x198   :  { %6223 = vpow2.f32 %v1543_v37  ;;  %1614 = vadd.xlane.f32.xlu0 %v1613_v1  ;;  %v1487_v54 = vsub.f32 %v6985_v8, %v1453_v10  ;;  %1611 = vadd.xlane.f32.xlu1 %v1610_v12  ;;  %v6425_v1 = vld [vmem:[%s8781_s1 + $0x8] sm:$0xff]   ;;  %v6426_v10 = vld [vmem:[%s8782_s0] sm:$0xff]  }
 0x199   :  { %v7133_v59 = vpop.eup %6211  ;;  %6225 = vpow2.f32 %v1545_v47 }
 0x19a   :  { %v7135_v50 = vpop.eup %6213  ;;  %v1549_v30 = vmul.f32 1.442695, %v1487_v54  ;;  %v1619_v48 = vsel %vm1360_vm2, %v7133_v59, 0.0  ;;  %v6427_v54 = vld [vmem:[%s8781_s1] sm:$0xff]  }
 0x19b   :  { %v1616_v18 = vsel %vm1360_vm2, %v7135_v50, 0.0 }
 0x19c   :  { %6227 = vpow2.f32 %v1549_v30  ;;  %1620 = vadd.xlane.f32.xlu0 %v1619_v48  ;;  %1617 = vadd.xlane.f32.xlu1 %v1616_v18  ;;  %v1450_v30 = vpop.xlane.xlu1 %1449  ;;  %v6428_v48 = vld [vmem:[%s8782_s0 + $0x8] sm:$0xff]  }
 0x19d   :  { %v7141_v24 = vpop.eup %6215  ;;  %v1486_v18 = vsub.f32 %v6996_v7, %v1450_v30  ;;  %v6431_v7 = vld [vmem:[%s8782_s0 + $0x20] sm:$0xff]  }
 0x19e   :  { %v7143_v13 = vpop.eup %6217  ;;  %v1622_v8 = vsel %vm1360_vm2, %v7141_v24, 0.0 }
 0x19f   :  { %v1625_v17 = vsel %vm1360_vm2, %v7143_v13, 0.0 }
 0x1a0   :  { %1626 = vadd.xlane.f32.xlu0 %v1625_v17  ;;  %1623 = vadd.xlane.f32.xlu1 %v1622_v8  ;;  %v1456_v8 = vpop.xlane.xlu1 %1455  ;;  %v6429_v17 = vld [vmem:[%s8782_s0 + $0x10] sm:$0xff]  }
 0x1a1   :  { %v7149_v31 = vpop.eup %6219 }
 0x1a2   :  { %v7151_v43 = vpop.eup %6221  ;;  %v1631_v55 = vsel %vm1360_vm2, %v7149_v31, 0.0 }
 0x1a3   :  { %v1628_v28 = vsel %vm1360_vm2, %v7151_v43, 0.0 }
 0x1a4   :  { %1632 = vadd.xlane.f32.xlu0 %v1631_v55  ;;  %1629 = vadd.xlane.f32.xlu1 %v1628_v28  ;;  %v1547_v55 = vmul.f32 1.442695, %v1486_v18  ;;  %v1488_v28 = vsub.f32 %v6999_v33, %v1456_v8  ;;  %v6433_v33 = vld [vmem:[%s8782_s0 + $0x30] sm:$0xff]   ;;  %v6436_v8 = vld [vmem:[%s8782_s0 + $0x48] sm:$0xff]  }
 0x1a5   :  { %v7157_v27 = vpop.eup %6223 }
 0x1a6   :  { %v7159_v44 = vpop.eup %6225  ;;  %v1634_v53 = vsel %vm1360_vm2, %v7157_v27, 0.0  ;;  %6229 = vpow2.f32 %v1547_v55  ;;  %v6438_v55 = vld [vmem:[%s8782_s0 + $0x58] sm:$0xff]  }
 0x1a7   :  { %v1637_v37 = vsel %vm1360_vm2, %v7159_v44, 0.0 }
 0x1a8   :  { %1638 = vadd.xlane.f32.xlu0 %v1637_v37  ;;  %1635 = vadd.xlane.f32.xlu1 %v1634_v53  ;;  %v6430_v53 = vld [vmem:[%s8782_s0 + $0x18] sm:$0xff]   ;;  %v1551_v37 = vmul.f32 1.442695, %v1488_v28  ;;  %v6439_v28 = vld [vmem:[%s8782_s0 + $0x60] sm:$0xff]  }
 0x1a9   :  { %v7165_v47 = vpop.eup %6227 }
 0x1aa   :  { %v1643_v12 = vsel %vm1360_vm2, %v7165_v47, 0.0  ;;  %6231 = vpow2.f32 %v1551_v37  ;;  %v6441_v37 = vld [vmem:[%s8782_s0 + $0x68] sm:$0xff]  }
 0x1ac   :  { %1644 = vadd.xlane.f32.xlu0 %v1643_v12  ;;  %v6432_v12 = vld [vmem:[%s8782_s0 + $0x28] sm:$0xff]  }
 0x1b9   :  { %2630 = vrot.lane.b32.xlu1 %v6425_v1, %s6495_s23  ;;  %v7207_v1 = vpop.eup %6229 }
 0x1ba   :  { %v7215_v30 = vpop.eup %6231 }
 0x1bb   :  { %v1646_v18 = vsel %vm1360_vm2, %v7215_v30, 0.0 }
 0x1bd   :  { %2577 = vrot.lane.b32.xlu1 %v6426_v10, %s6495_s23  ;;  %v6434_v10 = vld [vmem:[%s8782_s0 + $0x38] sm:$0xff]  }
 0x1c2   :  { %2579 = vrot.lane.b32.xlu0 %v6427_v54, %s6495_s23  ;;  %v1640_v54 = vsel %vm1360_vm2, %v7207_v1, 0.0 }
 0x1c6   :  { %2628 = vrot.lane.b32.xlu0 %v6428_v48, %s6495_s23  ;;  %v6435_v48 = vld [vmem:[%s8782_s0 + $0x40] sm:$0xff]  }
 0x1ca   :  { %2679 = vrot.lane.b32.xlu0 %v6429_v17, %s6495_s23  ;;  %v6437_v17 = vld [vmem:[%s8782_s0 + $0x50] sm:$0xff]  }
 0x1ce   :  { %2730 = vrot.lane.b32.xlu0 %v6430_v53, %s6495_s23  ;;  %v6440_v53 = vld [vmem:[%s8781_s1 + $0x10] sm:$0xff]  }
 0x1d2   :  { %2781 = vrot.lane.b32.xlu0 %v6431_v7, %s6495_s23 }
 0x1d6   :  { %2832 = vrot.lane.b32.xlu0 %v6432_v12, %s6495_s23  ;;  %v6442_v12 = vld [vmem:[%s8781_s1 + $0x18] sm:$0xff]  }
 0x1da   :  { %2883 = vrot.lane.b32.xlu0 %v6433_v33, %s6495_s23  ;;  %v6443_v33 = vld [vmem:[%s8782_s0 + $0x70] sm:$0xff]  }
 0x1de   :  { %2934 = vrot.lane.b32.xlu0 %v6434_v10, %s6495_s23 }
 0x1e1   :  { %1641 = vadd.xlane.f32.xlu1 %v1640_v54 }
 0x1e2   :  { %2985 = vrot.lane.b32.xlu0 %v6435_v48, %s6495_s23  ;;  %v6444_v48 = vld [vmem:[%s8781_s1 + $0x20] sm:$0xff]  }
 0x1e5   :  { %1647 = vadd.xlane.f32.xlu1 %v1646_v18 }
 0x1e6   :  { %3036 = vrot.lane.b32.xlu0 %v6436_v8, %s6495_s23 }
 0x1ea   :  { %3087 = vrot.lane.b32.xlu0 %v6437_v17, %s6495_s23  ;;  %v6155_v17 = vld [vmem:[%s8785_s2 + $0x10] sm:$0xff]  }
 0x1ee   :  { %3138 = vrot.lane.b32.xlu0 %v6438_v55, %s6495_s23  ;;  %v6445_v55 = vld [vmem:[%s8781_s1 + $0x28] sm:$0xff]  }
 0x1f2   :  { %3189 = vrot.lane.b32.xlu0 %v6439_v28, %s6495_s23 }
 0x1f6   :  { %2681 = vrot.lane.b32.xlu1 %v6440_v53, %s6495_s23  ;;  %3240 = vrot.lane.b32.xlu0 %v6441_v37, %s6495_s23  ;;  %v6446_v37 = vld [vmem:[%s8781_s1 + $0x30] sm:$0xff]  }
 0x1f8   :  { %v1555_v7 = vpop.xlane.xlu0 %1554 }
 0x1f9   :  { %6233 = vrcp.f32 %v1555_v7  ;;  %v7283_v7 = vld [vmem:[%s8785_s2 + $0x30] sm:$0xff]  }
 0x1fa   :  { %2732 = vrot.lane.b32.xlu1 %v6442_v12, %s6495_s23  ;;  %3291 = vrot.lane.b32.xlu0 %v6443_v33, %s6495_s23 }
 0x1fc   :  { %v1561_v10 = vpop.xlane.xlu0 %1560  ;;  %v1558_v54 = vpop.xlane.xlu1 %1557 }
 0x1fd   :  { %6235 = vrcp.f32 %v1558_v54  ;;  %v6447_v54 = vld [vmem:[%s8781_s1 + $0x38] sm:$0xff]  }
 0x1fe   :  { %2783 = vrot.lane.b32.xlu1 %v6444_v48, %s6495_s23  ;;  %3860 = vrot.lane.b32.xlu0 %v7093_v32, %s6495_s23  ;;  %6237 = vrcp.f32 %v1561_v10  ;;  %v7272_v32 = vld [vmem:[%s8785_s2 + $0x20] sm:$0xff]  }
 0x200   :  { %v1567_v18 = vpop.xlane.xlu0 %1566  ;;  %v1564_v8 = vpop.xlane.xlu1 %1563 }
 0x201   :  { %6239 = vrcp.f32 %v1564_v8 }
 0x202   :  { %2834 = vrot.lane.b32.xlu1 %v6445_v55, %s6495_s23  ;;  %3954 = vrot.lane.b32.xlu0 %v6155_v17, %s6495_s23  ;;  %6241 = vrcp.f32 %v1567_v18  ;;  %v7296_v55 = vld [vmem:[%s8785_s2 + $0x40] sm:$0xff]  }
 0x204   :  { %v1573_v28 = vpop.xlane.xlu0 %1572 }
 0x205   :  { %v1570_v53 = vpop.xlane.xlu1 %1569 }
 0x206   :  { %6243 = vrcp.f32 %v1570_v53  ;;  %2885 = vrot.lane.b32.xlu1 %v6446_v37, %s6495_s23  ;;  %4048 = vrot.lane.b32.xlu0 %v7272_v32, %s6495_s23  ;;  %v6234_v12 = vpop.eup %6233 }
 0x207   :  { %6245 = vrcp.f32 %v1573_v28  ;;  %v1681_v18 = vmul.f32 %v6234_v12, %v7014_v19 }
 0x209   :  { %v1579_v33 = vpop.xlane.xlu0 %1578  ;;  %v1576_v10 = vpop.xlane.xlu1 %1575 }
 0x20a   :  { %2936 = vrot.lane.b32.xlu1 %v6447_v54, %s6495_s23  ;;  %4142 = vrot.lane.b32.xlu0 %v7283_v7, %s6495_s23  ;;  %v6236_v48 = vpop.eup %6235  ;;  %6247 = vrcp.f32 %v1576_v10  ;;  %v6448_v54 = vld [vmem:[%s8781_s1 + $0x40] sm:$0xff]  }
 0x20b   :  { %v1682_v8 = vmul.f32 %v6236_v48, %v7022_v36  ;;  %v6238_v28 = vpop.eup %6237  ;;  %6249 = vrcp.f32 %v1579_v33 }
 0x20c   :  { %v1683_v36 = vmul.f32 %v6238_v28, %v7018_v52 }
 0x20d   :  { %v1585_v53 = vpop.xlane.xlu0 %1584  ;;  %v1582_v37 = vpop.xlane.xlu1 %1581  ;;  %v1713_v0 = vpack.c.bf16 %v1682_v8, %v1681_v18  ;;  %v8819_v18 = vmov 0.0   ;;  %v7312_v8 = vld [vmem:[%s8785_s2 + $0x18] sm:$0xff]  }
 0x20e   :  { %2987 = vrot.lane.b32.xlu1 %v6448_v54, %s6495_s23  ;;  %4236 = vrot.lane.b32.xlu0 %v7296_v55, %s6495_s23  ;;  %v6240_v19 = vpop.eup %6239  ;;  %6251 = vrcp.f32 %v1582_v37 }
 0x20f   :  { %5762 = vmatmul.mubr.msk.bf16.vlgmr.msra.gmra.mxu0 %vm1360_vm2, %v1713_v0  ;;  %v1684_v12 = vmul.f32 %v6240_v19, %v7028_v46  ;;  %v6242_v33 = vpop.eup %6241  ;;  %6253 = vrcp.f32 %v1585_v53  ;;  %v6449_v0 = vld [vmem:[%s8781_s1 + $0x48] sm:$0xff]  }
 0x210   :  { %5772 = vmatpush3.bf16.msra.mxu0 %v6155_v17  ;;  %5773 = vmatprep.mubr.msk.bf16.mxu0 %vm6493_vm1, %v8819_v18  ;;  %v1685_v46 = vmul.f32 %v6242_v33, %v7032_v42 }
 0x211   :  { %v1591_v10 = vpop.xlane.xlu0 %1590  ;;  %v1588_v48 = vpop.xlane.xlu1 %1587  ;;  %v1714_v37 = vpack.c.bf16 %v1684_v12, %v1683_v36  ;;  %5783 = vmatprep.subr.bf16.mxu0 %v8819_v18  ;;  %v6450_v36 = vld [vmem:[%s8781_s1 + $0x50] sm:$0xff]  }
 0x212   :  { %3038 = vrot.lane.b32.xlu1 %v6449_v0, %s6495_s23  ;;  %6255 = vrcp.f32 %v1588_v48  ;;  %v6451_v0 = vld [vmem:[%s8781_s1 + $0x58] sm:$0xff]  }
 0x213   :  { %v6244_v52 = vpop.eup %6243  ;;  %5768 = vmatmul.mubr.msk.bf16.vlgmr.msra.gmra.mxu1 %vm1360_vm2, %v1714_v37  ;;  %6257 = vrcp.f32 %v1591_v10  ;;  %v7339_v37 = vld [vmem:[%s8785_s2 + $0x28] sm:$0xff]  }
 0x214   :  { %v1686_v17 = vmul.f32 %v6244_v52, %v7042_v21  ;;  %5778 = vmatpush3.bf16.msra.mxu1 %v7312_v8  ;;  %5779 = vmatprep.mubr.msk.bf16.mxu1 %vm6493_vm1, %v8819_v18  ;;  %v6246_v54 = vpop.eup %6245 }
 0x215   :  { %v1597_v28 = vpop.xlane.xlu0 %1596  ;;  %v1594_v53 = vpop.xlane.xlu1 %1593  ;;  %5789 = vmatprep.subr.bf16.mxu1 %v8819_v18  ;;  %v1687_v33 = vmul.f32 %v6246_v54, %v7040_v49  ;;  %v6452_v54 = vld [vmem:[%s8781_s1 + $0x60] sm:$0xff]  }
 0x216   :  { %v1715_v19 = vpack.c.bf16 %v1686_v17, %v1685_v46  ;;  %3089 = vrot.lane.b32.xlu1 %v6450_v36, %s6495_s23  ;;  %6259 = vrcp.f32 %v1594_v53 }
 0x217   :  { %v6248_v42 = vpop.eup %6247  ;;  %6261 = vrcp.f32 %v1597_v28 }
 0x218   :  { %5774 = vmatmul.mubr.msk.bf16.vlgmr.msra.gmra.mxu0 %vm1360_vm2, %v1715_v19  ;;  %v1688_v10 = vmul.f32 %v6248_v42, %v7050_v41  ;;  %v6250_v48 = vpop.eup %6249 }
 0x219   :  { %v1603_v21 = vpop.xlane.xlu0 %1602  ;;  %v1600_v12 = vpop.xlane.xlu1 %1599  ;;  %5784 = vmatpush3.bf16.msra.mxu0 %v7272_v32  ;;  %5785 = vmatprep.mubr.msk.bf16.mxu0 %vm6493_vm1, %v8819_v18  ;;  %v1689_v46 = vmul.f32 %v6250_v48, %v7052_v45 }
 0x21a   :  { %5795 = vmatprep.subr.bf16.mxu0 %v8819_v18  ;;  %3140 = vrot.lane.b32.xlu1 %v6451_v0, %s6495_s23  ;;  %6263 = vrcp.f32 %v1600_v12  ;;  %v1716_v49 = vpack.c.bf16 %v1688_v10, %v1687_v33  ;;  %v7366_v12 = vld [vmem:[%s8785_s2 + $0x38] sm:$0xff]  }
 0x21b   :  { %v6252_v41 = vpop.eup %6251  ;;  %6265 = vrcp.f32 %v1603_v21 }
 0x21c   :  { %5780 = vmatmul.mubr.msk.bf16.vlgmr.msra.gmra.mxu1 %vm1360_vm2, %v1716_v49  ;;  %v1690_v17 = vmul.f32 %v6252_v41, %v7062_v3  ;;  %v6254_v28 = vpop.eup %6253 }
 0x21d   :  { %v1609_v32 = vpop.xlane.xlu0 %1608  ;;  %v1606_v52 = vpop.xlane.xlu1 %1605  ;;  %5790 = vmatpush3.bf16.msra.mxu1 %v7339_v37  ;;  %5791 = vmatprep.mubr.msk.bf16.mxu1 %vm6493_vm1, %v8819_v18  ;;  %v1691_v36 = vmul.f32 %v6254_v28, %v7060_v34  ;;  %v6453_v34 = vld [vmem:[%s8781_s1 + $0x68] sm:$0xff]  }
 0x21e   :  { %6267 = vrcp.f32 %v1606_v52  ;;  %v1717_v53 = vpack.c.bf16 %v1690_v17, %v1689_v46  ;;  %5801 = vmatprep.subr.bf16.mxu1 %v8819_v18  ;;  %3191 = vrot.lane.b32.xlu1 %v6452_v54, %s6495_s23 }
 0x21f   :  { %v6256_v19 = vpop.eup %6255  ;;  %6269 = vrcp.f32 %v1609_v32  ;;  %v6454_v32 = vld [vmem:[%s8781_s1 + $0x70] sm:$0xff]  }
 0x220   :  { %5786 = vmatmul.mubr.msk.bf16.vlgmr.msra.gmra.mxu0 %vm1360_vm2, %v1717_v53  ;;  %v1692_v42 = vmul.f32 %v6256_v19, %v7070_v5  ;;  %v6258_v21 = vpop.eup %6257  ;;  %v7393_v53 = vld [vmem:[%s8785_s2 + $0x48] sm:$0xff]  }
 0x221   :  { %v1615_v45 = vpop.xlane.xlu0 %1614  ;;  %v1612_v3 = vpop.xlane.xlu1 %1611  ;;  %5796 = vmatpush3.bf16.msra.mxu0 %v7283_v7  ;;  %5797 = vmatprep.mubr.msk.bf16.mxu0 %vm6493_vm1, %v8819_v18  ;;  %v1693_v48 = vmul.f32 %v6258_v21, %v7072_v22 }
 0x222   :  { %6271 = vrcp.f32 %v1612_v3  ;;  %v1718_v33 = vpack.c.bf16 %v1692_v42, %v1691_v36  ;;  %5807 = vmatprep.subr.bf16.mxu0 %v8819_v18  ;;  %3242 = vrot.lane.b32.xlu1 %v6453_v34, %s6495_s23  ;;  %v7409_v42 = vld [vmem:[%s8785_s2 + $0x50] sm:$0xff]  }
 0x223   :  { %v6260_v5 = vpop.eup %6259  ;;  %6273 = vrcp.f32 %v1615_v45 }
 0x224   :  { %5792 = vmatmul.mubr.msk.bf16.vlgmr.msra.gmra.mxu1 %vm1360_vm2, %v1718_v33  ;;  %v1694_v0 = vmul.f32 %v6260_v5, %v7082_v61  ;;  %v6262_v49 = vpop.eup %6261 }
 0x225   :  { %v1621_v7 = vpop.xlane.xlu0 %1620  ;;  %v1618_v10 = vpop.xlane.xlu1 %1617  ;;  %5802 = vmatpush3.bf16.msra.mxu1 %v7366_v12  ;;  %5803 = vmatprep.mubr.msk.bf16.mxu1 %vm6493_vm1, %v8819_v18  ;;  %v1695_v46 = vmul.f32 %v6262_v49, %v7080_v20  ;;  %v6455_v20 = vld [vmem:[%s8781_s1 + $0x78] sm:$0xff]  }
 0x226   :  { %6275 = vrcp.f32 %v1618_v10  ;;  %v1719_v41 = vpack.c.bf16 %v1694_v0, %v1693_v48  ;;  %5813 = vmatprep.subr.bf16.mxu1 %v8819_v18  ;;  %3293 = vrot.lane.b32.xlu1 %v6454_v32, %s6495_s23  ;;  %v6164_v10 = vld [vmem:[%s8785_s2 + $0x58] sm:$0xff]  }
 0x227   :  { %v6264_v52 = vpop.eup %6263  ;;  %6277 = vrcp.f32 %v1621_v7 }
 0x228   :  { %5798 = vmatmul.mubr.msk.bf16.vlgmr.msra.gmra.mxu0 %vm1360_vm2, %v1719_v41  ;;  %v1696_v17 = vmul.f32 %v6264_v52, %v7095_v11  ;;  %v6266_v28 = vpop.eup %6265  ;;  %v6165_v41 = vld [vmem:[%s8785_s2 + $0x60] sm:$0xff]  }
 0x229   :  { %v1627_v22 = vpop.xlane.xlu0 %1626  ;;  %v1624_v61 = vpop.xlane.xlu1 %1623  ;;  %5808 = vmatpush3.bf16.msra.mxu0 %v7296_v55  ;;  %5809 = vmatprep.mubr.msk.bf16.mxu0 %vm6493_vm1, %v8819_v18  ;;  %v1697_v19 = vmul.f32 %v6266_v28, %v7097_v51  ;;  %v6456_v51 = vld [vmem:[%s8782_s0 + $0x78] sm:$0xff]  }
 0x22a   :  { %6279 = vrcp.f32 %v1624_v61  ;;  %v1720_v54 = vpack.c.bf16 %v1696_v17, %v1695_v46  ;;  %5819 = vmatprep.subr.bf16.mxu0 %v8819_v18  ;;  %3344 = vrot.lane.b32.xlu1 %v6455_v20, %s6495_s23  ;;  %v6167_v17 = vld [vmem:[%s8785_s2 + $0x70] sm:$0xff]  }
 0x22b   :  { %v6268_v11 = vpop.eup %6267  ;;  %6281 = vrcp.f32 %v1627_v22  ;;  %v6166_v22 = vld [vmem:[%s8785_s2 + $0x68] sm:$0xff]  }
 0x22c   :  { %5804 = vmatmul.mubr.msk.bf16.vlgmr.msra.gmra.mxu1 %vm1360_vm2, %v1720_v54  ;;  %v1698_v45 = vmul.f32 %v6268_v11, %v7114_v25  ;;  %v6270_v3 = vpop.eup %6269  ;;  %v6168_v54 = vld [vmem:[%s8785_s2 + $0x78] sm:$0xff]  }
 0x22d   :  { %v1630_v55 = vpop.xlane.xlu1 %1629  ;;  %v1633_v36 = vpop.xlane.xlu0 %1632  ;;  %5814 = vmatpush3.bf16.msra.mxu1 %v7393_v53  ;;  %5815 = vmatprep.mubr.msk.bf16.mxu1 %vm6493_vm1, %v8819_v18  ;;  %v1699_v34 = vmul.f32 %v6270_v3, %v7112_v6 }
 0x22e   :  { %6283 = vrcp.f32 %v1630_v55  ;;  %v1721_v21 = vpack.c.bf16 %v1698_v45, %v1697_v19  ;;  %5825 = vmatprep.subr.bf16.mxu1 %v8819_v18  ;;  %3342 = vrot.lane.b32.xlu1 %v6456_v51, %s6495_s23 }
 0x22f   :  { %v6272_v25 = vpop.eup %6271  ;;  %6285 = vrcp.f32 %v1633_v36 }
 0x230   :  { %5810 = vmatmul.mubr.msk.bf16.vlgmr.msra.gmra.mxu0 %vm1360_vm2, %v1721_v21  ;;  %v1700_v5 = vmul.f32 %v6272_v25, %v7124_v39  ;;  %v6274_v7 = vpop.eup %6273 }
 0x231   :  { %v1636_v33 = vpop.xlane.xlu1 %1635  ;;  %5820 = vmatpush3.bf16.msra.mxu0 %v7409_v42  ;;  %5821 = vmatprep.mubr.msk.bf16.mxu0 %vm6493_vm1, %v8819_v18  ;;  %v1701_v39 = vmul.f32 %v6274_v7, %v7126_v9 }
 0x232   :  { %6287 = vrcp.f32 %v1636_v33  ;;  %v1722_v48 = vpack.c.bf16 %v1700_v5, %v1699_v34  ;;  %5831 = vmatprep.subr.bf16.mxu0 %v8819_v18  ;;  %3907 = vrot.lane.b32.xlu1 %v7110_v23, %s6495_s23 }
 0x233   :  { %v6276_v6 = vpop.eup %6275 }
 0x234   :  { %5816 = vmatmul.mubr.msk.bf16.vlgmr.msra.gmra.mxu1 %vm1360_vm2, %v1722_v48  ;;  %v1702_v0 = vmul.f32 %v6276_v6, %v7135_v50  ;;  %v6278_v49 = vpop.eup %6277 }
 0x235   :  { %5826 = vmatpush3.bf16.msra.mxu1 %v6164_v10  ;;  %5827 = vmatprep.mubr.msk.bf16.mxu1 %vm6493_vm1, %v8819_v18  ;;  %v1703_v9 = vmul.f32 %v6278_v49, %v7133_v59 }
 0x236   :  { %v1723_v32 = vpack.c.bf16 %v1702_v0, %v1701_v39  ;;  %5837 = vmatprep.subr.bf16.mxu1 %v8819_v18  ;;  %4001 = vrot.lane.b32.xlu1 %v7312_v8, %s6495_s23 }
 0x237   :  { %v6280_v23 = vpop.eup %6279 }
 0x238   :  { %5822 = vmatmul.mubr.msk.bf16.vlgmr.msra.gmra.mxu0 %vm1360_vm2, %v1723_v32  ;;  %v1704_v50 = vmul.f32 %v6280_v23, %v7141_v24  ;;  %v6282_v52 = vpop.eup %6281 }
 0x239   :  { %5832 = vmatpush3.bf16.msra.mxu0 %v6165_v41  ;;  %5833 = vmatprep.mubr.msk.bf16.mxu0 %vm6493_vm1, %v8819_v18  ;;  %v1705_v59 = vmul.f32 %v6282_v52, %v7143_v13 }
 0x23a   :  { %v1724_v61 = vpack.c.bf16 %v1704_v50, %v1703_v9  ;;  %5843 = vmatprep.subr.bf16.mxu0 %v8819_v18  ;;  %4095 = vrot.lane.b32.xlu1 %v7339_v37, %s6495_s23 }
 0x23b   :  { %v6284_v8 = vpop.eup %6283 }
 0x23c   :  { %5828 = vmatmul.mubr.msk.bf16.vlgmr.msra.gmra.mxu1 %vm1360_vm2, %v1724_v61  ;;  %v1706_v24 = vmul.f32 %v6284_v8, %v7151_v43  ;;  %v6286_v46 = vpop.eup %6285 }
 0x23d   :  { %5838 = vmatpush3.bf16.msra.mxu1 %v6166_v22  ;;  %5839 = vmatprep.mubr.msk.bf16.mxu1 %vm6493_vm1, %v8819_v18  ;;  %v1707_v13 = vmul.f32 %v6286_v46, %v7149_v31  ;;  %v1639_v31 = vpop.xlane.xlu0 %1638 }
 0x23e   :  { %v1725_v28 = vpack.c.bf16 %v1706_v24, %v1705_v59  ;;  %5849 = vmatprep.subr.bf16.mxu1 %v8819_v18  ;;  %4189 = vrot.lane.b32.xlu1 %v7366_v12, %s6495_s23  ;;  %6289 = vrcp.f32 %v1639_v31 }
 0x23f   :  { %v6288_v37 = vpop.eup %6287 }
 0x240   :  { %5834 = vmatmul.mubr.msk.bf16.vlgmr.msra.gmra.mxu0 %vm1360_vm2, %v1725_v28  ;;  %v1708_v43 = vmul.f32 %v6288_v37, %v7157_v27  ;;  %v2631_v27 = vpop.permute.xlu1 %2630 }
 0x241   :  { %5844 = vmatpush3.bf16.msra.mxu0 %v6167_v17  ;;  %5845 = vmatprep.mubr.msk.bf16.mxu0 %vm6493_vm1, %v8819_v18  ;;  %v1645_v12 = vpop.xlane.xlu0 %1644 }
 0x242   :  { %v1726_v20 = vpack.c.bf16 %v1708_v43, %v1707_v13  ;;  %5855 = vmatprep.subr.bf16.mxu0 %v8819_v18  ;;  %4283 = vrot.lane.b32.xlu1 %v7393_v53, %s6495_s23 }
 0x244   :  { %5840 = vmatmul.mubr.msk.bf16.vlgmr.msra.gmra.mxu1 %vm1360_vm2, %v1726_v20  ;;  %v2578_v11 = vpop.permute.xlu1 %2577 }
 0x245   :  { %5850 = vmatpush3.bf16.msra.mxu1 %v6168_v54  ;;  %5851 = vmatprep.mubr.msk.bf16.mxu1 %vm6493_vm1, %v8819_v18  ;;  %v2580_v55 = vpop.permute.xlu0 %2579 }
 0x246   :  { %5861 = vmatprep.subr.bf16.mxu1 %v8819_v18  ;;  %4330 = vrot.lane.b32.xlu1 %v7409_v42, %s6495_s23 }
 0x249   :  { %v2629_v19 = vpop.permute.xlu0 %2628 }
 0x24a   :  { %4377 = vrot.lane.b32.xlu1 %v6164_v10, %s6495_s23  ;;  %v2585_v10 = vsel %vm179_vm0, %v2580_v55, 0 }
 0x24b   :  { %v6290_v21 = vpop.eup %6289 }
 0x24c   :  { %v1709_v33 = vmul.f32 %v6290_v21, %v7159_v44 }
 0x24d   :  { %v2680_v36 = vpop.permute.xlu0 %2679 }
 0x251   :  { %v2731_v42 = vpop.permute.xlu0 %2730 }
 0x255   :  { %v2782_v44 = vpop.permute.xlu0 %2781 }
 0x259   :  { %v2833_v32 = vpop.permute.xlu0 %2832 }
 0x25d   :  { %v2884_v50 = vpop.permute.xlu0 %2883 }
 0x261   :  { %v2935_v8 = vpop.permute.xlu0 %2934 }
 0x265   :  { %v2986_v46 = vpop.permute.xlu0 %2985 }
 0x269   :  { %v3037_v13 = vpop.permute.xlu0 %3036 }
 0x26a   :  { %v1642_v53 = vpop.xlane.xlu1 %1641 }
 0x26b   :  { %6291 = vrcp.f32 %v1642_v53 }
 0x26c   :  { %6293 = vrcp.f32 %v1645_v12 }
 0x26d   :  { %v3088_v20 = vpop.permute.xlu0 %3087 }
 0x26e   :  { %v1648_v45 = vpop.xlane.xlu1 %1647 }
 0x26f   :  { %6295 = vrcp.f32 %v1648_v45 }
 0x272   :  { %v2682_v3 = vpop.permute.xlu1 %2681 }
 0x276   :  { %v2733_v51 = vpop.permute.xlu1 %2732 }
 0x277   :  { %v2738_v9 = vsel %vm179_vm0, %v2733_v51, 0 }
 0x278   :  { %v6292_v25 = vpop.eup %6291 }
 0x279   :  { %v1710_v34 = vmul.f32 %v6292_v25, %v7207_v1  ;;  %v6294_v5 = vpop.eup %6293  ;;  %v2636_v1 = vsel %vm179_vm0, %v2631_v27, 0 }
 0x27a   :  { %v2784_v7 = vpop.permute.xlu1 %2783  ;;  %v1711_v39 = vmul.f32 %v6294_v5, %v7165_v47  ;;  %v129_v5 = vld [vmem:[%s8786_s3] sm:$0xff] }
 0x27b   :  { %v1727_v48 = vpack.c.bf16 %v1710_v34, %v1709_v33  ;;  %v2789_v22 = vsel %vm179_vm0, %v2784_v7, 0 }
 0x27c   :  { %v6296_v6 = vpop.eup %6295 }
 0x27d   :  { %5846 = vmatmul.mubr.msk.bf16.vlgmr.msra.gmra.mxu0 %vm1360_vm2, %v1727_v48  ;;  %v1712_v0 = vmul.f32 %v6296_v6, %v7215_v30  ;;  %v2687_v30 = vsel %vm179_vm0, %v2682_v3, 0 }
 0x27e   :  { %5856 = vmatpush3.bf16.xpose.msra.mxu0 %v2585_v10  ;;  %5857 = vmatprep.mubr.msk.bf16.mxu0 %vm6493_vm1, %v8819_v18  ;;  %v2835_v49 = vpop.permute.xlu1 %2834  ;;  %v130_v10 = vld [vmem:[%s8786_s3 + $0x8] sm:$0xff] }
 0x27f   :  { %v1728_v41 = vpack.c.bf16 %v1712_v0, %v1711_v39  ;;  %5867 = vmatprep.subr.bf16.mxu0 %v8819_v18  ;;  %v2840_v61 = vsel %vm179_vm0, %v2835_v49, 0  ;;  %v131_v49 = vld [vmem:[%s8786_s3 + $0x10] sm:$0xff] }
 0x281   :  { %5852 = vmatmul.mubr.msk.bf16.vlgmr.msra.gmra.mxu1 %vm1360_vm2, %v1728_v41 }
 0x282   :  { %5862 = vmatpush3.bf16.xpose.msra.mxu1 %v2636_v1  ;;  %5863 = vmatprep.mubr.msk.bf16.mxu1 %vm6493_vm1, %v8819_v18  ;;  %v2886_v47 = vpop.permute.xlu1 %2885  ;;  %v132_v1 = vld [vmem:[%s8786_s3 + $0x18] sm:$0xff] }
 0x283   :  { %5873 = vmatprep.subr.bf16.mxu1 %v8819_v18  ;;  %v2891_v24 = vsel %vm179_vm0, %v2886_v47, 0 }
 0x285   :  { %5858 = vmatmul.mubr.msk.bf16.vlgmr.msra.gmra.mxu0 %vm179_vm0, %v2578_v11  ;;  %v3139_v11 = vpop.permute.xlu0 %3138 }
 0x286   :  { %5868 = vmatpush3.bf16.xpose.msra.mxu0 %v2687_v30  ;;  %5869 = vmatprep.mubr.msk.bf16.mxu0 %vm6493_vm1, %v8819_v18  ;;  %v2937_v23 = vpop.permute.xlu1 %2936 }
 0x287   :  { %5879 = vmatprep.subr.bf16.mxu0 %v8819_v18  ;;  %v2942_v28 = vsel %vm179_vm0, %v2937_v23, 0 }
 0x289   :  { %5864 = vmatmul.mubr.msk.bf16.vlgmr.msra.gmra.mxu1 %vm179_vm0, %v2629_v19  ;;  %v3190_v19 = vpop.permute.xlu0 %3189 }
 0x28a   :  { %5874 = vmatpush3.bf16.xpose.msra.mxu1 %v2738_v9  ;;  %5875 = vmatprep.mubr.msk.bf16.mxu1 %vm6493_vm1, %v8819_v18  ;;  %v2988_v52 = vpop.permute.xlu1 %2987 }
 0x28b   :  { %5885 = vmatprep.subr.bf16.mxu1 %v8819_v18  ;;  %v2993_v37 = vsel %vm179_vm0, %v2988_v52, 0 }
 0x28d   :  { %5870 = vmatmul.mubr.msk.bf16.vlgmr.msra.gmra.mxu0 %vm179_vm0, %v2680_v36  ;;  %v3241_v21 = vpop.permute.xlu0 %3240 }
 0x28e   :  { %5880 = vmatpush3.bf16.xpose.msra.mxu0 %v2789_v22  ;;  %5881 = vmatprep.mubr.msk.bf16.mxu0 %vm6493_vm1, %v8819_v18  ;;  %v3039_v59 = vpop.permute.xlu1 %3038 }
 0x28f   :  { %5891 = vmatprep.subr.bf16.mxu0 %v8819_v18  ;;  %v3044_v54 = vsel %vm179_vm0, %v3039_v59, 0 }
 0x291   :  { %5876 = vmatmul.mubr.msk.bf16.vlgmr.msra.gmra.mxu1 %vm179_vm0, %v2731_v42  ;;  %v3292_v42 = vpop.permute.xlu0 %3291 }
 0x292   :  { %5886 = vmatpush3.bf16.xpose.msra.mxu1 %v2840_v61  ;;  %5887 = vmatprep.mubr.msk.bf16.mxu1 %vm6493_vm1, %v8819_v18  ;;  %v3090_v17 = vpop.permute.xlu1 %3089  ;;  %v134_v61 = vld [vmem:[%s8786_s3 + $0x28] sm:$0xff] }
 0x293   :  { %5897 = vmatprep.subr.bf16.mxu1 %v8819_v18  ;;  %v3095_v27 = vsel %vm179_vm0, %v3090_v17, 0 }
 0x295   :  { %5882 = vmatmul.mubr.msk.bf16.vlgmr.msra.gmra.mxu0 %vm179_vm0, %v2782_v44 }
 0x296   :  { %5892 = vmatpush3.bf16.xpose.msra.mxu0 %v2891_v24  ;;  %5893 = vmatprep.mubr.msk.bf16.mxu0 %vm6493_vm1, %v8819_v18  ;;  %v3141_v43 = vpop.permute.xlu1 %3140 }
 0x297   :  { %5903 = vmatprep.subr.bf16.mxu0 %v8819_v18  ;;  %v3146_v12 = vsel %vm179_vm0, %v3141_v43, 0 }
 0x299   :  { %5888 = vmatmul.mubr.msk.bf16.vlgmr.msra.gmra.mxu1 %vm179_vm0, %v2833_v32 }
 0x29a   :  { %5898 = vmatpush3.bf16.xpose.msra.mxu1 %v2942_v28  ;;  %5899 = vmatprep.mubr.msk.bf16.mxu1 %vm6493_vm1, %v8819_v18  ;;  %v3192_v31 = vpop.permute.xlu1 %3191 }
 0x29b   :  { %5909 = vmatprep.subr.bf16.mxu1 %v8819_v18  ;;  %v3197_v53 = vsel %vm179_vm0, %v3192_v31, 0 }
 0x29d   :  { %5894 = vmatmul.mubr.msk.bf16.vlgmr.msra.gmra.mxu0 %vm179_vm0, %v2884_v50  ;;  %v133_v50 = vld [vmem:[%s8786_s3 + $0x20] sm:$0xff] }
 0x29e   :  { %5904 = vmatpush3.bf16.xpose.msra.mxu0 %v2993_v37  ;;  %5905 = vmatprep.mubr.msk.bf16.mxu0 %vm6493_vm1, %v8819_v18  ;;  %v3243_v55 = vpop.permute.xlu1 %3242 }
 0x29f   :  { %5915 = vmatprep.subr.bf16.mxu0 %v8819_v18  ;;  %v3248_v3 = vsel %vm179_vm0, %v3243_v55, 0 }
 0x2a1   :  { %5900 = vmatmul.mubr.msk.bf16.vlgmr.msra.gmra.mxu1 %vm179_vm0, %v2935_v8 }
 0x2a2   :  { %5910 = vmatpush3.bf16.xpose.msra.mxu1 %v3044_v54  ;;  %5911 = vmatprep.mubr.msk.bf16.mxu1 %vm6493_vm1, %v8819_v18  ;;  %v3294_v45 = vpop.permute.xlu1 %3293  ;;  %v136_v54 = vld [vmem:[%s8786_s3 + $0x38] sm:$0xff] }
 0x2a3   :  { %5921 = vmatprep.subr.bf16.mxu1 %v8819_v18  ;;  %v3299_v36 = vsel %vm179_vm0, %v3294_v45, 0 }
 0x2a5   :  { %5906 = vmatmul.mubr.msk.bf16.vlgmr.msra.gmra.mxu0 %vm179_vm0, %v2986_v46 }
 0x2a6   :  { %5916 = vmatpush3.bf16.xpose.msra.mxu0 %v3095_v27  ;;  %5917 = vmatprep.mubr.msk.bf16.mxu0 %vm6493_vm1, %v8819_v18  ;;  %v3345_v51 = vpop.permute.xlu1 %3344 }
 0x2a7   :  { %5927 = vmatprep.subr.bf16.mxu0 %v8819_v18  ;;  %v3350_v25 = vsel %vm179_vm0, %v3345_v51, 0 }
 0x2a9   :  { %5912 = vmatmul.mubr.msk.bf16.vlgmr.msra.gmra.mxu1 %vm179_vm0, %v3037_v13  ;;  %v135_v13 = vld [vmem:[%s8786_s3 + $0x30] sm:$0xff] }
 0x2aa   :  { %5922 = vmatpush3.bf16.xpose.msra.mxu1 %v3146_v12  ;;  %5923 = vmatprep.mubr.msk.bf16.mxu1 %vm6493_vm1, %v8819_v18  ;;  %v3343_v33 = vpop.permute.xlu1 %3342 }
 0x2ab   :  { %5933 = vmatprep.subr.bf16.mxu1 %v8819_v18 }
 0x2ad   :  { %5918 = vmatmul.mubr.msk.bf16.vlgmr.msra.gmra.mxu0 %vm179_vm0, %v3088_v20 }
 0x2ae   :  { %5928 = vmatpush3.bf16.xpose.msra.mxu0 %v3197_v53  ;;  %5929 = vmatprep.mubr.msk.bf16.mxu0 %vm6493_vm1, %v8819_v18 }
 0x2af   :  { %5939 = vmatprep.subr.bf16.mxu0 %v8819_v18 }
 0x2b1   :  { %5924 = vmatmul.mubr.msk.bf16.vlgmr.msra.gmra.mxu1 %vm179_vm0, %v3139_v11  ;;  %v137_v11 = vld [vmem:[%s8786_s3 + $0x40] sm:$0xff] }
 0x2b2   :  { %5934 = vmatpush3.bf16.xpose.msra.mxu1 %v3248_v3  ;;  %5935 = vmatprep.mubr.msk.bf16.mxu1 %vm6493_vm1, %v8819_v18 }
 0x2b3   :  { %5945 = vmatprep.subr.bf16.mxu1 %v8819_v18 }
 0x2b5   :  { %5930 = vmatmul.mubr.msk.bf16.vlgmr.msra.gmra.mxu0 %vm179_vm0, %v3190_v19  ;;  %v138_v19 = vld [vmem:[%s8786_s3 + $0x48] sm:$0xff] }
 0x2b6   :  { %5940 = vmatpush3.bf16.xpose.msra.mxu0 %v3299_v36  ;;  %5941 = vmatprep.mubr.msk.bf16.mxu0 %vm6493_vm1, %v8819_v18 }
 0x2b7   :  { %5951 = vmatprep.subr.bf16.mxu0 %v8819_v18 }
 0x2b9   :  { %5936 = vmatmul.mubr.msk.bf16.vlgmr.msra.gmra.mxu1 %vm179_vm0, %v3241_v21 }
 0x2ba   :  { %5946 = vmatpush3.bf16.xpose.msra.mxu1 %v3350_v25  ;;  %5947 = vmatprep.mubr.msk.bf16.mxu1 %vm6493_vm1, %v8819_v18  ;;  %v139_v25 = vld [vmem:[%s8786_s3 + $0x50] sm:$0xff] }
 0x2bb   :  { %5957 = vmatprep.subr.bf16.mxu1 %v8819_v18 }
 0x2bd   :  { %5942 = vmatmul.mubr.msk.bf16.vlgmr.msra.gmra.mxu0 %vm179_vm0, %v3292_v42 }
 0x2be   :  { %5953 = vmatprep.mubr.msk.bf16.mxu0 %vm6493_vm1, %v8819_v18 }
 0x2c1   :  { %5948 = vmatmul.mubr.msk.bf16.vlgmr.msra.gmra.mxu1 %vm179_vm0, %v3343_v33 }
 0x2c2   :  { %5959 = vmatprep.mubr.msk.bf16.mxu1 %vm6493_vm1, %v8819_v18 }
 0x2cf   :  { %v1772_v34 = vpop.f32.mrf.mxu0 }
 0x2d0   :  { %v7575_v39 = vmul.f32 %v1772_v34, %v129_v5  ;;  %v140_v34 = vld [vmem:[%s8786_s3 + $0x58] sm:$0xff] }
 0x2d1   :  { %v5763_v7 = vpop.f32.mrf.mxu0 }
 0x2d3   :  { %v1775_v48 = vpop.f32.mrf.mxu0  ;;  %v1822_v6 = vpop.f32.mrf.mxu1 }
 0x2d4   :  { %v7577_v0 = vmul.f32 %v1775_v48, %v130_v10  ;;  %v7587_v23 = vmul.f32 %v1822_v6, %v131_v49  ;;  %v141_v49 = vld [vmem:[%s8786_s3 + $0x60] sm:$0xff] }
 0x2d5   :  { %v5764_v44 = vpop.f32.mrf.mxu0  ;;  %v5769_v41 = vpop.f32.mrf.mxu1 }
 0x2d7   :  { %v1825_v30 = vpop.f32.mrf.mxu1 }
 0x2d8   :  { %v1872_v32 = vpop.f32.mrf.mxu0  ;;  %v7589_v9 = vmul.f32 %v1825_v30, %v132_v1  ;;  %v142_v1 = vld [vmem:[%s8786_s3 + $0x68] sm:$0xff] }
 0x2d9   :  { %v5770_v52 = vpop.f32.mrf.mxu1  ;;  %v7599_v24 = vmul.f32 %v1872_v32, %v133_v50 }
 0x2da   :  { %v5775_v22 = vpop.f32.mrf.mxu0 }
 0x2dc   :  { %v1875_v59 = vpop.f32.mrf.mxu0  ;;  %v1922_v17 = vpop.f32.mrf.mxu1 }
 0x2dd   :  { %v7601_v46 = vmul.f32 %v1875_v59, %v134_v61  ;;  %v7611_v27 = vmul.f32 %v1922_v17, %v135_v13  ;;  %v143_v61 = vld [vmem:[%s8786_s3 + $0x70] sm:$0xff] }
 0x2de   :  { %v5776_v28 = vpop.f32.mrf.mxu0  ;;  %v5781_v43 = vpop.f32.mrf.mxu1 }
 0x2df   :  { %8820 = vst [vmem:[#allocation2_spill] sm:$0xff] %v7611_v27  ;;  %v144_v28 = vld [vmem:[%s8786_s3 + $0x78] sm:$0xff] }
 0x2e0   :  { %v1925_v20 = vpop.f32.mrf.mxu1  ;;  %v1972_v31 = vpop.f32.mrf.mxu0 }
 0x2e1   :  { %v7613_v12 = vmul.f32 %v1925_v20, %v136_v54  ;;  %v7623_v21 = vmul.f32 %v1972_v31, %v137_v11  ;;  %v145_v11 = vld [vmem:[%s8786_s3 + $0x80] sm:$0xff] }
 0x2e2   :  { %v5782_v55 = vpop.f32.mrf.mxu1  ;;  %v5787_v53 = vpop.f32.mrf.mxu0 }
 0x2e3   :  { %8821 = vst [vmem:[#allocation3_spill] sm:$0xff] %v7613_v12  ;;  %8822 = vst [vmem:[#allocation4_spill] sm:$0xff] %v7623_v21 }
 0x2e4   :  { %v1975_v3 = vpop.f32.mrf.mxu0  ;;  %v2022_v36 = vpop.f32.mrf.mxu1 }
 0x2e5   :  { %v7625_v51 = vmul.f32 %v1975_v3, %v138_v19  ;;  %v7635_v48 = vmul.f32 %v2022_v36, %v139_v25  ;;  %v146_v19 = vld [vmem:[%s8786_s3 + $0x88] sm:$0xff] }
 0x2e6   :  { %v5788_v42 = vpop.f32.mrf.mxu0  ;;  %v5793_v33 = vpop.f32.mrf.mxu1 }
 0x2e7   :  { %8823 = vst [vmem:[#allocation5_spill] sm:$0xff] %v7625_v51  ;;  %8824 = vst [vmem:[#allocation6_spill] sm:$0xff] %v7635_v48 }
 0x2e8   :  { %v2025_v7 = vpop.f32.mrf.mxu1  ;;  %v2072_v10 = vpop.f32.mrf.mxu0 }
 0x2e9   :  { %v7637_v6 = vmul.f32 %v2025_v7, %v140_v34  ;;  %v7647_v52 = vmul.f32 %v2072_v10, %v141_v49  ;;  %v147_v34 = vld [vmem:[%s8786_s3 + $0x90] sm:$0xff]  ;;  %v148_v49 = vld [vmem:[%s8786_s3 + $0x98] sm:$0xff] }
 0x2ea   :  { %v5794_v44 = vpop.f32.mrf.mxu1  ;;  %v5799_v41 = vpop.f32.mrf.mxu0 }
 0x2eb   :  { %8825 = vst [vmem:[#allocation7_spill] sm:$0xff] %v7637_v6  ;;  %8826 = vst [vmem:[#allocation8_spill] sm:$0xff] %v7647_v52 }
 0x2ec   :  { %v2075_v32 = vpop.f32.mrf.mxu0  ;;  %v2122_v50 = vpop.f32.mrf.mxu1 }
 0x2ed   :  { %v7649_v22 = vmul.f32 %v2075_v32, %v142_v1  ;;  %v7659_v20 = vmul.f32 %v2122_v50, %v143_v61  ;;  %v149_v61 = vld [vmem:[%s8786_s3 + $0xa0] sm:$0xff] }
 0x2ee   :  { %v5800_v59 = vpop.f32.mrf.mxu0  ;;  %v5805_v17 = vpop.f32.mrf.mxu1 }
 0x2ef   :  { %8827 = vst [vmem:[#allocation9_spill] sm:$0xff] %v7649_v22  ;;  %8828 = vst [vmem:[#allocation10_spill] sm:$0xff] %v7659_v20 }
 0x2f0   :  { %v2125_v43 = vpop.f32.mrf.mxu1  ;;  %v2172_v54 = vpop.f32.mrf.mxu0 }
 0x2f1   :  { %v7661_v31 = vmul.f32 %v2125_v43, %v144_v28  ;;  %v7671_v42 = vmul.f32 %v2172_v54, %v145_v11  ;;  %v150_v28 = vld [vmem:[%s8786_s3 + $0xa8] sm:$0xff]  ;;  %v3908_v43 = vpop.permute.xlu1 %3907 }
 0x2f2   :  { %v5806_v55 = vpop.f32.mrf.mxu1  ;;  %v5811_v53 = vpop.f32.mrf.mxu0  ;;  %5958 = vmatpush3.bf16.msra.mxu1 %v3908_v43  ;;  %v158_v43 = vld [vmem:[%s8786_s3 + $0xe8] sm:$0xff] }
 0x2f3   :  { %8829 = vst [vmem:[#allocation11_spill] sm:$0xff] %v7661_v31  ;;  %8830 = vst [vmem:[#allocation12_spill] sm:$0xff] %v7671_v42  ;;  %5969 = vmatprep.subr.bf16.mxu1 %v8819_v18 }
 0x2f4   :  { %v2175_v36 = vpop.f32.mrf.mxu0  ;;  %v2222_v25 = vpop.f32.mrf.mxu1 }
 0x2f5   :  { %v7673_v33 = vmul.f32 %v2175_v36, %v146_v19  ;;  %v7683_v32 = vmul.f32 %v2222_v25, %v147_v34  ;;  %v151_v19 = vld [vmem:[%s8786_s3 + $0xb0] sm:$0xff]  ;;  %v152_v34 = vld [vmem:[%s8786_s3 + $0xb8] sm:$0xff] }
 0x2f6   :  { %v5812_v7 = vpop.f32.mrf.mxu0  ;;  %v5817_v10 = vpop.f32.mrf.mxu1 }
 0x2f7   :  { %8831 = vst [vmem:[#allocation13_spill] sm:$0xff] %v7673_v33  ;;  %8832 = vst [vmem:[#allocation14_spill] sm:$0xff] %v7683_v32 }
 0x2f8   :  { %v2225_v41 = vpop.f32.mrf.mxu1  ;;  %v2272_v1 = vpop.f32.mrf.mxu0 }
 0x2f9   :  { %v7685_v50 = vmul.f32 %v2225_v41, %v148_v49  ;;  %v7695_v55 = vmul.f32 %v2272_v1, %v149_v61  ;;  %v153_v61 = vld [vmem:[%s8786_s3 + $0xc0] sm:$0xff] }
 0x2fa   :  { %v5818_v59 = vpop.f32.mrf.mxu1  ;;  %v5823_v17 = vpop.f32.mrf.mxu0 }
 0x2fb   :  { %8833 = vst [vmem:[#allocation15_spill] sm:$0xff] %v7685_v50  ;;  %8834 = vst [vmem:[#allocation16_spill] sm:$0xff] %v7695_v55 }
 0x2fc   :  { %v2275_v54 = vpop.f32.mrf.mxu0  ;;  %v2322_v11 = vpop.f32.mrf.mxu1 }
 0x2fd   :  { %v7697_v53 = vmul.f32 %v2275_v54, %v150_v28  ;;  %v7707_v41 = vmul.f32 %v2322_v11, %v151_v19  ;;  %v154_v28 = vld [vmem:[%s8786_s3 + $0xc8] sm:$0xff]  ;;  %v155_v19 = vld [vmem:[%s8786_s3 + $0xd0] sm:$0xff] }
 0x2fe   :  { %v5824_v36 = vpop.f32.mrf.mxu0  ;;  %v5829_v25 = vpop.f32.mrf.mxu1 }
 0x2ff   :  { %8835 = vst [vmem:[#allocation17_spill] sm:$0xff] %v7697_v53  ;;  %8836 = vst [vmem:[#allocation18_spill] sm:$0xff] %v7707_v41 }
 0x300   :  { %v2325_v10 = vpop.f32.mrf.mxu1  ;;  %v2372_v49 = vpop.f32.mrf.mxu0 }
 0x301   :  { %v7709_v1 = vmul.f32 %v2325_v10, %v152_v34  ;;  %v7719_v7 = vmul.f32 %v2372_v49, %v153_v61 }
 0x302   :  { %v5830_v59 = vpop.f32.mrf.mxu1  ;;  %v5835_v17 = vpop.f32.mrf.mxu0 }
 0x303   :  { %8837 = vst [vmem:[#allocation19_spill] sm:$0xff] %v7709_v1  ;;  %8838 = vst [vmem:[#allocation20_spill] sm:$0xff] %v7719_v7  ;;  %v156_v59 = vld [vmem:[%s8786_s3 + $0xd8] sm:$0xff] }
 0x304   :  { %v2375_v36 = vpop.f32.mrf.mxu0  ;;  %v2422_v25 = vpop.f32.mrf.mxu1 }
 0x305   :  { %v7721_v11 = vmul.f32 %v2375_v36, %v154_v28  ;;  %v7731_v44 = vmul.f32 %v2422_v25, %v155_v19  ;;  %v3861_v36 = vpop.permute.xlu0 %3860 }
 0x306   :  { %v5836_v34 = vpop.f32.mrf.mxu0  ;;  %v5841_v10 = vpop.f32.mrf.mxu1  ;;  %5952 = vmatpush3.bf16.msra.mxu0 %v3861_v36  ;;  %v159_v36 = vld [vmem:[%s8786_s3 + $0xf0] sm:$0xff] }
 0x307   :  { %8839 = vst [vmem:[#allocation21_spill] sm:$0xff] %v7721_v11  ;;  %8840 = vst [vmem:[#allocation22_spill] sm:$0xff] %v7731_v44  ;;  %5963 = vmatprep.subr.bf16.mxu0 %v8819_v18  ;;  %v157_v10 = vld [vmem:[%s8786_s3 + $0xe0] sm:$0xff] }
 0x308   :  { %v2425_v54 = vpop.f32.mrf.mxu1 }
 0x309   :  { %v7733_v49 = vmul.f32 %v2425_v54, %v156_v59 }
 0x30a   :  { %v5842_v61 = vpop.f32.mrf.mxu1 }
 0x30b   :  { %8841 = vst [vmem:[#allocation23_spill] sm:$0xff] %v7733_v49 }
 0x33d   :  { %v2472_v34 = vpop.f32.mrf.mxu0 }
 0x33e   :  { %v7745_v59 = vmul.f32 %v2472_v34, %v157_v10 }
 0x33f   :  { %v5847_v25 = vpop.f32.mrf.mxu0 }
 0x340   :  { %8842 = vst [vmem:[#allocation24_spill] sm:$0xff] %v7745_v59  ;;  %v7755_v25 = vld [vmem:[%s8786_s3 + $0xf8] sm:$0xff] }
 0x341   :  { %v2475_v54 = vpop.f32.mrf.mxu0  ;;  %v2522_v19 = vpop.f32.mrf.mxu1 }
 0x342   :  { %v7747_v61 = vmul.f32 %v2475_v54, %v158_v43  ;;  %v7759_v34 = vmul.f32 %v2522_v19, %v159_v36 }
 0x343   :  { %v5848_v28 = vpop.f32.mrf.mxu0  ;;  %v5853_v17 = vpop.f32.mrf.mxu1 }
 0x344   :  { %8843 = vst [vmem:[#allocation25_spill] sm:$0xff] %v7747_v61  ;;  %8844 = vst [vmem:[#allocation26_spill] sm:$0xff] %v7759_v34  ;;  %v7767_v17 = vld [vmem:[%s8784_s5 + $0x10] sm:$0xff] }
 0x345   :  { %v2525_v13 = vpop.f32.mrf.mxu1  ;;  %v2621_v30 = vpop.f32.mrf.mxu0 }
 0x346   :  { %v7762_v10 = vmul.f32 %v2525_v13, %v7755_v25  ;;  %v3393_v43 = vmul.f32 0.35355338, %v2621_v30 }
 0x347   :  { %v5854_v54 = vpop.f32.mrf.mxu1  ;;  %v5859_v5 = vpop.f32.mrf.mxu0 }
 0x348   :  { %8845 = vst [vmem:[#allocation27_spill] sm:$0xff] %v7762_v10  ;;  %v3425_v3 = vadd.f32 %v3393_v43, %v6739_v63  ;;  %v7778_v5 = vld [vmem:[%s8784_s5 + $0x18] sm:$0xff] }
 0x349   :  { %v2624_v45 = vpop.f32.mrf.mxu0  ;;  %v2672_v37 = vpop.f32.mrf.mxu1 }
 0x34a   :  { %v3394_v19 = vmul.f32 0.35355338, %v2624_v45  ;;  %v3395_v36 = vmul.f32 0.35355338, %v2672_v37  ;;  %v7773_v13 = vadd.f32 %v7767_v17, %v3425_v3 }
 0x34b   :  { %v5860_v30 = vpop.f32.mrf.mxu0  ;;  %v5865_v54 = vpop.f32.mrf.mxu1 }
 0x34c   :  { %v3426_v8 = vadd.f32 %v3394_v19, %v6739_v63  ;;  %v3427_v28 = vadd.f32 %v3395_v36, %v6742_v2  ;;  %v3492_v43 = vsel %vm1360_vm2, %v7773_v13, -inf }
 0x34d   :  { %v2675_v47 = vpop.f32.mrf.mxu1  ;;  %3493 = vmax.xlane.f32.xlu0 %v3492_v43  ;;  %v2723_v37 = vpop.f32.mrf.mxu0 }
 0x34e   :  { %v3396_v45 = vmul.f32 0.35355338, %v2675_v47  ;;  %v3397_v3 = vmul.f32 0.35355338, %v2723_v37  ;;  %v7785_v30 = vadd.f32 %v7767_v17, %v3427_v28  ;;  %v7788_v54 = vadd.f32 %v7778_v5, %v3426_v8 }
 0x34f   :  { %v5866_v34 = vpop.f32.mrf.mxu1  ;;  %v5871_v10 = vpop.f32.mrf.mxu0 }
 0x350   :  { %v3428_v63 = vadd.f32 %v3396_v45, %v6742_v2  ;;  %v3429_v19 = vadd.f32 %v3397_v3, %v6767_v26  ;;  %v3498_v36 = vsel %vm1360_vm2, %v7785_v30, -inf  ;;  %v3495_v43 = vsel %vm1360_vm2, %v7788_v54, -inf }
 0x351   :  { %v2774_v47 = vpop.f32.mrf.mxu1  ;;  %3499 = vmax.xlane.f32.xlu0 %v3498_v36  ;;  %3496 = vmax.xlane.f32.xlu1 %v3495_v43  ;;  %v2726_v28 = vpop.f32.mrf.mxu0 }
 0x352   :  { %v3399_v37 = vmul.f32 0.35355338, %v2774_v47  ;;  %v3398_v59 = vmul.f32 0.35355338, %v2726_v28  ;;  %v7797_v8 = vadd.f32 %v7778_v5, %v3428_v63  ;;  %v7800_v34 = vadd.f32 %v7767_v17, %v3429_v19 }
 0x353   :  { %v5872_v2 = vpop.f32.mrf.mxu0  ;;  %v5877_v10 = vpop.f32.mrf.mxu1 }
 0x354   :  { %v3431_v45 = vadd.f32 %v3399_v37, %v6773_v29  ;;  %v3430_v3 = vadd.f32 %v3398_v59, %v6767_v26  ;;  %v3501_v61 = vsel %vm1360_vm2, %v7797_v8, -inf  ;;  %v3504_v47 = vsel %vm1360_vm2, %v7800_v34, -inf }
 0x355   :  { %v2777_v36 = vpop.f32.mrf.mxu1  ;;  %3502 = vmax.xlane.f32.xlu0 %v3501_v61  ;;  %v2825_v43 = vpop.f32.mrf.mxu0 }
 0x356   :  { %v3400_v63 = vmul.f32 0.35355338, %v2777_v36  ;;  %v3401_v28 = vmul.f32 0.35355338, %v2825_v43  ;;  %v7809_v19 = vadd.f32 %v7778_v5, %v3430_v3  ;;  %v7812_v2 = vadd.f32 %v7767_v17, %v3431_v45 }
 0x357   :  { %v5878_v37 = vpop.f32.mrf.mxu1  ;;  %v5883_v10 = vpop.f32.mrf.mxu0 }
 0x358   :  { %v3432_v26 = vadd.f32 %v3400_v63, %v6773_v29  ;;  %v3433_v59 = vadd.f32 %v3401_v28, %v6802_v58  ;;  %v3507_v61 = vsel %vm1360_vm2, %v7809_v19, -inf  ;;  %v3510_v3 = vsel %vm1360_vm2, %v7812_v2, -inf }
 0x359   :  { %v2876_v44 = vpop.f32.mrf.mxu1  ;;  %3505 = vmax.xlane.f32.xlu0 %v3504_v47  ;;  %3508 = vmax.xlane.f32.xlu1 %v3507_v61  ;;  %v2828_v36 = vpop.f32.mrf.mxu0 }
 0x35a   :  { %v3403_v43 = vmul.f32 0.35355338, %v2876_v44  ;;  %v3402_v49 = vmul.f32 0.35355338, %v2828_v36  ;;  %v7821_v45 = vadd.f32 %v7778_v5, %v3432_v26  ;;  %v7824_v37 = vadd.f32 %v7767_v17, %v3433_v59 }
 0x35b   :  { %v5884_v29 = vpop.f32.mrf.mxu0  ;;  %v5889_v63 = vpop.f32.mrf.mxu1 }
 0x35c   :  { %v3435_v28 = vadd.f32 %v3403_v43, %v6806_v60  ;;  %v3434_v10 = vadd.f32 %v3402_v49, %v6802_v58  ;;  %v3513_v47 = vsel %vm1360_vm2, %v7821_v45, -inf  ;;  %v3516_v26 = vsel %vm1360_vm2, %v7824_v37, -inf }
 0x35d   :  { %v2879_v61 = vpop.f32.mrf.mxu1  ;;  %3511 = vmax.xlane.f32.xlu0 %v3510_v3  ;;  %3514 = vmax.xlane.f32.xlu1 %v3513_v47  ;;  %v2927_v44 = vpop.f32.mrf.mxu0 }
 0x35e   :  { %v3404_v36 = vmul.f32 0.35355338, %v2879_v61  ;;  %v3405_v7 = vmul.f32 0.35355338, %v2927_v44  ;;  %v7833_v59 = vadd.f32 %v7778_v5, %v3434_v10  ;;  %v7836_v29 = vadd.f32 %v7767_v17, %v3435_v28 }
 0x35f   :  { %v5890_v43 = vpop.f32.mrf.mxu1  ;;  %v5895_v58 = vpop.f32.mrf.mxu0 }
 0x360   :  { %v3436_v49 = vadd.f32 %v3404_v36, %v6806_v60  ;;  %v3437_v63 = vadd.f32 %v3405_v7, %v6836_v35  ;;  %v3519_v3 = vsel %vm1360_vm2, %v7833_v59, -inf  ;;  %v3522_v10 = vsel %vm1360_vm2, %v7836_v29, -inf }
 0x361   :  { %v2978_v47 = vpop.f32.mrf.mxu1  ;;  %3517 = vmax.xlane.f32.xlu0 %v3516_v26  ;;  %3520 = vmax.xlane.f32.xlu1 %v3519_v3  ;;  %v2930_v61 = vpop.f32.mrf.mxu0 }
 0x362   :  { %v3407_v44 = vmul.f32 0.35355338, %v2978_v47  ;;  %v3406_v11 = vmul.f32 0.35355338, %v2930_v61  ;;  %v7845_v28 = vadd.f32 %v7778_v5, %v3436_v49  ;;  %v7848_v43 = vadd.f32 %v7767_v17, %v3437_v63 }
 0x363   :  { %v5896_v60 = vpop.f32.mrf.mxu0  ;;  %v5901_v7 = vpop.f32.mrf.mxu1 }
 0x364   :  { %v3439_v36 = vadd.f32 %v3407_v44, %v6840_v38  ;;  %v3438_v58 = vadd.f32 %v3406_v11, %v6836_v35  ;;  %v3525_v26 = vsel %vm1360_vm2, %v7845_v28, -inf  ;;  %v3528_v49 = vsel %vm1360_vm2, %v7848_v43, -inf }
 0x365   :  { %v2981_v3 = vpop.f32.mrf.mxu1  ;;  %3523 = vmax.xlane.f32.xlu0 %v3522_v10  ;;  %3526 = vmax.xlane.f32.xlu1 %v3525_v26  ;;  %v3029_v47 = vpop.f32.mrf.mxu0 }
 0x366   :  { %v3408_v61 = vmul.f32 0.35355338, %v2981_v3  ;;  %v3409_v41 = vmul.f32 0.35355338, %v3029_v47  ;;  %v7857_v63 = vadd.f32 %v7778_v5, %v3438_v58  ;;  %v7860_v60 = vadd.f32 %v7767_v17, %v3439_v36 }
 0x367   :  { %v5902_v44 = vpop.f32.mrf.mxu1  ;;  %v5907_v35 = vpop.f32.mrf.mxu0 }
 0x368   :  { %v3440_v11 = vadd.f32 %v3408_v61, %v6840_v38  ;;  %v3441_v7 = vadd.f32 %v3409_v41, %v6868_v14  ;;  %v3531_v10 = vsel %vm1360_vm2, %v7857_v63, -inf  ;;  %v3534_v58 = vsel %vm1360_vm2, %v7860_v60, -inf }
 0x369   :  { %v3080_v26 = vpop.f32.mrf.mxu1  ;;  %3529 = vmax.xlane.f32.xlu0 %v3528_v49  ;;  %3532 = vmax.xlane.f32.xlu1 %v3531_v10  ;;  %v3032_v3 = vpop.f32.mrf.mxu0 }
 0x36a   :  { %v3411_v47 = vmul.f32 0.35355338, %v3080_v26  ;;  %v3410_v1 = vmul.f32 0.35355338, %v3032_v3  ;;  %v7869_v36 = vadd.f32 %v7778_v5, %v3440_v11  ;;  %v7872_v44 = vadd.f32 %v7767_v17, %v3441_v7 }
 0x36b   :  { %v5908_v38 = vpop.f32.mrf.mxu0  ;;  %v5913_v41 = vpop.f32.mrf.mxu1 }
 0x36c   :  { %v3443_v61 = vadd.f32 %v3411_v47, %v6872_v16  ;;  %v3442_v35 = vadd.f32 %v3410_v1, %v6868_v14  ;;  %v3537_v49 = vsel %vm1360_vm2, %v7869_v36, -inf  ;;  %v3540_v11 = vsel %vm1360_vm2, %v7872_v44, -inf }
 0x36d   :  { %v3083_v10 = vpop.f32.mrf.mxu1  ;;  %3535 = vmax.xlane.f32.xlu0 %v3534_v58  ;;  %3538 = vmax.xlane.f32.xlu1 %v3537_v49  ;;  %v3131_v26 = vpop.f32.mrf.mxu0 }
 0x36e   :  { %v3412_v3 = vmul.f32 0.35355338, %v3083_v10  ;;  %v3413_v55 = vmul.f32 0.35355338, %v3131_v26  ;;  %v7881_v7 = vadd.f32 %v7778_v5, %v3442_v35  ;;  %v7884_v38 = vadd.f32 %v7767_v17, %v3443_v61 }
 0x36f   :  { %v5914_v47 = vpop.f32.mrf.mxu1  ;;  %v5919_v14 = vpop.f32.mrf.mxu0 }
 0x370   :  { %v3444_v1 = vadd.f32 %v3412_v3, %v6872_v16  ;;  %v3445_v41 = vadd.f32 %v3413_v55, %v6901_v62  ;;  %v3543_v58 = vsel %vm1360_vm2, %v7881_v7, -inf  ;;  %v3546_v35 = vsel %vm1360_vm2, %v7884_v38, -inf }
 0x371   :  { %v3182_v49 = vpop.f32.mrf.mxu1  ;;  %3541 = vmax.xlane.f32.xlu0 %v3540_v11  ;;  %3544 = vmax.xlane.f32.xlu1 %v3543_v58  ;;  %v3134_v10 = vpop.f32.mrf.mxu0 }
 0x372   :  { %v3415_v26 = vmul.f32 0.35355338, %v3182_v49  ;;  %v3414_v53 = vmul.f32 0.35355338, %v3134_v10  ;;  %v7893_v61 = vadd.f32 %v7778_v5, %v3444_v1  ;;  %v7896_v47 = vadd.f32 %v7767_v17, %v3445_v41 }
 0x373   :  { %v5920_v16 = vpop.f32.mrf.mxu0  ;;  %v5925_v55 = vpop.f32.mrf.mxu1 }
 0x374   :  { %v3447_v3 = vadd.f32 %v3415_v26, %v6905_v4  ;;  %v3446_v14 = vadd.f32 %v3414_v53, %v6901_v62  ;;  %v3549_v11 = vsel %vm1360_vm2, %v7893_v61, -inf  ;;  %v3552_v1 = vsel %vm1360_vm2, %v7896_v47, -inf }
 0x375   :  { %v3185_v58 = vpop.f32.mrf.mxu1  ;;  %3547 = vmax.xlane.f32.xlu0 %v3546_v35  ;;  %3550 = vmax.xlane.f32.xlu1 %v3549_v11  ;;  %v3233_v49 = vpop.f32.mrf.mxu0 }
 0x376   :  { %v3416_v10 = vmul.f32 0.35355338, %v3185_v58  ;;  %v3417_v32 = vmul.f32 0.35355338, %v3233_v49  ;;  %v7905_v41 = vadd.f32 %v7778_v5, %v3446_v14  ;;  %v7908_v16 = vadd.f32 %v7767_v17, %v3447_v3 }
 0x377   :  { %v5926_v26 = vpop.f32.mrf.mxu1  ;;  %v5931_v62 = vpop.f32.mrf.mxu0 }
 0x378   :  { %v3448_v53 = vadd.f32 %v3416_v10, %v6905_v4  ;;  %v3449_v55 = vadd.f32 %v3417_v32, %v6933_v57  ;;  %v3555_v35 = vsel %vm1360_vm2, %v7905_v41, -inf  ;;  %v3558_v14 = vsel %vm1360_vm2, %v7908_v16, -inf }
 0x379   :  { %v3284_v11 = vpop.f32.mrf.mxu1  ;;  %3553 = vmax.xlane.f32.xlu0 %v3552_v1  ;;  %3556 = vmax.xlane.f32.xlu1 %v3555_v35  ;;  %v3236_v58 = vpop.f32.mrf.mxu0 }
 0x37a   :  { %v3419_v49 = vmul.f32 0.35355338, %v3284_v11  ;;  %v3418_v50 = vmul.f32 0.35355338, %v3236_v58  ;;  %v7917_v3 = vadd.f32 %v7778_v5, %v3448_v53  ;;  %v7920_v26 = vadd.f32 %v7767_v17, %v3449_v55 }
 0x37b   :  { %v5932_v4 = vpop.f32.mrf.mxu0  ;;  %v5937_v32 = vpop.f32.mrf.mxu1 }
 0x37c   :  { %v3451_v10 = vadd.f32 %v3419_v49, %v6937_v56  ;;  %v3450_v62 = vadd.f32 %v3418_v50, %v6933_v57  ;;  %v3561_v1 = vsel %vm1360_vm2, %v7917_v3, -inf  ;;  %v3564_v53 = vsel %vm1360_vm2, %v7920_v26, -inf }
 0x37d   :  { %v3287_v35 = vpop.f32.mrf.mxu1  ;;  %3559 = vmax.xlane.f32.xlu0 %v3558_v14  ;;  %3562 = vmax.xlane.f32.xlu1 %v3561_v1  ;;  %v3335_v11 = vpop.f32.mrf.mxu0 }
 0x37e   :  { %v3420_v58 = vmul.f32 0.35355338, %v3287_v35  ;;  %v3421_v42 = vmul.f32 0.35355338, %v3335_v11  ;;  %v7929_v55 = vadd.f32 %v7778_v5, %v3450_v62  ;;  %v7932_v4 = vadd.f32 %v7767_v17, %v3451_v10 }
 0x37f   :  { %v5938_v49 = vpop.f32.mrf.mxu1  ;;  %v5943_v57 = vpop.f32.mrf.mxu0 }
 0x380   :  { %v3452_v50 = vadd.f32 %v3420_v58, %v6937_v56  ;;  %v3453_v32 = vadd.f32 %v3421_v42, %v6963_v40  ;;  %v3567_v14 = vsel %vm1360_vm2, %v7929_v55, -inf  ;;  %v3570_v62 = vsel %vm1360_vm2, %v7932_v4, -inf }
 0x381   :  { %v3386_v1 = vpop.f32.mrf.mxu1  ;;  %3565 = vmax.xlane.f32.xlu0 %v3564_v53  ;;  %3568 = vmax.xlane.f32.xlu1 %v3567_v14  ;;  %v3338_v35 = vpop.f32.mrf.mxu0 }
 0x382   :  { %v3423_v11 = vmul.f32 0.35355338, %v3386_v1  ;;  %v3422_v33 = vmul.f32 0.35355338, %v3338_v35  ;;  %v7941_v10 = vadd.f32 %v7778_v5, %v3452_v50  ;;  %v7944_v49 = vadd.f32 %v7767_v17, %v3453_v32 }
 0x383   :  { %v5944_v56 = vpop.f32.mrf.mxu0  ;;  %v5949_v42 = vpop.f32.mrf.mxu1 }
 0x384   :  { %v3455_v58 = vadd.f32 %v3423_v11, %v6967_v15  ;;  %v3454_v57 = vadd.f32 %v3422_v33, %v6963_v40  ;;  %v3573_v53 = vsel %vm1360_vm2, %v7941_v10, -inf  ;;  %v3576_v50 = vsel %vm1360_vm2, %v7944_v49, -inf }
 0x385   :  { %v3389_v14 = vpop.f32.mrf.mxu1  ;;  %3571 = vmax.xlane.f32.xlu0 %v3570_v62  ;;  %3574 = vmax.xlane.f32.xlu1 %v3573_v53 }
 0x386   :  { %v3424_v1 = vmul.f32 0.35355338, %v3389_v14  ;;  %v7953_v35 = vadd.f32 %v7778_v5, %v3454_v57  ;;  %v7956_v32 = vadd.f32 %v7767_v17, %v3455_v58  ;;  %v6458_v17 = vld [vmem:[%s8785_s2 + $0x60] sm:$0xff]   ;;  %v7976_v58 = vpop.permute.xlu1 %4001  ;;  %v7980_v57 = vpop.permute.xlu0 %3954 }
 0x387   :  { %v5950_v56 = vpop.f32.mrf.mxu1 }
 0x388   :  { %v3456_v11 = vadd.f32 %v3424_v1, %v6967_v15  ;;  %v3579_v40 = vsel %vm1360_vm2, %v7953_v35, -inf  ;;  %v3582_v33 = vsel %vm1360_vm2, %v7956_v32, -inf  ;;  %v6457_v15 = vld [vmem:[%s8785_s2 + $0x68] sm:$0xff]  }
 0x389   :  { %3577 = vmax.xlane.f32.xlu0 %v3576_v50  ;;  %3580 = vmax.xlane.f32.xlu1 %v3579_v40 }
 0x38a   :  { %v7964_v62 = vadd.f32 %v7778_v5, %v3456_v11  ;;  %v7978_v5 = vpop.permute.xlu1 %4095  ;;  %v7984_v14 = vpop.permute.xlu0 %4048 }
 0x38c   :  { %v3585_v42 = vsel %vm1360_vm2, %v7964_v62, -inf }
 0x38d   :  { %3583 = vmax.xlane.f32.xlu0 %v3582_v33  ;;  %3586 = vmax.xlane.f32.xlu1 %v3585_v42 }
 0x38e   :  { %v7982_v53 = vpop.permute.xlu1 %4189  ;;  %v7988_v50 = vpop.permute.xlu0 %4142 }
 0x392   :  { %v7986_v1 = vpop.permute.xlu1 %4283  ;;  %v7992_v11 = vpop.permute.xlu0 %4236 }
 0x396   :  { %v7990_v56 = vpop.permute.xlu1 %4330 }
 0x39a   :  { %v7994_v40 = vpop.permute.xlu1 %4377 }
 0x39e   :  { %4471 = vrot.lane.b32.xlu1 %v6457_v15, %s6495_s23 }
 0x3a3   :  { %4424 = vrot.lane.b32.xlu0 %v6458_v17, %s6495_s23 }
 0x3d6   :  { %v3494_v33 = vpop.xlane.xlu0 %3493 }
 0x3d7   :  { %v3588_v42 = vsub.f32 %v7773_v13, %v3494_v33 }
 0x3d9   :  { %v3620_v15 = vmul.f32 1.442695, %v3588_v42 }
 0x3da   :  { %v3500_v17 = vpop.xlane.xlu0 %3499  ;;  %v3497_v20 = vpop.xlane.xlu1 %3496 }
 0x3db   :  { %6297 = vpow2.f32 %v3620_v15  ;;  %v3590_v31 = vsub.f32 %v7785_v30, %v3500_v17  ;;  %v3589_v52 = vsub.f32 %v7788_v54, %v3497_v20 }
 0x3dd   :  { %v3624_v22 = vmul.f32 1.442695, %v3590_v31  ;;  %v3622_v48 = vmul.f32 1.442695, %v3589_v52 }
 0x3de   :  { %v3503_v6 = vpop.xlane.xlu0 %3502 }
 0x3df   :  { %6299 = vpow2.f32 %v3624_v22  ;;  %v3591_v21 = vsub.f32 %v7797_v8, %v3503_v6 }
 0x3e0   :  { %6301 = vpow2.f32 %v3622_v48 }
 0x3e1   :  { %v3626_v51 = vmul.f32 1.442695, %v3591_v21 }
 0x3e2   :  { %v3506_v27 = vpop.xlane.xlu0 %3505  ;;  %v3509_v12 = vpop.xlane.xlu1 %3508 }
 0x3e3   :  { %6303 = vpow2.f32 %v3626_v51  ;;  %v3592_v13 = vsub.f32 %v7800_v34, %v3506_v27  ;;  %v3593_v33 = vsub.f32 %v7809_v19, %v3509_v12 }
 0x3e5   :  { %v3628_v42 = vmul.f32 1.442695, %v3592_v13  ;;  %v3630_v15 = vmul.f32 1.442695, %v3593_v33 }
 0x3e6   :  { %v3512_v30 = vpop.xlane.xlu0 %3511  ;;  %v3515_v17 = vpop.xlane.xlu1 %3514 }
 0x3e7   :  { %6305 = vpow2.f32 %v3628_v42  ;;  %v3594_v52 = vsub.f32 %v7812_v2, %v3512_v30  ;;  %v3595_v22 = vsub.f32 %v7821_v45, %v3515_v17 }
 0x3e8   :  { %v8004_v20 = vpop.eup %6297  ;;  %6307 = vpow2.f32 %v3630_v15 }
 0x3e9   :  { %v3632_v21 = vmul.f32 1.442695, %v3594_v52  ;;  %v3634_v48 = vmul.f32 1.442695, %v3595_v22  ;;  %v3684_v51 = vsel %vm1360_vm2, %v8004_v20, 0.0 }
 0x3ea   :  { %v3518_v27 = vpop.xlane.xlu0 %3517  ;;  %v3521_v6 = vpop.xlane.xlu1 %3520  ;;  %3685 = vadd.xlane.f32.xlu0 %v3684_v51 }
 0x3eb   :  { %6309 = vpow2.f32 %v3632_v21  ;;  %v3596_v12 = vsub.f32 %v7824_v37, %v3518_v27  ;;  %v3597_v31 = vsub.f32 %v7833_v59, %v3521_v6 }
 0x3ec   :  { %v8010_v54 = vpop.eup %6299  ;;  %6311 = vpow2.f32 %v3634_v48 }
 0x3ed   :  { %v8012_v8 = vpop.eup %6301  ;;  %v3636_v34 = vmul.f32 1.442695, %v3596_v12  ;;  %v3638_v19 = vmul.f32 1.442695, %v3597_v31  ;;  %v3690_v2 = vsel %vm1360_vm2, %v8010_v54, 0.0 }
 0x3ee   :  { %v3524_v45 = vpop.xlane.xlu0 %3523  ;;  %v3527_v13 = vpop.xlane.xlu1 %3526  ;;  %3691 = vadd.xlane.f32.xlu0 %v3690_v2  ;;  %v3687_v33 = vsel %vm1360_vm2, %v8012_v8, 0.0 }
 0x3ef   :  { %6313 = vpow2.f32 %v3636_v34  ;;  %v3598_v37 = vsub.f32 %v7836_v29, %v3524_v45  ;;  %v3599_v59 = vsub.f32 %v7845_v28, %v3527_v13  ;;  %3688 = vadd.xlane.f32.xlu1 %v3687_v33 }
 0x3f0   :  { %v8020_v42 = vpop.eup %6303  ;;  %6315 = vpow2.f32 %v3638_v19 }
 0x3f1   :  { %v3640_v15 = vmul.f32 1.442695, %v3598_v37  ;;  %v3642_v30 = vmul.f32 1.442695, %v3599_v59  ;;  %v3693_v17 = vsel %vm1360_vm2, %v8020_v42, 0.0 }
 0x3f2   :  { %v3530_v52 = vpop.xlane.xlu0 %3529  ;;  %v3533_v22 = vpop.xlane.xlu1 %3532 }
 0x3f3   :  { %6317 = vpow2.f32 %v3640_v15  ;;  %v3600_v21 = vsub.f32 %v7848_v43, %v3530_v52  ;;  %v3601_v48 = vsub.f32 %v7857_v63, %v3533_v22  ;;  %3694 = vadd.xlane.f32.xlu1 %v3693_v17 }
 0x3f4   :  { %v8026_v29 = vpop.eup %6305  ;;  %6319 = vpow2.f32 %v3642_v30 }
 0x3f5   :  { %v8028_v28 = vpop.eup %6307  ;;  %v3644_v51 = vmul.f32 1.442695, %v3600_v21  ;;  %v3646_v27 = vmul.f32 1.442695, %v3601_v48  ;;  %v3696_v6 = vsel %vm1360_vm2, %v8026_v29, 0.0 }
 0x3f6   :  { %v3536_v12 = vpop.xlane.xlu0 %3535  ;;  %v3539_v31 = vpop.xlane.xlu1 %3538  ;;  %3697 = vadd.xlane.f32.xlu0 %v3696_v6  ;;  %v3699_v34 = vsel %vm1360_vm2, %v8028_v28, 0.0 }
 0x3f7   :  { %6321 = vpow2.f32 %v3644_v51  ;;  %v3602_v43 = vsub.f32 %v7860_v60, %v3536_v12  ;;  %v3603_v63 = vsub.f32 %v7869_v36, %v3539_v31  ;;  %3700 = vadd.xlane.f32.xlu1 %v3699_v34 }
 0x3f8   :  { %v8036_v19 = vpop.eup %6309  ;;  %6323 = vpow2.f32 %v3646_v27 }
 0x3f9   :  { %v8038_v2 = vpop.eup %6311  ;;  %v3648_v45 = vmul.f32 1.442695, %v3602_v43  ;;  %v3650_v13 = vmul.f32 1.442695, %v3603_v63  ;;  %v3702_v33 = vsel %vm1360_vm2, %v8036_v19, 0.0 }
 0x3fa   :  { %v3542_v37 = vpop.xlane.xlu0 %3541  ;;  %v3545_v59 = vpop.xlane.xlu1 %3544  ;;  %3703 = vadd.xlane.f32.xlu0 %v3702_v33  ;;  %v3705_v15 = vsel %vm1360_vm2, %v8038_v2, 0.0 }
 0x3fb   :  { %6325 = vpow2.f32 %v3648_v45  ;;  %v3604_v60 = vsub.f32 %v7872_v44, %v3542_v37  ;;  %3706 = vadd.xlane.f32.xlu1 %v3705_v15  ;;  %v3605_v30 = vsub.f32 %v7881_v7, %v3545_v59 }
 0x3fc   :  { %v8045_v36 = vpop.eup %6313  ;;  %6327 = vpow2.f32 %v3650_v13 }
 0x3fd   :  { %v8048_v17 = vpop.eup %6315  ;;  %v3652_v52 = vmul.f32 1.442695, %v3604_v60  ;;  %v3708_v22 = vsel %vm1360_vm2, %v8045_v36, 0.0  ;;  %v3654_v7 = vmul.f32 1.442695, %v3605_v30 }
 0x3fe   :  { %v3548_v21 = vpop.xlane.xlu0 %3547  ;;  %v3551_v48 = vpop.xlane.xlu1 %3550  ;;  %3709 = vadd.xlane.f32.xlu0 %v3708_v22  ;;  %v3711_v51 = vsel %vm1360_vm2, %v8048_v17, 0.0 }
 0x3ff   :  { %6329 = vpow2.f32 %v3652_v52  ;;  %v3606_v44 = vsub.f32 %v7884_v38, %v3548_v21  ;;  %v3607_v27 = vsub.f32 %v7893_v61, %v3551_v48  ;;  %3712 = vadd.xlane.f32.xlu1 %v3711_v51 }
 0x400   :  { %v8056_v6 = vpop.eup %6317 }
 0x401   :  { %v8058_v12 = vpop.eup %6319  ;;  %v3656_v31 = vmul.f32 1.442695, %v3606_v44  ;;  %v3658_v34 = vmul.f32 1.442695, %v3607_v27  ;;  %v3714_v43 = vsel %vm1360_vm2, %v8056_v6, 0.0 }
 0x402   :  { %v3554_v63 = vpop.xlane.xlu0 %3553  ;;  %v3557_v45 = vpop.xlane.xlu1 %3556  ;;  %3715 = vadd.xlane.f32.xlu0 %v3714_v43  ;;  %v3717_v13 = vsel %vm1360_vm2, %v8058_v12, 0.0 }
 0x403   :  { %6331 = vpow2.f32 %v3656_v31  ;;  %v3608_v38 = vsub.f32 %v7896_v47, %v3554_v63  ;;  %3718 = vadd.xlane.f32.xlu1 %v3717_v13  ;;  %v3609_v33 = vsub.f32 %v7905_v41, %v3557_v45 }
 0x404   :  { %v8065_v61 = vpop.eup %6321  ;;  %6333 = vpow2.f32 %v3658_v34 }
 0x405   :  { %v8068_v37 = vpop.eup %6323  ;;  %6335 = vpow2.f32 %v3654_v7  ;;  %v3660_v59 = vmul.f32 1.442695, %v3608_v38  ;;  %v3720_v15 = vsel %vm1360_vm2, %v8065_v61, 0.0  ;;  %v3662_v21 = vmul.f32 1.442695, %v3609_v33 }
 0x406   :  { %v3560_v60 = vpop.xlane.xlu0 %3559  ;;  %v3563_v30 = vpop.xlane.xlu1 %3562  ;;  %3721 = vadd.xlane.f32.xlu0 %v3720_v15  ;;  %v3723_v52 = vsel %vm1360_vm2, %v8068_v37, 0.0 }
 0x407   :  { %6337 = vpow2.f32 %v3660_v59  ;;  %v3610_v47 = vsub.f32 %v7908_v16, %v3560_v60  ;;  %v3611_v22 = vsub.f32 %v7917_v3, %v3563_v30  ;;  %3724 = vadd.xlane.f32.xlu1 %v3723_v52 }
 0x408   :  { %v8076_v41 = vpop.eup %6325 }
 0x409   :  { %v8078_v48 = vpop.eup %6327  ;;  %v3664_v51 = vmul.f32 1.442695, %v3610_v47  ;;  %v3666_v44 = vmul.f32 1.442695, %v3611_v22  ;;  %v3726_v27 = vsel %vm1360_vm2, %v8076_v41, 0.0 }
 0x40a   :  { %v3566_v7 = vpop.xlane.xlu0 %3565  ;;  %v3569_v31 = vpop.xlane.xlu1 %3568  ;;  %3727 = vadd.xlane.f32.xlu0 %v3726_v27  ;;  %v3729_v34 = vsel %vm1360_vm2, %v8078_v48, 0.0 }
 0x40b   :  { %6339 = vpow2.f32 %v3664_v51  ;;  %v3612_v16 = vsub.f32 %v7920_v26, %v3566_v7  ;;  %3730 = vadd.xlane.f32.xlu1 %v3729_v34  ;;  %v3613_v43 = vsub.f32 %v7929_v55, %v3569_v31 }
 0x40c   :  { %v8085_v3 = vpop.eup %6329  ;;  %6341 = vpow2.f32 %v3666_v44 }
 0x40d   :  { %6343 = vpow2.f32 %v3662_v21  ;;  %v3668_v63 = vmul.f32 1.442695, %v3612_v16  ;;  %v3732_v45 = vsel %vm1360_vm2, %v8085_v3, 0.0  ;;  %v3670_v15 = vmul.f32 1.442695, %v3613_v43 }
 0x40e   :  { %v3572_v13 = vpop.xlane.xlu0 %3571  ;;  %v3575_v38 = vpop.xlane.xlu1 %3574 }
 0x40f   :  { %6345 = vpow2.f32 %v3668_v63  ;;  %v3614_v33 = vsub.f32 %v7932_v4, %v3572_v13  ;;  %v3615_v59 = vsub.f32 %v7941_v10, %v3575_v38  ;;  %3733 = vadd.xlane.f32.xlu1 %v3732_v45 }
 0x410   :  { %v8092_v26 = vpop.eup %6331 }
 0x411   :  { %v8094_v60 = vpop.eup %6333  ;;  %v3672_v30 = vmul.f32 1.442695, %v3614_v33  ;;  %v3674_v55 = vmul.f32 1.442695, %v3615_v59  ;;  %v3738_v52 = vsel %vm1360_vm2, %v8092_v26, 0.0 }
 0x412   :  { %v8098_v47 = vpop.eup %6335  ;;  %3739 = vadd.xlane.f32.xlu0 %v3738_v52  ;;  %v3578_v22 = vpop.xlane.xlu0 %3577  ;;  %v3741_v4 = vsel %vm1360_vm2, %v8094_v60, 0.0 }
 0x413   :  { %v3581_v21 = vpop.xlane.xlu1 %3580  ;;  %6347 = vpow2.f32 %v3672_v30  ;;  %v3616_v10 = vsub.f32 %v7944_v49, %v3578_v22  ;;  %3742 = vadd.xlane.f32.xlu1 %v3741_v4  ;;  %v3735_v7 = vsel %vm1360_vm2, %v8098_v47, 0.0 }
 0x414   :  { %v8103_v51 = vpop.eup %6337  ;;  %6349 = vpow2.f32 %v3674_v55  ;;  %v3617_v44 = vsub.f32 %v7953_v35, %v3581_v21 }
 0x415   :  { %6351 = vpow2.f32 %v3670_v15  ;;  %v3676_v27 = vmul.f32 1.442695, %v3616_v10  ;;  %v3744_v31 = vsel %vm1360_vm2, %v8103_v51, 0.0 }
 0x416   :  { %3736 = vadd.xlane.f32.xlu0 %v3735_v7  ;;  %v3584_v34 = vpop.xlane.xlu0 %3583  ;;  %v3678_v35 = vmul.f32 1.442695, %v3617_v44 }
 0x417   :  { %v3587_v16 = vpop.xlane.xlu1 %3586  ;;  %6353 = vpow2.f32 %v3676_v27  ;;  %v3618_v49 = vsub.f32 %v7956_v32, %v3584_v34  ;;  %3745 = vadd.xlane.f32.xlu1 %v3744_v31 }
 0x418   :  { %v3619_v43 = vsub.f32 %v7964_v62, %v3587_v16  ;;  %v8112_v63 = vpop.eup %6339 }
 0x419   :  { %v8114_v45 = vpop.eup %6341  ;;  %v3680_v13 = vmul.f32 1.442695, %v3618_v49  ;;  %v3750_v33 = vsel %vm1360_vm2, %v8112_v63, 0.0 }
 0x41a   :  { %v3682_v38 = vmul.f32 1.442695, %v3619_v43  ;;  %v8118_v59 = vpop.eup %6343  ;;  %3751 = vadd.xlane.f32.xlu0 %v3750_v33  ;;  %v3753_v15 = vsel %vm1360_vm2, %v8114_v45, 0.0  ;;  %v6462_v33 = vld [vmem:[%s8786_s3 + $0x18] sm:$0xff] }
 0x41b   :  { %6355 = vpow2.f32 %v3680_v13  ;;  %3754 = vadd.xlane.f32.xlu1 %v3753_v15  ;;  %v3747_v62 = vsel %vm1360_vm2, %v8118_v59, 0.0  ;;  %v6460_v13 = vld [vmem:[%s8786_s3 + $0x8] sm:$0xff]  ;;  %v6463_v15 = vld [vmem:[%s8786_s3] sm:$0xff] }
 0x41c   :  { %v8122_v32 = vpop.eup %6345  ;;  %6357 = vpow2.f32 %v3682_v38  ;;  %v6461_v38 = vld [vmem:[%s8785_s2 + $0x70] sm:$0xff]  }
 0x41d   :  { %6359 = vpow2.f32 %v3678_v35  ;;  %v3756_v30 = vsel %vm1360_vm2, %v8122_v32, 0.0  ;;  %v6459_v35 = vld [vmem:[%s8785_s2 + $0x78] sm:$0xff]  }
 0x41e   :  { %3748 = vadd.xlane.f32.xlu0 %v3747_v62  ;;  %v6464_v62 = vld [vmem:[%s8786_s3 + $0x28] sm:$0xff] }
 0x41f   :  { %3757 = vadd.xlane.f32.xlu1 %v3756_v30  ;;  %v6465_v30 = vld [vmem:[%s8786_s3 + $0x10] sm:$0xff] }
 0x420   :  { %v8128_v55 = vpop.eup %6347 }
 0x421   :  { %v8130_v52 = vpop.eup %6349  ;;  %v3762_v22 = vsel %vm1360_vm2, %v8128_v55, 0.0 }
 0x422   :  { %v8134_v4 = vpop.eup %6351  ;;  %3763 = vadd.xlane.f32.xlu0 %v3762_v22  ;;  %v3765_v21 = vsel %vm1360_vm2, %v8130_v52, 0.0  ;;  %v6466_v22 = vld [vmem:[%s8786_s3 + $0x38] sm:$0xff] }
 0x423   :  { %3766 = vadd.xlane.f32.xlu1 %v3765_v21  ;;  %v3759_v44 = vsel %vm1360_vm2, %v8134_v4, 0.0  ;;  %v6467_v21 = vld [vmem:[%s8786_s3 + $0x20] sm:$0xff] }
 0x424   :  { %v8138_v10 = vpop.eup %6353 }
 0x425   :  { %v3768_v27 = vsel %vm1360_vm2, %v8138_v10, 0.0 }
 0x426   :  { %3760 = vadd.xlane.f32.xlu0 %v3759_v44  ;;  %v6468_v44 = vld [vmem:[%s8786_s3 + $0x48] sm:$0xff] }
 0x427   :  { %3769 = vadd.xlane.f32.xlu1 %v3768_v27  ;;  %v6469_v27 = vld [vmem:[%s8786_s3 + $0x30] sm:$0xff] }
 0x428   :  { %v8144_v7 = vpop.eup %6355 }
 0x429   :  { %v8146_v31 = vpop.eup %6357  ;;  %v3774_v34 = vsel %vm1360_vm2, %v8144_v7, 0.0 }
 0x42a   :  { %v8150_v16 = vpop.eup %6359  ;;  %3775 = vadd.xlane.f32.xlu0 %v3774_v34  ;;  %v3777_v49 = vsel %vm1360_vm2, %v8146_v31, 0.0  ;;  %v6470_v34 = vld [vmem:[%s8786_s3 + $0x58] sm:$0xff] }
 0x42b   :  { %3778 = vadd.xlane.f32.xlu1 %v3777_v49  ;;  %v3771_v43 = vsel %vm1360_vm2, %v8150_v16, 0.0  ;;  %v6471_v49 = vld [vmem:[%s8786_s3 + $0x40] sm:$0xff] }
 0x42e   :  { %3772 = vadd.xlane.f32.xlu0 %v3771_v43  ;;  %v6472_v43 = vld [vmem:[%s8786_s3 + $0x68] sm:$0xff] }
 0x43c   :  { %4565 = vrot.lane.b32.xlu1 %v6459_v35, %s6495_s23  ;;  %v6473_v35 = vld [vmem:[%s8786_s3 + $0x50] sm:$0xff] }
 0x440   :  { %4646 = vrot.lane.b32.xlu1 %v6460_v13, %s6495_s23  ;;  %v6474_v13 = vld [vmem:[%s8786_s3 + $0x78] sm:$0xff] }
 0x444   :  { %4518 = vrot.lane.b32.xlu0 %v6461_v38, %s6495_s23  ;;  %4650 = vrot.lane.b32.xlu1 %v6462_v33, %s6495_s23  ;;  %v6475_v38 = vld [vmem:[%s8786_s3 + $0x60] sm:$0xff]  ;;  %v6476_v33 = vld [vmem:[%s8786_s3 + $0x88] sm:$0xff] }
 0x448   :  { %4644 = vrot.lane.b32.xlu0 %v6463_v15, %s6495_s23  ;;  %4654 = vrot.lane.b32.xlu1 %v6464_v62, %s6495_s23  ;;  %v6477_v15 = vld [vmem:[%s8786_s3 + $0x70] sm:$0xff]  ;;  %v6478_v62 = vld [vmem:[%s8786_s3 + $0x98] sm:$0xff] }
 0x44c   :  { %4648 = vrot.lane.b32.xlu0 %v6465_v30, %s6495_s23  ;;  %4658 = vrot.lane.b32.xlu1 %v6466_v22, %s6495_s23  ;;  %v6479_v30 = vld [vmem:[%s8786_s3 + $0x80] sm:$0xff]  ;;  %v6480_v22 = vld [vmem:[%s8786_s3 + $0xa8] sm:$0xff] }
 0x450   :  { %4652 = vrot.lane.b32.xlu0 %v6467_v21, %s6495_s23  ;;  %4662 = vrot.lane.b32.xlu1 %v6468_v44, %s6495_s23  ;;  %v6481_v21 = vld [vmem:[%s8786_s3 + $0x90] sm:$0xff]  ;;  %v6482_v44 = vld [vmem:[%s8786_s3 + $0xb8] sm:$0xff] }
 0x454   :  { %4656 = vrot.lane.b32.xlu0 %v6469_v27, %s6495_s23  ;;  %4666 = vrot.lane.b32.xlu1 %v6470_v34, %s6495_s23  ;;  %v8252_v27 = vpop.permute.xlu0 %4424  ;;  %v6483_v34 = vld [vmem:[%s8786_s3 + $0xa0] sm:$0xff] }
 0x458   :  { %4660 = vrot.lane.b32.xlu0 %v6471_v49, %s6495_s23  ;;  %4670 = vrot.lane.b32.xlu1 %v6472_v43, %s6495_s23  ;;  %v6484_v49 = vld [vmem:[%s8786_s3 + $0xc8] sm:$0xff] }
 0x45c   :  { %4664 = vrot.lane.b32.xlu0 %v6473_v35, %s6495_s23  ;;  %4674 = vrot.lane.b32.xlu1 %v6474_v13, %s6495_s23  ;;  %v8262_v35 = vpop.permute.xlu1 %4471  ;;  %v6485_v13 = vld [vmem:[%s8786_s3 + $0xb0] sm:$0xff] }
 0x460   :  { %4668 = vrot.lane.b32.xlu0 %v6475_v38, %s6495_s23  ;;  %4678 = vrot.lane.b32.xlu1 %v6476_v33, %s6495_s23  ;;  %v6486_v38 = vld [vmem:[%s8786_s3 + $0xd8] sm:$0xff] }
 0x464   :  { %4672 = vrot.lane.b32.xlu0 %v6477_v15, %s6495_s23  ;;  %4682 = vrot.lane.b32.xlu1 %v6478_v62, %s6495_s23  ;;  %v6487_v62 = vld [vmem:[%s8786_s3 + $0xc0] sm:$0xff] }
 0x468   :  { %4676 = vrot.lane.b32.xlu0 %v6479_v30, %s6495_s23  ;;  %4686 = vrot.lane.b32.xlu1 %v6480_v22, %s6495_s23  ;;  %v6488_v30 = vld [vmem:[%s8786_s3 + $0xe8] sm:$0xff] }
 0x46c   :  { %4680 = vrot.lane.b32.xlu0 %v6481_v21, %s6495_s23  ;;  %4690 = vrot.lane.b32.xlu1 %v6482_v44, %s6495_s23  ;;  %v6489_v21 = vld [vmem:[%s8786_s3 + $0xd0] sm:$0xff] }
 0x470   :  { %4684 = vrot.lane.b32.xlu0 %v6483_v34, %s6495_s23  ;;  %4694 = vrot.lane.b32.xlu1 %v6484_v49, %s6495_s23  ;;  %v6490_v49 = vld [vmem:[%s8786_s3 + $0xe0] sm:$0xff] }
 0x473   :  { %v3686_v43 = vpop.xlane.xlu0 %3685 }
 0x474   :  { %4688 = vrot.lane.b32.xlu0 %v6485_v13, %s6495_s23  ;;  %4698 = vrot.lane.b32.xlu1 %v6486_v38, %s6495_s23  ;;  %6361 = vrcp.f32 %v3686_v43 }
 0x477   :  { %v3692_v33 = vpop.xlane.xlu0 %3691 }
 0x478   :  { %v3689_v15 = vpop.xlane.xlu1 %3688  ;;  %4692 = vrot.lane.b32.xlu0 %v6487_v62, %s6495_s23  ;;  %4702 = vrot.lane.b32.xlu1 %v6488_v30, %s6495_s23 }
 0x479   :  { %6363 = vrcp.f32 %v3689_v15 }
 0x47a   :  { %6365 = vrcp.f32 %v3692_v33  ;;  %v6491_v33 = vld [vmem:[%s8786_s3 + $0xf0] sm:$0xff] }
 0x47c   :  { %v3695_v22 = vpop.xlane.xlu1 %3694  ;;  %4696 = vrot.lane.b32.xlu0 %v6489_v21, %s6495_s23  ;;  %4706 = vrot.lane.b32.xlu1 %v7755_v25, %s6495_s23 }
 0x47d   :  { %6367 = vrcp.f32 %v3695_v22 }
 0x47f   :  { %v3698_v44 = vpop.xlane.xlu0 %3697 }
 0x480   :  { %6369 = vrcp.f32 %v3698_v44  ;;  %v3701_v34 = vpop.xlane.xlu1 %3700  ;;  %4700 = vrot.lane.b32.xlu0 %v6490_v49, %s6495_s23 }
 0x481   :  { %6371 = vrcp.f32 %v3701_v34  ;;  %v6362_v13 = vpop.eup %6361 }
 0x482   :  { %v3812_v62 = vmul.f32 %v6362_v13, %v8004_v20 }
 0x483   :  { %v3704_v43 = vpop.xlane.xlu0 %3703 }
 0x484   :  { %6373 = vrcp.f32 %v3704_v43  ;;  %v3707_v38 = vpop.xlane.xlu1 %3706  ;;  %4704 = vrot.lane.b32.xlu0 %v6491_v33, %s6495_s23 }
 0x485   :  { %6375 = vrcp.f32 %v3707_v38 }
 0x486   :  { %v6364_v25 = vpop.eup %6363 }
 0x487   :  { %v3710_v15 = vpop.xlane.xlu0 %3709  ;;  %v3813_v30 = vmul.f32 %v6364_v25, %v8012_v8  ;;  %v6366_v22 = vpop.eup %6365 }
 0x488   :  { %6377 = vrcp.f32 %v3710_v15  ;;  %v3713_v21 = vpop.xlane.xlu1 %3712  ;;  %v3814_v43 = vmul.f32 %v6366_v22, %v8010_v54 }
 0x489   :  { %6379 = vrcp.f32 %v3713_v21  ;;  %v3844_v44 = vpack.c.bf16 %v3813_v30, %v3812_v62 }
 0x48a   :  { %v6368_v34 = vpop.eup %6367 }
 0x48b   :  { %5954 = vmatmul.mubr.msk.bf16.vlgmr.msra.gmra.mxu0 %vm1360_vm2, %v3844_v44  ;;  %v3716_v49 = vpop.xlane.xlu0 %3715  ;;  %v3815_v33 = vmul.f32 %v6368_v34, %v8020_v42 }
 0x48c   :  { %5964 = vmatpush3.bf16.msra.mxu0 %v7980_v57  ;;  %6381 = vrcp.f32 %v3716_v49  ;;  %v3719_v38 = vpop.xlane.xlu1 %3718  ;;  %5965 = vmatprep.mubr.msk.bf16.mxu0 %vm6493_vm1, %v8819_v18 }
 0x48d   :  { %v6370_v20 = vpop.eup %6369  ;;  %6383 = vrcp.f32 %v3719_v38  ;;  %v3845_v8 = vpack.c.bf16 %v3815_v33, %v3814_v43  ;;  %5975 = vmatprep.subr.bf16.mxu0 %v8819_v18 }
 0x48e   :  { %v6372_v13 = vpop.eup %6371  ;;  %v3816_v25 = vmul.f32 %v6370_v20, %v8026_v29 }
 0x48f   :  { %5960 = vmatmul.mubr.msk.bf16.vlgmr.msra.gmra.mxu1 %vm1360_vm2, %v3845_v8  ;;  %v3722_v54 = vpop.xlane.xlu0 %3721  ;;  %v3817_v42 = vmul.f32 %v6372_v13, %v8028_v28 }
 0x490   :  { %5970 = vmatpush3.bf16.msra.mxu1 %v7976_v58  ;;  %6385 = vrcp.f32 %v3722_v54  ;;  %v3725_v57 = vpop.xlane.xlu1 %3724  ;;  %5971 = vmatprep.mubr.msk.bf16.mxu1 %vm6493_vm1, %v8819_v18 }
 0x491   :  { %v6374_v15 = vpop.eup %6373  ;;  %6387 = vrcp.f32 %v3725_v57  ;;  %v3846_v62 = vpack.c.bf16 %v3817_v42, %v3816_v25  ;;  %5981 = vmatprep.subr.bf16.mxu1 %v8819_v18 }
 0x492   :  { %v6376_v30 = vpop.eup %6375  ;;  %v3818_v29 = vmul.f32 %v6374_v15, %v8036_v19 }
 0x493   :  { %5966 = vmatmul.mubr.msk.bf16.vlgmr.msra.gmra.mxu0 %vm1360_vm2, %v3846_v62  ;;  %v3728_v22 = vpop.xlane.xlu0 %3727  ;;  %v3819_v28 = vmul.f32 %v6376_v30, %v8038_v2 }
 0x494   :  { %5976 = vmatpush3.bf16.msra.mxu0 %v7984_v14  ;;  %6389 = vrcp.f32 %v3728_v22  ;;  %v3731_v58 = vpop.xlane.xlu1 %3730  ;;  %5977 = vmatprep.mubr.msk.bf16.mxu0 %vm6493_vm1, %v8819_v18 }
 0x495   :  { %v6378_v21 = vpop.eup %6377  ;;  %6391 = vrcp.f32 %v3731_v58  ;;  %v3847_v44 = vpack.c.bf16 %v3819_v28, %v3818_v29  ;;  %5987 = vmatprep.subr.bf16.mxu0 %v8819_v18 }
 0x496   :  { %v6380_v34 = vpop.eup %6379  ;;  %v3820_v19 = vmul.f32 %v6378_v21, %v8045_v36 }
 0x497   :  { %5972 = vmatmul.mubr.msk.bf16.vlgmr.msra.gmra.mxu1 %vm1360_vm2, %v3847_v44  ;;  %v3821_v49 = vmul.f32 %v6380_v34, %v8048_v17 }
 0x498   :  { %5982 = vmatpush3.bf16.msra.mxu1 %v7978_v5  ;;  %v3734_v14 = vpop.xlane.xlu1 %3733  ;;  %5983 = vmatprep.mubr.msk.bf16.mxu1 %vm6493_vm1, %v8819_v18 }
 0x499   :  { %v6382_v2 = vpop.eup %6381  ;;  %v3848_v43 = vpack.c.bf16 %v3821_v49, %v3820_v19  ;;  %5993 = vmatprep.subr.bf16.mxu1 %v8819_v18 }
 0x49a   :  { %v6384_v33 = vpop.eup %6383  ;;  %v3822_v38 = vmul.f32 %v6382_v2, %v8056_v6 }
 0x49b   :  { %5978 = vmatmul.mubr.msk.bf16.vlgmr.msra.gmra.mxu0 %vm1360_vm2, %v3848_v43  ;;  %v3740_v36 = vpop.xlane.xlu0 %3739  ;;  %v3823_v20 = vmul.f32 %v6384_v33, %v8058_v12 }
 0x49c   :  { %5988 = vmatpush3.bf16.msra.mxu0 %v7988_v50  ;;  %6393 = vrcp.f32 %v3740_v36  ;;  %v3743_v5 = vpop.xlane.xlu1 %3742  ;;  %5989 = vmatprep.mubr.msk.bf16.mxu0 %vm6493_vm1, %v8819_v18 }
 0x49d   :  { %v6386_v17 = vpop.eup %6385  ;;  %6395 = vrcp.f32 %v3743_v5  ;;  %v3849_v8 = vpack.c.bf16 %v3823_v20, %v3822_v38  ;;  %5999 = vmatprep.subr.bf16.mxu0 %v8819_v18 }
 0x49e   :  { %v6388_v13 = vpop.eup %6387  ;;  %6397 = vrcp.f32 %v3734_v14  ;;  %v3824_v6 = vmul.f32 %v6386_v17, %v8065_v61 }
 0x49f   :  { %5984 = vmatmul.mubr.msk.bf16.vlgmr.msra.gmra.mxu1 %vm1360_vm2, %v3849_v8  ;;  %v3737_v25 = vpop.xlane.xlu0 %3736  ;;  %v3825_v12 = vmul.f32 %v6388_v13, %v8068_v37 }
 0x4a0   :  { %5994 = vmatpush3.bf16.msra.mxu1 %v7982_v53  ;;  %6399 = vrcp.f32 %v3737_v25  ;;  %v3746_v50 = vpop.xlane.xlu1 %3745  ;;  %5995 = vmatprep.mubr.msk.bf16.mxu1 %vm6493_vm1, %v8819_v18 }
 0x4a1   :  { %v6390_v54 = vpop.eup %6389  ;;  %v3850_v42 = vpack.c.bf16 %v3825_v12, %v3824_v6  ;;  %6005 = vmatprep.subr.bf16.mxu1 %v8819_v18 }
 0x4a2   :  { %v6392_v57 = vpop.eup %6391  ;;  %v3826_v15 = vmul.f32 %v6390_v54, %v8076_v41 }
 0x4a3   :  { %5990 = vmatmul.mubr.msk.bf16.vlgmr.msra.gmra.mxu0 %vm1360_vm2, %v3850_v42  ;;  %v3752_v61 = vpop.xlane.xlu0 %3751  ;;  %v3827_v62 = vmul.f32 %v6392_v57, %v8078_v48 }
 0x4a4   :  { %6000 = vmatpush3.bf16.msra.mxu0 %v7992_v11  ;;  %6401 = vrcp.f32 %v3752_v61  ;;  %v3755_v53 = vpop.xlane.xlu1 %3754  ;;  %6001 = vmatprep.mubr.msk.bf16.mxu0 %vm6493_vm1, %v8819_v18 }
 0x4a5   :  { %6403 = vrcp.f32 %v3755_v53  ;;  %v3851_v37 = vpack.c.bf16 %v3827_v62, %v3826_v15  ;;  %6011 = vmatprep.subr.bf16.mxu0 %v8819_v18 }
 0x4a6   :  { %6405 = vrcp.f32 %v3746_v50 }
 0x4a7   :  { %5996 = vmatmul.mubr.msk.bf16.vlgmr.msra.gmra.mxu1 %vm1360_vm2, %v3851_v37  ;;  %v3749_v41 = vpop.xlane.xlu0 %3748  ;;  %v8846_v37 = vpack.c.bf16 %v7577_v0, %v7575_v39  ;;  %v8849_v0 = vld [vmem:[#allocation3_spill] sm:$0xff] }
 0x4a8   :  { %6006 = vmatpush3.bf16.msra.mxu1 %v7986_v1  ;;  %6407 = vrcp.f32 %v3749_v41  ;;  %v3758_v30 = vpop.xlane.xlu1 %3757  ;;  %6007 = vmatprep.mubr.msk.bf16.mxu1 %vm6493_vm1, %v8819_v18 }
 0x4a9   :  { %v6394_v11 = vpop.eup %6393  ;;  %6017 = vmatprep.subr.bf16.mxu1 %v8819_v18 }
 0x4aa   :  { %v6396_v48 = vpop.eup %6395  ;;  %v3830_v29 = vmul.f32 %v6394_v11, %v8092_v26 }
 0x4ab   :  { %v6398_v22 = vpop.eup %6397  ;;  %v3831_v28 = vmul.f32 %v6396_v48, %v8094_v60  ;;  %v3764_v58 = vpop.xlane.xlu0 %3763  ;;  %v8858_v48 = vld [vmem:[#allocation9_spill] sm:$0xff] }
 0x4ac   :  { %6409 = vrcp.f32 %v3764_v58  ;;  %v3767_v21 = vpop.xlane.xlu1 %3766  ;;  %v3828_v1 = vmul.f32 %v6398_v22, %v8085_v3  ;;  %v8862_v58 = vld [vmem:[#allocation10_spill] sm:$0xff] }
 0x4ad   :  { %v6400_v44 = vpop.eup %6399  ;;  %v3853_v34 = vpack.c.bf16 %v3831_v28, %v3830_v29  ;;  %6411 = vrcp.f32 %v3767_v21  ;;  %v8859_v29 = vld [vmem:[#allocation8_spill] sm:$0xff]  ;;  %v8861_v28 = vld [vmem:[#allocation11_spill] sm:$0xff] }
 0x4ae   :  { %v3829_v19 = vmul.f32 %v6400_v44, %v8098_v47  ;;  %6413 = vrcp.f32 %v3758_v30  ;;  %v8860_v22 = vpack.c.bf16 %v8858_v48, %v8859_v29  ;;  %v8863_v21 = vpack.c.bf16 %v8861_v28, %v8862_v58  ;;  %v8864_v44 = vld [vmem:[#allocation13_spill] sm:$0xff] }
 0x4af   :  { %6008 = vmatmul.mubr.msk.bf16.vlgmr.msra.gmra.mxu1 %vm1360_vm2, %v3853_v34  ;;  %v3761_v49 = vpop.xlane.xlu0 %3760  ;;  %v8865_v34 = vld [vmem:[#allocation12_spill] sm:$0xff] }
 0x4b0   :  { %v3852_v14 = vpack.c.bf16 %v3829_v19, %v3828_v1  ;;  %6018 = vmatpush3.bf16.msra.mxu1 %v7994_v40  ;;  %6415 = vrcp.f32 %v3761_v49  ;;  %v3770_v26 = vpop.xlane.xlu1 %3769  ;;  %6019 = vmatprep.mubr.msk.bf16.mxu1 %vm6493_vm1, %v8819_v18  ;;  %v8866_v1 = vpack.c.bf16 %v8864_v44, %v8865_v34  ;;  %v8867_v19 = vld [vmem:[#allocation15_spill] sm:$0xff]  ;;  %v8868_v49 = vld [vmem:[#allocation14_spill] sm:$0xff] }
 0x4b1   :  { %v6402_v60 = vpop.eup %6401  ;;  %6029 = vmatprep.subr.bf16.mxu1 %v8819_v18 }
 0x4b2   :  { %v6404_v2 = vpop.eup %6403  ;;  %v3834_v3 = vmul.f32 %v6402_v60, %v8112_v63  ;;  %6002 = vmatmul.mubr.msk.bf16.vlgmr.msra.gmra.mxu0 %vm1360_vm2, %v3852_v14  ;;  %v8869_v14 = vpack.c.bf16 %v8867_v19, %v8868_v49  ;;  %v8871_v60 = vld [vmem:[#allocation16_spill] sm:$0xff] }
 0x4b3   :  { %v6406_v47 = vpop.eup %6405  ;;  %v3835_v43 = vmul.f32 %v6404_v2, %v8114_v45  ;;  %6012 = vmatpush3.bf16.msra.mxu0 %v7990_v56  ;;  %v3776_v33 = vpop.xlane.xlu0 %3775  ;;  %6013 = vmatprep.mubr.msk.bf16.mxu0 %vm6493_vm1, %v8819_v18 }
 0x4b4   :  { %6417 = vrcp.f32 %v3776_v33  ;;  %v3779_v40 = vpop.xlane.xlu1 %3778  ;;  %6023 = vmatprep.subr.bf16.mxu0 %v8819_v18  ;;  %v3832_v63 = vmul.f32 %v6406_v47, %v8103_v51  ;;  %v8874_v47 = vld [vmem:[#allocation18_spill] sm:$0xff]  ;;  %v8876_v33 = vld [vmem:[#allocation21_spill] sm:$0xff] }
 0x4b5   :  { %v6408_v38 = vpop.eup %6407  ;;  %v3855_v36 = vpack.c.bf16 %v3835_v43, %v3834_v3  ;;  %6419 = vrcp.f32 %v3779_v40  ;;  %v8873_v3 = vld [vmem:[#allocation19_spill] sm:$0xff]  ;;  %v8877_v40 = vld [vmem:[#allocation20_spill] sm:$0xff] }
 0x4b6   :  { %v3833_v20 = vmul.f32 %v6408_v38, %v8118_v59  ;;  %6421 = vrcp.f32 %v3770_v26  ;;  %v8870_v26 = vld [vmem:[#allocation17_spill] sm:$0xff]  ;;  %v8875_v43 = vpack.c.bf16 %v8873_v3, %v8874_v47  ;;  %v8878_v38 = vpack.c.bf16 %v8876_v33, %v8877_v40 }
 0x4b7   :  { %6020 = vmatmul.mubr.msk.bf16.vlgmr.msra.gmra.mxu1 %vm1360_vm2, %v3855_v36  ;;  %v3773_v45 = vpop.xlane.xlu0 %3772  ;;  %v8872_v2 = vpack.c.bf16 %v8870_v26, %v8871_v60  ;;  %v8879_v36 = vld [vmem:[#allocation23_spill] sm:$0xff] }
 0x4b8   :  { %v3854_v56 = vpack.c.bf16 %v3833_v20, %v3832_v63  ;;  %6030 = vmatpush3.bf16.msra.mxu1 %v8262_v35  ;;  %6423 = vrcp.f32 %v3773_v45  ;;  %6031 = vmatprep.mubr.msk.bf16.mxu1 %vm6493_vm1, %v8819_v18  ;;  %v4566_v6 = vpop.permute.xlu1 %4565  ;;  %v8880_v63 = vld [vmem:[#allocation22_spill] sm:$0xff]  ;;  %v8882_v45 = vld [vmem:[#allocation25_spill] sm:$0xff] }
 0x4b9   :  { %v6410_v5 = vpop.eup %6409  ;;  %6041 = vmatprep.subr.bf16.mxu1 %v8819_v18  ;;  %v8881_v20 = vpack.c.bf16 %v8879_v36, %v8880_v63 }
 0x4ba   :  { %v6412_v17 = vpop.eup %6411  ;;  %v3838_v8 = vmul.f32 %v6410_v5, %v8128_v55  ;;  %6014 = vmatmul.mubr.msk.bf16.vlgmr.msra.gmra.mxu0 %vm1360_vm2, %v3854_v56  ;;  %v161_v55 = vld [vmem:[%s8787_s6] sm:$0xf]  ;;  %v8883_v56 = vld [vmem:[#allocation24_spill] sm:$0xff] }
 0x4bb   :  { %v6414_v51 = vpop.eup %6413  ;;  %v3839_v59 = vmul.f32 %v6412_v17, %v8130_v52  ;;  %6024 = vmatpush3.bf16.msra.mxu0 %v8252_v27  ;;  %6025 = vmatprep.mubr.msk.bf16.mxu0 %vm6493_vm1, %v8819_v18  ;;  %v4519_v27 = vpop.permute.xlu0 %4518  ;;  %v5050_v61 = vsel %vm4836_vm3, %v161_v55, 0  ;;  %v8884_v5 = vpack.c.bf16 %v8882_v45, %v8883_v56  ;;  %v8885_v17 = vld [vmem:[#allocation27_spill] sm:$0xff] }
 0x4bc   :  { %6035 = vmatprep.subr.bf16.mxu0 %v8819_v18  ;;  %v3836_v25 = vmul.f32 %v6414_v51, %v8122_v32 }
 0x4bd   :  { %v6416_v35 = vpop.eup %6415  ;;  %v3857_v13 = vpack.c.bf16 %v3839_v59, %v3838_v8  ;;  %v8886_v8 = vld [vmem:[#allocation26_spill] sm:$0xff]  ;;  %v4647_v59 = vpop.permute.xlu1 %4646 }
 0x4be   :  { %v3837_v12 = vmul.f32 %v6416_v35, %v8134_v4  ;;  %v8887_v51 = vpack.c.bf16 %v8885_v17, %v8886_v8 }
 0x4bf   :  { %6032 = vmatmul.mubr.msk.bf16.vlgmr.msra.gmra.mxu1 %vm1360_vm2, %v3857_v13  ;;  %v4645_v35 = vpop.permute.xlu0 %4644 }
 0x4c0   :  { %v3856_v52 = vpack.c.bf16 %v3837_v12, %v3836_v25  ;;  %6042 = vmatpush3.bf16.msra.mxu1 %v4566_v6  ;;  %6043 = vmatprep.mubr.msk.bf16.mxu1 %vm6493_vm1, %v8819_v18 }
 0x4c1   :  { %v6418_v50 = vpop.eup %6417  ;;  %6116 = vmatprep.subr.msk.bf16.mxu1 %vm4836_vm3, %v161_v55  ;;  %v4651_v13 = vpop.permute.xlu1 %4650 }
 0x4c2   :  { %v6420_v54 = vpop.eup %6419  ;;  %v3842_v32 = vmul.f32 %v6418_v50, %v8144_v7  ;;  %6026 = vmatmul.mubr.msk.bf16.vlgmr.msra.gmra.mxu0 %vm1360_vm2, %v3856_v52 }
 0x4c3   :  { %v6422_v4 = vpop.eup %6421  ;;  %v3843_v42 = vmul.f32 %v6420_v54, %v8146_v31  ;;  %6036 = vmatpush3.bf16.msra.mxu0 %v4519_v27  ;;  %6037 = vmatprep.mubr.msk.bf16.mxu0 %vm6493_vm1, %v8819_v18  ;;  %v8847_v18 = vpack.c.bf16 %v7589_v9, %v7587_v23  ;;  %v162_v31 = vld [vmem:[%s8787_s6 + $0x4] sm:$0xf]  ;;  %v8852_v23 = vld [vmem:[#allocation5_spill] sm:$0xff]  ;;  %v8853_v9 = vld [vmem:[#allocation4_spill] sm:$0xff]  ;;  %v4649_v6 = vpop.permute.xlu0 %4648 }
 0x4c4   :  { %v3840_v62 = vmul.f32 %v6422_v4, %v8138_v10  ;;  %v8848_v10 = vpack.c.bf16 %v7601_v46, %v7599_v24  ;;  %6115 = vmatprep.subr.msk.bf16.mxu0 %vm4836_vm3, %v162_v31  ;;  %v4838_v39 = vsel %vm4836_vm3, %v162_v31, 0  ;;  %v8854_v30 = vpack.c.bf16 %v8852_v23, %v8853_v9  ;;  %v8855_v24 = vld [vmem:[#allocation7_spill] sm:$0xff]  ;;  %v8856_v46 = vld [vmem:[#allocation6_spill] sm:$0xff] }
 0x4c5   :  { %v6424_v57 = vpop.eup %6423  ;;  %v3859_v15 = vpack.c.bf16 %v3843_v42, %v3842_v32  ;;  %v8857_v11 = vpack.c.bf16 %v8855_v24, %v8856_v46  ;;  %v4655_v25 = vpop.permute.xlu1 %4654 }
 0x4c6   :  { %v3841_v53 = vmul.f32 %v6424_v57, %v8150_v16  ;;  %v8850_v16 = vld [vmem:[#allocation2_spill] sm:$0xff] }
 0x4c7   :  { %6044 = vmatmul.mubr.msk.bf16.vlgmr.msra.gmra.mxu1 %vm1360_vm2, %v3859_v15  ;;  %v8851_v41 = vpack.c.bf16 %v8849_v0, %v8850_v16  ;;  %v4653_v12 = vpop.permute.xlu0 %4652 }
 0x4c8   :  { %v3858_v7 = vpack.c.bf16 %v3841_v53, %v3840_v62  ;;  %6083 = vmatprep.mubr.msk.bf16.mxu1 %vm179_vm0, %v8846_v37  ;;  %6082 = vmatpush3.bf16.msra.mxu1 %v5050_v61 }
 0x4c9   :  { %v4659_v55 = vpop.permute.xlu1 %4658 }
 0x4ca   :  { %6038 = vmatmul.mubr.msk.bf16.vlgmr.msra.gmra.mxu0 %vm1360_vm2, %v3858_v7 }
 0x4cb   :  { %6048 = vmatpush3.bf16.msra.mxu0 %v4838_v39  ;;  %v4657_v52 = vpop.permute.xlu0 %4656 }
 0x4cd   :  { %v4663_v27 = vpop.permute.xlu1 %4662 }
 0x4cf   :  { %6084 = vmatmul.mubr.msk.bf16.vlgmr.msra.gmra.mxu1 %vm179_vm0, %v8847_v18  ;;  %v4661_v50 = vpop.permute.xlu0 %4660 }
 0x4d0   :  { %6087 = vmatprep.mubr.msk.bf16.mxu1 %vm179_vm0, %v8848_v10 }
 0x4d1   :  { %v4667_v4 = vpop.permute.xlu1 %4666 }
 0x4d3   :  { %v4665_v62 = vpop.permute.xlu0 %4664 }
 0x4d5   :  { %v4671_v0 = vpop.permute.xlu1 %4670 }
 0x4d7   :  { %6088 = vmatmul.mubr.msk.bf16.gmra.mxu1 %vm179_vm0, %v8851_v41  ;;  %v4669_v9 = vpop.permute.xlu0 %4668 }
 0x4d8   :  { %6091 = vmatprep.mubr.msk.bf16.mxu1 %vm179_vm0, %v8854_v30 }
 0x4d9   :  { %v4675_v28 = vpop.permute.xlu1 %4674 }
 0x4dd   :  { %v4679_v47 = vpop.permute.xlu1 %4678 }
 0x4df   :  { %6092 = vmatmul.mubr.msk.bf16.gmra.mxu1 %vm179_vm0, %v8857_v11 }
 0x4e0   :  { %6095 = vmatprep.mubr.msk.bf16.mxu1 %vm179_vm0, %v8860_v22 }
 0x4e1   :  { %v4683_v8 = vpop.permute.xlu1 %4682 }
 0x4e7   :  { %6096 = vmatmul.mubr.msk.bf16.gmra.mxu1 %vm179_vm0, %v8863_v21 }
 0x4e8   :  { %6099 = vmatprep.mubr.msk.bf16.mxu1 %vm179_vm0, %v8866_v1  ;;  %v4673_v1 = vpop.permute.xlu0 %4672 }
 0x4ef   :  { %6100 = vmatmul.mubr.msk.bf16.gmra.mxu1 %vm179_vm0, %v8869_v14 }
 0x4f0   :  { %6103 = vmatprep.mubr.msk.bf16.mxu1 %vm179_vm0, %v8872_v2 }
 0x4f7   :  { %6104 = vmatmul.mubr.msk.bf16.gmra.mxu1 %vm179_vm0, %v8875_v43 }
 0x4f8   :  { %6107 = vmatprep.mubr.msk.bf16.mxu1 %vm179_vm0, %v8878_v38  ;;  %v4677_v38 = vpop.permute.xlu0 %4676 }
 0x4ff   :  { %6108 = vmatmul.mubr.msk.bf16.gmra.mxu1 %vm179_vm0, %v8881_v20 }
 0x500   :  { %6111 = vmatprep.mubr.msk.bf16.mxu1 %vm179_vm0, %v8884_v5 }
 0x507   :  { %6112 = vmatmul.mubr.msk.bf16.gmra.mxu1 %vm179_vm0, %v8887_v51 }
 0x54b   :  { %v3900_v54 = vpop.f32.mrf.mxu0 }
 0x54c   :  { %v4740_v15 = vmul.f32 %v4645_v35, %v3900_v54 }
 0x54d   :  { %v5955_v32 = vpop.f32.mrf.mxu0 }
 0x54e   :  { %v4687_v32 = vpop.permute.xlu1 %4686 }
 0x54f   :  { %v3947_v42 = vpop.f32.mrf.mxu1  ;;  %v3903_v57 = vpop.f32.mrf.mxu0 }
 0x550   :  { %v4741_v61 = vmul.f32 %v4647_v59, %v3903_v57  ;;  %v4742_v31 = vmul.f32 %v4649_v6, %v3947_v42  ;;  %v4681_v6 = vpop.permute.xlu0 %4680 }
 0x551   :  { %v5956_v53 = vpop.f32.mrf.mxu0  ;;  %v5961_v7 = vpop.f32.mrf.mxu1 }
 0x552   :  { %v4772_v37 = vpack.c.bf16 %v4741_v61, %v4740_v15  ;;  %v4691_v53 = vpop.permute.xlu1 %4690 }
 0x553   :  { %v3950_v18 = vpop.f32.mrf.mxu1  ;;  %v3994_v10 = vpop.f32.mrf.mxu0 }
 0x554   :  { %v4743_v39 = vmul.f32 %v4651_v13, %v3950_v18  ;;  %6049 = vmatprep.mubr.msk.bf16.mxu0 %vm179_vm0, %v4772_v37  ;;  %v4744_v46 = vmul.f32 %v4653_v12, %v3994_v10  ;;  %v4685_v57 = vpop.permute.xlu0 %4684 }
 0x555   :  { %v5962_v16 = vpop.f32.mrf.mxu1  ;;  %v5967_v41 = vpop.f32.mrf.mxu0 }
 0x556   :  { %v4773_v23 = vpack.c.bf16 %v4743_v39, %v4742_v31 }
 0x557   :  { %v4041_v30 = vpop.f32.mrf.mxu1  ;;  %v3997_v24 = vpop.f32.mrf.mxu0 }
 0x558   :  { %v4745_v11 = vmul.f32 %v4655_v25, %v3997_v24  ;;  %6050 = vmatmul.mubr.msk.bf16.vlgmr.msra.gmra.mxu0 %vm179_vm0, %v4773_v23  ;;  %v4746_v44 = vmul.f32 %v4657_v52, %v4041_v30  ;;  %v4689_v18 = vpop.permute.xlu0 %4688  ;;  %v4695_v24 = vpop.permute.xlu1 %4694 }
 0x559   :  { %v5968_v48 = vpop.f32.mrf.mxu0  ;;  %v5973_v29 = vpop.f32.mrf.mxu1 }
 0x55a   :  { %v4774_v22 = vpack.c.bf16 %v4745_v11, %v4744_v46 }
 0x55b   :  { %v4044_v58 = vpop.f32.mrf.mxu1  ;;  %v4088_v21 = vpop.f32.mrf.mxu0 }
 0x55c   :  { %v4747_v34 = vmul.f32 %v4659_v55, %v4044_v58  ;;  %6053 = vmatprep.mubr.msk.bf16.mxu0 %vm179_vm0, %v4774_v22  ;;  %v4748_v2 = vmul.f32 %v4661_v50, %v4088_v21  ;;  %v4693_v48 = vpop.permute.xlu0 %4692 }
 0x55d   :  { %v5974_v19 = vpop.f32.mrf.mxu1  ;;  %v5979_v49 = vpop.f32.mrf.mxu0 }
 0x55e   :  { %v4775_v14 = vpack.c.bf16 %v4747_v34, %v4746_v44  ;;  %v4699_v19 = vpop.permute.xlu1 %4698 }
 0x55f   :  { %v4135_v26 = vpop.f32.mrf.mxu1  ;;  %v4091_v60 = vpop.f32.mrf.mxu0 }
 0x560   :  { %v4749_v3 = vmul.f32 %v4663_v27, %v4091_v60  ;;  %6054 = vmatmul.mubr.msk.bf16.gmra.mxu0 %vm179_vm0, %v4775_v14  ;;  %v4750_v20 = vmul.f32 %v4665_v62, %v4135_v26  ;;  %v4697_v26 = vpop.permute.xlu0 %4696 }
 0x561   :  { %v5980_v43 = vpop.f32.mrf.mxu0  ;;  %v5985_v33 = vpop.f32.mrf.mxu1 }
 0x562   :  { %v4776_v40 = vpack.c.bf16 %v4749_v3, %v4748_v2 }
 0x563   :  { %v4138_v36 = vpop.f32.mrf.mxu1  ;;  %v4182_v63 = vpop.f32.mrf.mxu0 }
 0x564   :  { %v4751_v45 = vmul.f32 %v4667_v4, %v4138_v36  ;;  %6057 = vmatprep.mubr.msk.bf16.mxu0 %vm179_vm0, %v4776_v40  ;;  %v4752_v35 = vmul.f32 %v4669_v9, %v4182_v63 }
 0x565   :  { %v5986_v56 = vpop.f32.mrf.mxu1  ;;  %v5991_v5 = vpop.f32.mrf.mxu0 }
 0x566   :  { %v4777_v17 = vpack.c.bf16 %v4751_v45, %v4750_v20  ;;  %v4701_v20 = vpop.permute.xlu0 %4700 }
 0x567   :  { %v4229_v51 = vpop.f32.mrf.mxu1  ;;  %v4185_v59 = vpop.f32.mrf.mxu0 }
 0x568   :  { %v4753_v13 = vmul.f32 %v4671_v0, %v4185_v59  ;;  %6058 = vmatmul.mubr.msk.bf16.gmra.mxu0 %vm179_vm0, %v4777_v17  ;;  %v4754_v27 = vmul.f32 %v4673_v1, %v4229_v51 }
 0x569   :  { %v5992_v25 = vpop.f32.mrf.mxu0  ;;  %v5997_v12 = vpop.f32.mrf.mxu1 }
 0x56a   :  { %v4778_v55 = vpack.c.bf16 %v4753_v13, %v4752_v35 }
 0x56b   :  { %v4232_v52 = vpop.f32.mrf.mxu1 }
 0x56c   :  { %v4755_v50 = vmul.f32 %v4675_v28, %v4232_v52  ;;  %6061 = vmatprep.mubr.msk.bf16.mxu0 %vm179_vm0, %v4778_v55  ;;  %v4705_v55 = vpop.permute.xlu0 %4704 }
 0x56d   :  { %v5998_v54 = vpop.f32.mrf.mxu1 }
 0x56e   :  { %v4779_v4 = vpack.c.bf16 %v4755_v50, %v4754_v27 }
 0x56f   :  { %v4323_v42 = vpop.f32.mrf.mxu1 }
 0x570   :  { %6062 = vmatmul.mubr.msk.bf16.gmra.mxu0 %vm179_vm0, %v4779_v4  ;;  %v4758_v41 = vmul.f32 %v4681_v6, %v4323_v42 }
 0x571   :  { %v6009_v15 = vpop.f32.mrf.mxu1 }
 0x572   :  { %v4276_v61 = vpop.f32.mrf.mxu0 }
 0x573   :  { %v4326_v62 = vpop.f32.mrf.mxu1  ;;  %v4756_v39 = vmul.f32 %v4677_v38, %v4276_v61  ;;  %v4703_v38 = vpop.permute.xlu1 %4702 }
 0x574   :  { %v6003_v7 = vpop.f32.mrf.mxu0  ;;  %v4759_v10 = vmul.f32 %v4683_v8, %v4326_v62 }
 0x575   :  { %v6010_v37 = vpop.f32.mrf.mxu1 }
 0x576   :  { %v4279_v31 = vpop.f32.mrf.mxu0  ;;  %v4781_v46 = vpack.c.bf16 %v4759_v10, %v4758_v41 }
 0x577   :  { %v4417_v0 = vpop.f32.mrf.mxu1  ;;  %v4757_v16 = vmul.f32 %v4679_v47, %v4279_v31  ;;  %v4707_v25 = vpop.permute.xlu1 %4706 }
 0x578   :  { %v6004_v23 = vpop.f32.mrf.mxu0  ;;  %v4762_v49 = vmul.f32 %v4689_v18, %v4417_v0 }
 0x579   :  { %v4780_v9 = vpack.c.bf16 %v4757_v16, %v4756_v39  ;;  %v6021_v30 = vpop.f32.mrf.mxu1 }
 0x57a   :  { %v4370_v11 = vpop.f32.mrf.mxu0 }
 0x57b   :  { %v4420_v29 = vpop.f32.mrf.mxu1  ;;  %6065 = vmatprep.mubr.msk.bf16.mxu0 %vm179_vm0, %v4780_v9  ;;  %v4760_v44 = vmul.f32 %v4685_v57, %v4370_v11 }
 0x57c   :  { %v6015_v22 = vpop.f32.mrf.mxu0  ;;  %6066 = vmatmul.mubr.msk.bf16.gmra.mxu0 %vm179_vm0, %v4781_v46  ;;  %v4763_v58 = vmul.f32 %v4691_v53, %v4420_v29  ;;  %v8499_v46 = vld [vmem:[%s8788_s7] ss:$0 sm:$0xff]  ;;  %v5254_v29 = vld [vmem:[%s8789_s8 + $0x10] sm:$0xff] }
 0x57d   :  { %v6022_v28 = vpop.f32.mrf.mxu1 }
 0x57e   :  { %v4373_v21 = vpop.f32.mrf.mxu0  ;;  %v4783_v3 = vpack.c.bf16 %v4763_v58, %v4762_v49 }
 0x57f   :  { %v4511_v34 = vpop.f32.mrf.mxu1  ;;  %v4761_v1 = vmul.f32 %v4687_v32, %v4373_v21  ;;  %v5252_v21 = vld [vmem:[%s8789_s8] sm:$0xff] }
 0x580   :  { %v6016_v14 = vpop.f32.mrf.mxu0  ;;  %v4766_v17 = vmul.f32 %v4697_v26, %v4511_v34 }
 0x581   :  { %v4782_v60 = vpack.c.bf16 %v4761_v1, %v4760_v44  ;;  %v6033_v2 = vpop.f32.mrf.mxu1  ;;  %v5255_v14 = vld [vmem:[%s8789_s8 + $0x18] sm:$0xff] }
 0x582   :  { %v4464_v47 = vpop.f32.mrf.mxu0 }
 0x583   :  { %v4514_v43 = vpop.f32.mrf.mxu1  ;;  %6069 = vmatprep.mubr.msk.bf16.mxu0 %vm179_vm0, %v4782_v60  ;;  %v4764_v45 = vmul.f32 %v4693_v48, %v4464_v47  ;;  %v5253_v47 = vld [vmem:[%s8789_s8 + $0x8] sm:$0xff] }
 0x584   :  { %v6027_v33 = vpop.f32.mrf.mxu0  ;;  %6070 = vmatmul.mubr.msk.bf16.gmra.mxu0 %vm179_vm0, %v4783_v3  ;;  %v4767_v36 = vmul.f32 %v4699_v19, %v4514_v43 }
 0x585   :  { %v6034_v40 = vpop.f32.mrf.mxu1 }
 0x586   :  { %v4467_v63 = vpop.f32.mrf.mxu0  ;;  %v4785_v35 = vpack.c.bf16 %v4767_v36, %v4766_v17  ;;  %v5256_v17 = vld [vmem:[%s8789_s8 + $0x20] sm:$0xff] }
 0x587   :  { %v4605_v56 = vpop.f32.mrf.mxu1  ;;  %v4765_v5 = vmul.f32 %v4695_v24, %v4467_v63  ;;  %v5258_v63 = vld [vmem:[%s8789_s8 + $0x30] sm:$0xff] }
 0x588   :  { %v6028_v8 = vpop.f32.mrf.mxu0  ;;  %v4770_v4 = vmul.f32 %v4705_v55, %v4605_v56 }
 0x589   :  { %v4784_v51 = vpack.c.bf16 %v4765_v5, %v4764_v45  ;;  %v6045_v59 = vpop.f32.mrf.mxu1 }
 0x58a   :  { %v4558_v13 = vpop.f32.mrf.mxu0 }
 0x58b   :  { %v4608_v6 = vpop.f32.mrf.mxu1  ;;  %6073 = vmatprep.mubr.msk.bf16.mxu0 %vm179_vm0, %v4784_v51  ;;  %v4768_v54 = vmul.f32 %v4701_v20, %v4558_v13 }
 0x58c   :  { %v6039_v12 = vpop.f32.mrf.mxu0  ;;  %6074 = vmatmul.mubr.msk.bf16.gmra.mxu0 %vm179_vm0, %v4785_v35  ;;  %v4771_v27 = vmul.f32 %v4707_v25, %v4608_v6  ;;  %v5259_v6 = vld [vmem:[%s8789_s8 + $0x38] sm:$0xff] }
 0x58d   :  { %v6046_v52 = vpop.f32.mrf.mxu1 }
 0x58e   :  { %v4561_v50 = vpop.f32.mrf.mxu0  ;;  %v4787_v15 = vpack.c.bf16 %v4771_v27, %v4770_v4  ;;  %v5257_v27 = vld [vmem:[%s8789_s8 + $0x28] sm:$0xff] }
 0x58f   :  { %v4769_v32 = vmul.f32 %v4703_v38, %v4561_v50  ;;  %v6085_v61 = vpop.f32.mrf.mxu1 }
 0x590   :  { %v6040_v42 = vpop.f32.mrf.mxu0 }
 0x591   :  { %v4786_v57 = vpack.c.bf16 %v4769_v32, %v4768_v54  ;;  %v5086_v62 = vpop.f32.mrf.mxu1 }
 0x593   :  { %6077 = vmatprep.mubr.msk.bf16.mxu0 %vm179_vm0, %v4786_v57  ;;  %v6086_v53 = vpop.f32.mrf.mxu1  ;;  %v5262_v57 = vld [vmem:[%s8789_s8 + $0x50] sm:$0xff] }
 0x594   :  { %6078 = vmatmul.mubr.msk.bf16.gmra.mxu0 %vm179_vm0, %v4787_v15 }
 0x595   :  { %v5089_v7 = vpop.f32.mrf.mxu1 }
 0x597   :  { %v6089_v37 = vpop.f32.mrf.mxu1 }
 0x599   :  { %v5102_v18 = vpop.f32.mrf.mxu1 }
 0x59b   :  { %v6090_v10 = vpop.f32.mrf.mxu1 }
 0x59d   :  { %v5105_v31 = vpop.f32.mrf.mxu1 }
 0x59f   :  { %v6093_v39 = vpop.f32.mrf.mxu1 }
 0x5a1   :  { %v8484_v0 = vpop.f32.mrf.mxu1 }
 0x5a3   :  { %v8486_v16 = vpop.f32.mrf.mxu1 }
 0x5a5   :  { %v8488_v41 = vpop.f32.mrf.mxu1 }
 0x5a7   :  { %v8490_v23 = vpop.f32.mrf.mxu1 }
 0x5a9   :  { %v8492_v9 = vpop.f32.mrf.mxu1 }
 0x5ab   :  { %v8494_v30 = vpop.f32.mrf.mxu1 }
 0x5ad   :  { %v8501_v48 = vpop.f32.mrf.mxu1 }
 0x5af   :  { %v8511_v49 = vpop.f32.mrf.mxu1 }
 0x5b1   :  { %v8529_v36 = vpop.f32.mrf.mxu1 }
 0x5b3   :  { %v8547_v13 = vpop.f32.mrf.mxu1 }
 0x5b5   :  { %v8565_v42 = vpop.f32.mrf.mxu1 }
 0x618   :  { %v6051_v24 = vpop.f32.mrf.mxu0 }
 0x619   :  { %v5095_v11 = vadd.f32 %v6085_v61, %v6051_v24 }
 0x61a   :  { %v4874_v22 = vpop.f32.mrf.mxu0 }
 0x61b   :  { %v5222_v28 = vadd.f32 %v8499_v46, %v5095_v11  ;;  %v5087_v58 = vadd.f32 %v5086_v62, %v4874_v22 }
 0x61c   :  { %v6052_v44 = vpop.f32.mrf.mxu0 }
 0x61d   :  { %v5286_v34 = vadd.f32 %v5254_v29, %v5222_v28  ;;  %v5220_v1 = vadd.f32 %v8499_v46, %v5087_v58  ;;  %v5098_v19 = vadd.f32 %v6086_v53, %v6052_v44 }
 0x61e   :  { %v4877_v26 = vpop.f32.mrf.mxu0 }
 0x61f   :  { %5318 = vst.msk [vmem:[%s8790_s9 + $0x10] sm:$0xff] %vm1360_vm2, %v5286_v34  ;;  %v5284_v60 = vadd.f32 %v5252_v21, %v5220_v1  ;;  %v5223_v2 = vadd.f32 %v8499_v46, %v5098_v19  ;;  %v5090_v3 = vadd.f32 %v5089_v7, %v4877_v26  ;;  %v5260_v7 = vld [vmem:[%s8789_s8 + $0x40] sm:$0xff] }
 0x620   :  { %v6055_v43 = vpop.f32.mrf.mxu0 }
 0x621   :  { %5316 = vst.msk [vmem:[%s8790_s9] sm:$0xff] %vm1360_vm2, %v5284_v60  ;;  %v5287_v33 = vadd.f32 %v5255_v14, %v5223_v2  ;;  %v5221_v40 = vadd.f32 %v8499_v46, %v5090_v3  ;;  %v5111_v38 = vadd.f32 %v6089_v37, %v6055_v43 }
 0x622   :  { %v4890_v20 = vpop.f32.mrf.mxu0 }
 0x623   :  { %5319 = vst.msk [vmem:[%s8790_s9 + $0x18] sm:$0xff] %vm1360_vm2, %v5287_v33  ;;  %v5285_v45 = vadd.f32 %v5253_v47, %v5221_v40  ;;  %v5226_v56 = vadd.f32 %v8499_v46, %v5111_v38  ;;  %v5103_v5 = vadd.f32 %v5102_v18, %v4890_v20 }
 0x624   :  { %v6056_v8 = vpop.f32.mrf.mxu0 }
 0x625   :  { %5317 = vst.msk [vmem:[%s8790_s9 + $0x8] sm:$0xff] %vm1360_vm2, %v5285_v45  ;;  %v5290_v51 = vadd.f32 %v5258_v63, %v5226_v56  ;;  %v5224_v59 = vadd.f32 %v8499_v46, %v5103_v5  ;;  %v5114_v35 = vadd.f32 %v6090_v10, %v6056_v8 }
 0x626   :  { %v4893_v25 = vpop.f32.mrf.mxu0 }
 0x627   :  { %5322 = vst.msk [vmem:[%s8790_s9 + $0x30] sm:$0xff] %vm1360_vm2, %v5290_v51  ;;  %v5288_v12 = vadd.f32 %v5256_v17, %v5224_v59  ;;  %v5227_v55 = vadd.f32 %v8499_v46, %v5114_v35  ;;  %v5106_v52 = vadd.f32 %v5105_v31, %v4893_v25  ;;  %v5270_v51 = vld [vmem:[%s8789_s8 + $0x90] sm:$0xff]  ;;  %v5268_v25 = vld [vmem:[%s8789_s8 + $0x80] sm:$0xff] }
 0x628   :  { %v6059_v50 = vpop.f32.mrf.mxu0 }
 0x629   :  { %5320 = vst.msk [vmem:[%s8790_s9 + $0x20] sm:$0xff] %vm1360_vm2, %v5288_v12  ;;  %v5291_v54 = vadd.f32 %v5259_v6, %v5227_v55  ;;  %v5225_v32 = vadd.f32 %v8499_v46, %v5106_v52  ;;  %v5127_v4 = vadd.f32 %v6093_v39, %v6059_v50  ;;  %v8585_v39 = vpop.f32.mrf.mxu1  ;;  %v5271_v50 = vld [vmem:[%s8789_s8 + $0x98] sm:$0xff] }
 0x62a   :  { %v4906_v15 = vpop.f32.mrf.mxu0 }
 0x62b   :  { %5323 = vst.msk [vmem:[%s8790_s9 + $0x38] sm:$0xff] %vm1360_vm2, %v5291_v54  ;;  %v5289_v61 = vadd.f32 %v5257_v27, %v5225_v32  ;;  %v5230_v62 = vadd.f32 %v8499_v46, %v5127_v4  ;;  %v5119_v53 = vadd.f32 %v8484_v0, %v4906_v15  ;;  %v5263_v0 = vld [vmem:[%s8789_s8 + $0x58] sm:$0xff]  ;;  %v5166_v34 = vpop.f32.mrf.mxu1 }
 0x62c   :  { %v6060_v37 = vpop.f32.mrf.mxu0 }
 0x62d   :  { %5321 = vst.msk [vmem:[%s8790_s9 + $0x28] sm:$0xff] %vm1360_vm2, %v5289_v61  ;;  %v5294_v18 = vadd.f32 %v5262_v57, %v5230_v62  ;;  %v5228_v10 = vadd.f32 %v8499_v46, %v5119_v53  ;;  %v5130_v31 = vadd.f32 %v8486_v16, %v6060_v37  ;;  %v5261_v16 = vld [vmem:[%s8789_s8 + $0x48] sm:$0xff]  ;;  %v6106_v43 = vpop.f32.mrf.mxu1 }
 0x62e   :  { %v4909_v24 = vpop.f32.mrf.mxu0 }
 0x62f   :  { %5326 = vst.msk [vmem:[%s8790_s9 + $0x50] sm:$0xff] %vm1360_vm2, %v5294_v18  ;;  %v5292_v11 = vadd.f32 %v5260_v7, %v5228_v10  ;;  %v5231_v29 = vadd.f32 %v8499_v46, %v5130_v31  ;;  %v5122_v22 = vadd.f32 %v8488_v41, %v4909_v24  ;;  %v5266_v41 = vld [vmem:[%s8789_s8 + $0x70] sm:$0xff]  ;;  %v5169_v56 = vpop.f32.mrf.mxu1  ;;  %v5272_v31 = vld [vmem:[%s8789_s8 + $0xa0] sm:$0xff] }
 0x630   :  { %v6063_v28 = vpop.f32.mrf.mxu0 }
 0x631   :  { %5324 = vst.msk [vmem:[%s8790_s9 + $0x40] sm:$0xff] %vm1360_vm2, %v5292_v11  ;;  %v5295_v58 = vadd.f32 %v5263_v0, %v5231_v29  ;;  %v5229_v21 = vadd.f32 %v8499_v46, %v5122_v22  ;;  %v5143_v44 = vadd.f32 %v8490_v23, %v6063_v28  ;;  %v5264_v23 = vld [vmem:[%s8789_s8 + $0x60] sm:$0xff]  ;;  %v6109_v8 = vpop.f32.mrf.mxu1  ;;  %v5275_v22 = vld [vmem:[%s8789_s8 + $0xb8] sm:$0xff] }
 0x632   :  { %v4922_v1 = vpop.f32.mrf.mxu0 }
 0x633   :  { %5327 = vst.msk [vmem:[%s8790_s9 + $0x58] sm:$0xff] %vm1360_vm2, %v5295_v58  ;;  %v5293_v19 = vadd.f32 %v5261_v16, %v5229_v21  ;;  %v5234_v14 = vadd.f32 %v8499_v46, %v5143_v44  ;;  %v5135_v26 = vadd.f32 %v8492_v9, %v4922_v1  ;;  %v5267_v9 = vld [vmem:[%s8789_s8 + $0x78] sm:$0xff]  ;;  %v5182_v27 = vpop.f32.mrf.mxu1  ;;  %v5273_v44 = vld [vmem:[%s8789_s8 + $0xa8] sm:$0xff] }
 0x634   :  { %v6064_v60 = vpop.f32.mrf.mxu0 }
 0x635   :  { %5325 = vst.msk [vmem:[%s8790_s9 + $0x48] sm:$0xff] %vm1360_vm2, %v5293_v19  ;;  %v5298_v2 = vadd.f32 %v5266_v41, %v5234_v14  ;;  %v5232_v3 = vadd.f32 %v8499_v46, %v5135_v26  ;;  %v5146_v47 = vadd.f32 %v8494_v30, %v6064_v60  ;;  %v5265_v30 = vld [vmem:[%s8789_s8 + $0x68] sm:$0xff]  ;;  %v6110_v53 = vpop.f32.mrf.mxu1  ;;  %v5278_v26 = vld [vmem:[%s8789_s8 + $0xd0] sm:$0xff] }
 0x636   :  { %v4925_v33 = vpop.f32.mrf.mxu0 }
 0x637   :  { %5330 = vst.msk [vmem:[%s8790_s9 + $0x70] sm:$0xff] %vm1360_vm2, %v5298_v2  ;;  %v5296_v40 = vadd.f32 %v5264_v23, %v5232_v3  ;;  %v5235_v38 = vadd.f32 %v8499_v46, %v5146_v47  ;;  %v5138_v63 = vadd.f32 %v8501_v48, %v4925_v33  ;;  %v5185_v29 = vpop.f32.mrf.mxu1  ;;  %v5276_v47 = vld [vmem:[%s8789_s8 + $0xc0] sm:$0xff] }
 0x639   :  { %5328 = vst.msk [vmem:[%s8790_s9 + $0x60] sm:$0xff] %vm1360_vm2, %v5296_v40  ;;  %v5299_v20 = vadd.f32 %v5267_v9, %v5235_v38  ;;  %v5233_v45 = vadd.f32 %v8499_v46, %v5138_v63  ;;  %v6113_v14 = vpop.f32.mrf.mxu1  ;;  %v5279_v63 = vld [vmem:[%s8789_s8 + $0xd8] sm:$0xff] }
 0x63b   :  { %5331 = vst.msk [vmem:[%s8790_s9 + $0x78] sm:$0xff] %vm1360_vm2, %v5299_v20  ;;  %v5297_v5 = vadd.f32 %v5265_v30, %v5233_v45  ;;  %v5198_v38 = vpop.f32.mrf.mxu1 }
 0x63c   :  { %v6067_v48 = vpop.f32.mrf.mxu0 }
 0x63d   :  { %5329 = vst.msk [vmem:[%s8790_s9 + $0x68] sm:$0xff] %vm1360_vm2, %v5297_v5  ;;  %v5159_v17 = vadd.f32 %v8511_v49, %v6067_v48  ;;  %v5277_v5 = vld [vmem:[%s8789_s8 + $0xc8] sm:$0xff] }
 0x63e   :  { %v4938_v59 = vpop.f32.mrf.mxu0 }
 0x63f   :  { %v5238_v35 = vadd.f32 %v8499_v46, %v5159_v17  ;;  %v5151_v6 = vadd.f32 %v8529_v36, %v4938_v59  ;;  %v6114_v59 = vpop.f32.mrf.mxu1 }
 0x640   :  { %v6068_v12 = vpop.f32.mrf.mxu0 }
 0x641   :  { %v5302_v55 = vadd.f32 %v5270_v51, %v5238_v35  ;;  %v5236_v52 = vadd.f32 %v8499_v46, %v5151_v6  ;;  %v5162_v49 = vadd.f32 %v8547_v13, %v6068_v12  ;;  %v5269_v13 = vld [vmem:[%s8789_s8 + $0x88] sm:$0xff]  ;;  %v5282_v35 = vld [vmem:[%s8789_s8 + $0xf0] sm:$0xff] }
 0x642   :  { %v4941_v54 = vpop.f32.mrf.mxu0 }
 0x643   :  { %5334 = vst.msk [vmem:[%s8790_s9 + $0x90] sm:$0xff] %vm1360_vm2, %v5302_v55  ;;  %v5300_v36 = vadd.f32 %v5268_v25, %v5236_v52  ;;  %v5239_v32 = vadd.f32 %v8499_v46, %v5162_v49  ;;  %v5154_v4 = vadd.f32 %v8565_v42, %v4941_v54  ;;  %v5274_v42 = vld [vmem:[%s8789_s8 + $0xb0] sm:$0xff]  ;;  %v5280_v52 = vld [vmem:[%s8789_s8 + $0xe0] sm:$0xff] }
 0x644   :  { %v6071_v57 = vpop.f32.mrf.mxu0 }
 0x645   :  { %5332 = vst.msk [vmem:[%s8790_s9 + $0x80] sm:$0xff] %vm1360_vm2, %v5300_v36  ;;  %v5303_v15 = vadd.f32 %v5271_v50, %v5239_v32  ;;  %v5237_v61 = vadd.f32 %v8499_v46, %v5154_v4  ;;  %v5175_v62 = vadd.f32 %v8585_v39, %v6071_v57  ;;  %v5201_v36 = vpop.f32.mrf.mxu1  ;;  %v5283_v32 = vld [vmem:[%s8789_s8 + $0xf8] sm:$0xff] }
 0x646   :  { %v4954_v7 = vpop.f32.mrf.mxu0 }
 0x647   :  { %5335 = vst.msk [vmem:[%s8790_s9 + $0x98] sm:$0xff] %vm1360_vm2, %v5303_v15  ;;  %v5301_v37 = vadd.f32 %v5269_v13, %v5237_v61  ;;  %v5242_v18 = vadd.f32 %v8499_v46, %v5175_v62  ;;  %v5167_v10 = vadd.f32 %v5166_v34, %v4954_v7  ;;  %v5281_v61 = vld [vmem:[%s8789_s8 + $0xe8] sm:$0xff] }
 0x648   :  { %v6072_v39 = vpop.f32.mrf.mxu0 }
 0x649   :  { %5333 = vst.msk [vmem:[%s8790_s9 + $0x88] sm:$0xff] %vm1360_vm2, %v5301_v37  ;;  %v5306_v0 = vadd.f32 %v5274_v42, %v5242_v18  ;;  %v5240_v24 = vadd.f32 %v8499_v46, %v5167_v10  ;;  %v5178_v11 = vadd.f32 %v6106_v43, %v6072_v39 }
 0x64a   :  { %v4957_v16 = vpop.f32.mrf.mxu0 }
 0x64b   :  { %5338 = vst.msk [vmem:[%s8790_s9 + $0xb0] sm:$0xff] %vm1360_vm2, %v5306_v0  ;;  %v5304_v28 = vadd.f32 %v5272_v31, %v5240_v24  ;;  %v5243_v58 = vadd.f32 %v8499_v46, %v5178_v11  ;;  %v5170_v21 = vadd.f32 %v5169_v56, %v4957_v16 }
 0x64c   :  { %v6075_v34 = vpop.f32.mrf.mxu0 }
 0x64d   :  { %5336 = vst.msk [vmem:[%s8790_s9 + $0xa0] sm:$0xff] %vm1360_vm2, %v5304_v28  ;;  %v5307_v41 = vadd.f32 %v5275_v22, %v5243_v58  ;;  %v5241_v1 = vadd.f32 %v8499_v46, %v5170_v21  ;;  %v5191_v19 = vadd.f32 %v6109_v8, %v6075_v34 }
 0x64e   :  { %v4970_v23 = vpop.f32.mrf.mxu0 }
 0x64f   :  { %5339 = vst.msk [vmem:[%s8790_s9 + $0xb8] sm:$0xff] %vm1360_vm2, %v5307_v41  ;;  %v5305_v60 = vadd.f32 %v5273_v44, %v5241_v1  ;;  %v5246_v2 = vadd.f32 %v8499_v46, %v5191_v19  ;;  %v5183_v3 = vadd.f32 %v5182_v27, %v4970_v23 }
 0x650   :  { %v6076_v43 = vpop.f32.mrf.mxu0 }
 0x651   :  { %5337 = vst.msk [vmem:[%s8790_s9 + $0xa8] sm:$0xff] %vm1360_vm2, %v5305_v60  ;;  %v5310_v9 = vadd.f32 %v5278_v26, %v5246_v2  ;;  %v5244_v33 = vadd.f32 %v8499_v46, %v5183_v3  ;;  %v5194_v40 = vadd.f32 %v6110_v53, %v6076_v43 }
 0x652   :  { %v4973_v30 = vpop.f32.mrf.mxu0 }
 0x653   :  { %5342 = vst.msk [vmem:[%s8790_s9 + $0xd0] sm:$0xff] %vm1360_vm2, %v5310_v9  ;;  %v5308_v20 = vadd.f32 %v5276_v47, %v5244_v33  ;;  %v5247_v45 = vadd.f32 %v8499_v46, %v5194_v40  ;;  %v5186_v56 = vadd.f32 %v5185_v29, %v4973_v30 }
 0x654   :  { %v6079_v48 = vpop.f32.mrf.mxu0 }
 0x655   :  { %5340 = vst.msk [vmem:[%s8790_s9 + $0xc0] sm:$0xff] %vm1360_vm2, %v5308_v20  ;;  %v5311_v17 = vadd.f32 %v5279_v63, %v5247_v45  ;;  %v5245_v8 = vadd.f32 %v8499_v46, %v5186_v56  ;;  %v5207_v51 = vadd.f32 %v6113_v14, %v6079_v48 }
 0x656   :  { %v4986_v6 = vpop.f32.mrf.mxu0 }
 0x657   :  { %5343 = vst.msk [vmem:[%s8790_s9 + $0xd8] sm:$0xff] %vm1360_vm2, %v5311_v17  ;;  %v5309_v25 = vadd.f32 %v5277_v5, %v5245_v8  ;;  %v5250_v12 = vadd.f32 %v8499_v46, %v5207_v51  ;;  %v5199_v55 = vadd.f32 %v5198_v38, %v4986_v6 }
 0x658   :  { %v6080_v49 = vpop.f32.mrf.mxu0 }
 0x659   :  { %5341 = vst.msk [vmem:[%s8790_s9 + $0xc8] sm:$0xff] %vm1360_vm2, %v5309_v25  ;;  %v5314_v27 = vadd.f32 %v5282_v35, %v5250_v12  ;;  %v5248_v50 = vadd.f32 %v8499_v46, %v5199_v55  ;;  %v5210_v54 = vadd.f32 %v6114_v59, %v6080_v49 }
 0x65a   :  { %v4989_v4 = vpop.f32.mrf.mxu0 }
 0x65b   :  { %5346 = vst.msk [vmem:[%s8790_s9 + $0xf0] sm:$0xff] %vm1360_vm2, %v5314_v27  ;;  %v5312_v13 = vadd.f32 %v5280_v52, %v5248_v50  ;;  %v5251_v57 = vadd.f32 %v8499_v46, %v5210_v54  ;;  %v5202_v15 = vadd.f32 %v5201_v36, %v4989_v4 }
 0x65d   :  { %5344 = vst.msk [vmem:[%s8790_s9 + $0xe0] sm:$0xff] %vm1360_vm2, %v5312_v13  ;;  %v5315_v62 = vadd.f32 %v5283_v32, %v5251_v57  ;;  %v5249_v53 = vadd.f32 %v8499_v46, %v5202_v15 }
 0x65f   :  { %5347 = vst.msk [vmem:[%s8790_s9 + $0xf8] sm:$0xff] %vm1360_vm2, %v5315_v62  ;;  %v5313_v42 = vadd.f32 %v5281_v61, %v5249_v53 }
 0x661   :  { %5345 = vst.msk [vmem:[%s8790_s9 + $0xe8] sm:$0xff] %vm1360_vm2, %v5313_v42 }

</bundles_post_ra>
